<compile_context>
chip_gen: v5e
topology: v5e:2x2
jax: 0.10.0
libtpu: 0.0.40
codegen_flags: <defaults>
</compile_context>

<pallas_src>
import math
import jax
import jax.numpy as jnp
from jax.experimental import pallas as pl
from jax.experimental.pallas import tpu as pltpu


# ---------------------------------------------------------------------------
# Pallas kernel: fused  (im2col A) @ W  ->  training-mode BN -> affine -> relu
# (conv bias omitted: it is cancelled exactly by the BN mean subtraction)
# ---------------------------------------------------------------------------
def _conv_bn_relu_kernel(a_ref, w_ref, gb_ref, o_ref):
    """A:(M,K) bf16, W:(K,tn) bf16 -> f32 acc; per-column (channel) BN with
    batch stats (biased var, eps=1e-5); gamma*x+beta; relu."""
    y = jnp.dot(a_ref[...], w_ref[...], preferred_element_type=jnp.float32)
    mean = jnp.mean(y, axis=0, keepdims=True)
    var = jnp.mean((y - mean) ** 2, axis=0, keepdims=True)   # biased, like torch BN
    inv = jax.lax.rsqrt(var + 1e-5)
    gamma = gb_ref[0:1, :]
    beta = gb_ref[1:2, :]
    o_ref[...] = jnp.maximum((y - mean) * inv * gamma + beta, 0.0)


def conv_bn_relu(a_bf16, w_bf16, gb):
    """a_bf16:(M,K) bf16 im2col patches, w_bf16:(K,N) bf16 conv weight matrix,
    gb:(2,N) f32 packed [gamma; beta].  Returns relu(gamma*BN(a@w)+beta) f32,
    shape (M,N).  Grid tiles only N (never M: BN stats must stay batch-wide)."""
    M, K = a_bf16.shape
    K2, N = w_bf16.shape
    assert K == K2 and gb.shape == (2, N)

    tn = 256 if N % 256 == 0 else N           # MXU-aligned column tile
    grid_n = N // tn

    # Re-derived VMEM budget: double-buffered blocks with sublane padding
    # (bf16 packs to 16-row tiles, f32 to 8-row tiles) + slack for internal
    # scratch.  Stays far below v7x's 64 MiB physical VMEM at this size.
    m16 = ((M + 15) // 16) * 16
    m8 = ((M + 7) // 8) * 8
    est = 2 * (m16 * K * 2 + K * tn * 2 + m8 * tn * 4 + 8 * tn * 4)
    vmem_limit = min(est + (4 << 20), 48 << 20)

    return pl.pallas_call(
        _conv_bn_relu_kernel,
        out_shape=jax.ShapeDtypeStruct((M, N), jnp.float32),
        grid=(grid_n,),
        in_specs=[pl.BlockSpec((M, K), lambda j: (0, 0)),
                  pl.BlockSpec((K, tn), lambda j: (0, j)),
                  pl.BlockSpec((2, tn), lambda j: (0, j))],
        out_specs=pl.BlockSpec((M, tn), lambda j: (0, j)),
        compiler_params=pltpu.CompilerParams(
            dimension_semantics=("parallel",),
            vmem_limit_bytes=vmem_limit),
    )(a_bf16, w_bf16, gb)


# ---------------------------------------------------------------------------
# Glue (im2col / weight layout / parameter setup) in plain JAX
# ---------------------------------------------------------------------------
def im2col_1d(x_btc, ksize):
    """x:(B,L,C) -> patches:(B*(L-k+1), k*C) with (k, c) ordering per patch."""
    B, L, C = x_btc.shape
    Lout = L - ksize + 1
    patches = jnp.stack([x_btc[:, k:k + Lout, :] for k in range(ksize)], axis=2)
    return patches.reshape(B * Lout, ksize * C), Lout


def conv_w_to_mat(w):
    """torch Conv1d weight (Cout, Cin, K) -> matmul weight (K*Cin, Cout)."""
    Cout, Cin, K = w.shape
    return jnp.transpose(w, (2, 1, 0)).reshape(K * Cin, Cout)


def init_params(key, num_classes=5, num_kp=5):
    ks = jax.random.split(key, 8)

    def conv_w(kw, cout, cin, ksz):
        bound = 1.0 / math.sqrt(cin * ksz)
        return jax.random.uniform(kw, (cout, cin, ksz), minval=-bound,
                                  maxval=bound, dtype=jnp.float32)

    p = {}
    # Conv biases intentionally omitted: a bias added before training-mode BN
    # is cancelled exactly by the per-channel mean subtraction.
    w1 = conv_w(ks[0], 512, 2048, 3)
    w2 = conv_w(ks[1], 128, 512, 3)
    # Hoisted relayout + bf16 cast: done once here, NOT per forward call.
    p["conv1_wmat"] = conv_w_to_mat(w1).astype(jnp.bfloat16)     # (6144, 512)
    p["conv2_wmat"] = conv_w_to_mat(w2).astype(jnp.bfloat16)     # (1536, 128)

    bound = 1.0 / math.sqrt(128)
    p["fc_w"] = jax.random.uniform(ks[2], (num_classes, 128), minval=-bound,
                                   maxval=bound, dtype=jnp.float32)
    p["fc_b"] = jax.random.uniform(ks[3], (num_classes,), minval=-bound,
                                   maxval=bound, dtype=jnp.float32)

    kp_bound = 1.0 / math.sqrt(128 * 1)
    kp_w = jax.random.uniform(ks[4], (num_kp, 128, 1), minval=-kp_bound,
                              maxval=kp_bound, dtype=jnp.float32)
    p["kp_wmat"] = conv_w_to_mat(kp_w)                           # (128, num_kp)
    p["kp_b"] = jax.random.uniform(ks[5], (num_kp,), minval=-kp_bound,
                                   maxval=kp_bound, dtype=jnp.float32)

    # DIAL gamma ~ U[0,1), beta = 0 (reset_parameters); packed as (2, C).
    p["bn1_gb"] = jnp.concatenate(
        [jax.random.uniform(ks[6], (1, 512), dtype=jnp.float32),
         jnp.zeros((1, 512), jnp.float32)], axis=0)
    p["bn2_gb"] = jnp.concatenate(
        [jax.random.uniform(ks[7], (1, 128), dtype=jnp.float32),
         jnp.zeros((1, 128), jnp.float32)], axis=0)
    return p


def baseline_forward(params, x, is_source=True):
    """x: (B, L, 2048) — matches torch `input` (permuted to NCT inside torch).
    is_source is effectively True for the default config (dial=False)."""
    del is_source
    B, L, _ = x.shape
    x16 = x.astype(jnp.bfloat16)                                 # cast once

    # conv1 (2048 -> 512, k=3) + DIAL1d BN + relu, fused
    a1, T1 = im2col_1d(x16, 3)                                   # (B*T1, 6144) bf16
    r1 = conv_bn_relu(a1, params["conv1_wmat"], params["bn1_gb"])  # (B*T1, 512) f32
    r1_btc = r1.reshape(B, T1, 512)

    # conv2 (512 -> 128, k=3) + DIAL1d BN + relu, fused
    a2, T2 = im2col_1d(r1_btc.astype(jnp.bfloat16), 3)           # (B*T2, 1536) bf16
    r2 = conv_bn_relu(a2, params["conv2_wmat"], params["bn2_gb"])  # (B*T2, 128) f32
    feat_btc = r2.reshape(B, T2, 128)

    # torch: out = relu1_nct.view(B, feat_C=128, -1).mean(-1)
    r1_nct = jnp.transpose(r1_btc, (0, 2, 1))                    # (B, 512, T1)
    pooled = r1_nct.reshape(B, 128, -1).mean(-1)                 # (B, 128)

    # fc + kp heads in plain jnp (N=5 is lane-sparse; XLA fuses these cheaply)
    out = pooled @ params["fc_w"].T + params["fc_b"]             # (B, num_classes)
    kp_flat = r2 @ params["kp_wmat"] + params["kp_b"]            # (B*T2, num_kp)
    kp = jnp.transpose(kp_flat.reshape(B, T2, -1), (0, 2, 1))    # (B, num_kp, T2)

    feat = jnp.transpose(feat_btc, (0, 2, 1))                    # (B, 128, T2)
    return out, kp, feat


if __name__ == "__main__":
    key = jax.random.PRNGKey(0)
    k_params, k_x = jax.random.split(key)
    params = init_params(k_params)

    B, L = 2, 8                      # input: (B, L, 2048); conv lengths L-2=6, L-4=4
    x = jax.random.normal(k_x, (B, L, 2048), dtype=jnp.float32)

    fwd = jax.jit(lambda p, xx: baseline_forward(p, xx, is_source=True))
    out, kp, feat = fwd(params, x)
    jax.block_until_ready((out, kp, feat))

    assert out.shape == (B, 5)
    assert kp.shape == (B, 5, L - 4)
    assert feat.shape == (B, 128, L - 4)
    assert bool(jnp.all(jnp.isfinite(out))) and bool(jnp.all(jnp.isfinite(kp)))
    assert bool(jnp.all(jnp.isfinite(feat)))
    print("KERNEL_OK")
</pallas_src>

<mosaic_0001>
module attributes {stable_mosaic.version = 11 : i64} {
  func.func @_conv_bn_relu_kernel(%arg0: i32, %arg1: memref<8x1536xbf16, #tpu.memory_space<vmem>>, %arg2: memref<1536x128xbf16, #tpu.memory_space<vmem>>, %arg3: memref<2x128xf32, #tpu.memory_space<vmem>>, %arg4: memref<8x128xf32, #tpu.memory_space<vmem>>) attributes {dimension_semantics = [#tpu.dimension_semantics<parallel>], iteration_bounds = array<i64: 1>, scalar_prefetch = 0 : i64, scratch_operands = 0 : i64, tpu.core_type = #tpu.core_type<tc>, window_params = [{pipeline_mode = #tpu.pipeline_mode<synchronous>, transform_indices = @transform_0, window_bounds = array<i64: 8, 1536>}, {transform_indices = @transform_1, window_bounds = array<i64: 1536, 128>}, {transform_indices = @transform_2, window_bounds = array<i64: 2, 128>}, {transform_indices = @transform_3, window_bounds = array<i64: 8, 128>}]} {
    %c0 = arith.constant 0 : index
    %c0_0 = arith.constant 0 : index
    %0 = vector.load %arg1[%c0, %c0_0] : memref<8x1536xbf16, #tpu.memory_space<vmem>>, vector<8x1536xbf16>
    %c0_1 = arith.constant 0 : index
    %c0_2 = arith.constant 0 : index
    %1 = vector.load %arg2[%c0_1, %c0_2] : memref<1536x128xbf16, #tpu.memory_space<vmem>>, vector<1536x128xbf16>
    %cst = arith.constant dense<0.000000e+00> : vector<8x128xf32>
    %2 = tpu.matmul %0, %1, %cst {dimension_numbers = #tpu.dot_dimension_numbers<[1], [0], [0], [1], [0, 0, 1, 1], [], []>} : vector<8x1536xbf16>, vector<1536x128xbf16>, vector<8x128xf32> -> vector<8x128xf32>
    %cst_3 = arith.constant dense<0.000000e+00> : vector<128xf32>
    %3 = vector.multi_reduction <add>, %2, %cst_3 [0] : vector<8x128xf32> to vector<128xf32>
    %4 = vector.shape_cast %3 : vector<128xf32> to vector<1x128xf32>
    %cst_4 = arith.constant 8.000000e+00 : f32
    %5 = vector.broadcast %cst_4 : f32 to vector<1x128xf32>
    %6 = arith.divf %4, %5 : vector<1x128xf32>
    %7 = vector.broadcast %6 : vector<1x128xf32> to vector<8x128xf32>
    %8 = arith.subf %2, %7 : vector<8x128xf32>
    %9 = arith.mulf %8, %8 : vector<8x128xf32>
    %cst_5 = arith.constant dense<0.000000e+00> : vector<128xf32>
    %10 = vector.multi_reduction <add>, %9, %cst_5 [0] : vector<8x128xf32> to vector<128xf32>
    %11 = vector.shape_cast %10 : vector<128xf32> to vector<1x128xf32>
    %cst_6 = arith.constant 8.000000e+00 : f32
    %12 = vector.broadcast %cst_6 : f32 to vector<1x128xf32>
    %13 = arith.divf %11, %12 : vector<1x128xf32>
    %cst_7 = arith.constant 9.99999974E-6 : f32
    %14 = vector.broadcast %cst_7 : f32 to vector<1x128xf32>
    %15 = arith.addf %13, %14 : vector<1x128xf32>
    %16 = math.rsqrt %15 : vector<1x128xf32>
    %c0_8 = arith.constant 0 : index
    %c0_9 = arith.constant 0 : index
    %17 = vector.load %arg3[%c0_8, %c0_9] : memref<2x128xf32, #tpu.memory_space<vmem>>, vector<1x128xf32>
    %c1 = arith.constant 1 : index
    %c0_10 = arith.constant 0 : index
    %18 = vector.load %arg3[%c1, %c0_10] : memref<2x128xf32, #tpu.memory_space<vmem>>, vector<1x128xf32>
    %19 = vector.broadcast %6 : vector<1x128xf32> to vector<8x128xf32>
    %20 = arith.subf %2, %19 : vector<8x128xf32>
    %21 = vector.broadcast %16 : vector<1x128xf32> to vector<8x128xf32>
    %22 = arith.mulf %20, %21 : vector<8x128xf32>
    %23 = vector.broadcast %17 : vector<1x128xf32> to vector<8x128xf32>
    %24 = arith.mulf %22, %23 : vector<8x128xf32>
    %25 = vector.broadcast %18 : vector<1x128xf32> to vector<8x128xf32>
    %26 = arith.addf %24, %25 : vector<8x128xf32>
    %cst_11 = arith.constant 0.000000e+00 : f32
    %27 = vector.broadcast %cst_11 : f32 to vector<8x128xf32>
    %28 = arith.maximumf %26, %27 : vector<8x128xf32>
    %c0_12 = arith.constant 0 : index
    %c0_13 = arith.constant 0 : index
    %29 = vector.load %arg4[%c0_12, %c0_13] : memref<8x128xf32, #tpu.memory_space<vmem>>, vector<8x128xf32>
    tpu.vector_store %arg4[%c0_12, %c0_13], %28 {strides = array<i32>} : memref<8x128xf32, #tpu.memory_space<vmem>>, vector<8x128xf32>,
    return
  }
  func.func @transform_0(%arg0: i32) -> (i32, i32) {
    %c0_i32 = arith.constant 0 : i32
    %c0_i32_0 = arith.constant 0 : i32
    %c0_i32_1 = arith.constant 0 : i32
    return %c0_i32, %c0_i32_0 : i32, i32
  }
  func.func @transform_1(%arg0: i32) -> (i32, i32) {
    %c0_i32 = arith.constant 0 : i32
    %c0_i32_0 = arith.constant 0 : i32
    return %c0_i32, %arg0 : i32, i32
  }
  func.func @transform_2(%arg0: i32) -> (i32, i32) {
    %c0_i32 = arith.constant 0 : i32
    %c0_i32_0 = arith.constant 0 : i32
    return %c0_i32, %arg0 : i32, i32
  }
  func.func @transform_3(%arg0: i32) -> (i32, i32) {
    %c0_i32 = arith.constant 0 : i32
    %c0_i32_0 = arith.constant 0 : i32
    return %c0_i32, %arg0 : i32, i32
  }
}

module attributes {stable_mosaic.version = 11 : i64} {
  func.func @_conv_bn_relu_kernel(%arg0: i32, %arg1: memref<12x6144xbf16, #tpu.memory_space<vmem>>, %arg2: memref<6144x256xbf16, #tpu.memory_space<vmem>>, %arg3: memref<2x256xf32, #tpu.memory_space<vmem>>, %arg4: memref<12x256xf32, #tpu.memory_space<vmem>>) attributes {dimension_semantics = [#tpu.dimension_semantics<parallel>], iteration_bounds = array<i64: 2>, scalar_prefetch = 0 : i64, scratch_operands = 0 : i64, tpu.core_type = #tpu.core_type<tc>, window_params = [{pipeline_mode = #tpu.pipeline_mode<synchronous>, transform_indices = @transform_0, window_bounds = array<i64: 12, 6144>}, {transform_indices = @transform_1, window_bounds = array<i64: 6144, 256>}, {transform_indices = @transform_2, window_bounds = array<i64: 2, 256>}, {transform_indices = @transform_3, window_bounds = array<i64: 12, 256>}]} {
    %c0 = arith.constant 0 : index
    %c0_0 = arith.constant 0 : index
    %0 = vector.load %arg1[%c0, %c0_0] : memref<12x6144xbf16, #tpu.memory_space<vmem>>, vector<12x6144xbf16>
    %c0_1 = arith.constant 0 : index
    %c0_2 = arith.constant 0 : index
    %1 = vector.load %arg2[%c0_1, %c0_2] : memref<6144x256xbf16, #tpu.memory_space<vmem>>, vector<6144x256xbf16>
    %cst = arith.constant dense<0.000000e+00> : vector<12x256xf32>
    %2 = tpu.matmul %0, %1, %cst {dimension_numbers = #tpu.dot_dimension_numbers<[1], [0], [0], [1], [0, 0, 1, 1], [], []>} : vector<12x6144xbf16>, vector<6144x256xbf16>, vector<12x256xf32> -> vector<12x256xf32>
    %cst_3 = arith.constant dense<0.000000e+00> : vector<256xf32>
    %3 = vector.multi_reduction <add>, %2, %cst_3 [0] : vector<12x256xf32> to vector<256xf32>
    %4 = vector.shape_cast %3 : vector<256xf32> to vector<1x256xf32>
    %cst_4 = arith.constant 1.200000e+01 : f32
    %5 = vector.broadcast %cst_4 : f32 to vector<1x256xf32>
    %6 = arith.divf %4, %5 : vector<1x256xf32>
    %7 = vector.broadcast %6 : vector<1x256xf32> to vector<12x256xf32>
    %8 = arith.subf %2, %7 : vector<12x256xf32>
    %9 = arith.mulf %8, %8 : vector<12x256xf32>
    %cst_5 = arith.constant dense<0.000000e+00> : vector<256xf32>
    %10 = vector.multi_reduction <add>, %9, %cst_5 [0] : vector<12x256xf32> to vector<256xf32>
    %11 = vector.shape_cast %10 : vector<256xf32> to vector<1x256xf32>
    %cst_6 = arith.constant 1.200000e+01 : f32
    %12 = vector.broadcast %cst_6 : f32 to vector<1x256xf32>
    %13 = arith.divf %11, %12 : vector<1x256xf32>
    %cst_7 = arith.constant 9.99999974E-6 : f32
    %14 = vector.broadcast %cst_7 : f32 to vector<1x256xf32>
    %15 = arith.addf %13, %14 : vector<1x256xf32>
    %16 = math.rsqrt %15 : vector<1x256xf32>
    %c0_8 = arith.constant 0 : index
    %c0_9 = arith.constant 0 : index
    %17 = vector.load %arg3[%c0_8, %c0_9] : memref<2x256xf32, #tpu.memory_space<vmem>>, vector<1x256xf32>
    %c1 = arith.constant 1 : index
    %c0_10 = arith.constant 0 : index
    %18 = vector.load %arg3[%c1, %c0_10] : memref<2x256xf32, #tpu.memory_space<vmem>>, vector<1x256xf32>
    %19 = vector.broadcast %6 : vector<1x256xf32> to vector<12x256xf32>
    %20 = arith.subf %2, %19 : vector<12x256xf32>
    %21 = vector.broadcast %16 : vector<1x256xf32> to vector<12x256xf32>
    %22 = arith.mulf %20, %21 : vector<12x256xf32>
    %23 = vector.broadcast %17 : vector<1x256xf32> to vector<12x256xf32>
    %24 = arith.mulf %22, %23 : vector<12x256xf32>
    %25 = vector.broadcast %18 : vector<1x256xf32> to vector<12x256xf32>
    %26 = arith.addf %24, %25 : vector<12x256xf32>
    %cst_11 = arith.constant 0.000000e+00 : f32
    %27 = vector.broadcast %cst_11 : f32 to vector<12x256xf32>
    %28 = arith.maximumf %26, %27 : vector<12x256xf32>
    %c0_12 = arith.constant 0 : index
    %c0_13 = arith.constant 0 : index
    %29 = vector.load %arg4[%c0_12, %c0_13] : memref<12x256xf32, #tpu.memory_space<vmem>>, vector<12x256xf32>
    tpu.vector_store %arg4[%c0_12, %c0_13], %28 {strides = array<i32>} : memref<12x256xf32, #tpu.memory_space<vmem>>, vector<12x256xf32>,
    return
  }
  func.func @transform_0(%arg0: i32) -> (i32, i32) {
    %c0_i32 = arith.constant 0 : i32
    %c0_i32_0 = arith.constant 0 : i32
    %c0_i32_1 = arith.constant 0 : i32
    return %c0_i32, %c0_i32_0 : i32, i32
  }
  func.func @transform_1(%arg0: i32) -> (i32, i32) {
    %c0_i32 = arith.constant 0 : i32
    %c0_i32_0 = arith.constant 0 : i32
    return %c0_i32, %arg0 : i32, i32
  }
  func.func @transform_2(%arg0: i32) -> (i32, i32) {
    %c0_i32 = arith.constant 0 : i32
    %c0_i32_0 = arith.constant 0 : i32
    return %c0_i32, %arg0 : i32, i32
  }
  func.func @transform_3(%arg0: i32) -> (i32, i32) {
    %c0_i32 = arith.constant 0 : i32
    %c0_i32_0 = arith.constant 0 : i32
    return %c0_i32, %arg0 : i32, i32
  }
}

</mosaic_0001>

<bundles_post_ra>
// kernel: _lambda_.3
= control target key start
LH: loop header
LB: loop body
LE: loop exit
PB: predicated region body
PF: predicated region fallthrough
CT: control target
= control target key end

     0   :  { %8 = vsyncpa [#allocation3], 0  ;;  %s1660_s0 = inlined_call_operand.vmem [shape: bf16[8,1536], index: 0, kind: input, shape index: {}]   ;;  %s1661_s1 = inlined_call_operand.hbm [shape: bf16[1536,128], index: 1, kind: input, shape index: {}]   ;;  %s1662_s2 = inlined_call_operand.hbm [shape: f32[2,128], index: 2, kind: input, shape index: {}]   ;;  %s1663_s3 = inlined_call_operand.vmem [shape: f32[8,128], index: 3, kind: output, shape index: {}]  }
   0x1   :  { %s16_s14 = sshll.u32 %s1661_s1, 4  ;;  %s17_s14 = int_to_ptr.hbm [resolvable:$true] %s16_s14 }
   0x2   :  { %9 = vsyncpa [#allocation5], 0  ;;  %s1608_s15 = smov [#allocation2]   ;;  %s30_s19 = sshll.u32 %s1662_s2, 4  ;;  %s31_s19 = int_to_ptr.hbm [resolvable:$true] %s30_s19 }
   0x3   :  { %s18_s16 = sshll.u32 %s1608_s15, 4  ;;  %s1609_s20 = smov 64   ;;  %s19_s16 = int_to_ptr.vmem [resolvable:$true] %s18_s16 }
   0x4   :  { %s1610_s21 = smov 4   ;;  %s1611_s22 = smov [#allocation4]  }
   0x5   :  { %24 = dma.hbm_to_vmem [thread:$0]  %s17_s14, 12288, %s19_s16, [#allocation3], %s1609_s20, %s1609_s20, %s1610_s21  }
   0x6   :  { %s32_s23 = sshll.u32 %s1611_s22, 4  ;;  %s33_s23 = int_to_ptr.vmem [resolvable:$true] %s32_s23 }
   0x7   :  { %35 = dma.hbm_to_vmem [thread:$0]  %s31_s19, 32, %s33_s23, [#allocation5]  }
   0x8   :  { %1604 = dma.done.wait [#allocation3], 12288  }
   0x9   :  { %1605 = vsyncadd [#allocation3], 4294955008 }
   0xa   :  { %1606 = dma.done.wait [#allocation5], 32  }
   0xb   :  { %1607 = vsyncadd [#allocation5], 4294967264  ;;  %v1456_v0 = vld [vmem:[#allocation2 + $0x38] sm:$0xff]  ;;  %v1455_v4 = vld [vmem:[#allocation2 + $0x30] sm:$0xff] }
   0xc   :  { %v1464_v1 = vld [vmem:[#allocation2 + $0x78] sm:$0xff]  ;;  %860 = vmatpush.bf16.msra.mxu0 %v1456_v0  ;;  %v1463_v5 = vld [vmem:[#allocation2 + $0x70] sm:$0xff]  ;;  %v1454_v8 = vld [vmem:[#allocation2 + $0x28] sm:$0xff] }
   0xd   :  { %v1472_v2 = vld [vmem:[#allocation2 + $0xb8] sm:$0xff]  ;;  %873 = vmatpush.bf16.msra.mxu1 %v1464_v1  ;;  %v1471_v6 = vld [vmem:[#allocation2 + $0xb0] sm:$0xff]  ;;  %v1462_v9 = vld [vmem:[#allocation2 + $0x68] sm:$0xff] }
   0xe   :  { %v1480_v3 = vld [vmem:[#allocation2 + $0xf8] sm:$0xff]  ;;  %886 = vmatpush.bf16.msra.mxu2 %v1472_v2  ;;  %v1479_v7 = vld [vmem:[#allocation2 + $0xf0] sm:$0xff]  ;;  %v1470_v10 = vld [vmem:[#allocation2 + $0xa8] sm:$0xff] }
   0xf   :  { %899 = vmatpush.bf16.msra.mxu3 %v1480_v3  ;;  %v1478_v11 = vld [vmem:[#allocation2 + $0xe8] sm:$0xff]  ;;  %v1453_v12 = vld [vmem:[#allocation2 + $0x20] sm:$0xff]  ;;  %v1452_v16 = vld [vmem:[#allocation2 + $0x18] sm:$0xff] }
  0x10   :  { %861 = vmatpush.bf16.msra.mxu0 %v1455_v4  ;;  %v1461_v13 = vld [vmem:[#allocation2 + $0x60] sm:$0xff]  ;;  %v1460_v17 = vld [vmem:[#allocation2 + $0x58] sm:$0xff]  ;;  %v1451_v20 = vld [vmem:[#allocation2 + $0x10] sm:$0xff] }
  0x11   :  { %874 = vmatpush.bf16.msra.mxu1 %v1463_v5  ;;  %v1469_v14 = vld [vmem:[#allocation2 + $0xa0] sm:$0xff]  ;;  %v1468_v18 = vld [vmem:[#allocation2 + $0x98] sm:$0xff]  ;;  %v1459_v21 = vld [vmem:[#allocation2 + $0x50] sm:$0xff] }
  0x12   :  { %887 = vmatpush.bf16.msra.mxu2 %v1471_v6  ;;  %v1477_v15 = vld [vmem:[#allocation2 + $0xe0] sm:$0xff]  ;;  %v1476_v19 = vld [vmem:[#allocation2 + $0xd8] sm:$0xff]  ;;  %v1467_v22 = vld [vmem:[#allocation2 + $0x90] sm:$0xff] }
  0x13   :  { %900 = vmatpush.bf16.msra.mxu3 %v1479_v7  ;;  %v1475_v23 = vld [vmem:[#allocation2 + $0xd0] sm:$0xff]  ;;  %v1450_v24 = vld [vmem:[#allocation2 + $0x8] sm:$0xff]  ;;  %v44_v29 = vld [vmem:[%s1660_s0] sm:$0xff] }
  0x14   :  { %862 = vmatpush.bf16.msra.mxu0 %v1454_v8  ;;  %v1458_v25 = vld [vmem:[#allocation2 + $0x48] sm:$0xff]  ;;  %v1449_v30 = vld [vmem:[#allocation2] sm:$0xff]  ;;  %v248_v33 = vunpack.c.l.b16 %v44_v29  ;;  %v249_v37 = vunpack.c.h.b16 %v44_v29  ;;  %v1488_v38 = vld [vmem:[#allocation2 + $0x138] sm:$0xff] }
  0x15   :  { %875 = vmatpush.bf16.msra.mxu1 %v1462_v9  ;;  %v1466_v26 = vld [vmem:[#allocation2 + $0x88] sm:$0xff]  ;;  %v1457_v31 = vld [vmem:[#allocation2 + $0x40] sm:$0xff]  ;;  %v1496_v39 = vld [vmem:[#allocation2 + $0x178] sm:$0xff] }
  0x16   :  { %888 = vmatpush.bf16.msra.mxu2 %v1470_v10  ;;  %v1474_v27 = vld [vmem:[#allocation2 + $0xc8] sm:$0xff]  ;;  %v1465_v34 = vld [vmem:[#allocation2 + $0x80] sm:$0xff]  ;;  %v1504_v40 = vld [vmem:[#allocation2 + $0x1b8] sm:$0xff]  ;;  %v260_v43 = vpack.c.b16 %v248_v33, %v248_v33  ;;  %v261_v45 = vpack.c.b16 %v249_v37, %v249_v37 }
  0x17   :  { %901 = vmatpush.bf16.msra.mxu3 %v1478_v11  ;;  %v45_v28 = vld [vmem:[%s1660_s0 + $0x8] sm:$0xff]  ;;  %v1473_v35 = vld [vmem:[#allocation2 + $0xc0] sm:$0xff]  ;;  %v1512_v41 = vld [vmem:[#allocation2 + $0x1f8] sm:$0xff] }
  0x18   :  { %863 = vmatpush.bf16.msra.mxu0 %v1453_v12  ;;  %v250_v32 = vunpack.c.l.b16 %v45_v28  ;;  %v251_v36 = vunpack.c.h.b16 %v45_v28  ;;  %v1487_v46 = vld [vmem:[#allocation2 + $0x130] sm:$0xff]  ;;  %v1486_v50 = vld [vmem:[#allocation2 + $0x128] sm:$0xff]  ;;  %v1485_v54 = vld [vmem:[#allocation2 + $0x120] sm:$0xff] }
  0x19   :  { %876 = vmatpush.bf16.msra.mxu1 %v1461_v13  ;;  %v1495_v47 = vld [vmem:[#allocation2 + $0x170] sm:$0xff]  ;;  %v1494_v51 = vld [vmem:[#allocation2 + $0x168] sm:$0xff]  ;;  %v1493_v55 = vld [vmem:[#allocation2 + $0x160] sm:$0xff] }
  0x1a   :  { %889 = vmatpush.bf16.msra.mxu2 %v1469_v14  ;;  %v262_v42 = vpack.c.b16 %v250_v32, %v250_v32  ;;  %v263_v44 = vpack.c.b16 %v251_v36, %v251_v36  ;;  %v1503_v48 = vld [vmem:[#allocation2 + $0x1b0] sm:$0xff]  ;;  %v1502_v52 = vld [vmem:[#allocation2 + $0x1a8] sm:$0xff]  ;;  %v1501_v56 = vld [vmem:[#allocation2 + $0x1a0] sm:$0xff] }
  0x1b   :  { %902 = vmatpush.bf16.msra.mxu3 %v1477_v15  ;;  %v1511_v49 = vld [vmem:[#allocation2 + $0x1f0] sm:$0xff]  ;;  %v1510_v53 = vld [vmem:[#allocation2 + $0x1e8] sm:$0xff]  ;;  %v1509_v57 = vld [vmem:[#allocation2 + $0x1e0] sm:$0xff] }
  0x1c   :  { %864 = vmatpush.bf16.msra.mxu0 %v1452_v16  ;;  %v1484_v58 = vld [vmem:[#allocation2 + $0x118] sm:$0xff]  ;;  %v1483_v62 = vld [vmem:[#allocation2 + $0x110] sm:$0xff]  ;;  %v1482_v2 = vld [vmem:[#allocation2 + $0x108] sm:$0xff] }
  0x1d   :  { %877 = vmatpush.bf16.msra.mxu1 %v1460_v17  ;;  %v1492_v59 = vld [vmem:[#allocation2 + $0x158] sm:$0xff]  ;;  %v1491_v63 = vld [vmem:[#allocation2 + $0x150] sm:$0xff]  ;;  %v1490_v3 = vld [vmem:[#allocation2 + $0x148] sm:$0xff] }
  0x1e   :  { %890 = vmatpush.bf16.msra.mxu2 %v1468_v18  ;;  %v1500_v60 = vld [vmem:[#allocation2 + $0x198] sm:$0xff]  ;;  %v1499_v0 = vld [vmem:[#allocation2 + $0x190] sm:$0xff]  ;;  %v1498_v4 = vld [vmem:[#allocation2 + $0x188] sm:$0xff] }
  0x1f   :  { %903 = vmatpush.bf16.msra.mxu3 %v1476_v19  ;;  %v1508_v61 = vld [vmem:[#allocation2 + $0x1d8] sm:$0xff]  ;;  %v1507_v1 = vld [vmem:[#allocation2 + $0x1d0] sm:$0xff]  ;;  %v1506_v5 = vld [vmem:[#allocation2 + $0x1c8] sm:$0xff] }
  0x20   :  { %865 = vmatpush.bf16.msra.mxu0 %v1451_v20  ;;  %v47_v6 = vld [vmem:[%s1660_s0 + $0x18] sm:$0xff]  ;;  %v46_v7 = vld [vmem:[%s1660_s0 + $0x10] sm:$0xff]  ;;  %v1481_v8 = vld [vmem:[#allocation2 + $0x100] sm:$0xff] }
  0x21   :  { %878 = vmatpush.bf16.msra.mxu1 %v1459_v21  ;;  %v1489_v9 = vld [vmem:[#allocation2 + $0x140] sm:$0xff]  ;;  %v254_v10 = vunpack.c.l.b16 %v47_v6  ;;  %v252_v11 = vunpack.c.l.b16 %v46_v7  ;;  %v255_v14 = vunpack.c.h.b16 %v47_v6  ;;  %v253_v15 = vunpack.c.h.b16 %v46_v7  ;;  %v1520_v16 = vld [vmem:[#allocation2 + $0x238] sm:$0xff]  ;;  %v1518_v28 = vld [vmem:[#allocation2 + $0x228] sm:$0xff] }
  0x22   :  { %891 = vmatpush.bf16.msra.mxu2 %v1467_v22  ;;  %v1497_v12 = vld [vmem:[#allocation2 + $0x180] sm:$0xff]  ;;  %v1528_v17 = vld [vmem:[#allocation2 + $0x278] sm:$0xff]  ;;  %v1526_v29 = vld [vmem:[#allocation2 + $0x268] sm:$0xff] }
  0x23   :  { %904 = vmatpush.bf16.msra.mxu3 %v1475_v23  ;;  %v1505_v13 = vld [vmem:[#allocation2 + $0x1c0] sm:$0xff]  ;;  %v1536_v18 = vld [vmem:[#allocation2 + $0x2b8] sm:$0xff]  ;;  %v266_v20 = vpack.c.b16 %v254_v10, %v254_v10  ;;  %v264_v21 = vpack.c.b16 %v252_v11, %v252_v11  ;;  %v267_v22 = vpack.c.b16 %v255_v14, %v255_v14  ;;  %v265_v23 = vpack.c.b16 %v253_v15, %v253_v15 }
  0x24   :  { %866 = vmatpush.bf16.msra.mxu0 %v1450_v24  ;;  %v1544_v19 = vld [vmem:[#allocation2 + $0x2f8] sm:$0xff]  ;;  %v1519_v24 = vld [vmem:[#allocation2 + $0x230] sm:$0xff]  ;;  %v1517_v32 = vld [vmem:[#allocation2 + $0x220] sm:$0xff] }
  0x25   :  { %879 = vmatpush.bf16.msra.mxu1 %v1458_v25  ;;  %v1527_v25 = vld [vmem:[#allocation2 + $0x270] sm:$0xff]  ;;  %v1525_v33 = vld [vmem:[#allocation2 + $0x260] sm:$0xff]  ;;  %v1516_v36 = vld [vmem:[#allocation2 + $0x218] sm:$0xff] }
  0x26   :  { %892 = vmatpush.bf16.msra.mxu2 %v1466_v26  ;;  %v1535_v26 = vld [vmem:[#allocation2 + $0x2b0] sm:$0xff]  ;;  %v1524_v37 = vld [vmem:[#allocation2 + $0x258] sm:$0xff] }
  0x27   :  { %905 = vmatpush.bf16.msra.mxu3 %v1474_v27  ;;  %v1543_v27 = vld [vmem:[#allocation2 + $0x2f0] sm:$0xff] }
  0x28   :  { %867 = vmatpush.bf16.msra.mxu0 %v1449_v30  ;;  %v1534_v30 = vld [vmem:[#allocation2 + $0x2a8] sm:$0xff] }
  0x29   :  { %880 = vmatpush.bf16.msra.mxu1 %v1457_v31  ;;  %v1542_v31 = vld [vmem:[#allocation2 + $0x2e8] sm:$0xff] }
  0x2a   :  { %893 = vmatpush.bf16.msra.mxu2 %v1465_v34  ;;  %v1533_v34 = vld [vmem:[#allocation2 + $0x2a0] sm:$0xff] }
  0x2b   :  { %906 = vmatpush.bf16.msra.mxu3 %v1473_v35  ;;  %868 = vmatmul.bf16.vlgmr.msra.gmra.mxu0 %v260_v43  ;;  %v1541_v35 = vld [vmem:[#allocation2 + $0x2e0] sm:$0xff]  ;;  %v1539_v43 = vld [vmem:[#allocation2 + $0x2d0] sm:$0xff] }
  0x2c   :  { %912 = vmatpush.bf16.msrb.mxu0 %v1488_v38  ;;  %881 = vmatmul.bf16.vlgmr.msra.gmra.mxu1 %v261_v45  ;;  %v1532_v38 = vld [vmem:[#allocation2 + $0x298] sm:$0xff]  ;;  %v1522_v45 = vld [vmem:[#allocation2 + $0x248] sm:$0xff] }
  0x2d   :  { %925 = vmatpush.bf16.msrb.mxu1 %v1496_v39  ;;  %894 = vmatmul.bf16.vlgmr.msra.gmra.mxu2 %v262_v42  ;;  %v1540_v39 = vld [vmem:[#allocation2 + $0x2d8] sm:$0xff]  ;;  %v1531_v42 = vld [vmem:[#allocation2 + $0x290] sm:$0xff] }
  0x2e   :  { %938 = vmatpush.bf16.msrb.mxu2 %v1504_v40  ;;  %907 = vmatmul.bf16.vlgmr.msra.gmra.mxu3 %v263_v44  ;;  %v1515_v40 = vld [vmem:[#allocation2 + $0x210] sm:$0xff]  ;;  %v1514_v44 = vld [vmem:[#allocation2 + $0x208] sm:$0xff] }
  0x2f   :  { %951 = vmatpush.bf16.msrb.mxu3 %v1512_v41  ;;  %v1523_v41 = vld [vmem:[#allocation2 + $0x250] sm:$0xff] }
  0x30   :  { %913 = vmatpush.bf16.msrb.mxu0 %v1487_v46  ;;  %v48_v46 = vld [vmem:[%s1660_s0 + $0x20] sm:$0xff] }
  0x31   :  { %926 = vmatpush.bf16.msrb.mxu1 %v1495_v47  ;;  %v1530_v47 = vld [vmem:[#allocation2 + $0x288] sm:$0xff] }
  0x32   :  { %939 = vmatpush.bf16.msrb.mxu2 %v1503_v48  ;;  %v1538_v48 = vld [vmem:[#allocation2 + $0x2c8] sm:$0xff] }
  0x33   :  { %952 = vmatpush.bf16.msrb.mxu3 %v1511_v49  ;;  %v49_v49 = vld [vmem:[%s1660_s0 + $0x28] sm:$0xff] }
  0x34   :  { %914 = vmatpush.bf16.msrb.mxu0 %v1486_v50  ;;  %v256_v50 = vunpack.c.l.b16 %v48_v46 }
  0x35   :  { %927 = vmatpush.bf16.msrb.mxu1 %v1494_v51  ;;  %v257_v51 = vunpack.c.h.b16 %v48_v46 }
  0x36   :  { %940 = vmatpush.bf16.msrb.mxu2 %v1502_v52  ;;  %v1513_v52 = vld [vmem:[#allocation2 + $0x200] sm:$0xff] }
  0x37   :  { %953 = vmatpush.bf16.msrb.mxu3 %v1510_v53  ;;  %v1521_v53 = vld [vmem:[#allocation2 + $0x240] sm:$0xff] }
  0x38   :  { %915 = vmatpush.bf16.msrb.mxu0 %v1485_v54  ;;  %v258_v54 = vunpack.c.l.b16 %v49_v49 }
  0x39   :  { %928 = vmatpush.bf16.msrb.mxu1 %v1493_v55  ;;  %v259_v55 = vunpack.c.h.b16 %v49_v49 }
  0x3a   :  { %941 = vmatpush.bf16.msrb.mxu2 %v1501_v56  ;;  %v1529_v56 = vld [vmem:[#allocation2 + $0x280] sm:$0xff] }
  0x3b   :  { %954 = vmatpush.bf16.msrb.mxu3 %v1509_v57  ;;  %v1537_v57 = vld [vmem:[#allocation2 + $0x2c0] sm:$0xff] }
  0x3c   :  { %916 = vmatpush.bf16.msrb.mxu0 %v1484_v58  ;;  %v268_v58 = vpack.c.b16 %v256_v50, %v256_v50 }
  0x3d   :  { %929 = vmatpush.bf16.msrb.mxu1 %v1492_v59  ;;  %v269_v59 = vpack.c.b16 %v257_v51, %v257_v51 }
  0x3e   :  { %942 = vmatpush.bf16.msrb.mxu2 %v1500_v60  ;;  %v270_v60 = vpack.c.b16 %v258_v54, %v258_v54 }
  0x3f   :  { %955 = vmatpush.bf16.msrb.mxu3 %v1508_v61  ;;  %v271_v61 = vpack.c.b16 %v259_v55, %v259_v55 }
  0x40   :  { %917 = vmatpush.bf16.msrb.mxu0 %v1483_v62 }
  0x41   :  { %930 = vmatpush.bf16.msrb.mxu1 %v1491_v63 }
  0x42   :  { %943 = vmatpush.bf16.msrb.mxu2 %v1499_v0 }
  0x43   :  { %956 = vmatpush.bf16.msrb.mxu3 %v1507_v1 }
  0x44   :  { %918 = vmatpush.bf16.msrb.mxu0 %v1482_v2 }
  0x45   :  { %931 = vmatpush.bf16.msrb.mxu1 %v1490_v3 }
  0x46   :  { %944 = vmatpush.bf16.msrb.mxu2 %v1498_v4 }
  0x47   :  { %957 = vmatpush.bf16.msrb.mxu3 %v1506_v5 }
  0x48   :  { %919 = vmatpush.bf16.msrb.mxu0 %v1481_v8 }
  0x49   :  { %932 = vmatpush.bf16.msrb.mxu1 %v1489_v9 }
  0x4a   :  { %945 = vmatpush.bf16.msrb.mxu2 %v1497_v12 }
  0x4b   :  { %958 = vmatpush.bf16.msrb.mxu3 %v1505_v13  ;;  %920 = vmatmul.bf16.vlgmr.msrb.gmra.mxu0 %v264_v21 }
  0x4c   :  { %964 = vmatpush.bf16.msra.mxu0 %v1520_v16  ;;  %933 = vmatmul.bf16.vlgmr.msrb.gmra.mxu1 %v265_v23 }
  0x4d   :  { %977 = vmatpush.bf16.msra.mxu1 %v1528_v17  ;;  %946 = vmatmul.bf16.vlgmr.msrb.gmra.mxu2 %v266_v20  ;;  %v1612_v20 = vmov 8.0  }
  0x4e   :  { %990 = vmatpush.bf16.msra.mxu2 %v1536_v18  ;;  %959 = vmatmul.bf16.vlgmr.msrb.gmra.mxu3 %v267_v22  ;;  %1552 = vrcp.f32 %v1612_v20 }
  0x4f   :  { %1003 = vmatpush.bf16.msra.mxu3 %v1544_v19 }
  0x50   :  { %965 = vmatpush.bf16.msra.mxu0 %v1519_v24 }
  0x51   :  { %978 = vmatpush.bf16.msra.mxu1 %v1527_v25 }
  0x52   :  { %991 = vmatpush.bf16.msra.mxu2 %v1535_v26 }
  0x53   :  { %1004 = vmatpush.bf16.msra.mxu3 %v1543_v27 }
  0x54   :  { %966 = vmatpush.bf16.msra.mxu0 %v1518_v28  ;;  %v1553_v24 = vpop.eup %1552 }
  0x55   :  { %979 = vmatpush.bf16.msra.mxu1 %v1526_v29  ;;  %v1023_v26 = vmul.f32 8.0, %v1553_v24  ;;  %vm1027_vm0 = vweird.f32 %v1553_v24 }
  0x56   :  { %992 = vmatpush.bf16.msra.mxu2 %v1534_v30 }
  0x57   :  { %1005 = vmatpush.bf16.msra.mxu3 %v1542_v31 }
  0x58   :  { %967 = vmatpush.bf16.msra.mxu0 %v1517_v32 }
  0x59   :  { %980 = vmatpush.bf16.msra.mxu1 %v1525_v33  ;;  %v1024_v33 = vsub.f32 1.0, %v1023_v26 }
  0x5a   :  { %993 = vmatpush.bf16.msra.mxu2 %v1533_v34 }
  0x5b   :  { %1006 = vmatpush.bf16.msra.mxu3 %v1541_v35 }
  0x5c   :  { %968 = vmatpush.bf16.msra.mxu0 %v1516_v36  ;;  %v1025_v36 = vmul.f32 %v1553_v24, %v1024_v33 }
  0x5d   :  { %981 = vmatpush.bf16.msra.mxu1 %v1524_v37 }
  0x5e   :  { %994 = vmatpush.bf16.msra.mxu2 %v1532_v38 }
  0x5f   :  { %1007 = vmatpush.bf16.msra.mxu3 %v1540_v39 }
  0x60   :  { %969 = vmatpush.bf16.msra.mxu0 %v1515_v40 }
  0x61   :  { %982 = vmatpush.bf16.msra.mxu1 %v1523_v41  ;;  %v1026_v41 = vadd.f32 %v1553_v24, %v1025_v36 }
  0x62   :  { %995 = vmatpush.bf16.msra.mxu2 %v1531_v42 }
  0x63   :  { %1008 = vmatpush.bf16.msra.mxu3 %v1539_v43 }
  0x64   :  { %970 = vmatpush.bf16.msra.mxu0 %v1514_v44  ;;  %v1028_v44 = vsel %vm1027_vm0, %v1553_v24, %v1026_v41 }
  0x65   :  { %983 = vmatpush.bf16.msra.mxu1 %v1522_v45 }
  0x66   :  { %996 = vmatpush.bf16.msra.mxu2 %v1530_v47 }
  0x67   :  { %1009 = vmatpush.bf16.msra.mxu3 %v1538_v48 }
  0x68   :  { %971 = vmatpush.bf16.msra.mxu0 %v1513_v52 }
  0x69   :  { %984 = vmatpush.bf16.msra.mxu1 %v1521_v53 }
  0x6a   :  { %997 = vmatpush.bf16.msra.mxu2 %v1529_v56 }
  0x6b   :  { %1010 = vmatpush.bf16.msra.mxu3 %v1537_v57  ;;  %972 = vmatmul.bf16.vlgmr.msra.gmra.mxu0 %v268_v58 }
  0x6c   :  { %985 = vmatmul.bf16.vlgmr.msra.gmra.mxu1 %v269_v59 }
  0x6d   :  { %998 = vmatmul.bf16.vlgmr.msra.gmra.mxu2 %v270_v60 }
  0x6e   :  { %1011 = vmatmul.bf16.vlgmr.msra.gmra.mxu3 %v271_v61 }
  0xa8   :  { %v869_v62 = vpop.f32.mrf.mxu0 }
  0xa9   :  { %v882_v63 = vpop.f32.mrf.mxu1 }
  0xaa   :  { %v883_v8 = vadd.f32 %v882_v63, %v869_v62  ;;  %v1550_v63 = vld [vmem:[#allocation4] ss:$0 sm:$0xff] }
  0xb0   :  { %v895_v0 = vpop.f32.mrf.mxu2  ;;  %v871_v2 = vpop.f32.mrf.mxu0 }
  0xb1   :  { %v908_v1 = vpop.f32.mrf.mxu3  ;;  %v884_v3 = vpop.f32.mrf.mxu1  ;;  %v896_v12 = vadd.f32 %v895_v0, %v883_v8  ;;  %v1551_v2 = vld [vmem:[#allocation4 + $0x1] ss:$0 sm:$0xff] }
  0xb3   :  { %v909_v14 = vadd.f32 %v908_v1, %v896_v12 }
  0xb8   :  { %v897_v4 = vpop.f32.mrf.mxu2 }
  0xb9   :  { %v910_v5 = vpop.f32.mrf.mxu3 }
  0xc8   :  { %v921_v6 = vpop.f32.mrf.mxu0 }
  0xc9   :  { %v934_v7 = vpop.f32.mrf.mxu1  ;;  %v922_v17 = vadd.f32 %v921_v6, %v909_v14 }
  0xcb   :  { %v935_v18 = vadd.f32 %v934_v7, %v922_v17 }
  0xd0   :  { %v947_v9 = vpop.f32.mrf.mxu2  ;;  %v923_v11 = vpop.f32.mrf.mxu0 }
  0xd1   :  { %v960_v10 = vpop.f32.mrf.mxu3  ;;  %v936_v13 = vpop.f32.mrf.mxu1  ;;  %v948_v19 = vadd.f32 %v947_v9, %v935_v18 }
  0xd3   :  { %v961_v21 = vadd.f32 %v960_v10, %v948_v19 }
  0xd8   :  { %v949_v15 = vpop.f32.mrf.mxu2 }
  0xd9   :  { %v962_v16 = vpop.f32.mrf.mxu3 }
  0xe8   :  { %v973_v22 = vpop.f32.mrf.mxu0 }
  0xe9   :  { %v986_v23 = vpop.f32.mrf.mxu1  ;;  %v974_v25 = vadd.f32 %v973_v22, %v961_v21 }
  0xeb   :  { %v987_v27 = vadd.f32 %v986_v23, %v974_v25 }
  0xf0   :  { %v999_v28 = vpop.f32.mrf.mxu2  ;;  %v975_v31 = vpop.f32.mrf.mxu0 }
  0xf1   :  { %v1012_v29 = vpop.f32.mrf.mxu3  ;;  %v1000_v30 = vadd.f32 %v999_v28, %v987_v27  ;;  %v988_v32 = vpop.f32.mrf.mxu1 }
  0xf3   :  { %v1013_v34 = vadd.f32 %v1012_v29, %v1000_v30 }
  0xf5   :  { %v1016_v35 = vrot.slane %v1013_v34, 4 }
  0xf7   :  { %v1017_v37 = vadd.f32 %v1016_v35, %v1013_v34 }
  0xf8   :  { %v1001_v38 = vpop.f32.mrf.mxu2 }
  0xf9   :  { %v1014_v39 = vpop.f32.mrf.mxu3  ;;  %v1018_v40 = vrot.slane %v1017_v37, 2 }
  0xfb   :  { %v1019_v42 = vadd.f32 %v1018_v40, %v1017_v37 }
  0xfd   :  { %v1020_v43 = vrot.slane %v1019_v42, 1 }
  0xff   :  { %v1021_v45 = vadd.f32 %v1020_v43, %v1019_v42 }
 0x101   :  { %v1029_v46 = vmul.f32 %v1028_v44, %v1021_v45 }
 0x103   :  { %v1030_v47 = vsub.f32 %v1013_v34, %v1029_v46 }
 0x105   :  { %v1031_v48 = vmul.f32 %v1030_v47, %v1030_v47 }
 0x107   :  { %v1032_v49 = vrot.slane %v1031_v48, 4 }
 0x109   :  { %v1033_v50 = vadd.f32 %v1032_v49, %v1031_v48 }
 0x10b   :  { %v1034_v51 = vrot.slane %v1033_v50, 2 }
 0x10d   :  { %v1035_v52 = vadd.f32 %v1034_v51, %v1033_v50 }
 0x10f   :  { %v1036_v53 = vrot.slane %v1035_v52, 1 }
 0x111   :  { %v1037_v54 = vadd.f32 %v1036_v53, %v1035_v52 }
 0x113   :  { %v1038_v55 = vmul.f32 %v1037_v54, %v1028_v44 }
 0x115   :  { %v1039_v56 = vadd.f32 1e-05, %v1038_v55 }
 0x117   :  { %1554 = vrsqrt.f32 %v1039_v56  ;;  %vm1046_vm2 = vweird.f32 %v1039_v56 }
 0x11d   :  { %v1555_v57 = vpop.eup %1554 }
 0x11e   :  { %v1041_v58 = vmul.f32 %v1555_v57, %v1039_v56  ;;  %vm1047_vm1 = vweird.f32 %v1555_v57 }
 0x11f   :  { %vm1048_vm3 = vmor %vm1046_vm2, %vm1047_vm1 }
 0x120   :  { %v1042_v59 = vmul.f32 %v1555_v57, %v1041_v58 }
 0x122   :  { %v1043_v60 = vmul.f32 0.5, %v1042_v59 }
 0x124   :  { %v1044_v61 = vsub.f32 1.5, %v1043_v60 }
 0x126   :  { %v1045_v62 = vmul.f32 %v1555_v57, %v1044_v61 }
 0x128   :  { %v1049_v0 = vsel %vm1048_vm3, %v1555_v57, %v1045_v62 }
 0x129   :  { %v1052_v1 = vmul.f32 %v1049_v0, %v1030_v47 }
 0x12b   :  { %v1054_v3 = vmul.f32 %v1550_v63, %v1052_v1 }
 0x12d   :  { %v1056_v4 = vadd.f32 %v1551_v2, %v1054_v3 }
 0x12f   :  { %v1057_v5 = vmax.f32 %v1056_v4, 0.0 }
 0x131   :  { %1058 = vst [vmem:[%s1663_s3] sm:$0xff] %v1057_v5 }
 0x132   :  { %1063 = vsyncpa [#allocation3], 1 }
 0x133   :  { %1064 = vsyncpa [#allocation5], 1 }

// kernel: _lambda_.2
= control target key start
LH: loop header
LB: loop body
LE: loop exit
PB: predicated region body
PF: predicated region fallthrough
CT: control target
= control target key end

     0   :  { %8 = vsyncpa [#allocation3], 0  ;;  %s13427_s0 = inlined_call_operand.vmem [shape: bf16[12,6144], index: 0, kind: input, shape index: {}]   ;;  %s13428_s1 = inlined_call_operand.hbm [shape: bf16[6144,512], index: 1, kind: input, shape index: {}]   ;;  %s13429_s2 = inlined_call_operand.hbm [shape: f32[2,512], index: 2, kind: input, shape index: {}]   ;;  %s13430_s3 = inlined_call_operand.vmem [shape: f32[12,512], index: 3, kind: output, shape index: {}]  }
   0x1   :  { %10 = vsyncpa [#allocation3 + $0x1], 0 }
   0x2   :  { %11 = vsyncpa [#allocation5], 0 }
   0x3   :  { %13 = vsyncpa [#allocation5 + $0x1], 0  ;;  %s10977_s12 = smov 0   ;;  %s10979_s13 = smov 0  }
   0x4   :  { %s10981_s14 = smov 0   ;;  %s10983_s15 = smov 0  }
   0x5 LB: > { %s10996_s16 = sadd.s32 4294967295, %s10951_s15   ;;  %s10999_s17 = sadd.s32 1, %s10951_s15   ;;  %s10951_s15 = sphi %s10983_s15, %s13525_s15   ;;  %s10947_s14 = sphi %s10981_s14, %s13524_s14   ;;  %s10943_s13 = sphi %s10979_s13, %s13523_s13   ;;  %s10939_s12 = sphi %s10977_s12, %s13522_s12  }
   0x6   : > { %s44_s18 = ssub.s32 %s10951_s15, %s10999_s17  ;;  %s47_s19 = sadd.s32 1, %s10947_s14 }
   0x7   : > { %p45_p0 = scmp.eq.s32.totalorder %s44_s18, 0  ;;  %p54_p1 = scmp.ne.s32.totalorder %s10947_s14, %s10943_s13 }
   0x8   : > { %p55_p2 = scmp.eq.s32.totalorder %s10951_s15, 0  ;;  %p60_p3 = scmp.ne.s32.totalorder %s10943_s13, %s10939_s12 }
   0x9   : > { %s11009_s20 = scalar_select %p45_p0, %s10947_s14, %s47_s19  }
   0xa   : > { %p56_p4 = por %p55_p2, %p54_p1  ;;  %p61_p5 = scmp.eq.s32.totalorder %s10996_s16, 0 }
   0xb   : > { %p110_p6 = scmp.eq.s32.totalorder %s10996_s16, 1  ;;  %p10808_p8 = scmp.lt.s32.totalorder %s10951_s15, 2 }
   0xc   : > { %p11013_p7 = por %p61_p5, %p60_p3  ;;  %s11023_s23 = sand.u32 1, %s10947_s14  }
   0xd   : > { %p11018_p9 = por %p110_p6, %p54_p1  ;;  %s10795_s24 = smul.u32 6144, %s11023_s23 }
   0xe   : > { %s9976_s25 = sshll.u32 %s10951_s15, 3  ;;  %p11027_p10 = pnand %p10808_p8, %p56_p4 }
   0xf   : > { %s148_s29 = scalar_lea.hbm %s13428_s1, %s9976_s25  ;;  %s143_s4 = scalar_lea.vmem [#allocation2], %s10795_s24 }
  0x10   : > { %s149_s30 = sshll.u32 %s148_s29, 4  ;;  %s151_s5 = sshll.u32 %s143_s4, 4  ;;  %s150_s30 = int_to_ptr.hbm [resolvable:$true] %s149_s30  ;;  %s152_s5 = int_to_ptr.vmem [resolvable:$true] %s151_s5 }
  0x11   : > { %s140_s6 = scalar_lea.sflag [#allocation3], %s11023_s23  ;;  %s10853_s7 = sshra.s32 %s150_s30, 4  ;;  %s10854_s7 = int_to_ptr.hbm [resolvable:$true] %s10853_s7 }
  0x12   : > { %s10855_s8 = scalar_lea.hbm %s10854_s7, 6144  ;;  %p10857_p12 = pneg %p11027_p10 }
  0x13   : > { %p10856_p11 = scmp.ne.s32.totalorder %s10854_s7, %s10855_s8  ;;  %s10860_s11 = scalar_lea.hbm %s13428_s1, 12288 }
  0x14   : > { %p10861_p1 = scmp.lt.s32.totalorder %s10854_s7, %s13428_s1  ;;  %p10862_p2 = scmp.lt.s32.totalorder %s10860_s11, %s10855_s8 }
  0x15   : > { %p10858_p13 = pnand %p10857_p12, %p10856_p11 }
  0x16   : > { %p10863_p3 = por %p10862_p2, %p10861_p1 }
  0x17   : > { %p10859_p0 = pneg %p10858_p13 }
  0x19   : > { %p10864_p4 = pnand %p10863_p3, %p10859_p0 }
  0x1b   : > { %10867 = shalt.err (!%p10864_p4)
}
  0x1c   : > { %s10953_s19 = smov 256   ;;  %s10954_s24 = smov 128  }
  0x1d   : > { %s10955_s25 = smov 8   ;;  %p6703_p5 = scmp.ge.s32.totalorder %s10951_s15, 1 }
  0x1e   : > { %10804 = dma.hbm_to_vmem [thread:$0]  (!%p11027_p10), %s150_s30, 98304, %s152_s5, %s140_s6, %s10953_s19, %s10954_s24, %s10955_s25  }
  0x1f   : > { %p179_p6 = scmp.lt.s32.totalorder %s10951_s15, 3  ;;  %s6700_s27 = sshll.u32 %s11023_s23, 2 }
  0x20   : > { %s9977_s29 = sshll.u32 %s10951_s15, 2  ;;  %s165_s4 = scalar_lea.vmem [#allocation4], %s6700_s27 }
  0x21   : > { %p11051_p8 = pnand %p6703_p5, %p179_p6  ;;  %s174_s7 = sshll.u32 %s165_s4, 4  ;;  %s175_s7 = int_to_ptr.vmem [resolvable:$true] %s174_s7 }
  0x22   : > { %s170_s10 = scalar_lea.hbm %s13429_s2, %s9977_s29  ;;  %s162_s12 = scalar_lea.sflag [#allocation5], %s11023_s23 }
  0x23   : > { %s172_s11 = sshll.u32 %s170_s10, 4  ;;  %s10890_s18 = scalar_lea.hbm %s13429_s2, 8  ;;  %s173_s11 = int_to_ptr.hbm [resolvable:$true] %s172_s11 }
  0x24   : > { %s10883_s30 = sshra.s32 %s173_s11, 4  ;;  %s10884_s30 = int_to_ptr.hbm [resolvable:$true] %s10883_s30 }
  0x25   : > { %s10885_s5 = scalar_lea.hbm %s10884_s30, 4  ;;  %p10891_p1 = scmp.lt.s32.totalorder %s10884_s30, %s13429_s2 }
  0x26   : > { %p10886_p11 = scmp.ne.s32.totalorder %s10884_s30, %s10885_s5  ;;  %p10892_p2 = scmp.lt.s32.totalorder %s10890_s18, %s10885_s5 }
  0x28   : > { %p10888_p13 = pnand %p10886_p11, %p10857_p12  ;;  %p10893_p3 = por %p10892_p2, %p10891_p1 }
  0x2a   : > { %p10889_p0 = pneg %p10888_p13 }
  0x2c   : > { %p10894_p4 = pnand %p10893_p3, %p10889_p0 }
  0x2e   : > { %10897 = shalt.err (!%p10894_p4)
}
  0x2f   : > { %10807 = dma.hbm_to_vmem [thread:$0]  (!%p11027_p10), %s173_s11, 64, %s175_s7, %s162_s12  }
  0x30   : > { %183 = sbr.rel (%p11051_p8) target bundleno = 1053 (0x41d), region = 32 }
  0x35   : > { %s11074_s23 = sand.u32 1, %s10943_s13  }
  0x36   : > { %s10796_s25 = smul.u32 6144, %s11074_s23  ;;  %s186_s27 = scalar_lea.sflag [#allocation3], %s11074_s23 }
  0x38   : > { %s11078_s29 = scalar_lea.vmem [#allocation2], %s10796_s25 }
  0x39   : > { %10930 = dma.done.wait (%p11013_p7), %s186_s27, 98304  }
  0x3a   : > { %10932 = vsyncadd (%p11013_p7), %s186_s27, 4294868992  ;;  %s6704_s26 = sshll.u32 %s11074_s23, 2  ;;  %s196_s28 = scalar_lea.sflag [#allocation5], %s11074_s23 }
  0x3b   : > { %s11086_s4 = scalar_lea.vmem [#allocation4], %s6704_s26 }
  0x3c   : > { %10934 = dma.done.wait (%p11013_p7), %s196_s28, 64  }
  0x3d   : > { %10936 = vsyncadd (%p11013_p7), %s196_s28, 4294967232  ;;  %v6956_v0 = vld [vmem:[%s11078_s29 + $0x70] sm:$0xf]  ;;  %v10041_v1 = vld [vmem:[%s11078_s29 + $0x74] sm:$0xf0]  ;;  %vm6470_vm0 = vcmask 1043456  }
  0x3e   : > { %v7020_v2 = vld [vmem:[%s11078_s29 + $0xf0] sm:$0xf]  ;;  %v6957_v3 = vor.u32 %v10041_v1, %v6956_v0  ;;  %v10057_v4 = vld [vmem:[%s11078_s29 + $0xf4] sm:$0xf0]  ;;  %v6948_v11 = vld [vmem:[%s11078_s29 + $0x60] sm:$0xf] }
  0x3f   : > { %v7084_v5 = vld [vmem:[%s11078_s29 + $0x170] sm:$0xf]  ;;  %v10073_v6 = vld [vmem:[%s11078_s29 + $0x174] sm:$0xf0]  ;;  %v7021_v7 = vor.u32 %v10057_v4, %v7020_v2  ;;  %v10039_v13 = vld [vmem:[%s11078_s29 + $0x64] sm:$0xf0] }
  0x40   : > { %v7085_v8 = vor.u32 %v10073_v6, %v7084_v5  ;;  %v7148_v9 = vld [vmem:[%s11078_s29 + $0x1f0] sm:$0xf]  ;;  %v10089_v10 = vld [vmem:[%s11078_s29 + $0x1f4] sm:$0xf0]  ;;  %5126 = vmatpush.bf16.msra.mxu0 %v6957_v3  ;;  %v7012_v14 = vld [vmem:[%s11078_s29 + $0xe0] sm:$0xf]  ;;  %v6949_v16 = vor.u32 %v10039_v13, %v6948_v11 }
  0x41   : > { %v7149_v12 = vor.u32 %v10089_v10, %v7148_v9  ;;  %v10055_v15 = vld [vmem:[%s11078_s29 + $0xe4] sm:$0xf0]  ;;  %5140 = vmatpush.bf16.msra.mxu1 %v7021_v7  ;;  %v7076_v18 = vld [vmem:[%s11078_s29 + $0x160] sm:$0xf]  ;;  %v6940_v23 = vld [vmem:[%s11078_s29 + $0x50] sm:$0xf] }
  0x42   : > { %5154 = vmatpush.bf16.msra.mxu2 %v7085_v8  ;;  %v7013_v17 = vor.u32 %v10055_v15, %v7012_v14  ;;  %v10071_v19 = vld [vmem:[%s11078_s29 + $0x164] sm:$0xf0]  ;;  %v7140_v20 = vld [vmem:[%s11078_s29 + $0x1e0] sm:$0xf]  ;;  %v10037_v24 = vld [vmem:[%s11078_s29 + $0x54] sm:$0xf0] }
  0x43   : > { %5168 = vmatpush.bf16.msra.mxu3 %v7149_v12  ;;  %v7077_v21 = vor.u32 %v10071_v19, %v7076_v18  ;;  %v10087_v22 = vld [vmem:[%s11078_s29 + $0x1e4] sm:$0xf0]  ;;  %v7004_v26 = vld [vmem:[%s11078_s29 + $0xd0] sm:$0xf]  ;;  %v10053_v27 = vld [vmem:[%s11078_s29 + $0xd4] sm:$0xf0]  ;;  %v6941_v29 = vor.u32 %v10037_v24, %v6940_v23 }
  0x44   : > { %v7141_v25 = vor.u32 %v10087_v22, %v7140_v20  ;;  %v7068_v28 = vld [vmem:[%s11078_s29 + $0x150] sm:$0xf]  ;;  %5127 = vmatpush.bf16.msra.mxu0 %v6949_v16  ;;  %v10069_v30 = vld [vmem:[%s11078_s29 + $0x154] sm:$0xf0]  ;;  %v7005_v33 = vor.u32 %v10053_v27, %v7004_v26  ;;  %v6932_v35 = vld [vmem:[%s11078_s29 + $0x40] sm:$0xf] }
  0x45   : > { %v7132_v31 = vld [vmem:[%s11078_s29 + $0x1d0] sm:$0xf]  ;;  %v10085_v32 = vld [vmem:[%s11078_s29 + $0x1d4] sm:$0xf0]  ;;  %5141 = vmatpush.bf16.msra.mxu1 %v7013_v17  ;;  %v7069_v34 = vor.u32 %v10069_v30, %v7068_v28  ;;  %v10035_v36 = vld [vmem:[%s11078_s29 + $0x44] sm:$0xf0] }
  0x46   : > { %5155 = vmatpush.bf16.msra.mxu2 %v7077_v21  ;;  %v6996_v37 = vld [vmem:[%s11078_s29 + $0xc0] sm:$0xf]  ;;  %v7133_v38 = vor.u32 %v10085_v32, %v7132_v31  ;;  %v10051_v39 = vld [vmem:[%s11078_s29 + $0xc4] sm:$0xf0]  ;;  %v6933_v44 = vor.u32 %v10035_v36, %v6932_v35  ;;  %v6924_v47 = vld [vmem:[%s11078_s29 + $0x30] sm:$0xf] }
  0x47   : > { %5169 = vmatpush.bf16.msra.mxu3 %v7141_v25  ;;  %v7060_v40 = vld [vmem:[%s11078_s29 + $0x140] sm:$0xf]  ;;  %v10067_v41 = vld [vmem:[%s11078_s29 + $0x144] sm:$0xf0]  ;;  %v6997_v45 = vor.u32 %v10051_v39, %v6996_v37  ;;  %v10033_v48 = vld [vmem:[%s11078_s29 + $0x34] sm:$0xf0] }
  0x48   : > { %v7124_v42 = vld [vmem:[%s11078_s29 + $0x1c0] sm:$0xf]  ;;  %v10083_v43 = vld [vmem:[%s11078_s29 + $0x1c4] sm:$0xf0]  ;;  %5128 = vmatpush.bf16.msra.mxu0 %v6941_v29  ;;  %v7061_v46 = vor.u32 %v10067_v41, %v7060_v40  ;;  %v6988_v49 = vld [vmem:[%s11078_s29 + $0xb0] sm:$0xf]  ;;  %v6925_v56 = vor.u32 %v10033_v48, %v6924_v47 }
  0x49   : > { %5142 = vmatpush.bf16.msra.mxu1 %v7005_v33  ;;  %v7125_v50 = vor.u32 %v10083_v43, %v7124_v42  ;;  %v10049_v51 = vld [vmem:[%s11078_s29 + $0xb4] sm:$0xf0]  ;;  %v7052_v52 = vld [vmem:[%s11078_s29 + $0x130] sm:$0xf]  ;;  %v6916_v59 = vld [vmem:[%s11078_s29 + $0x20] sm:$0xf] }
  0x4a   : > { %5156 = vmatpush.bf16.msra.mxu2 %v7069_v34  ;;  %v10065_v53 = vld [vmem:[%s11078_s29 + $0x134] sm:$0xf0]  ;;  %v7116_v54 = vld [vmem:[%s11078_s29 + $0x1b0] sm:$0xf]  ;;  %v6989_v57 = vor.u32 %v10049_v51, %v6988_v49  ;;  %v10031_v60 = vld [vmem:[%s11078_s29 + $0x24] sm:$0xf0] }
  0x4b   : > { %5170 = vmatpush.bf16.msra.mxu3 %v7133_v38  ;;  %v10081_v55 = vld [vmem:[%s11078_s29 + $0x1b4] sm:$0xf0]  ;;  %v7053_v58 = vor.u32 %v10065_v53, %v7052_v52  ;;  %v6980_v61 = vld [vmem:[%s11078_s29 + $0xa0] sm:$0xf]  ;;  %v10047_v63 = vld [vmem:[%s11078_s29 + $0xa4] sm:$0xf0]  ;;  %v6917_v4 = vor.u32 %v10031_v60, %v6916_v59 }
  0x4c   : > { %5129 = vmatpush.bf16.msra.mxu0 %v6933_v44  ;;  %v7117_v62 = vor.u32 %v10081_v55, %v7116_v54  ;;  %v7044_v0 = vld [vmem:[%s11078_s29 + $0x120] sm:$0xf]  ;;  %v10063_v1 = vld [vmem:[%s11078_s29 + $0x124] sm:$0xf0]  ;;  %v6981_v5 = vor.u32 %v10047_v63, %v6980_v61  ;;  %v6908_v7 = vld [vmem:[%s11078_s29 + $0x10] sm:$0xf] }
  0x4d   : > { %5143 = vmatpush.bf16.msra.mxu1 %v6997_v45  ;;  %v7108_v2 = vld [vmem:[%s11078_s29 + $0x1a0] sm:$0xf]  ;;  %v10079_v3 = vld [vmem:[%s11078_s29 + $0x1a4] sm:$0xf0]  ;;  %v7045_v6 = vor.u32 %v10063_v1, %v7044_v0  ;;  %v10029_v8 = vld [vmem:[%s11078_s29 + $0x14] sm:$0xf0] }
  0x4e   : > { %5157 = vmatpush.bf16.msra.mxu2 %v7061_v46  ;;  %v6972_v9 = vld [vmem:[%s11078_s29 + $0x90] sm:$0xf]  ;;  %v7109_v10 = vor.u32 %v10079_v3, %v7108_v2  ;;  %v10045_v11 = vld [vmem:[%s11078_s29 + $0x94] sm:$0xf0]  ;;  %v6909_v16 = vor.u32 %v10029_v8, %v6908_v7  ;;  %v6900_v17 = vld [vmem:[%s11078_s29] sm:$0xf] }
  0x4f   : > { %5171 = vmatpush.bf16.msra.mxu3 %v7125_v50  ;;  %v7036_v12 = vld [vmem:[%s11078_s29 + $0x110] sm:$0xf]  ;;  %v10061_v13 = vld [vmem:[%s11078_s29 + $0x114] sm:$0xf0]  ;;  %v10027_v18 = vld [vmem:[%s11078_s29 + $0x4] sm:$0xf0]  ;;  %v6973_v19 = vor.u32 %v10045_v11, %v6972_v9 }
  0x50   : > { %5130 = vmatpush.bf16.msra.mxu0 %v6925_v56  ;;  %v7100_v14 = vld [vmem:[%s11078_s29 + $0x190] sm:$0xf]  ;;  %v10077_v15 = vld [vmem:[%s11078_s29 + $0x194] sm:$0xf0]  ;;  %v7037_v20 = vor.u32 %v10061_v13, %v7036_v12  ;;  %v6964_v21 = vld [vmem:[%s11078_s29 + $0x80] sm:$0xf]  ;;  %v6901_v31 = vor.u32 %v10027_v18, %v6900_v17 }
  0x51   : > { %5144 = vmatpush.bf16.msra.mxu1 %v6989_v57  ;;  %v10043_v22 = vld [vmem:[%s11078_s29 + $0x84] sm:$0xf0]  ;;  %v7028_v23 = vld [vmem:[%s11078_s29 + $0x100] sm:$0xf]  ;;  %v7101_v24 = vor.u32 %v10077_v15, %v7100_v14  ;;  %v7212_v28 = vld [vmem:[%s11078_s29 + $0x270] sm:$0xf] }
  0x52   : > { %5158 = vmatpush.bf16.msra.mxu2 %v7053_v58  ;;  %v10059_v25 = vld [vmem:[%s11078_s29 + $0x104] sm:$0xf0]  ;;  %v7092_v26 = vld [vmem:[%s11078_s29 + $0x180] sm:$0xf]  ;;  %v10105_v29 = vld [vmem:[%s11078_s29 + $0x274] sm:$0xf0]  ;;  %v6965_v35 = vor.u32 %v10043_v22, %v6964_v21 }
  0x53   : > { %5172 = vmatpush.bf16.msra.mxu3 %v7117_v62  ;;  %v10075_v27 = vld [vmem:[%s11078_s29 + $0x184] sm:$0xf0]  ;;  %v7276_v30 = vld [vmem:[%s11078_s29 + $0x2f0] sm:$0xf]  ;;  %v10121_v32 = vld [vmem:[%s11078_s29 + $0x2f4] sm:$0xf0]  ;;  %v7029_v36 = vor.u32 %v10059_v25, %v7028_v23  ;;  %v7213_v40 = vor.u32 %v10105_v29, %v7212_v28 }
  0x54   : > { %5131 = vmatpush.bf16.msra.mxu0 %v6917_v4  ;;  %v7340_v33 = vld [vmem:[%s11078_s29 + $0x370] sm:$0xf]  ;;  %v10137_v34 = vld [vmem:[%s11078_s29 + $0x374] sm:$0xf0]  ;;  %v7093_v39 = vor.u32 %v10075_v27, %v7092_v26  ;;  %v7204_v41 = vld [vmem:[%s11078_s29 + $0x260] sm:$0xf]  ;;  %v7277_v43 = vor.u32 %v10121_v32, %v7276_v30 }
  0x55   : > { %5145 = vmatpush.bf16.msra.mxu1 %v6981_v5  ;;  %v7404_v37 = vld [vmem:[%s11078_s29 + $0x3f0] sm:$0xf]  ;;  %v10153_v38 = vld [vmem:[%s11078_s29 + $0x3f4] sm:$0xf0]  ;;  %v10103_v42 = vld [vmem:[%s11078_s29 + $0x264] sm:$0xf0]  ;;  %v7341_v44 = vor.u32 %v10137_v34, %v7340_v33 }
  0x56   : > { %5159 = vmatpush.bf16.msra.mxu2 %v7045_v6  ;;  %v7268_v45 = vld [vmem:[%s11078_s29 + $0x2e0] sm:$0xf]  ;;  %v10119_v46 = vld [vmem:[%s11078_s29 + $0x2e4] sm:$0xf0]  ;;  %v7405_v48 = vor.u32 %v10153_v38, %v7404_v37  ;;  %v7205_v55 = vor.u32 %v10103_v42, %v7204_v41  ;;  %v7196_v56 = vld [vmem:[%s11078_s29 + $0x250] sm:$0xf] }
  0x57   : > { %5173 = vmatpush.bf16.msra.mxu3 %v7109_v10  ;;  %v7332_v47 = vld [vmem:[%s11078_s29 + $0x360] sm:$0xf]  ;;  %v10135_v49 = vld [vmem:[%s11078_s29 + $0x364] sm:$0xf0]  ;;  %v10101_v57 = vld [vmem:[%s11078_s29 + $0x254] sm:$0xf0]  ;;  %v7269_v60 = vor.u32 %v10119_v46, %v7268_v45 }
  0x58   : > { %5132 = vmatpush.bf16.msra.mxu0 %v6909_v16  ;;  %v7396_v50 = vld [vmem:[%s11078_s29 + $0x3e0] sm:$0xf]  ;;  %v10151_v51 = vld [vmem:[%s11078_s29 + $0x3e4] sm:$0xf0]  ;;  %v7333_v61 = vor.u32 %v10135_v49, %v7332_v47  ;;  %v7260_v62 = vld [vmem:[%s11078_s29 + $0x2d0] sm:$0xf]  ;;  %v7197_v9 = vor.u32 %v10101_v57, %v7196_v56 }
  0x59   : > { %5146 = vmatpush.bf16.msra.mxu1 %v6973_v19  ;;  %v6708_v52 = vld [vmem:[%s13427_s0] sm:$0xf]  ;;  %v6716_v54 = vld [vmem:[%s13427_s0 + $0x8] sm:$0xf]  ;;  %v10117_v63 = vld [vmem:[%s11078_s29 + $0x2d4] sm:$0xf0]  ;;  %v7397_v2 = vor.u32 %v10151_v51, %v7396_v50 }
  0x5a   : > { %5160 = vmatpush.bf16.msra.mxu2 %v7037_v20  ;;  %v10002_v53 = vld [vmem:[%s13427_s0 + $0xbc] sm:$0x30]  ;;  %v10003_v59 = vld [vmem:[%s13427_s0 + $0xc4] sm:$0x30]  ;;  %v7324_v0 = vld [vmem:[%s11078_s29 + $0x350] sm:$0xf]  ;;  %v7261_v12 = vor.u32 %v10117_v63, %v7260_v62 }
  0x5b   : > { %5174 = vmatpush.bf16.msra.mxu3 %v7101_v24  ;;  %v11183_v58 = vor.u32 %v10002_v53, %v6708_v52  ;;  %v11191_v1 = vor.u32 %v10003_v59, %v6716_v54  ;;  %v10133_v3 = vld [vmem:[%s11078_s29 + $0x354] sm:$0xf0]  ;;  %v7388_v4 = vld [vmem:[%s11078_s29 + $0x3d0] sm:$0xf]  ;;  %v9978_v6 = vld [vmem:[%s13427_s0 + $0x4] sm:$0xf] }
  0x5c   : > { %5133 = vmatpush.bf16.msra.mxu0 %v6901_v31  ;;  %v10149_v5 = vld [vmem:[%s11078_s29 + $0x3d4] sm:$0xf0]  ;;  %v6710_v7 = vld [vmem:[%s13427_s0 + $0xc0] sm:$0x30]  ;;  %v9979_v8 = vld [vmem:[%s13427_s0 + $0xc] sm:$0xf]  ;;  %v7325_v13 = vor.u32 %v10133_v3, %v7324_v0 }
  0x5d   : > { %5147 = vmatpush.bf16.msra.mxu1 %v6965_v35  ;;  %v11207_v10 = vor.u32 %v9978_v6, %v6710_v7  ;;  %v6718_v11 = vld [vmem:[%s13427_s0 + $0xc8] sm:$0x30]  ;;  %v7188_v14 = vld [vmem:[%s11078_s29 + $0x240] sm:$0xf]  ;;  %v10099_v15 = vld [vmem:[%s11078_s29 + $0x244] sm:$0xf0]  ;;  %v7389_v18 = vor.u32 %v10149_v5, %v7388_v4 }
  0x5e   : > { %5161 = vmatpush.bf16.msra.mxu2 %v7029_v36  ;;  %v7252_v16 = vld [vmem:[%s11078_s29 + $0x2c0] sm:$0xf]  ;;  %v11215_v17 = vor.u32 %v9979_v8, %v6718_v11  ;;  %v10115_v19 = vld [vmem:[%s11078_s29 + $0x2c4] sm:$0xf0]  ;;  %v7189_v24 = vor.u32 %v10099_v15, %v7188_v14  ;;  %v7180_v27 = vld [vmem:[%s11078_s29 + $0x230] sm:$0xf] }
  0x5f   : > { %5175 = vmatpush.bf16.msra.mxu3 %v7093_v39  ;;  %5134 = vmatmul.bf16.vlgmr.msra.gmra.mxu0 %v11183_v58  ;;  %v7316_v20 = vld [vmem:[%s11078_s29 + $0x340] sm:$0xf]  ;;  %v10131_v21 = vld [vmem:[%s11078_s29 + $0x344] sm:$0xf0]  ;;  %v7253_v25 = vor.u32 %v10115_v19, %v7252_v16  ;;  %v10097_v28 = vld [vmem:[%s11078_s29 + $0x234] sm:$0xf0] }
  0x60   : > { %5182 = vmatpush.bf16.msrb.mxu0 %v7213_v40  ;;  %5148 = vmatmul.bf16.vlgmr.msra.gmra.mxu1 %v11207_v10  ;;  %v7380_v22 = vld [vmem:[%s11078_s29 + $0x3c0] sm:$0xf]  ;;  %v10147_v23 = vld [vmem:[%s11078_s29 + $0x3c4] sm:$0xf0]  ;;  %v7317_v26 = vor.u32 %v10131_v21, %v7316_v20  ;;  %v7244_v29 = vld [vmem:[%s11078_s29 + $0x2b0] sm:$0xf]  ;;  %v7181_v36 = vor.u32 %v10097_v28, %v7180_v27 }
  0x61   : > { %5196 = vmatpush.bf16.msrb.mxu1 %v7277_v43  ;;  %5162 = vmatmul.bf16.vlgmr.msra.gmra.mxu2 %v11191_v1  ;;  %v7381_v30 = vor.u32 %v10147_v23, %v7380_v22  ;;  %v10113_v31 = vld [vmem:[%s11078_s29 + $0x2b4] sm:$0xf0]  ;;  %v7308_v32 = vld [vmem:[%s11078_s29 + $0x330] sm:$0xf]  ;;  %v7172_v39 = vld [vmem:[%s11078_s29 + $0x220] sm:$0xf] }
  0x62   : > { %5210 = vmatpush.bf16.msrb.mxu2 %v7341_v44  ;;  %5176 = vmatmul.bf16.vlgmr.msra.gmra.mxu3 %v11215_v17  ;;  %v10129_v33 = vld [vmem:[%s11078_s29 + $0x334] sm:$0xf0]  ;;  %v7372_v34 = vld [vmem:[%s11078_s29 + $0x3b0] sm:$0xf]  ;;  %v7245_v37 = vor.u32 %v10113_v31, %v7244_v29  ;;  %v10095_v40 = vld [vmem:[%s11078_s29 + $0x224] sm:$0xf0] }
  0x63   : > { %5224 = vmatpush.bf16.msrb.mxu3 %v7405_v48  ;;  %v10145_v35 = vld [vmem:[%s11078_s29 + $0x3b4] sm:$0xf0]  ;;  %v7309_v38 = vor.u32 %v10129_v33, %v7308_v32  ;;  %v7236_v41 = vld [vmem:[%s11078_s29 + $0x2a0] sm:$0xf]  ;;  %v10111_v43 = vld [vmem:[%s11078_s29 + $0x2a4] sm:$0xf0]  ;;  %v7173_v48 = vor.u32 %v10095_v40, %v7172_v39 }
  0x64   : > { %5183 = vmatpush.bf16.msrb.mxu0 %v7205_v55  ;;  %v7373_v42 = vor.u32 %v10145_v35, %v7372_v34  ;;  %v7300_v44 = vld [vmem:[%s11078_s29 + $0x320] sm:$0xf]  ;;  %v10127_v45 = vld [vmem:[%s11078_s29 + $0x324] sm:$0xf0]  ;;  %v7164_v49 = vld [vmem:[%s11078_s29 + $0x210] sm:$0xf]  ;;  %v7237_v50 = vor.u32 %v10111_v43, %v7236_v41 }
  0x65   : > { %5197 = vmatpush.bf16.msrb.mxu1 %v7269_v60  ;;  %v7364_v46 = vld [vmem:[%s11078_s29 + $0x3a0] sm:$0xf]  ;;  %v10143_v47 = vld [vmem:[%s11078_s29 + $0x3a4] sm:$0xf0]  ;;  %v7301_v51 = vor.u32 %v10127_v45, %v7300_v44  ;;  %v10093_v52 = vld [vmem:[%s11078_s29 + $0x214] sm:$0xf0] }
  0x66   : > { %5211 = vmatpush.bf16.msrb.mxu2 %v7333_v61  ;;  %v7228_v53 = vld [vmem:[%s11078_s29 + $0x290] sm:$0xf]  ;;  %v10109_v54 = vld [vmem:[%s11078_s29 + $0x294] sm:$0xf0]  ;;  %v7365_v55 = vor.u32 %v10143_v47, %v7364_v46  ;;  %v7156_v61 = vld [vmem:[%s11078_s29 + $0x200] sm:$0xf]  ;;  %v7165_v63 = vor.u32 %v10093_v52, %v7164_v49 }
  0x67   : > { %5225 = vmatpush.bf16.msrb.mxu3 %v7397_v2  ;;  %v7292_v56 = vld [vmem:[%s11078_s29 + $0x310] sm:$0xf]  ;;  %v10125_v57 = vld [vmem:[%s11078_s29 + $0x314] sm:$0xf0]  ;;  %v10091_v62 = vld [vmem:[%s11078_s29 + $0x204] sm:$0xf0]  ;;  %v7229_v5 = vor.u32 %v10109_v54, %v7228_v53 }
  0x68   : > { %5184 = vmatpush.bf16.msrb.mxu0 %v7197_v9  ;;  %v7356_v59 = vld [vmem:[%s11078_s29 + $0x390] sm:$0xf]  ;;  %v10141_v60 = vld [vmem:[%s11078_s29 + $0x394] sm:$0xf0]  ;;  %v7220_v0 = vld [vmem:[%s11078_s29 + $0x280] sm:$0xf]  ;;  %v7293_v6 = vor.u32 %v10125_v57, %v7292_v56  ;;  %v7157_v19 = vor.u32 %v10091_v62, %v7156_v61 }
  0x69   : > { %5198 = vmatpush.bf16.msrb.mxu1 %v7261_v12  ;;  %v10107_v2 = vld [vmem:[%s11078_s29 + $0x284] sm:$0xf0]  ;;  %v7284_v3 = vld [vmem:[%s11078_s29 + $0x300] sm:$0xf]  ;;  %v7468_v9 = vld [vmem:[%s11078_s29 + $0x470] sm:$0xf]  ;;  %v7357_v11 = vor.u32 %v10141_v60, %v7356_v59 }
  0x6a   : > { %5212 = vmatpush.bf16.msrb.mxu2 %v7325_v13  ;;  %v10123_v4 = vld [vmem:[%s11078_s29 + $0x304] sm:$0xf0]  ;;  %v7348_v7 = vld [vmem:[%s11078_s29 + $0x380] sm:$0xf]  ;;  %v10169_v12 = vld [vmem:[%s11078_s29 + $0x474] sm:$0xf0]  ;;  %v7221_v23 = vor.u32 %v10107_v2, %v7220_v0 }
  0x6b   : > { %5226 = vmatpush.bf16.msrb.mxu3 %v7389_v18  ;;  %v10139_v8 = vld [vmem:[%s11078_s29 + $0x384] sm:$0xf0]  ;;  %v7532_v13 = vld [vmem:[%s11078_s29 + $0x4f0] sm:$0xf]  ;;  %v10185_v14 = vld [vmem:[%s11078_s29 + $0x4f4] sm:$0xf0]  ;;  %v7469_v29 = vor.u32 %v10169_v12, %v7468_v9 }
  0x6c   : > { %5185 = vmatpush.bf16.msrb.mxu0 %v7189_v24  ;;  %v7596_v15 = vld [vmem:[%s11078_s29 + $0x570] sm:$0xf]  ;;  %v10201_v16 = vld [vmem:[%s11078_s29 + $0x574] sm:$0xf0]  ;;  %v7285_v24 = vor.u32 %v10123_v4, %v7284_v3  ;;  %v9980_v27 = vld [vmem:[%s13427_s0 + $0x14] sm:$0xf]  ;;  %v7349_v28 = vor.u32 %v10139_v8, %v7348_v7  ;;  %v7533_v33 = vor.u32 %v10185_v14, %v7532_v13 }
  0x6d   : > { %5199 = vmatpush.bf16.msrb.mxu1 %v7253_v25  ;;  %v7660_v18 = vld [vmem:[%s11078_s29 + $0x5f0] sm:$0xf]  ;;  %v10217_v20 = vld [vmem:[%s11078_s29 + $0x5f4] sm:$0xf0]  ;;  %v9981_v31 = vld [vmem:[%s13427_s0 + $0x1c] sm:$0xf]  ;;  %v7597_v34 = vor.u32 %v10201_v16, %v7596_v15 }
  0x6e   : > { %5213 = vmatpush.bf16.msrb.mxu2 %v7317_v26  ;;  %v6724_v21 = vld [vmem:[%s13427_s0 + $0x10] sm:$0xf]  ;;  %v6732_v25 = vld [vmem:[%s13427_s0 + $0x18] sm:$0xf]  ;;  %v6734_v32 = vld [vmem:[%s13427_s0 + $0xd8] sm:$0x30] }
  0x6f   : > { %5227 = vmatpush.bf16.msrb.mxu3 %v7381_v30  ;;  %v10004_v22 = vld [vmem:[%s13427_s0 + $0xcc] sm:$0x30]  ;;  %v10005_v26 = vld [vmem:[%s13427_s0 + $0xd4] sm:$0x30]  ;;  %v6726_v30 = vld [vmem:[%s13427_s0 + $0xd0] sm:$0x30]  ;;  %v11302_v47 = vor.u32 %v9981_v31, %v6734_v32 }
  0x70   : > { %5186 = vmatpush.bf16.msrb.mxu0 %v7181_v36  ;;  %v7460_v35 = vld [vmem:[%s11078_s29 + $0x460] sm:$0xf]  ;;  %v10167_v36 = vld [vmem:[%s11078_s29 + $0x464] sm:$0xf0]  ;;  %v11291_v39 = vor.u32 %v10004_v22, %v6724_v21  ;;  %v11296_v43 = vor.u32 %v10005_v26, %v6732_v25  ;;  %v11298_v44 = vor.u32 %v9980_v27, %v6726_v30  ;;  %v10165_v52 = vld [vmem:[%s11078_s29 + $0x454] sm:$0xf0] }
  0x71   : > { %5200 = vmatpush.bf16.msrb.mxu1 %v7245_v37  ;;  %v7524_v37 = vld [vmem:[%s11078_s29 + $0x4e0] sm:$0xf]  ;;  %v10183_v40 = vld [vmem:[%s11078_s29 + $0x4e4] sm:$0xf0]  ;;  %v7516_v53 = vld [vmem:[%s11078_s29 + $0x4d0] sm:$0xf] }
  0x72   : > { %5214 = vmatpush.bf16.msrb.mxu2 %v7309_v38  ;;  %v7661_v38 = vor.u32 %v10217_v20, %v7660_v18  ;;  %v7588_v41 = vld [vmem:[%s11078_s29 + $0x560] sm:$0xf]  ;;  %v10215_v46 = vld [vmem:[%s11078_s29 + $0x5e4] sm:$0xf0]  ;;  %v7525_v49 = vor.u32 %v10183_v40, %v7524_v37  ;;  %v7580_v56 = vld [vmem:[%s11078_s29 + $0x550] sm:$0xf] }
  0x73   : > { %5228 = vmatpush.bf16.msrb.mxu3 %v7373_v42  ;;  %v10199_v42 = vld [vmem:[%s11078_s29 + $0x564] sm:$0xf0]  ;;  %v7652_v45 = vld [vmem:[%s11078_s29 + $0x5e0] sm:$0xf]  ;;  %v10197_v57 = vld [vmem:[%s11078_s29 + $0x554] sm:$0xf0] }
  0x74   : > { %5187 = vmatpush.bf16.msrb.mxu0 %v7173_v48  ;;  %v7461_v48 = vor.u32 %v10167_v36, %v7460_v35  ;;  %v7653_v54 = vor.u32 %v10215_v46, %v7652_v45  ;;  %v7644_v59 = vld [vmem:[%s11078_s29 + $0x5d0] sm:$0xf]  ;;  %v10213_v60 = vld [vmem:[%s11078_s29 + $0x5d4] sm:$0xf0]  ;;  %v7444_v0 = vld [vmem:[%s11078_s29 + $0x440] sm:$0xf] }
  0x75   : > { %5201 = vmatpush.bf16.msrb.mxu1 %v7237_v50  ;;  %v7589_v50 = vor.u32 %v10199_v42, %v7588_v41  ;;  %v10163_v2 = vld [vmem:[%s11078_s29 + $0x444] sm:$0xf0]  ;;  %v7508_v3 = vld [vmem:[%s11078_s29 + $0x4c0] sm:$0xf]  ;;  %v7645_v4 = vor.u32 %v10213_v60, %v7644_v59  ;;  %v7436_v14 = vld [vmem:[%s11078_s29 + $0x430] sm:$0xf] }
  0x76   : > { %5215 = vmatpush.bf16.msrb.mxu2 %v7301_v51  ;;  %v7452_v51 = vld [vmem:[%s11078_s29 + $0x450] sm:$0xf]  ;;  %v10195_v7 = vld [vmem:[%s11078_s29 + $0x544] sm:$0xf0]  ;;  %v7636_v8 = vld [vmem:[%s11078_s29 + $0x5c0] sm:$0xf] }
  0x77   : > { %5229 = vmatpush.bf16.msrb.mxu3 %v7365_v55  ;;  %v10181_v55 = vld [vmem:[%s11078_s29 + $0x4d4] sm:$0xf0]  ;;  %v7453_v61 = vor.u32 %v10165_v52, %v7452_v51  ;;  %v10211_v9 = vld [vmem:[%s11078_s29 + $0x5c4] sm:$0xf0]  ;;  %v7500_v16 = vld [vmem:[%s11078_s29 + $0x4b0] sm:$0xf] }
  0x78   : > { %5188 = vmatpush.bf16.msrb.mxu0 %v7165_v63  ;;  %v7517_v62 = vor.u32 %v10181_v55, %v7516_v53  ;;  %v7581_v63 = vor.u32 %v10197_v57, %v7580_v56  ;;  %v10161_v15 = vld [vmem:[%s11078_s29 + $0x434] sm:$0xf0]  ;;  %v7637_v18 = vor.u32 %v10211_v9, %v7636_v8  ;;  %v7564_v20 = vld [vmem:[%s11078_s29 + $0x530] sm:$0xf]  ;;  %v7428_v27 = vld [vmem:[%s11078_s29 + $0x420] sm:$0xf] }
  0x79   : > { %5202 = vmatpush.bf16.msrb.mxu1 %v7229_v5  ;;  %v10179_v5 = vld [vmem:[%s11078_s29 + $0x4c4] sm:$0xf0]  ;;  %v10193_v21 = vld [vmem:[%s11078_s29 + $0x534] sm:$0xf0]  ;;  %v7628_v22 = vld [vmem:[%s11078_s29 + $0x5b0] sm:$0xf] }
  0x7a   : > { %5216 = vmatpush.bf16.msrb.mxu2 %v7293_v6  ;;  %v7572_v6 = vld [vmem:[%s11078_s29 + $0x540] sm:$0xf]  ;;  %v7509_v12 = vor.u32 %v10179_v5, %v7508_v3  ;;  %v7565_v26 = vor.u32 %v10193_v21, %v7564_v20  ;;  %v10175_v31 = vld [vmem:[%s11078_s29 + $0x4a4] sm:$0xf0]  ;;  %v7420_v37 = vld [vmem:[%s11078_s29 + $0x410] sm:$0xf] }
  0x7b   : > { %5230 = vmatpush.bf16.msrb.mxu3 %v7357_v11  ;;  %v7445_v11 = vor.u32 %v10163_v2, %v7444_v0  ;;  %v7573_v13 = vor.u32 %v10195_v7, %v7572_v6  ;;  %v7556_v32 = vld [vmem:[%s11078_s29 + $0x520] sm:$0xf]  ;;  %v10207_v35 = vld [vmem:[%s11078_s29 + $0x5a4] sm:$0xf0]  ;;  %v10157_v41 = vld [vmem:[%s11078_s29 + $0x414] sm:$0xf0] }
  0x7c   : > { %5189 = vmatpush.bf16.msrb.mxu0 %v7157_v19  ;;  %v10177_v19 = vld [vmem:[%s11078_s29 + $0x4b4] sm:$0xf0]  ;;  %v7484_v42 = vld [vmem:[%s11078_s29 + $0x490] sm:$0xf]  ;;  %v7412_v52 = vld [vmem:[%s11078_s29 + $0x400] sm:$0xf] }
  0x7d   : > { %5203 = vmatpush.bf16.msrb.mxu1 %v7221_v23  ;;  %v10209_v23 = vld [vmem:[%s11078_s29 + $0x5b4] sm:$0xf0]  ;;  %v7501_v25 = vor.u32 %v10177_v19, %v7500_v16  ;;  %v10155_v53 = vld [vmem:[%s11078_s29 + $0x404] sm:$0xf0]  ;;  %v7476_v55 = vld [vmem:[%s11078_s29 + $0x480] sm:$0xf] }
  0x7e   : > { %5217 = vmatpush.bf16.msrb.mxu2 %v7285_v24  ;;  %v7437_v24 = vor.u32 %v10161_v15, %v7436_v14  ;;  %v7629_v30 = vor.u32 %v10209_v23, %v7628_v22  ;;  %v10173_v45 = vld [vmem:[%s11078_s29 + $0x494] sm:$0xf0]  ;;  %v10171_v56 = vld [vmem:[%s11078_s29 + $0x484] sm:$0xf0]  ;;  %v7540_v57 = vld [vmem:[%s11078_s29 + $0x500] sm:$0xf]  ;;  %v7413_v9 = vor.u32 %v10155_v53, %v7412_v52 }
  0x7f   : > { %5231 = vmatpush.bf16.msrb.mxu3 %v7349_v28  ;;  %5190 = vmatmul.bf16.vlgmr.msrb.gmra.mxu0 %v11291_v39  ;;  %v10159_v28 = vld [vmem:[%s11078_s29 + $0x424] sm:$0xf0]  ;;  %v10205_v51 = vld [vmem:[%s11078_s29 + $0x594] sm:$0xf0]  ;;  %v7485_v60 = vor.u32 %v10173_v45, %v7484_v42  ;;  %v7724_v0 = vld [vmem:[%s11078_s29 + $0x670] sm:$0xf]  ;;  %v7477_v14 = vor.u32 %v10171_v56, %v7476_v55 }
  0x80   : > { %5238 = vmatpush.bf16.msra.mxu0 %v7469_v29  ;;  %5204 = vmatmul.bf16.vlgmr.msrb.gmra.mxu1 %v11298_v44  ;;  %v7492_v29 = vld [vmem:[%s11078_s29 + $0x4a0] sm:$0xf]  ;;  %v7429_v36 = vor.u32 %v10159_v28, %v7428_v27  ;;  %v10187_v59 = vld [vmem:[%s11078_s29 + $0x504] sm:$0xf0]  ;;  %v10233_v3 = vld [vmem:[%s11078_s29 + $0x674] sm:$0xf0] }
  0x81   : > { %5252 = vmatpush.bf16.msra.mxu1 %v7533_v33  ;;  %5218 = vmatmul.bf16.vlgmr.msrb.gmra.mxu2 %v11296_v43  ;;  %v10191_v33 = vld [vmem:[%s11078_s29 + $0x524] sm:$0xf0]  ;;  %v10249_v5 = vld [vmem:[%s11078_s29 + $0x6f4] sm:$0xf0]  ;;  %v7852_v6 = vld [vmem:[%s11078_s29 + $0x770] sm:$0xf]  ;;  %v7541_v15 = vor.u32 %v10187_v59, %v7540_v57  ;;  %v7725_v21 = vor.u32 %v10233_v3, %v7724_v0 }
  0x82   : > { %5266 = vmatpush.bf16.msra.mxu2 %v7597_v34  ;;  %5232 = vmatmul.bf16.vlgmr.msrb.gmra.mxu3 %v11302_v47  ;;  %v7620_v34 = vld [vmem:[%s11078_s29 + $0x5a0] sm:$0xf]  ;;  %v7557_v40 = vor.u32 %v10191_v33, %v7556_v32  ;;  %v10265_v7 = vld [vmem:[%s11078_s29 + $0x774] sm:$0xf0]  ;;  %v7916_v8 = vld [vmem:[%s11078_s29 + $0x7f0] sm:$0xf] }
  0x83   : > { %5280 = vmatpush.bf16.msra.mxu3 %v7661_v38  ;;  %v7493_v38 = vor.u32 %v10175_v31, %v7492_v29  ;;  %v7621_v46 = vor.u32 %v10207_v35, %v7620_v34  ;;  %v6748_v16 = vld [vmem:[%s13427_s0 + $0x28] sm:$0xf]  ;;  %v9982_v19 = vld [vmem:[%s13427_s0 + $0x24] sm:$0xf]  ;;  %v9983_v23 = vld [vmem:[%s13427_s0 + $0x2c] sm:$0xf] }
  0x84   : > { %5239 = vmatpush.bf16.msra.mxu0 %v7461_v48  ;;  %v7548_v48 = vld [vmem:[%s11078_s29 + $0x510] sm:$0xf]  ;;  %v6742_v22 = vld [vmem:[%s13427_s0 + $0xe0] sm:$0x30]  ;;  %v7716_v27 = vld [vmem:[%s11078_s29 + $0x660] sm:$0xf] }
  0x85   : > { %5253 = vmatpush.bf16.msra.mxu1 %v7525_v49  ;;  %v10189_v49 = vld [vmem:[%s11078_s29 + $0x514] sm:$0xf0]  ;;  %v10231_v28 = vld [vmem:[%s11078_s29 + $0x664] sm:$0xf0]  ;;  %v7780_v29 = vld [vmem:[%s11078_s29 + $0x6e0] sm:$0xf] }
  0x86   : > { %5267 = vmatpush.bf16.msra.mxu2 %v7589_v50  ;;  %v7612_v50 = vld [vmem:[%s11078_s29 + $0x590] sm:$0xf]  ;;  %v10247_v32 = vld [vmem:[%s11078_s29 + $0x6e4] sm:$0xf0]  ;;  %v7844_v33 = vld [vmem:[%s11078_s29 + $0x760] sm:$0xf] }
  0x87   : > { %5281 = vmatpush.bf16.msra.mxu3 %v7653_v54  ;;  %v7421_v54 = vor.u32 %v10157_v41, %v7420_v37  ;;  %v7613_v2 = vor.u32 %v10205_v51, %v7612_v50  ;;  %v10263_v34 = vld [vmem:[%s11078_s29 + $0x764] sm:$0xf0]  ;;  %v7908_v37 = vld [vmem:[%s11078_s29 + $0x7e0] sm:$0xf]  ;;  %v7717_v41 = vor.u32 %v10231_v28, %v7716_v27  ;;  %v7781_v42 = vor.u32 %v10247_v32, %v7780_v29  ;;  %v10245_v51 = vld [vmem:[%s11078_s29 + $0x6d4] sm:$0xf0] }
  0x88   : > { %5240 = vmatpush.bf16.msra.mxu0 %v7453_v61  ;;  %v7549_v61 = vor.u32 %v10189_v49, %v7548_v48  ;;  %v7845_v45 = vor.u32 %v10263_v34, %v7844_v33  ;;  %v10229_v48 = vld [vmem:[%s11078_s29 + $0x654] sm:$0xf0]  ;;  %v7772_v49 = vld [vmem:[%s11078_s29 + $0x6d0] sm:$0xf]  ;;  %v10243_v0 = vld [vmem:[%s11078_s29 + $0x6c4] sm:$0xf0] }
  0x89   : > { %5254 = vmatpush.bf16.msra.mxu1 %v7517_v62  ;;  %v7604_v62 = vld [vmem:[%s11078_s29 + $0x580] sm:$0xf]  ;;  %v7836_v52 = vld [vmem:[%s11078_s29 + $0x750] sm:$0xf]  ;;  %v10261_v53 = vld [vmem:[%s11078_s29 + $0x754] sm:$0xf0]  ;;  %v7773_v57 = vor.u32 %v10245_v51, %v7772_v49 }
  0x8a   : > { %5268 = vmatpush.bf16.msra.mxu2 %v7581_v63  ;;  %v10203_v63 = vld [vmem:[%s11078_s29 + $0x584] sm:$0xf0]  ;;  %v10277_v55 = vld [vmem:[%s11078_s29 + $0x7d4] sm:$0xf0]  ;;  %v7837_v59 = vor.u32 %v10261_v53, %v7836_v52  ;;  %v7812_v28 = vld [vmem:[%s11078_s29 + $0x720] sm:$0xf] }
  0x8b   : > { %5282 = vmatpush.bf16.msra.mxu3 %v7645_v4  ;;  %v7788_v4 = vld [vmem:[%s11078_s29 + $0x6f0] sm:$0xf]  ;;  %v7605_v20 = vor.u32 %v10203_v63, %v7604_v62  ;;  %v7764_v62 = vld [vmem:[%s11078_s29 + $0x6c0] sm:$0xf]  ;;  %v10259_v3 = vld [vmem:[%s11078_s29 + $0x744] sm:$0xf0] }
  0x8c   : > { %5241 = vmatpush.bf16.msra.mxu0 %v7445_v11  ;;  %v10281_v11 = vld [vmem:[%s11078_s29 + $0x7f4] sm:$0xf0]  ;;  %v10239_v27 = vld [vmem:[%s11078_s29 + $0x6a4] sm:$0xf0]  ;;  %v7676_v34 = vld [vmem:[%s11078_s29 + $0x610] sm:$0xf] }
  0x8d   : > { %5255 = vmatpush.bf16.msra.mxu1 %v7509_v12  ;;  %v6740_v12 = vld [vmem:[%s13427_s0 + $0x20] sm:$0xf]  ;;  %v10255_v29 = vld [vmem:[%s11078_s29 + $0x724] sm:$0xf0]  ;;  %v10253_v49 = vld [vmem:[%s11078_s29 + $0x714] sm:$0xf0] }
  0x8e   : > { %5269 = vmatpush.bf16.msra.mxu2 %v7573_v13  ;;  %v10006_v13 = vld [vmem:[%s13427_s0 + $0xdc] sm:$0x30]  ;;  %v10271_v32 = vld [vmem:[%s11078_s29 + $0x7a4] sm:$0xf0]  ;;  %v10269_v51 = vld [vmem:[%s11078_s29 + $0x794] sm:$0xf0] }
  0x8f   : > { %5283 = vmatpush.bf16.msra.mxu3 %v7637_v18  ;;  %v10007_v18 = vld [vmem:[%s13427_s0 + $0xe4] sm:$0x30]  ;;  %v11391_v31 = vor.u32 %v10006_v13, %v6740_v12  ;;  %v7756_v12 = vld [vmem:[%s11078_s29 + $0x6b0] sm:$0xf]  ;;  %v7668_v52 = vld [vmem:[%s11078_s29 + $0x600] sm:$0xf] }
  0x90   : > { %5242 = vmatpush.bf16.msra.mxu0 %v7437_v24  ;;  %v6750_v24 = vld [vmem:[%s13427_s0 + $0xe8] sm:$0x30]  ;;  %v11396_v35 = vor.u32 %v10007_v18, %v6748_v16  ;;  %v10257_v16 = vld [vmem:[%s11078_s29 + $0x734] sm:$0xf0]  ;;  %v7884_v18 = vld [vmem:[%s11078_s29 + $0x7b0] sm:$0xf] }
  0x91   : > { %5256 = vmatpush.bf16.msra.mxu1 %v7501_v25  ;;  %v7789_v25 = vor.u32 %v10249_v5, %v7788_v4  ;;  %v7892_v4 = vld [vmem:[%s11078_s29 + $0x7c0] sm:$0xf]  ;;  %v10275_v5 = vld [vmem:[%s11078_s29 + $0x7c4] sm:$0xf0]  ;;  %s6705_s19 = sshll.u32 %s11074_s23, 5  ;;  %s10794_s23 = sshll.u32 (%p11018_p9), %s10996_s16, 4 }
  0x92   : > { %5270 = vmatpush.bf16.msra.mxu2 %v7565_v26  ;;  %v7853_v26 = vor.u32 %v10265_v7, %v7852_v6  ;;  %v7765_v7 = vor.u32 %v10243_v0, %v7764_v62  ;;  %v7893_v13 = vor.u32 %v10275_v5, %v7892_v4  ;;  %v10219_v53 = vld [vmem:[%s11078_s29 + $0x604] sm:$0xf0]  ;;  %v7860_v62 = vld [vmem:[%s11078_s29 + $0x780] sm:$0xf]  ;;  %v7980_v0 = vld [vmem:[%s11078_s29 + $0x870] sm:$0xf]  ;;  %s6586_s25 = scalar_lea.vmem (%p11018_p9), %s13430_s3, %s10794_s23 }
  0x93   : > { %5284 = vmatpush.bf16.msra.mxu3 %v7629_v30  ;;  %v7917_v30 = vor.u32 %v10281_v11, %v7916_v8  ;;  %v10225_v11 = vld [vmem:[%s11078_s29 + $0x634] sm:$0xf0]  ;;  %v8044_v4 = vld [vmem:[%s11078_s29 + $0x8f0] sm:$0xf]  ;;  %s13054_s24 = scalar_lea.vmem [#allocation6], %s6705_s19 }
  0x94   : > { %5243 = vmatpush.bf16.msra.mxu0 %v7429_v36  ;;  %v11398_v36 = vor.u32 %v9982_v19, %v6742_v22  ;;  %v10273_v19 = vld [vmem:[%s11078_s29 + $0x7b4] sm:$0xf0] }
  0x95   : > { %5257 = vmatpush.bf16.msra.mxu1 %v7493_v38  ;;  %v10279_v38 = vld [vmem:[%s11078_s29 + $0x7e4] sm:$0xf0]  ;;  %v10313_v5 = vld [vmem:[%s11078_s29 + $0x8f4] sm:$0xf0] }
  0x96   : > { %5271 = vmatpush.bf16.msra.mxu2 %v7557_v40  ;;  %v11402_v40 = vor.u32 %v9983_v23, %v6750_v24  ;;  %v7909_v50 = vor.u32 %v10279_v38, %v7908_v37  ;;  %v7684_v23 = vld [vmem:[%s11078_s29 + $0x620] sm:$0xf]  ;;  %v10223_v24 = vld [vmem:[%s11078_s29 + $0x624] sm:$0xf0]  ;;  %v7813_v38 = vor.u32 %v10255_v29, %v7812_v28 }
  0x97   : > { %5285 = vmatpush.bf16.msra.mxu3 %v7621_v46  ;;  %v7708_v46 = vld [vmem:[%s11078_s29 + $0x650] sm:$0xf]  ;;  %v7685_v33 = vor.u32 %v10223_v24, %v7684_v23  ;;  %v9985_v23 = vld [vmem:[%s13427_s0 + $0x3c] sm:$0xf]  ;;  %v10295_v28 = vld [vmem:[%s11078_s29 + $0x864] sm:$0xf0] }
  0x98   : > { %5244 = vmatpush.bf16.msra.mxu0 %v7421_v54  ;;  %v7900_v54 = vld [vmem:[%s11078_s29 + $0x7d0] sm:$0xf]  ;;  %v7709_v56 = vor.u32 %v10229_v48, %v7708_v46  ;;  %v6766_v24 = vld [vmem:[%s13427_s0 + $0xf8] sm:$0x30]  ;;  %v8036_v29 = vld [vmem:[%s11078_s29 + $0x8e0] sm:$0xf] }
  0x99   : > { %5258 = vmatpush.bf16.msra.mxu1 %v7485_v60  ;;  %v7700_v60 = vld [vmem:[%s11078_s29 + $0x640] sm:$0xf]  ;;  %v7901_v63 = vor.u32 %v10277_v55, %v7900_v54  ;;  %v7804_v48 = vld [vmem:[%s11078_s29 + $0x710] sm:$0xf] }
  0x9a   : > { %5272 = vmatpush.bf16.msra.mxu2 %v7549_v61  ;;  %v10227_v61 = vld [vmem:[%s11078_s29 + $0x644] sm:$0xf0]  ;;  %v7732_v55 = vld [vmem:[%s11078_s29 + $0x680] sm:$0xf] }
  0x9b   : > { %5286 = vmatpush.bf16.msra.mxu3 %v7613_v2  ;;  %v7828_v2 = vld [vmem:[%s11078_s29 + $0x740] sm:$0xf]  ;;  %v7701_v6 = vor.u32 %v10227_v61, %v7700_v60  ;;  %v7805_v61 = vor.u32 %v10253_v49, %v7804_v48 }
  0x9c   : > { %5245 = vmatpush.bf16.msra.mxu0 %v7413_v9  ;;  %v7829_v8 = vor.u32 %v10259_v3, %v7828_v2  ;;  %v7692_v9 = vld [vmem:[%s11078_s29 + $0x630] sm:$0xf]  ;;  %v10297_v3 = vld [vmem:[%s11078_s29 + $0x874] sm:$0xf0] }
  0x9d   : > { %5259 = vmatpush.bf16.msra.mxu1 %v7477_v14  ;;  %v10241_v14 = vld [vmem:[%s11078_s29 + $0x6b4] sm:$0xf0] }
  0x9e   : > { %5273 = vmatpush.bf16.msra.mxu2 %v7541_v15  ;;  %v7820_v15 = vld [vmem:[%s11078_s29 + $0x730] sm:$0xf] }
  0x9f   : > { %5287 = vmatpush.bf16.msra.mxu3 %v7605_v20  ;;  %5246 = vmatmul.bf16.vlgmr.msra.gmra.mxu0 %v11391_v31  ;;  %v7693_v20 = vor.u32 %v10225_v11, %v7692_v9  ;;  %v7821_v22 = vor.u32 %v10257_v16, %v7820_v15  ;;  %v7669_v9 = vor.u32 %v10219_v53, %v7668_v52  ;;  %v10345_v11 = vld [vmem:[%s11078_s29 + $0x9f4] sm:$0xf0]  ;;  %v8028_v53 = vld [vmem:[%s11078_s29 + $0x8d0] sm:$0xf] }
  0xa0   : > { %5294 = vmatpush.bf16.msrb.mxu0 %v7725_v21  ;;  %5260 = vmatmul.bf16.vlgmr.msra.gmra.mxu1 %v11398_v36  ;;  %v7757_v21 = vor.u32 %v10241_v14, %v7756_v12  ;;  %v6756_v12 = vld [vmem:[%s13427_s0 + $0x30] sm:$0xf]  ;;  %v6764_v16 = vld [vmem:[%s13427_s0 + $0x38] sm:$0xf] }
  0xa1   : > { %5308 = vmatpush.bf16.msrb.mxu1 %v7789_v25  ;;  %5274 = vmatmul.bf16.vlgmr.msra.gmra.mxu2 %v11396_v35  ;;  %v7748_v25 = vld [vmem:[%s11078_s29 + $0x6a0] sm:$0xf]  ;;  %v10293_v52 = vld [vmem:[%s11078_s29 + $0x854] sm:$0xf0] }
  0xa2   : > { %5322 = vmatpush.bf16.msrb.mxu2 %v7853_v26  ;;  %5288 = vmatmul.bf16.vlgmr.msra.gmra.mxu3 %v11402_v40  ;;  %v7885_v26 = vor.u32 %v10273_v19, %v7884_v18  ;;  %v7749_v37 = vor.u32 %v10239_v27, %v7748_v25  ;;  %v10009_v18 = vld [vmem:[%s13427_s0 + $0xf4] sm:$0x30]  ;;  %v9984_v19 = vld [vmem:[%s13427_s0 + $0x34] sm:$0xf]  ;;  %v8045_v25 = vor.u32 %v10313_v5, %v8044_v4  ;;  %v7972_v27 = vld [vmem:[%s11078_s29 + $0x860] sm:$0xf] }
  0xa3   : > { %5336 = vmatpush.bf16.msrb.mxu3 %v7917_v30  ;;  %v7876_v30 = vld [vmem:[%s11078_s29 + $0x7a0] sm:$0xf]  ;;  %v7973_v48 = vor.u32 %v10295_v28, %v7972_v27  ;;  %v10307_v5 = vld [vmem:[%s11078_s29 + $0x8c4] sm:$0xf0] }
  0xa4   : > { %5295 = vmatpush.bf16.msrb.mxu0 %v7717_v41  ;;  %v10221_v41 = vld [vmem:[%s11078_s29 + $0x614] sm:$0xf0]  ;;  %v7877_v46 = vor.u32 %v10271_v32, %v7876_v30  ;;  %v7940_v27 = vld [vmem:[%s11078_s29 + $0x820] sm:$0xf]  ;;  %v10287_v28 = vld [vmem:[%s11078_s29 + $0x824] sm:$0xf0] }
  0xa5   : > { %5309 = vmatpush.bf16.msrb.mxu1 %v7781_v42  ;;  %v7740_v42 = vld [vmem:[%s11078_s29 + $0x690] sm:$0xf]  ;;  %v7677_v54 = vor.u32 %v10221_v41, %v7676_v34  ;;  %v8100_v34 = vld [vmem:[%s11078_s29 + $0x960] sm:$0xf] }
  0xa6   : > { %5323 = vmatpush.bf16.msrb.mxu2 %v7845_v45  ;;  %v10237_v45 = vld [vmem:[%s11078_s29 + $0x694] sm:$0xf0] }
  0xa7   : > { %5337 = vmatpush.bf16.msrb.mxu3 %v7909_v50  ;;  %v7868_v50 = vld [vmem:[%s11078_s29 + $0x790] sm:$0xf]  ;;  %v7741_v60 = vor.u32 %v10237_v45, %v7740_v42  ;;  %v8164_v42 = vld [vmem:[%s11078_s29 + $0x9e0] sm:$0xf]  ;;  %v10343_v45 = vld [vmem:[%s11078_s29 + $0x9e4] sm:$0xf0] }
  0xa8   : > { %5296 = vmatpush.bf16.msrb.mxu0 %v7709_v56  ;;  %v10235_v56 = vld [vmem:[%s11078_s29 + $0x684] sm:$0xf0]  ;;  %v7869_v2 = vor.u32 %v10269_v51, %v7868_v50  ;;  %v7964_v51 = vld [vmem:[%s11078_s29 + $0x850] sm:$0xf] }
  0xa9   : > { %5310 = vmatpush.bf16.msrb.mxu1 %v7773_v57  ;;  %v7796_v57 = vld [vmem:[%s11078_s29 + $0x700] sm:$0xf]  ;;  %v7733_v14 = vor.u32 %v10235_v56, %v7732_v55  ;;  %v10309_v55 = vld [vmem:[%s11078_s29 + $0x8d4] sm:$0xf0]  ;;  %v8092_v56 = vld [vmem:[%s11078_s29 + $0x950] sm:$0xf] }
  0xaa   : > { %5324 = vmatpush.bf16.msrb.mxu2 %v7837_v59  ;;  %v10251_v59 = vld [vmem:[%s11078_s29 + $0x704] sm:$0xf0] }
  0xab   : > { %5338 = vmatpush.bf16.msrb.mxu3 %v7901_v63  ;;  %v10267_v63 = vld [vmem:[%s11078_s29 + $0x784] sm:$0xf0]  ;;  %v7797_v15 = vor.u32 %v10251_v59, %v7796_v57  ;;  %v10325_v57 = vld [vmem:[%s11078_s29 + $0x954] sm:$0xf0]  ;;  %v8156_v59 = vld [vmem:[%s11078_s29 + $0x9d0] sm:$0xf] }
  0xac   : > { %5297 = vmatpush.bf16.msrb.mxu0 %v7701_v6  ;;  %v8108_v6 = vld [vmem:[%s11078_s29 + $0x970] sm:$0xf] }
  0xad   : > { %5311 = vmatpush.bf16.msrb.mxu1 %v7765_v7  ;;  %v10329_v7 = vld [vmem:[%s11078_s29 + $0x974] sm:$0xf0] }
  0xae   : > { %5325 = vmatpush.bf16.msrb.mxu2 %v7829_v8  ;;  %v8172_v8 = vld [vmem:[%s11078_s29 + $0x9f0] sm:$0xf] }
  0xaf   : > { %5339 = vmatpush.bf16.msrb.mxu3 %v7893_v13  ;;  %v10008_v13 = vld [vmem:[%s13427_s0 + $0xec] sm:$0x30]  ;;  %v8173_v30 = vor.u32 %v10345_v11, %v8172_v8  ;;  %v8148_v8 = vld [vmem:[%s11078_s29 + $0x9c0] sm:$0xf] }
  0xb0   : > { %5298 = vmatpush.bf16.msrb.mxu0 %v7693_v20  ;;  %v7861_v20 = vor.u32 %v10267_v63, %v7860_v62  ;;  %v11491_v32 = vor.u32 %v10008_v13, %v6756_v12  ;;  %v8029_v62 = vor.u32 %v10309_v55, %v8028_v53  ;;  %v8093_v63 = vor.u32 %v10325_v57, %v8092_v56  ;;  %v7996_v53 = vld [vmem:[%s11078_s29 + $0x890] sm:$0xf]  ;;  %v10317_v57 = vld [vmem:[%s11078_s29 + $0x914] sm:$0xf0] }
  0xb1   : > { %5312 = vmatpush.bf16.msrb.mxu1 %v7757_v21  ;;  %v7981_v21 = vor.u32 %v10297_v3, %v7980_v0  ;;  %v7956_v0 = vld [vmem:[%s11078_s29 + $0x840] sm:$0xf]  ;;  %v8060_v56 = vld [vmem:[%s11078_s29 + $0x910] sm:$0xf] }
  0xb2   : > { %5326 = vmatpush.bf16.msrb.mxu2 %v7821_v22  ;;  %v6758_v22 = vld [vmem:[%s13427_s0 + $0xf0] sm:$0x30]  ;;  %v8020_v3 = vld [vmem:[%s11078_s29 + $0x8c0] sm:$0xf] }
  0xb3   : > { %5340 = vmatpush.bf16.msrb.mxu3 %v7885_v26  ;;  %v8109_v26 = vor.u32 %v10329_v7, %v8108_v6  ;;  %v11498_v41 = vor.u32 %v9984_v19, %v6758_v22  ;;  %v8084_v6 = vld [vmem:[%s11078_s29 + $0x940] sm:$0xf]  ;;  %v10323_v7 = vld [vmem:[%s11078_s29 + $0x944] sm:$0xf0]  ;;  %v8021_v12 = vor.u32 %v10307_v5, %v8020_v3  ;;  %v10305_v19 = vld [vmem:[%s11078_s29 + $0x8b4] sm:$0xf0] }
  0xb4   : > { %5299 = vmatpush.bf16.msrb.mxu0 %v7685_v33  ;;  %v10311_v33 = vld [vmem:[%s11078_s29 + $0x8e4] sm:$0xf0]  ;;  %v8085_v13 = vor.u32 %v10323_v7, %v8084_v6  ;;  %v8140_v22 = vld [vmem:[%s11078_s29 + $0x9b0] sm:$0xf]  ;;  %v8052_v3 = vld [vmem:[%s11078_s29 + $0x900] sm:$0xf]  ;;  %v8061_v6 = vor.u32 %v10317_v57, %v8060_v56 }
  0xb5   : > { %5313 = vmatpush.bf16.msrb.mxu1 %v7749_v37  ;;  %v10327_v37 = vld [vmem:[%s11078_s29 + $0x964] sm:$0xf0]  ;;  %v8037_v49 = vor.u32 %v10311_v33, %v8036_v29  ;;  %v8004_v29 = vld [vmem:[%s11078_s29 + $0x8a0] sm:$0xf] }
  0xb6   : > { %5327 = vmatpush.bf16.msrb.mxu2 %v7813_v38  ;;  %v11496_v38 = vor.u32 %v10009_v18, %v6764_v16  ;;  %v8101_v50 = vor.u32 %v10327_v37, %v8100_v34  ;;  %v8012_v16 = vld [vmem:[%s11078_s29 + $0x8b0] sm:$0xf]  ;;  %v10303_v33 = vld [vmem:[%s11078_s29 + $0x8a4] sm:$0xf0]  ;;  %v8068_v34 = vld [vmem:[%s11078_s29 + $0x920] sm:$0xf] }
  0xb7   : > { %5341 = vmatpush.bf16.msrb.mxu3 %v7877_v46  ;;  %v11502_v46 = vor.u32 %v9985_v23, %v6766_v24  ;;  %v10337_v23 = vld [vmem:[%s11078_s29 + $0x9b4] sm:$0xf0]  ;;  %v10319_v37 = vld [vmem:[%s11078_s29 + $0x924] sm:$0xf0]  ;;  %v8116_v7 = vld [vmem:[%s11078_s29 + $0x980] sm:$0xf] }
  0xb8   : > { %5300 = vmatpush.bf16.msrb.mxu0 %v7677_v54  ;;  %v8165_v54 = vor.u32 %v10343_v45, %v8164_v42  ;;  %v8132_v42 = vld [vmem:[%s11078_s29 + $0x9a0] sm:$0xf]  ;;  %v10335_v45 = vld [vmem:[%s11078_s29 + $0x9a4] sm:$0xf0] }
  0xb9   : > { %5314 = vmatpush.bf16.msrb.mxu1 %v7741_v60  ;;  %v10341_v60 = vld [vmem:[%s11078_s29 + $0x9d4] sm:$0xf0]  ;;  %v8133_v55 = vor.u32 %v10335_v45, %v8132_v42  ;;  %v8228_v45 = vld [vmem:[%s11078_s29 + $0xa60] sm:$0xf] }
  0xba   : > { %5328 = vmatpush.bf16.msrb.mxu2 %v7805_v61  ;;  %v7965_v61 = vor.u32 %v10293_v52, %v7964_v51  ;;  %v8157_v4 = vor.u32 %v10341_v60, %v8156_v59  ;;  %v8069_v51 = vor.u32 %v10319_v37, %v8068_v34  ;;  %v10285_v52 = vld [vmem:[%s11078_s29 + $0x814] sm:$0xf0]  ;;  %v8124_v59 = vld [vmem:[%s11078_s29 + $0x990] sm:$0xf]  ;;  %v6782_v34 = vld [vmem:[%s13427_s0 + $0x108] sm:$0x30] }
  0xbb   : > { %5342 = vmatpush.bf16.msrb.mxu3 %v7869_v2  ;;  %v10291_v2 = vld [vmem:[%s11078_s29 + $0x844] sm:$0xf0]  ;;  %v10333_v60 = vld [vmem:[%s11078_s29 + $0x994] sm:$0xf0]  ;;  %v8420_v57 = vld [vmem:[%s11078_s29 + $0xbe0] sm:$0xf] }
  0xbc   : > { %5301 = vmatpush.bf16.msrb.mxu0 %v7669_v9  ;;  %v10339_v9 = vld [vmem:[%s11078_s29 + $0x9c4] sm:$0xf0]  ;;  %v7957_v11 = vor.u32 %v10291_v2, %v7956_v0  ;;  %v7988_v0 = vld [vmem:[%s11078_s29 + $0x880] sm:$0xf] }
  0xbd   : > { %5315 = vmatpush.bf16.msrb.mxu1 %v7733_v14  ;;  %v7948_v14 = vld [vmem:[%s11078_s29 + $0x830] sm:$0xf]  ;;  %v8149_v18 = vor.u32 %v10339_v9, %v8148_v8  ;;  %v10299_v2 = vld [vmem:[%s11078_s29 + $0x884] sm:$0xf0] }
  0xbe   : > { %5329 = vmatpush.bf16.msrb.mxu2 %v7797_v15  ;;  %v10289_v15 = vld [vmem:[%s11078_s29 + $0x834] sm:$0xf0]  ;;  %v10331_v8 = vld [vmem:[%s11078_s29 + $0x984] sm:$0xf0]  ;;  %v8236_v9 = vld [vmem:[%s11078_s29 + $0xa70] sm:$0xf] }
  0xbf   : > { %5343 = vmatpush.bf16.msrb.mxu3 %v7861_v20  ;;  %5302 = vmatmul.bf16.vlgmr.msrb.gmra.mxu0 %v11491_v32  ;;  %v8076_v20 = vld [vmem:[%s11078_s29 + $0x930] sm:$0xf]  ;;  %v7949_v24 = vor.u32 %v10289_v15, %v7948_v14  ;;  %v10377_v14 = vld [vmem:[%s11078_s29 + $0xaf4] sm:$0xf0] }
  0xc0   : > { %5350 = vmatpush.bf16.msra.mxu0 %v7981_v21  ;;  %5316 = vmatmul.bf16.vlgmr.msrb.gmra.mxu1 %v11498_v41  ;;  %v10321_v21 = vld [vmem:[%s11078_s29 + $0x934] sm:$0xf0]  ;;  %v8364_v15 = vld [vmem:[%s11078_s29 + $0xb70] sm:$0xf] }
  0xc1   : > { %5364 = vmatpush.bf16.msra.mxu1 %v8045_v25  ;;  %5330 = vmatmul.bf16.vlgmr.msrb.gmra.mxu2 %v11496_v38  ;;  %v8013_v25 = vor.u32 %v10305_v19, %v8012_v16  ;;  %v10393_v16 = vld [vmem:[%s11078_s29 + $0xb74] sm:$0xf0] }
  0xc2   : > { %5378 = vmatpush.bf16.msra.mxu2 %v8109_v26  ;;  %5344 = vmatmul.bf16.vlgmr.msrb.gmra.mxu3 %v11502_v46  ;;  %v8077_v26 = vor.u32 %v10321_v21, %v8076_v20  ;;  %v10409_v20 = vld [vmem:[%s11078_s29 + $0xbf4] sm:$0xf0]  ;;  %v6772_v21 = vld [vmem:[%s13427_s0 + $0x40] sm:$0xf]  ;;  %v8365_v42 = vor.u32 %v10393_v16, %v8364_v15  ;;  %v10355_v15 = vld [vmem:[%s11078_s29 + $0xa44] sm:$0xf0] }
  0xc3   : > { %5392 = vmatpush.bf16.msra.mxu3 %v8173_v30  ;;  %v8141_v30 = vor.u32 %v10337_v23, %v8140_v22  ;;  %v10010_v22 = vld [vmem:[%s13427_s0 + $0xfc] sm:$0x30]  ;;  %v7989_v23 = vor.u32 %v10299_v2, %v7988_v0  ;;  %v8220_v0 = vld [vmem:[%s11078_s29 + $0xa50] sm:$0xf]  ;;  %v10357_v2 = vld [vmem:[%s11078_s29 + $0xa54] sm:$0xf0] }
  0xc4   : > { %5351 = vmatpush.bf16.msra.mxu0 %v7973_v48  ;;  %v7941_v48 = vor.u32 %v10287_v28, %v7940_v27  ;;  %v9986_v27 = vld [vmem:[%s13427_s0 + $0x44] sm:$0xf]  ;;  %v8117_v28 = vor.u32 %v10331_v8, %v8116_v7  ;;  %v10389_v7 = vld [vmem:[%s11078_s29 + $0xb54] sm:$0xf0]  ;;  %v8412_v8 = vld [vmem:[%s11078_s29 + $0xbd0] sm:$0xf] }
  0xc5   : > { %5365 = vmatpush.bf16.msra.mxu1 %v8037_v49  ;;  %v7932_v49 = vld [vmem:[%s11078_s29 + $0x810] sm:$0xf]  ;;  %v8276_v16 = vld [vmem:[%s11078_s29 + $0xac0] sm:$0xf] }
  0xc6   : > { %5379 = vmatpush.bf16.msra.mxu2 %v8101_v50  ;;  %v8005_v50 = vor.u32 %v10303_v33, %v8004_v29  ;;  %v9987_v33 = vld [vmem:[%s13427_s0 + $0x4c] sm:$0xf] }
  0xc7   : > { %5393 = vmatpush.bf16.msra.mxu3 %v8165_v54  ;;  %v10301_v54 = vld [vmem:[%s11078_s29 + $0x894] sm:$0xf0] }
  0xc8   : > { %5352 = vmatpush.bf16.msra.mxu0 %v7965_v61  ;;  %v7924_v61 = vld [vmem:[%s11078_s29 + $0x800] sm:$0xf]  ;;  %v7997_v5 = vor.u32 %v10301_v54, %v7996_v53  ;;  %v10391_v54 = vld [vmem:[%s11078_s29 + $0xb64] sm:$0xf0] }
  0xc9   : > { %5366 = vmatpush.bf16.msra.mxu1 %v8029_v62  ;;  %v10283_v62 = vld [vmem:[%s11078_s29 + $0x804] sm:$0xf0]  ;;  %v8356_v53 = vld [vmem:[%s11078_s29 + $0xb60] sm:$0xf] }
  0xca   : > { %5380 = vmatpush.bf16.msra.mxu2 %v8093_v63  ;;  %v7933_v63 = vor.u32 %v10285_v52, %v7932_v49  ;;  %v7925_v19 = vor.u32 %v10283_v62, %v7924_v61  ;;  %v8292_v49 = vld [vmem:[%s11078_s29 + $0xae0] sm:$0xf]  ;;  %v10375_v52 = vld [vmem:[%s11078_s29 + $0xae4] sm:$0xf0] }
  0xcb   : > { %5394 = vmatpush.bf16.msra.mxu3 %v8157_v4  ;;  %v10315_v4 = vld [vmem:[%s11078_s29 + $0x904] sm:$0xf0]  ;;  %v8293_v62 = vor.u32 %v10375_v52, %v8292_v49 }
  0xcc   : > { %5353 = vmatpush.bf16.msra.mxu0 %v7957_v11  ;;  %v8125_v11 = vor.u32 %v10333_v60, %v8124_v59  ;;  %v10407_v59 = vld [vmem:[%s11078_s29 + $0xbe4] sm:$0xf0]  ;;  %v11602_v60 = vor.u32 %v9987_v33, %v6782_v34  ;;  %v10369_v33 = vld [vmem:[%s11078_s29 + $0xab4] sm:$0xf0]  ;;  %v8332_v34 = vld [vmem:[%s11078_s29 + $0xb30] sm:$0xf] }
  0xcd   : > { %5367 = vmatpush.bf16.msra.mxu1 %v8021_v12  ;;  %v10361_v12 = vld [vmem:[%s11078_s29 + $0xa74] sm:$0xf0] }
  0xce   : > { %5381 = vmatpush.bf16.msra.mxu2 %v8085_v13  ;;  %v8300_v13 = vld [vmem:[%s11078_s29 + $0xaf0] sm:$0xf]  ;;  %v8237_v29 = vor.u32 %v10361_v12, %v8236_v9  ;;  %13466 = vst [vmem:[#allocation11_spill] sm:$0xff] %v11602_v60  ;;  %v10405_v9 = vld [vmem:[%s11078_s29 + $0xbd4] sm:$0xf0] }
  0xcf   : > { %5395 = vmatpush.bf16.msra.mxu3 %v8149_v18  ;;  %v8428_v18 = vld [vmem:[%s11078_s29 + $0xbf0] sm:$0xf]  ;;  %v8301_v37 = vor.u32 %v10377_v14, %v8300_v13  ;;  %v8212_v14 = vld [vmem:[%s11078_s29 + $0xa40] sm:$0xf] }
  0xd0   : > { %5354 = vmatpush.bf16.msra.mxu0 %v7949_v24  ;;  %v8053_v24 = vor.u32 %v10315_v4, %v8052_v3  ;;  %v8284_v3 = vld [vmem:[%s11078_s29 + $0xad0] sm:$0xf]  ;;  %v8421_v4 = vor.u32 %v10407_v59, %v8420_v57  ;;  %v8196_v57 = vld [vmem:[%s11078_s29 + $0xa20] sm:$0xf]  ;;  %v10351_v59 = vld [vmem:[%s11078_s29 + $0xa24] sm:$0xf0] }
  0xd1   : > { %5368 = vmatpush.bf16.msra.mxu1 %v8013_v25  ;;  %v6780_v25 = vld [vmem:[%s13427_s0 + $0x48] sm:$0xf] }
  0xd2   : > { %5382 = vmatpush.bf16.msra.mxu2 %v8077_v26  ;;  %v10011_v26 = vld [vmem:[%s13427_s0 + $0x104] sm:$0x30] }
  0xd3   : > { %5396 = vmatpush.bf16.msra.mxu3 %v8141_v30  ;;  %v6774_v30 = vld [vmem:[%s13427_s0 + $0x100] sm:$0x30] }
  0xd4   : > { %5355 = vmatpush.bf16.msra.mxu0 %v7941_v48  ;;  %v10359_v48 = vld [vmem:[%s11078_s29 + $0xa64] sm:$0xf0]  ;;  %v11598_v56 = vor.u32 %v9986_v27, %v6774_v30  ;;  %v8204_v27 = vld [vmem:[%s11078_s29 + $0xa30] sm:$0xf] }
  0xd5   : > { %5369 = vmatpush.bf16.msra.mxu1 %v8005_v50  ;;  %v8429_v50 = vor.u32 %v10409_v20, %v8428_v18  ;;  %v8229_v61 = vor.u32 %v10359_v48, %v8228_v45  ;;  %v8413_v18 = vor.u32 %v10405_v9, %v8412_v8  ;;  %v8340_v20 = vld [vmem:[%s11078_s29 + $0xb40] sm:$0xf]  ;;  %v10401_v45 = vld [vmem:[%s11078_s29 + $0xbb4] sm:$0xf0]  ;;  %v8188_v8 = vld [vmem:[%s11078_s29 + $0xa10] sm:$0xf] }
  0xd6   : > { %5383 = vmatpush.bf16.msra.mxu2 %v8069_v51  ;;  %v11591_v51 = vor.u32 %v10010_v22, %v6772_v21  ;;  %13465 = vst [vmem:[#allocation10_spill] sm:$0xff] %v11598_v56  ;;  %v10387_v21 = vld [vmem:[%s11078_s29 + $0xb44] sm:$0xf0]  ;;  %v8404_v22 = vld [vmem:[%s11078_s29 + $0xbc0] sm:$0xf] }
  0xd7   : > { %5397 = vmatpush.bf16.msra.mxu3 %v8133_v55  ;;  %v11596_v55 = vor.u32 %v10011_v26, %v6780_v25  ;;  %v8341_v26 = vor.u32 %v10387_v21, %v8340_v20  ;;  %v10397_v21 = vld [vmem:[%s11078_s29 + $0xb94] sm:$0xf0] }
  0xd8   : > { %5356 = vmatpush.bf16.msra.mxu0 %v7933_v63  ;;  %v8357_v63 = vor.u32 %v10391_v54, %v8356_v53 }
  0xd9   : > { %5370 = vmatpush.bf16.msra.mxu1 %v7997_v5  ;;  %13464 = vst [vmem:[#allocation9_spill] sm:$0xff] %v11596_v55  ;;  %v10373_v5 = vld [vmem:[%s11078_s29 + $0xad4] sm:$0xf0] }
  0xda   : > { %5384 = vmatpush.bf16.msra.mxu2 %v8061_v6  ;;  %v8348_v6 = vld [vmem:[%s11078_s29 + $0xb50] sm:$0xf]  ;;  %v8285_v12 = vor.u32 %v10373_v5, %v8284_v3  ;;  %v10399_v5 = vld [vmem:[%s11078_s29 + $0xba4] sm:$0xf0] }
  0xdb   : > { %5398 = vmatpush.bf16.msra.mxu3 %v8125_v11  ;;  %v8221_v11 = vor.u32 %v10357_v2, %v8220_v0  ;;  %v8349_v13 = vor.u32 %v10389_v7, %v8348_v6  ;;  %v8324_v0 = vld [vmem:[%s11078_s29 + $0xb20] sm:$0xf]  ;;  %v10383_v2 = vld [vmem:[%s11078_s29 + $0xb24] sm:$0xf0]  ;;  %v8197_v7 = vor.u32 %v10351_v59, %v8196_v57  ;;  %v10473_v59 = vld [vmem:[%s11078_s29 + $0xdf4] sm:$0xf0] }
  0xdc   : > { %5357 = vmatpush.bf16.msra.mxu0 %v7925_v19  ;;  %v10371_v19 = vld [vmem:[%s11078_s29 + $0xac4] sm:$0xf0]  ;;  %v5135_v48 = vpop.f32.mrf.mxu0 }
  0xdd   : > { %5371 = vmatpush.bf16.msra.mxu1 %v7989_v23  ;;  %v10403_v23 = vld [vmem:[%s11078_s29 + $0xbc4] sm:$0xf0]  ;;  %v8277_v25 = vor.u32 %v10371_v19, %v8276_v16  ;;  %v5149_v49 = vpop.f32.mrf.mxu1  ;;  %v8316_v16 = vld [vmem:[%s11078_s29 + $0xb10] sm:$0xf] }
  0xde   : > { %5385 = vmatpush.bf16.msra.mxu2 %v8053_v24  ;;  %v8213_v24 = vor.u32 %v10355_v15, %v8212_v14  ;;  %v8405_v30 = vor.u32 %v10403_v23, %v8404_v22  ;;  %v5150_v52 = vadd.f32 %v5149_v49, %v5135_v48  ;;  %v10365_v14 = vld [vmem:[%s11078_s29 + $0xa94] sm:$0xf0]  ;;  %v8380_v19 = vld [vmem:[%s11078_s29 + $0xb90] sm:$0xf]  ;;  %v8180_v22 = vld [vmem:[%s11078_s29 + $0xa00] sm:$0xf] }
  0xdf   : > { %5399 = vmatpush.bf16.msra.mxu3 %v8117_v28  ;;  %5358 = vmatmul.bf16.vlgmr.msra.gmra.mxu0 %v11591_v51  ;;  %v10353_v28 = vld [vmem:[%s11078_s29 + $0xa34] sm:$0xf0]  ;;  %v10347_v23 = vld [vmem:[%s11078_s29 + $0xa04] sm:$0xf0]  ;;  %v8556_v49 = vld [vmem:[%s11078_s29 + $0xcf0] sm:$0xf] }
  0xe0   : > { %5406 = vmatpush.bf16.msrb.mxu0 %v8237_v29  ;;  %5372 = vmatmul.bf16.vlgmr.msra.gmra.mxu1 %v11598_v56  ;;  %v8268_v29 = vld [vmem:[%s11078_s29 + $0xab0] sm:$0xf]  ;;  %v10425_v48 = vld [vmem:[%s11078_s29 + $0xc74] sm:$0xf0]  ;;  %v8181_v57 = vor.u32 %v10347_v23, %v8180_v22  ;;  %v10455_v22 = vld [vmem:[%s11078_s29 + $0xd64] sm:$0xf0] }
  0xe1   : > { %5420 = vmatpush.bf16.msrb.mxu1 %v8301_v37  ;;  %5386 = vmatmul.bf16.vlgmr.msra.gmra.mxu2 %v11596_v55  ;;  %v10385_v37 = vld [vmem:[%s11078_s29 + $0xb34] sm:$0xf0]  ;;  %v8269_v53 = vor.u32 %v10369_v33, %v8268_v29  ;;  %v10379_v29 = vld [vmem:[%s11078_s29 + $0xb04] sm:$0xf0] }
  0xe2   : > { %5434 = vmatpush.bf16.msrb.mxu2 %v8365_v42  ;;  %5400 = vmatmul.bf16.vlgmr.msra.gmra.mxu3 %v11602_v60  ;;  %v8396_v42 = vld [vmem:[%s11078_s29 + $0xbb0] sm:$0xf]  ;;  %v8333_v54 = vor.u32 %v10385_v37, %v8332_v34  ;;  %v8372_v34 = vld [vmem:[%s11078_s29 + $0xb80] sm:$0xf]  ;;  %v10395_v37 = vld [vmem:[%s11078_s29 + $0xb84] sm:$0xf0] }
  0xe3   : > { %5448 = vmatpush.bf16.msrb.mxu3 %v8429_v50  ;;  %v8205_v50 = vor.u32 %v10353_v28, %v8204_v27  ;;  %v10363_v27 = vld [vmem:[%s11078_s29 + $0xa84] sm:$0xf0]  ;;  %v8308_v28 = vld [vmem:[%s11078_s29 + $0xb00] sm:$0xf]  ;;  %v9708_v60 = vld [vmem:[%s11078_s29 + $0x15f0] sm:$0xf] }
  0xe4   : > { %5407 = vmatpush.bf16.msrb.mxu0 %v8229_v61  ;;  %v8260_v61 = vld [vmem:[%s11078_s29 + $0xaa0] sm:$0xf]  ;;  %v5163_v3 = vpop.f32.mrf.mxu2  ;;  %v10729_v55 = vld [vmem:[%s11078_s29 + $0x15f4] sm:$0xf0] }
  0xe5   : > { %5421 = vmatpush.bf16.msrb.mxu1 %v8293_v62  ;;  %v8397_v62 = vor.u32 %v10401_v45, %v8396_v42  ;;  %v5164_v6 = vadd.f32 %v5163_v3, %v5150_v52  ;;  %v5177_v20 = vpop.f32.mrf.mxu3  ;;  %v8492_v42 = vld [vmem:[%s11078_s29 + $0xc70] sm:$0xf]  ;;  %v8381_v45 = vor.u32 %v10397_v21, %v8380_v19  ;;  %v10013_v3 = vld [vmem:[%s13427_s0 + $0x114] sm:$0x30]  ;;  %v8612_v21 = vld [vmem:[%s11078_s29 + $0xd60] sm:$0xf] }
  0xe6   : > { %5435 = vmatpush.bf16.msrb.mxu2 %v8357_v63  ;;  %v10367_v63 = vld [vmem:[%s11078_s29 + $0xaa4] sm:$0xf0]  ;;  %v8620_v52 = vld [vmem:[%s11078_s29 + $0xd70] sm:$0xf] }
  0xe7   : > { %5449 = vmatpush.bf16.msrb.mxu3 %v8421_v4  ;;  %v8388_v4 = vld [vmem:[%s11078_s29 + $0xba0] sm:$0xf]  ;;  %v8261_v9 = vor.u32 %v10367_v63, %v8260_v61  ;;  %v6788_v61 = vld [vmem:[%s13427_s0 + $0x50] sm:$0xf] }
  0xe8   : > { %5408 = vmatpush.bf16.msrb.mxu0 %v8221_v11  ;;  %v8325_v11 = vor.u32 %v10383_v2, %v8324_v0  ;;  %v8389_v15 = vor.u32 %v10399_v5, %v8388_v4  ;;  %v8309_v0 = vor.u32 %v10379_v29, %v8308_v28  ;;  %v6796_v2 = vld [vmem:[%s13427_s0 + $0x58] sm:$0xf]  ;;  %v9988_v4 = vld [vmem:[%s13427_s0 + $0x54] sm:$0xf]  ;;  %v8373_v5 = vor.u32 %v10395_v37, %v8372_v34  ;;  %v11706_v28 = vpop.f32.mrf.mxu1  ;;  %v8476_v37 = vld [vmem:[%s11078_s29 + $0xc50] sm:$0xf] }
  0xe9   : > { %5422 = vmatpush.bf16.msrb.mxu1 %v8285_v12  ;;  %v10349_v12 = vld [vmem:[%s11078_s29 + $0xa14] sm:$0xf0]  ;;  %v11700_v23 = vor.u32 %v10013_v3, %v6796_v2  ;;  %v8613_v34 = vor.u32 %v10455_v22, %v8612_v21  ;;  %v8532_v2 = vld [vmem:[%s11078_s29 + $0xcc0] sm:$0xf]  ;;  %v8524_v22 = vld [vmem:[%s11078_s29 + $0xcb0] sm:$0xf] }
  0xea   : > { %5436 = vmatpush.bf16.msrb.mxu2 %v8349_v13  ;;  %v8252_v13 = vld [vmem:[%s11078_s29 + $0xa90] sm:$0xf]  ;;  %v10417_v21 = vld [vmem:[%s11078_s29 + $0xc34] sm:$0xf0] }
  0xeb   : > { %5450 = vmatpush.bf16.msrb.mxu3 %v8413_v18  ;;  %v10381_v18 = vld [vmem:[%s11078_s29 + $0xb14] sm:$0xf0]  ;;  %13468 = vst [vmem:[#allocation13_spill] sm:$0xff] %v11700_v23 }
  0xec   : > { %5409 = vmatpush.bf16.msrb.mxu0 %v8213_v24  ;;  %v11650_v24 = vadd.f32 %v5177_v20, %v5164_v6  ;;  %v8317_v33 = vor.u32 %v10381_v18, %v8316_v16  ;;  %v8493_v6 = vor.u32 %v10425_v48, %v8492_v42  ;;  %v8548_v16 = vld [vmem:[%s11078_s29 + $0xce0] sm:$0xf]  ;;  %v10439_v20 = vld [vmem:[%s11078_s29 + $0xce4] sm:$0xf0]  ;;  %v10421_v42 = vld [vmem:[%s11078_s29 + $0xc54] sm:$0xf0] }
  0xed   : > { %5423 = vmatpush.bf16.msrb.mxu1 %v8277_v25  ;;  %v8189_v25 = vor.u32 %v10349_v12, %v8188_v8  ;;  %v9989_v8 = vld [vmem:[%s13427_s0 + $0x5c] sm:$0xf] }
  0xee   : > { %5437 = vmatpush.bf16.msrb.mxu2 %v8341_v26  ;;  %v8244_v26 = vld [vmem:[%s11078_s29 + $0xa80] sm:$0xf] }
  0xef   : > { %5451 = vmatpush.bf16.msrb.mxu3 %v8405_v30  ;;  %v8253_v30 = vor.u32 %v10365_v14, %v8252_v13  ;;  %v8245_v63 = vor.u32 %v10363_v27, %v8244_v26  ;;  %v11690_v13 = vpop.f32.mrf.mxu0  ;;  %v8484_v14 = vld [vmem:[%s11078_s29 + $0xc60] sm:$0xf]  ;;  %v10471_v27 = vld [vmem:[%s11078_s29 + $0xde4] sm:$0xf0] }
  0xf0   : > { %5410 = vmatpush.bf16.msrb.mxu0 %v8205_v50  ;;  %v10441_v50 = vld [vmem:[%s11078_s29 + $0xcf4] sm:$0xf0]  ;;  %v8676_v26 = vld [vmem:[%s11078_s29 + $0xde0] sm:$0xf] }
  0xf1   : > { %5424 = vmatpush.bf16.msrb.mxu1 %v8269_v53  ;;  %v10457_v53 = vld [vmem:[%s11078_s29 + $0xd74] sm:$0xf0]  ;;  %v8677_v48 = vor.u32 %v10471_v27, %v8676_v26 }
  0xf2   : > { %5438 = vmatpush.bf16.msrb.mxu2 %v8333_v54  ;;  %v8684_v54 = vld [vmem:[%s11078_s29 + $0xdf0] sm:$0xf]  ;;  %v8621_v12 = vor.u32 %v10457_v53, %v8620_v52  ;;  %v10453_v52 = vld [vmem:[%s11078_s29 + $0xd54] sm:$0xf0] }
  0xf3   : > { %5452 = vmatpush.bf16.msrb.mxu3 %v8397_v62  ;;  %v10012_v62 = vld [vmem:[%s13427_s0 + $0x10c] sm:$0x30]  ;;  %v8685_v18 = vor.u32 %v10473_v59, %v8684_v54  ;;  %v10469_v54 = vld [vmem:[%s11078_s29 + $0xdd4] sm:$0xf0]  ;;  %v11722_v59 = vpop.f32.mrf.mxu2 }
  0xf4   : > { %5411 = vmatpush.bf16.msrb.mxu0 %v8197_v7  ;;  %v6790_v7 = vld [vmem:[%s13427_s0 + $0x110] sm:$0x30]  ;;  %v11695_v19 = vor.u32 %v10012_v62, %v6788_v61  ;;  %v8668_v53 = vld [vmem:[%s11078_s29 + $0xdd0] sm:$0xf] }
  0xf5   : > { %5425 = vmatpush.bf16.msrb.mxu1 %v8261_v9  ;;  %v6798_v9 = vld [vmem:[%s13427_s0 + $0x118] sm:$0x30]  ;;  %v8669_v3 = vor.u32 %v10469_v54, %v8668_v53 }
  0xf6   : > { %5439 = vmatpush.bf16.msrb.mxu2 %v8325_v11  ;;  %v8557_v11 = vor.u32 %v10441_v50, %v8556_v49  ;;  %13467 = vst [vmem:[#allocation12_spill] sm:$0xff] %v11695_v19  ;;  %v11708_v29 = vor.u32 %v9989_v8, %v6798_v9  ;;  %v10437_v49 = vld [vmem:[%s11078_s29 + $0xcd4] sm:$0xf0]  ;;  %v8604_v50 = vld [vmem:[%s11078_s29 + $0xd50] sm:$0xf] }
  0xf7   : > { %5453 = vmatpush.bf16.msrb.mxu3 %v8389_v15  ;;  %v10423_v15 = vld [vmem:[%s11078_s29 + $0xc64] sm:$0xf0]  ;;  %v8605_v62 = vor.u32 %v10453_v52, %v8604_v50  ;;  %v8660_v9 = vld [vmem:[%s11078_s29 + $0xdc0] sm:$0xf] }
  0xf8   : > { %5412 = vmatpush.bf16.msrb.mxu0 %v8189_v25  ;;  %v11702_v25 = vor.u32 %v9988_v4, %v6790_v7  ;;  %13470 = vst [vmem:[#allocation15_spill] sm:$0xff] %v11708_v29  ;;  %v11727_v4 = vpop.f32.mrf.mxu3  ;;  %v10451_v7 = vld [vmem:[%s11078_s29 + $0xd44] sm:$0xf0]  ;;  %v8516_v52 = vld [vmem:[%s11078_s29 + $0xca0] sm:$0xf] }
  0xf9   : > { %5426 = vmatpush.bf16.msrb.mxu1 %v8253_v30  ;;  %v8485_v30 = vor.u32 %v10423_v15, %v8484_v14  ;;  %v10415_v50 = vld [vmem:[%s11078_s29 + $0xc24] sm:$0xf0] }
  0xfa   : > { %5440 = vmatpush.bf16.msrb.mxu2 %v8317_v33  ;;  %13469 = vst [vmem:[#allocation14_spill] sm:$0xff] %v11702_v25  ;;  %v8549_v33 = vor.u32 %v10439_v20, %v8548_v16  ;;  %v8460_v20 = vld [vmem:[%s11078_s29 + $0xc30] sm:$0xf] }
  0xfb   : > { %5454 = vmatpush.bf16.msrb.mxu3 %v8381_v45  ;;  %v8540_v45 = vld [vmem:[%s11078_s29 + $0xcd0] sm:$0xf] }
  0xfc   : > { %5413 = vmatpush.bf16.msrb.mxu0 %v8181_v57  ;;  %v8477_v57 = vor.u32 %v10421_v42, %v8476_v37  ;;  %v8541_v61 = vor.u32 %v10437_v49, %v8540_v45  ;;  %v5191_v8 = vpop.f32.mrf.mxu0  ;;  %v10465_v37 = vld [vmem:[%s11078_s29 + $0xdb4] sm:$0xf0]  ;;  %v8461_v42 = vor.u32 %v10417_v21, %v8460_v20  ;;  %v8452_v49 = vld [vmem:[%s11078_s29 + $0xc20] sm:$0xf]  ;;  %v8636_v20 = vld [vmem:[%s11078_s29 + $0xd90] sm:$0xf] }
  0xfd   : > { %5427 = vmatpush.bf16.msrb.mxu1 %v8245_v63  ;;  %v8468_v63 = vld [vmem:[%s11078_s29 + $0xc40] sm:$0xf]  ;;  %v10461_v21 = vld [vmem:[%s11078_s29 + $0xd94] sm:$0xf0] }
  0xfe   : > { %5441 = vmatpush.bf16.msrb.mxu2 %v8309_v0  ;;  %v10419_v0 = vld [vmem:[%s11078_s29 + $0xc44] sm:$0xf0] }
  0xff   : > { %5455 = vmatpush.bf16.msrb.mxu3 %v8373_v5  ;;  %5414 = vmatmul.bf16.vlgmr.msrb.gmra.mxu0 %v11695_v19  ;;  %v10435_v5 = vld [vmem:[%s11078_s29 + $0xcc4] sm:$0xf0]  ;;  %v8469_v14 = vor.u32 %v10419_v0, %v8468_v63  ;;  %v8644_v0 = vld [vmem:[%s11078_s29 + $0xda0] sm:$0xf]  ;;  %v10713_v19 = vld [vmem:[%s11078_s29 + $0x1574] sm:$0xf0] }
 0x100   : > { %5462 = vmatpush.bf16.msra.mxu0 %v8493_v6  ;;  %5428 = vmatmul.bf16.vlgmr.msrb.gmra.mxu1 %v11702_v25  ;;  %v8596_v6 = vld [vmem:[%s11078_s29 + $0xd40] sm:$0xf]  ;;  %v8533_v15 = vor.u32 %v10435_v5, %v8532_v2  ;;  %v10463_v2 = vld [vmem:[%s11078_s29 + $0xda4] sm:$0xf0]  ;;  %v8453_v5 = vor.u32 %v10415_v50, %v8452_v49  ;;  %v8748_v49 = vld [vmem:[%s11078_s29 + $0xe70] sm:$0xf]  ;;  %v8637_v50 = vor.u32 %v10461_v21, %v8636_v20 }
 0x101   : > { %5476 = vmatpush.bf16.msra.mxu1 %v8557_v11  ;;  %5442 = vmatmul.bf16.vlgmr.msrb.gmra.mxu2 %v11700_v23  ;;  %v10467_v11 = vld [vmem:[%s11078_s29 + $0xdc4] sm:$0xf0]  ;;  %v8597_v16 = vor.u32 %v10451_v7, %v8596_v6  ;;  %v8444_v6 = vld [vmem:[%s11078_s29 + $0xc10] sm:$0xf]  ;;  %v10665_v23 = vld [vmem:[%s11078_s29 + $0x13f4] sm:$0xf0] }
 0x102   : > { %5490 = vmatpush.bf16.msra.mxu2 %v8621_v12  ;;  %5456 = vmatmul.bf16.vlgmr.msrb.gmra.mxu3 %v11708_v29  ;;  %v5192_v12 = vadd.f32 %v5191_v8, %v11650_v24  ;;  %v8661_v26 = vor.u32 %v10467_v11, %v8660_v9  ;;  %v10449_v24 = vld [vmem:[%s11078_s29 + $0xd34] sm:$0xf0]  ;;  %v9452_v29 = vld [vmem:[%s11078_s29 + $0x13f0] sm:$0xf] }
 0x103   : > { %5504 = vmatpush.bf16.msra.mxu3 %v8685_v18  ;;  %v5205_v18 = vpop.f32.mrf.mxu1  ;;  %v10413_v11 = vld [vmem:[%s11078_s29 + $0xc14] sm:$0xf0] }
 0x104   : > { %5463 = vmatpush.bf16.msra.mxu0 %v8485_v30  ;;  %v5206_v27 = vadd.f32 %v5205_v18, %v5192_v12  ;;  %v10433_v30 = vld [vmem:[%s11078_s29 + $0xcb4] sm:$0xf0]  ;;  %v5219_v54 = vpop.f32.mrf.mxu2  ;;  %v8508_v12 = vld [vmem:[%s11078_s29 + $0xc90] sm:$0xf] }
 0x105   : > { %5477 = vmatpush.bf16.msra.mxu1 %v8549_v33  ;;  %v8588_v33 = vld [vmem:[%s11078_s29 + $0xd30] sm:$0xf]  ;;  %v8525_v45 = vor.u32 %v10433_v30, %v8524_v22  ;;  %v10445_v18 = vld [vmem:[%s11078_s29 + $0xd14] sm:$0xf0]  ;;  %v8436_v22 = vld [vmem:[%s11078_s29 + $0xc00] sm:$0xf] }
 0x106   : > { %5491 = vmatpush.bf16.msra.mxu2 %v8613_v34  ;;  %v8652_v34 = vld [vmem:[%s11078_s29 + $0xdb0] sm:$0xf]  ;;  %v5220_v63 = vadd.f32 %v5219_v54, %v5206_v27  ;;  %v8445_v27 = vor.u32 %v10413_v11, %v8444_v6  ;;  %v8500_v30 = vld [vmem:[%s11078_s29 + $0xc80] sm:$0xf]  ;;  %v10505_v54 = vld [vmem:[%s11078_s29 + $0xef4] sm:$0xf0] }
 0x107   : > { %5505 = vmatpush.bf16.msra.mxu3 %v8677_v48  ;;  %v8589_v48 = vor.u32 %v10449_v24, %v8588_v33  ;;  %v8653_v53 = vor.u32 %v10465_v37, %v8652_v34  ;;  %v10427_v33 = vld [vmem:[%s11078_s29 + $0xc84] sm:$0xf0]  ;;  %v8564_v24 = vld [vmem:[%s11078_s29 + $0xd00] sm:$0xf]  ;;  %v9990_v11 = vld [vmem:[%s13427_s0 + $0x64] sm:$0xf] }
 0x108   : > { %5464 = vmatpush.bf16.msra.mxu0 %v8477_v57  ;;  %v10431_v57 = vld [vmem:[%s11078_s29 + $0xca4] sm:$0xf0] }
 0x109   : > { %5478 = vmatpush.bf16.msra.mxu1 %v8541_v61  ;;  %v8580_v61 = vld [vmem:[%s11078_s29 + $0xd20] sm:$0xf]  ;;  %v8517_v8 = vor.u32 %v10431_v57, %v8516_v52  ;;  %v10443_v34 = vld [vmem:[%s11078_s29 + $0xd04] sm:$0xf0]  ;;  %v10489_v52 = vld [vmem:[%s11078_s29 + $0xe74] sm:$0xf0] }
 0x10a   : > { %5492 = vmatpush.bf16.msra.mxu2 %v8605_v62  ;;  %v10447_v62 = vld [vmem:[%s11078_s29 + $0xd24] sm:$0xf0]  ;;  %v8876_v57 = vld [vmem:[%s11078_s29 + $0xf70] sm:$0xf]  ;;  %v8565_v6 = vor.u32 %v10443_v34, %v8564_v24  ;;  %v8868_v34 = vld [vmem:[%s11078_s29 + $0xf60] sm:$0xf] }
 0x10b   : > { %5506 = vmatpush.bf16.msra.mxu3 %v8669_v3  ;;  %v5233_v3 = vpop.f32.mrf.mxu3  ;;  %v8581_v9 = vor.u32 %v10447_v62, %v8580_v61  ;;  %v10521_v61 = vld [vmem:[%s11078_s29 + $0xf74] sm:$0xf0]  ;;  %v8940_v62 = vld [vmem:[%s11078_s29 + $0xff0] sm:$0xf]  ;;  %v10503_v24 = vld [vmem:[%s11078_s29 + $0xee4] sm:$0xf0] }
 0x10c   : > { %5465 = vmatpush.bf16.msra.mxu0 %v8469_v14  ;;  %v11752_v7 = vadd.f32 %v5233_v3, %v5220_v63  ;;  %v10429_v14 = vld [vmem:[%s11078_s29 + $0xc94] sm:$0xf0]  ;;  %v10014_v3 = vld [vmem:[%s13427_s0 + $0x11c] sm:$0x30]  ;;  %v8877_v21 = vor.u32 %v10521_v61, %v8876_v57 }
 0x10d   : > { %5479 = vmatpush.bf16.msra.mxu1 %v8533_v15  ;;  %v8645_v15 = vor.u32 %v10463_v2, %v8644_v0  ;;  %v8509_v37 = vor.u32 %v10429_v14, %v8508_v12  ;;  %v10537_v0 = vld [vmem:[%s11078_s29 + $0xff4] sm:$0xf0]  ;;  %v6804_v2 = vld [vmem:[%s13427_s0 + $0x60] sm:$0xf]  ;;  %v8749_v14 = vor.u32 %v10489_v52, %v8748_v49  ;;  %v11817_v52 = vpop.f32.mrf.mxu1 }
 0x10e   : > { %5493 = vmatpush.bf16.msra.mxu2 %v8597_v16  ;;  %v8572_v16 = vld [vmem:[%s11078_s29 + $0xd10] sm:$0xf]  ;;  %v8932_v49 = vld [vmem:[%s11078_s29 + $0xfe0] sm:$0xf] }
 0x10f   : > { %5507 = vmatpush.bf16.msra.mxu3 %v8661_v26  ;;  %v10411_v26 = vld [vmem:[%s11078_s29 + $0xc04] sm:$0xf0] }
 0x110   : > { %5466 = vmatpush.bf16.msra.mxu0 %v8461_v42  ;;  %v8573_v42 = vor.u32 %v10445_v18, %v8572_v16  ;;  %v8437_v63 = vor.u32 %v10411_v26, %v8436_v22  ;;  %v9991_v16 = vld [vmem:[%s13427_s0 + $0x6c] sm:$0xf]  ;;  %v8740_v22 = vld [vmem:[%s11078_s29 + $0xe60] sm:$0xf]  ;;  %v10487_v26 = vld [vmem:[%s11078_s29 + $0xe64] sm:$0xf0] }
 0x111   : > { %5480 = vmatpush.bf16.msra.mxu1 %v8525_v45  ;;  %v8628_v45 = vld [vmem:[%s11078_s29 + $0xd80] sm:$0xf]  ;;  %v6814_v18 = vld [vmem:[%s13427_s0 + $0x128] sm:$0x30] }
 0x112   : > { %5494 = vmatpush.bf16.msra.mxu2 %v8589_v48  ;;  %v10459_v48 = vld [vmem:[%s11078_s29 + $0xd84] sm:$0xf0] }
 0x113   : > { %5508 = vmatpush.bf16.msra.mxu3 %v8653_v53  ;;  %v8812_v53 = vld [vmem:[%s11078_s29 + $0xef0] sm:$0xf]  ;;  %v8629_v12 = vor.u32 %v10459_v48, %v8628_v45 }
 0x114   : > { %5467 = vmatpush.bf16.msra.mxu0 %v8453_v5  ;;  %v8501_v5 = vor.u32 %v10427_v33, %v8500_v30  ;;  %v8813_v20 = vor.u32 %v10505_v54, %v8812_v53  ;;  %v8941_v30 = vor.u32 %v10537_v0, %v8940_v62  ;;  %v11804_v33 = vor.u32 %v10014_v3, %v6804_v2  ;;  %v8732_v62 = vld [vmem:[%s11078_s29 + $0xe50] sm:$0xf]  ;;  %v10501_v3 = vld [vmem:[%s11078_s29 + $0xed4] sm:$0xf0] }
 0x115   : > { %5481 = vmatpush.bf16.msra.mxu1 %v8517_v8  ;;  %v6812_v8 = vld [vmem:[%s13427_s0 + $0x68] sm:$0xf]  ;;  %v11819_v53 = vor.u32 %v9991_v16, %v6814_v18  ;;  %v8741_v54 = vor.u32 %v10487_v26, %v8740_v22  ;;  %v8796_v0 = vld [vmem:[%s11078_s29 + $0xed0] sm:$0xf]  ;;  %v8788_v18 = vld [vmem:[%s11078_s29 + $0xec0] sm:$0xf] }
 0x116   : > { %5495 = vmatpush.bf16.msra.mxu2 %v8581_v9  ;;  %v10015_v9 = vld [vmem:[%s13427_s0 + $0x124] sm:$0x30]  ;;  %13471 = vst [vmem:[#allocation16_spill] sm:$0xff] %v11804_v33  ;;  %v8852_v26 = vld [vmem:[%s11078_s29 + $0xf40] sm:$0xf] }
 0x117   : > { %5509 = vmatpush.bf16.msra.mxu3 %v8645_v15  ;;  %v6806_v15 = vld [vmem:[%s13427_s0 + $0x120] sm:$0x30]  ;;  %v11811_v45 = vor.u32 %v10015_v9, %v6812_v8  ;;  %13474 = vst [vmem:[#allocation19_spill] sm:$0xff] %v11819_v53  ;;  %v8924_v8 = vld [vmem:[%s11078_s29 + $0xfd0] sm:$0xf] }
 0x118   : > { %5468 = vmatpush.bf16.msra.mxu0 %v8445_v27  ;;  %v8804_v27 = vld [vmem:[%s11078_s29 + $0xee0] sm:$0xf]  ;;  %v11813_v48 = vor.u32 %v9990_v11, %v6806_v15  ;;  %v10533_v9 = vld [vmem:[%s11078_s29 + $0xfd4] sm:$0xf0]  ;;  %v10483_v16 = vld [vmem:[%s11078_s29 + $0xe44] sm:$0xf0] }
 0x119   : > { %5482 = vmatpush.bf16.msra.mxu1 %v8509_v37  ;;  %v10519_v37 = vld [vmem:[%s11078_s29 + $0xf64] sm:$0xf0]  ;;  %13472 = vst [vmem:[#allocation17_spill] sm:$0xff] %v11811_v45  ;;  %v8805_v57 = vor.u32 %v10503_v24, %v8804_v27  ;;  %v8724_v15 = vld [vmem:[%s11078_s29 + $0xe40] sm:$0xf] }
 0x11a   : > { %5496 = vmatpush.bf16.msra.mxu2 %v8573_v42  ;;  %v11809_v42 = vpop.f32.mrf.mxu0  ;;  %13473 = vst [vmem:[#allocation18_spill] sm:$0xff] %v11813_v48  ;;  %v8869_v61 = vor.u32 %v10519_v37, %v8868_v34  ;;  %v10499_v22 = vld [vmem:[%s11078_s29 + $0xec4] sm:$0xf0]  ;;  %v8916_v34 = vld [vmem:[%s11078_s29 + $0xfc0] sm:$0xf] }
 0x11b   : > { %5510 = vmatpush.bf16.msra.mxu3 %v8637_v50  ;;  %v10535_v50 = vld [vmem:[%s11078_s29 + $0xfe4] sm:$0xf0] }
 0x11c   : > { %5469 = vmatpush.bf16.msra.mxu0 %v8437_v63  ;;  %v10485_v63 = vld [vmem:[%s11078_s29 + $0xe54] sm:$0xf0]  ;;  %v8933_v2 = vor.u32 %v10535_v50, %v8932_v49  ;;  %v10515_v27 = vld [vmem:[%s11078_s29 + $0xf44] sm:$0xf0]  ;;  %v8725_v50 = vor.u32 %v10483_v16, %v8724_v15  ;;  %v8708_v15 = vld [vmem:[%s11078_s29 + $0xe20] sm:$0xf] }
 0x11d   : > { %5483 = vmatpush.bf16.msra.mxu1 %v8501_v5  ;;  %v8860_v5 = vld [vmem:[%s11078_s29 + $0xf50] sm:$0xf]  ;;  %v8733_v11 = vor.u32 %v10485_v63, %v8732_v62  ;;  %v10531_v37 = vld [vmem:[%s11078_s29 + $0xfc4] sm:$0xf0]  ;;  %v10481_v63 = vld [vmem:[%s11078_s29 + $0xe34] sm:$0xf0] }
 0x11e   : > { %5497 = vmatpush.bf16.msra.mxu2 %v8565_v6  ;;  %v10517_v6 = vld [vmem:[%s11078_s29 + $0xf54] sm:$0xf0]  ;;  %v8716_v62 = vld [vmem:[%s11078_s29 + $0xe30] sm:$0xf]  ;;  %v10479_v16 = vld [vmem:[%s11078_s29 + $0xe24] sm:$0xf0] }
 0x11f   : > { %5511 = vmatpush.bf16.msra.mxu3 %v8629_v12  ;;  %5470 = vmatmul.bf16.vlgmr.msra.gmra.mxu0 %v11804_v33  ;;  %v8797_v12 = vor.u32 %v10501_v3, %v8796_v0  ;;  %v8780_v0 = vld [vmem:[%s11078_s29 + $0xeb0] sm:$0xf]  ;;  %v10649_v33 = vld [vmem:[%s11078_s29 + $0x1374] sm:$0xf0] }
 0x120   : > { %5518 = vmatpush.bf16.msrb.mxu0 %v8749_v14  ;;  %5484 = vmatmul.bf16.vlgmr.msra.gmra.mxu1 %v11813_v48  ;;  %v8861_v14 = vor.u32 %v10517_v6, %v8860_v5  ;;  %v10497_v5 = vld [vmem:[%s11078_s29 + $0xeb4] sm:$0xf0]  ;;  %v8844_v6 = vld [vmem:[%s11078_s29 + $0xf30] sm:$0xf] }
 0x121   : > { %5532 = vmatpush.bf16.msrb.mxu1 %v8813_v20  ;;  %5498 = vmatmul.bf16.vlgmr.msra.gmra.mxu2 %v11811_v45  ;;  %v11836_v20 = vpop.f32.mrf.mxu2  ;;  %v10601_v45 = vld [vmem:[%s11078_s29 + $0x11f4] sm:$0xf0] }
 0x122   : > { %5546 = vmatpush.bf16.msrb.mxu2 %v8877_v21  ;;  %5512 = vmatmul.bf16.vlgmr.msra.gmra.mxu3 %v11819_v53  ;;  %v8925_v21 = vor.u32 %v10533_v9, %v8924_v8  ;;  %v5247_v24 = vpop.f32.mrf.mxu0  ;;  %v8908_v8 = vld [vmem:[%s11078_s29 + $0xfb0] sm:$0xf]  ;;  %v10529_v9 = vld [vmem:[%s11078_s29 + $0xfb4] sm:$0xf0] }
 0x123   : > { %5560 = vmatpush.bf16.msrb.mxu3 %v8941_v30  ;;  %v11841_v30 = vpop.f32.mrf.mxu3  ;;  %v5248_v49 = vadd.f32 %v5247_v24, %v11752_v7  ;;  %v10513_v7 = vld [vmem:[%s11078_s29 + $0xf34] sm:$0xf0]  ;;  %v10511_v24 = vld [vmem:[%s11078_s29 + $0xf24] sm:$0xf0]  ;;  %v9196_v53 = vld [vmem:[%s11078_s29 + $0x11f0] sm:$0xf] }
 0x124   : > { %5519 = vmatpush.bf16.msrb.mxu0 %v8741_v54  ;;  %v5261_v54 = vpop.f32.mrf.mxu1 }
 0x125   : > { %5533 = vmatpush.bf16.msrb.mxu1 %v8805_v57  ;;  %v8789_v57 = vor.u32 %v10499_v22, %v8788_v18  ;;  %v5262_v3 = vadd.f32 %v5261_v54, %v5248_v49  ;;  %v8772_v18 = vld [vmem:[%s11078_s29 + $0xea0] sm:$0xf]  ;;  %v8709_v54 = vor.u32 %v10479_v16, %v8708_v15  ;;  %v10491_v16 = vld [vmem:[%s11078_s29 + $0xe84] sm:$0xf0] }
 0x126   : > { %5547 = vmatpush.bf16.msrb.mxu2 %v8869_v61  ;;  %v8853_v61 = vor.u32 %v10515_v27, %v8852_v26  ;;  %v10495_v26 = vld [vmem:[%s11078_s29 + $0xea4] sm:$0xf0]  ;;  %v8836_v27 = vld [vmem:[%s11078_s29 + $0xf20] sm:$0xf] }
 0x127   : > { %5561 = vmatpush.bf16.msrb.mxu3 %v8933_v2  ;;  %v8917_v2 = vor.u32 %v10531_v37, %v8916_v34  ;;  %v8900_v49 = vld [vmem:[%s11078_s29 + $0xfa0] sm:$0xf] }
 0x128   : > { %5520 = vmatpush.bf16.msrb.mxu0 %v8733_v11  ;;  %v8717_v11 = vor.u32 %v10481_v63, %v8716_v62  ;;  %v8773_v62 = vor.u32 %v10495_v26, %v8772_v18  ;;  %v8837_v63 = vor.u32 %v10511_v24, %v8836_v27  ;;  %v8756_v15 = vld [vmem:[%s11078_s29 + $0xe80] sm:$0xf]  ;;  %v10523_v24 = vld [vmem:[%s11078_s29 + $0xf84] sm:$0xf0] }
 0x129   : > { %5534 = vmatpush.bf16.msrb.mxu1 %v8797_v12  ;;  %v8781_v12 = vor.u32 %v10497_v5, %v8780_v0  ;;  %v5275_v22 = vpop.f32.mrf.mxu2  ;;  %v10477_v0 = vld [vmem:[%s11078_s29 + $0xe14] sm:$0xf0]  ;;  %v8820_v18 = vld [vmem:[%s11078_s29 + $0xf00] sm:$0xf] }
 0x12a   : > { %5548 = vmatpush.bf16.msrb.mxu2 %v8861_v14  ;;  %v8845_v14 = vor.u32 %v10513_v7, %v8844_v6  ;;  %v5276_v34 = vadd.f32 %v5275_v22, %v5262_v3  ;;  %v10493_v3 = vld [vmem:[%s11078_s29 + $0xe94] sm:$0xf0]  ;;  %v8828_v6 = vld [vmem:[%s11078_s29 + $0xf10] sm:$0xf]  ;;  %v8884_v27 = vld [vmem:[%s11078_s29 + $0xf80] sm:$0xf] }
 0x12b   : > { %5562 = vmatpush.bf16.msrb.mxu3 %v8925_v21  ;;  %v8909_v21 = vor.u32 %v10529_v9, %v8908_v8  ;;  %v5289_v37 = vpop.f32.mrf.mxu3  ;;  %v10509_v7 = vld [vmem:[%s11078_s29 + $0xf14] sm:$0xf0]  ;;  %v8892_v8 = vld [vmem:[%s11078_s29 + $0xf90] sm:$0xf] }
 0x12c   : > { %5521 = vmatpush.bf16.msrb.mxu0 %v8725_v50  ;;  %v10527_v50 = vld [vmem:[%s11078_s29 + $0xfa4] sm:$0xf0]  ;;  %v10525_v9 = vld [vmem:[%s11078_s29 + $0xf94] sm:$0xf0]  ;;  %v8829_v26 = vor.u32 %v10509_v7, %v8828_v6  ;;  %v9992_v7 = vld [vmem:[%s13427_s0 + $0x74] sm:$0xf] }
 0x12d   : > { %5535 = vmatpush.bf16.msrb.mxu1 %v8789_v57  ;;  %v8700_v57 = vld [vmem:[%s11078_s29 + $0xe10] sm:$0xf]  ;;  %v8901_v5 = vor.u32 %v10527_v50, %v8900_v49  ;;  %v10553_v49 = vld [vmem:[%s11078_s29 + $0x1074] sm:$0xf0] }
 0x12e   : > { %5549 = vmatpush.bf16.msrb.mxu2 %v8853_v61  ;;  %v11863_v61 = vadd.f32 %v5289_v37, %v5276_v34  ;;  %v9004_v34 = vld [vmem:[%s11078_s29 + $0x1070] sm:$0xf]  ;;  %v8893_v37 = vor.u32 %v10525_v9, %v8892_v8  ;;  %v10017_v6 = vld [vmem:[%s13427_s0 + $0x134] sm:$0x30]  ;;  %v8885_v8 = vor.u32 %v10523_v24, %v8884_v27  ;;  %v10567_v24 = vld [vmem:[%s11078_s29 + $0x10e4] sm:$0xf0] }
 0x12f   : > { %5563 = vmatpush.bf16.msrb.mxu3 %v8917_v2  ;;  %v8764_v2 = vld [vmem:[%s11078_s29 + $0xe90] sm:$0xf]  ;;  %v9005_v9 = vor.u32 %v10553_v49, %v9004_v34  ;;  %v9124_v34 = vld [vmem:[%s11078_s29 + $0x1160] sm:$0xf]  ;;  %v11920_v49 = vpop.f32.mrf.mxu0 }
 0x130   : > { %5522 = vmatpush.bf16.msrb.mxu0 %v8717_v11  ;;  %v8692_v11 = vld [vmem:[%s11078_s29 + $0xe00] sm:$0xf]  ;;  %v8765_v22 = vor.u32 %v10493_v3, %v8764_v2  ;;  %v9068_v50 = vld [vmem:[%s11078_s29 + $0x10f0] sm:$0xf]  ;;  %v8757_v2 = vor.u32 %v10491_v16, %v8756_v15 }
 0x131   : > { %5536 = vmatpush.bf16.msrb.mxu1 %v8781_v12  ;;  %v10475_v12 = vld [vmem:[%s11078_s29 + $0xe04] sm:$0xf0] }
 0x132   : > { %5550 = vmatpush.bf16.msrb.mxu2 %v8845_v14  ;;  %v8701_v14 = vor.u32 %v10477_v0, %v8700_v57  ;;  %v9132_v57 = vld [vmem:[%s11078_s29 + $0x1170] sm:$0xf]  ;;  %v10585_v0 = vld [vmem:[%s11078_s29 + $0x1174] sm:$0xf0]  ;;  %v8693_v48 = vor.u32 %v10475_v12, %v8692_v11  ;;  %v6822_v11 = vld [vmem:[%s13427_s0 + $0x130] sm:$0x30] }
 0x133   : > { %5564 = vmatpush.bf16.msrb.mxu3 %v8909_v21  ;;  %v10507_v21 = vld [vmem:[%s11078_s29 + $0xf04] sm:$0xf0]  ;;  %v9993_v12 = vld [vmem:[%s13427_s0 + $0x7c] sm:$0xf]  ;;  %v9133_v16 = vor.u32 %v10585_v0, %v9132_v57  ;;  %v9188_v57 = vld [vmem:[%s11078_s29 + $0x11e0] sm:$0xf] }
 0x134   : > { %5523 = vmatpush.bf16.msrb.mxu0 %v8709_v54  ;;  %v10569_v54 = vld [vmem:[%s11078_s29 + $0x10f4] sm:$0xf0]  ;;  %v8821_v3 = vor.u32 %v10507_v21, %v8820_v18  ;;  %v8996_v18 = vld [vmem:[%s11078_s29 + $0x1060] sm:$0xf]  ;;  %v10551_v21 = vld [vmem:[%s11078_s29 + $0x1064] sm:$0xf0] }
 0x135   : > { %5537 = vmatpush.bf16.msrb.mxu1 %v8773_v62  ;;  %v6820_v62 = vld [vmem:[%s13427_s0 + $0x70] sm:$0xf]  ;;  %v9069_v15 = vor.u32 %v10569_v54, %v9068_v50  ;;  %v11924_v54 = vor.u32 %v9992_v7, %v6822_v11  ;;  %v10599_v0 = vld [vmem:[%s11078_s29 + $0x11e4] sm:$0xf0]  ;;  %v10565_v7 = vld [vmem:[%s11078_s29 + $0x10d4] sm:$0xf0] }
 0x136   : > { %5551 = vmatpush.bf16.msrb.mxu2 %v8837_v63  ;;  %v10016_v63 = vld [vmem:[%s13427_s0 + $0x12c] sm:$0x30] }
 0x137   : > { %5565 = vmatpush.bf16.msrb.mxu3 %v8901_v5  ;;  %v6828_v5 = vld [vmem:[%s13427_s0 + $0x78] sm:$0xf]  ;;  %v11915_v27 = vor.u32 %v10016_v63, %v6820_v62  ;;  %13477 = vst [vmem:[#allocation22_spill] sm:$0xff] %v11924_v54  ;;  %v9180_v11 = vld [vmem:[%s11078_s29 + $0x11d0] sm:$0xf] }
 0x138   : > { %5524 = vmatpush.bf16.msrb.mxu0 %v8701_v14  ;;  %v6830_v14 = vld [vmem:[%s13427_s0 + $0x138] sm:$0x30]  ;;  %v11922_v50 = vor.u32 %v10017_v6, %v6828_v5  ;;  %v9052_v5 = vld [vmem:[%s11078_s29 + $0x10d0] sm:$0xf]  ;;  %v9189_v6 = vor.u32 %v10599_v0, %v9188_v57  ;;  %v10579_v57 = vld [vmem:[%s11078_s29 + $0x1144] sm:$0xf0]  ;;  %v11952_v0 = vpop.f32.mrf.mxu3 }
 0x139   : > { %5538 = vmatpush.bf16.msrb.mxu1 %v8765_v22  ;;  %v9060_v22 = vld [vmem:[%s11078_s29 + $0x10e0] sm:$0xf]  ;;  %13475 = vst [vmem:[#allocation20_spill] sm:$0xff] %v11915_v27 }
 0x13a   : > { %5552 = vmatpush.bf16.msrb.mxu2 %v8829_v26  ;;  %v9197_v26 = vor.u32 %v10601_v45, %v9196_v53  ;;  %13476 = vst [vmem:[#allocation21_spill] sm:$0xff] %v11922_v50  ;;  %v11928_v45 = vpop.f32.mrf.mxu1  ;;  %v8997_v53 = vor.u32 %v10551_v21, %v8996_v18  ;;  %v9061_v62 = vor.u32 %v10567_v24, %v9060_v22  ;;  %v8980_v18 = vld [vmem:[%s11078_s29 + $0x1040] sm:$0xf]  ;;  %v10547_v21 = vld [vmem:[%s11078_s29 + $0x1044] sm:$0xf0] }
 0x13b   : > { %5566 = vmatpush.bf16.msrb.mxu3 %v8893_v37  ;;  %v10583_v37 = vld [vmem:[%s11078_s29 + $0x1164] sm:$0xf0]  ;;  %v9044_v22 = vld [vmem:[%s11078_s29 + $0x10c0] sm:$0xf] }
 0x13c   : > { %5525 = vmatpush.bf16.msrb.mxu0 %v8693_v48  ;;  %v11930_v48 = vor.u32 %v9993_v12, %v6830_v14  ;;  %v9125_v63 = vor.u32 %v10583_v37, %v9124_v34  ;;  %v10597_v12 = vld [vmem:[%s11078_s29 + $0x11d4] sm:$0xf0]  ;;  %v10563_v34 = vld [vmem:[%s11078_s29 + $0x10c4] sm:$0xf0]  ;;  %v9108_v37 = vld [vmem:[%s11078_s29 + $0x1140] sm:$0xf] }
 0x13d   : > { %5539 = vmatpush.bf16.msrb.mxu1 %v8757_v2  ;;  %v8988_v2 = vld [vmem:[%s11078_s29 + $0x1050] sm:$0xf]  ;;  %v9181_v24 = vor.u32 %v10597_v12, %v9180_v11 }
 0x13e   : > { %5553 = vmatpush.bf16.msrb.mxu2 %v8821_v3  ;;  %13478 = vst [vmem:[#allocation23_spill] sm:$0xff] %v11930_v48  ;;  %v10549_v3 = vld [vmem:[%s11078_s29 + $0x1054] sm:$0xf0]  ;;  %v9036_v11 = vld [vmem:[%s11078_s29 + $0x10b0] sm:$0xf] }
 0x13f   : > { %5567 = vmatpush.bf16.msrb.mxu3 %v8885_v8  ;;  %5526 = vmatmul.bf16.vlgmr.msrb.gmra.mxu0 %v11915_v27  ;;  %v9116_v8 = vld [vmem:[%s11078_s29 + $0x1150] sm:$0xf]  ;;  %v8989_v14 = vor.u32 %v10549_v3, %v8988_v2  ;;  %v8981_v3 = vor.u32 %v10547_v21, %v8980_v18 }
 0x140   : > { %5574 = vmatpush.bf16.msra.mxu0 %v9005_v9  ;;  %v10581_v9 = vld [vmem:[%s11078_s29 + $0x1154] sm:$0xf0]  ;;  %5540 = vmatmul.bf16.vlgmr.msrb.gmra.mxu1 %v11924_v54  ;;  %v9100_v54 = vld [vmem:[%s11078_s29 + $0x1130] sm:$0xf] }
 0x141   : > { %5588 = vmatpush.bf16.msra.mxu1 %v9069_v15  ;;  %5554 = vmatmul.bf16.vlgmr.msrb.gmra.mxu2 %v11922_v50  ;;  %v9053_v15 = vor.u32 %v10565_v7, %v9052_v5  ;;  %v9109_v7 = vor.u32 %v10579_v57, %v9108_v37  ;;  %v9164_v18 = vld [vmem:[%s11078_s29 + $0x11b0] sm:$0xf]  ;;  %v9028_v37 = vld [vmem:[%s11078_s29 + $0x10a0] sm:$0xf]  ;;  %v10617_v50 = vld [vmem:[%s11078_s29 + $0x1274] sm:$0xf0] }
 0x142   : > { %5602 = vmatpush.bf16.msra.mxu2 %v9133_v16  ;;  %5568 = vmatmul.bf16.vlgmr.msrb.gmra.mxu3 %v11930_v48  ;;  %v9117_v16 = vor.u32 %v10581_v9, %v9116_v8  ;;  %v5317_v5 = vpop.f32.mrf.mxu1  ;;  %v8972_v8 = vld [vmem:[%s11078_s29 + $0x1030] sm:$0xf]  ;;  %v10545_v9 = vld [vmem:[%s11078_s29 + $0x1034] sm:$0xf0] }
 0x143   : > { %5616 = vmatpush.bf16.msra.mxu3 %v9197_v26  ;;  %v11947_v26 = vpop.f32.mrf.mxu2  ;;  %v10561_v48 = vld [vmem:[%s11078_s29 + $0x10b4] sm:$0xf0]  ;;  %v9388_v27 = vld [vmem:[%s11078_s29 + $0x1370] sm:$0xf] }
 0x144   : > { %5575 = vmatpush.bf16.msra.mxu0 %v8997_v53  ;;  %v5303_v53 = vpop.f32.mrf.mxu0  ;;  %v9037_v21 = vor.u32 %v10561_v48, %v9036_v11  ;;  %v10591_v48 = vld [vmem:[%s11078_s29 + $0x11a4] sm:$0xf0] }
 0x145   : > { %5589 = vmatpush.bf16.msra.mxu1 %v9061_v62  ;;  %v9172_v62 = vld [vmem:[%s11078_s29 + $0x11c0] sm:$0xf]  ;;  %v5304_v2 = vadd.f32 %v5303_v53, %v11863_v61  ;;  %v10577_v61 = vld [vmem:[%s11078_s29 + $0x1134] sm:$0xf0] }
 0x146   : > { %5603 = vmatpush.bf16.msra.mxu2 %v9125_v63  ;;  %v10595_v63 = vld [vmem:[%s11078_s29 + $0x11c4] sm:$0xf0] }
 0x147   : > { %5617 = vmatpush.bf16.msra.mxu3 %v9189_v6  ;;  %v9045_v6 = vor.u32 %v10563_v34, %v9044_v22  ;;  %v9173_v12 = vor.u32 %v10595_v63, %v9172_v62  ;;  %v9101_v22 = vor.u32 %v10577_v61, %v9100_v54  ;;  %v10543_v34 = vld [vmem:[%s11078_s29 + $0x1024] sm:$0xf0]  ;;  %v9092_v63 = vld [vmem:[%s11078_s29 + $0x1120] sm:$0xf]  ;;  %v10557_v61 = vld [vmem:[%s11078_s29 + $0x1094] sm:$0xf0] }
 0x148   : > { %5576 = vmatpush.bf16.msra.mxu0 %v8989_v14  ;;  %v5318_v14 = vadd.f32 %v5317_v5, %v5304_v2  ;;  %v10559_v62 = vld [vmem:[%s11078_s29 + $0x10a4] sm:$0xf0]  ;;  %v5345_v5 = vpop.f32.mrf.mxu3 }
 0x149   : > { %5590 = vmatpush.bf16.msra.mxu1 %v9053_v15  ;;  %v10593_v15 = vld [vmem:[%s11078_s29 + $0x11b4] sm:$0xf0]  ;;  %v10575_v2 = vld [vmem:[%s11078_s29 + $0x1124] sm:$0xf0] }
 0x14a   : > { %5604 = vmatpush.bf16.msra.mxu2 %v9117_v16  ;;  %v8973_v16 = vor.u32 %v10545_v9, %v8972_v8  ;;  %v9165_v57 = vor.u32 %v10593_v15, %v9164_v18  ;;  %v9029_v9 = vor.u32 %v10559_v62, %v9028_v37  ;;  %v9093_v11 = vor.u32 %v10575_v2, %v9092_v63  ;;  %v9084_v15 = vld [vmem:[%s11078_s29 + $0x1110] sm:$0xf]  ;;  %v10555_v62 = vld [vmem:[%s11078_s29 + $0x1084] sm:$0xf0] }
 0x14b   : > { %5618 = vmatpush.bf16.msra.mxu3 %v9181_v24  ;;  %v8964_v24 = vld [vmem:[%s11078_s29 + $0x1020] sm:$0xf]  ;;  %v5331_v53 = vpop.f32.mrf.mxu2  ;;  %v10571_v63 = vld [vmem:[%s11078_s29 + $0x1104] sm:$0xf0] }
 0x14c   : > { %5577 = vmatpush.bf16.msra.mxu0 %v8981_v3  ;;  %v5332_v3 = vadd.f32 %v5331_v53, %v5318_v14  ;;  %v8965_v54 = vor.u32 %v10543_v34, %v8964_v24  ;;  %v9020_v14 = vld [vmem:[%s11078_s29 + $0x1090] sm:$0xf]  ;;  %v10539_v34 = vld [vmem:[%s11078_s29 + $0x1004] sm:$0xf0]  ;;  %v9012_v53 = vld [vmem:[%s11078_s29 + $0x1080] sm:$0xf] }
 0x14d   : > { %5591 = vmatpush.bf16.msra.mxu1 %v9045_v6  ;;  %v9156_v6 = vld [vmem:[%s11078_s29 + $0x11a0] sm:$0xf]  ;;  %v9148_v24 = vld [vmem:[%s11078_s29 + $0x1190] sm:$0xf]  ;;  %v9021_v2 = vor.u32 %v10557_v61, %v9020_v14  ;;  %v9013_v14 = vor.u32 %v10555_v62, %v9012_v53  ;;  %v9389_v62 = vor.u32 %v10649_v33, %v9388_v27 }
 0x14e   : > { %5605 = vmatpush.bf16.msra.mxu2 %v9109_v7  ;;  %v8956_v7 = vld [vmem:[%s11078_s29 + $0x1010] sm:$0xf]  ;;  %v11974_v8 = vadd.f32 %v5345_v5, %v5332_v3  ;;  %v9157_v18 = vor.u32 %v10591_v48, %v9156_v6  ;;  %v9140_v5 = vld [vmem:[%s11078_s29 + $0x1180] sm:$0xf]  ;;  %v10587_v6 = vld [vmem:[%s11078_s29 + $0x1184] sm:$0xf0] }
 0x14f   : > { %5619 = vmatpush.bf16.msra.mxu3 %v9173_v12  ;;  %v10541_v12 = vld [vmem:[%s11078_s29 + $0x1014] sm:$0xf0]  ;;  %v9260_v48 = vld [vmem:[%s11078_s29 + $0x1270] sm:$0xf]  ;;  %v9444_v27 = vld [vmem:[%s11078_s29 + $0x13e0] sm:$0xf] }
 0x150   : > { %5578 = vmatpush.bf16.msra.mxu0 %v8973_v16  ;;  %v10573_v16 = vld [vmem:[%s11078_s29 + $0x1114] sm:$0xf0]  ;;  %v8957_v37 = vor.u32 %v10541_v12, %v8956_v7  ;;  %v9324_v7 = vld [vmem:[%s11078_s29 + $0x12f0] sm:$0xf] }
 0x151   : > { %5592 = vmatpush.bf16.msra.mxu1 %v9037_v21  ;;  %v10589_v21 = vld [vmem:[%s11078_s29 + $0x1194] sm:$0xf0]  ;;  %v9085_v3 = vor.u32 %v10573_v16, %v9084_v15  ;;  %v10019_v15 = vld [vmem:[%s13427_s0 + $0x144] sm:$0x30]  ;;  %v9994_v16 = vld [vmem:[%s13427_s0 + $0x84] sm:$0xf] }
 0x152   : > { %5606 = vmatpush.bf16.msra.mxu2 %v9101_v22  ;;  %v8948_v22 = vld [vmem:[%s11078_s29 + $0x1000] sm:$0xf]  ;;  %v10633_v12 = vld [vmem:[%s11078_s29 + $0x12f4] sm:$0xf0] }
 0x153   : > { %5620 = vmatpush.bf16.msra.mxu3 %v9165_v57  ;;  %v9076_v57 = vld [vmem:[%s11078_s29 + $0x1100] sm:$0xf]  ;;  %v8949_v25 = vor.u32 %v10539_v34, %v8948_v22  ;;  %v6838_v22 = vld [vmem:[%s13427_s0 + $0x140] sm:$0x30]  ;;  %v9995_v34 = vld [vmem:[%s13427_s0 + $0x8c] sm:$0xf]  ;;  %v9325_v53 = vor.u32 %v10633_v12, %v9324_v7 }
 0x154   : > { %5579 = vmatpush.bf16.msra.mxu0 %v8965_v54  ;;  %v9149_v54 = vor.u32 %v10589_v21, %v9148_v24  ;;  %v9077_v61 = vor.u32 %v10571_v63, %v9076_v57  ;;  %v9141_v24 = vor.u32 %v10587_v6, %v9140_v5  ;;  %v9261_v21 = vor.u32 %v10617_v50, %v9260_v48  ;;  %v9252_v57 = vld [vmem:[%s11078_s29 + $0x1260] sm:$0xf]  ;;  %v10615_v63 = vld [vmem:[%s11078_s29 + $0x1264] sm:$0xf0] }
 0x155   : > { %5593 = vmatpush.bf16.msra.mxu1 %v9029_v9  ;;  %v6836_v9 = vld [vmem:[%s13427_s0 + $0x80] sm:$0xf]  ;;  %v9453_v50 = vor.u32 %v10665_v23, %v9452_v29  ;;  %v10631_v5 = vld [vmem:[%s11078_s29 + $0x12e4] sm:$0xf0]  ;;  %v12035_v33 = vor.u32 %v9994_v16, %v6838_v22  ;;  %v12039_v23 = vpop.f32.mrf.mxu1  ;;  %v9253_v29 = vor.u32 %v10615_v63, %v9252_v57  ;;  %v10629_v16 = vld [vmem:[%s11078_s29 + $0x12d4] sm:$0xf0] }
 0x156   : > { %5607 = vmatpush.bf16.msra.mxu2 %v9093_v11  ;;  %v10018_v11 = vld [vmem:[%s13427_s0 + $0x13c] sm:$0x30]  ;;  %v10647_v48 = vld [vmem:[%s11078_s29 + $0x1364] sm:$0xf0]  ;;  %v9436_v22 = vld [vmem:[%s11078_s29 + $0x13d0] sm:$0xf] }
 0x157   : > { %5621 = vmatpush.bf16.msra.mxu3 %v9157_v18  ;;  %v6844_v18 = vld [vmem:[%s13427_s0 + $0x88] sm:$0xf]  ;;  %v9380_v6 = vld [vmem:[%s11078_s29 + $0x1360] sm:$0xf]  ;;  %13481 = vst [vmem:[#allocation26_spill] sm:$0xff] %v12035_v33 }
 0x158   : > { %5580 = vmatpush.bf16.msra.mxu0 %v8957_v37  ;;  %v6846_v37 = vld [vmem:[%s13427_s0 + $0x148] sm:$0x30]  ;;  %v12033_v7 = vor.u32 %v10019_v15, %v6844_v18  ;;  %v10663_v12 = vld [vmem:[%s11078_s29 + $0x13e4] sm:$0xf0]  ;;  %v9308_v18 = vld [vmem:[%s11078_s29 + $0x12d0] sm:$0xf] }
 0x159   : > { %5594 = vmatpush.bf16.msra.mxu1 %v9021_v2  ;;  %v9316_v2 = vld [vmem:[%s11078_s29 + $0x12e0] sm:$0xf]  ;;  %v9445_v15 = vor.u32 %v10663_v12, %v9444_v27  ;;  %v10611_v63 = vld [vmem:[%s11078_s29 + $0x1244] sm:$0xf0]  ;;  %v12063_v12 = vpop.f32.mrf.mxu3 }
 0x15a   : > { %5608 = vmatpush.bf16.msra.mxu2 %v9085_v3  ;;  %v12026_v3 = vor.u32 %v10018_v11, %v6836_v9  ;;  %13480 = vst [vmem:[#allocation25_spill] sm:$0xff] %v12033_v7  ;;  %v9317_v9 = vor.u32 %v10631_v5, %v9316_v2  ;;  %v9381_v11 = vor.u32 %v10647_v48, %v9380_v6  ;;  %v9236_v57 = vld [vmem:[%s11078_s29 + $0x1240] sm:$0xf]  ;;  %v10627_v6 = vld [vmem:[%s11078_s29 + $0x12c4] sm:$0xf0] }
 0x15b   : > { %5622 = vmatpush.bf16.msra.mxu3 %v9149_v54  ;;  %v12031_v54 = vpop.f32.mrf.mxu0  ;;  %v9300_v2 = vld [vmem:[%s11078_s29 + $0x12c0] sm:$0xf]  ;;  %v10643_v27 = vld [vmem:[%s11078_s29 + $0x1344] sm:$0xf0] }
 0x15c   : > { %5581 = vmatpush.bf16.msra.mxu0 %v8949_v25  ;;  %13479 = vst [vmem:[#allocation24_spill] sm:$0xff] %v12026_v3  ;;  %v12041_v25 = vor.u32 %v9995_v34, %v6846_v37  ;;  %v10661_v34 = vld [vmem:[%s11078_s29 + $0x13d4] sm:$0xf0]  ;;  %v9364_v48 = vld [vmem:[%s11078_s29 + $0x1340] sm:$0xf] }
 0x15d   : > { %5595 = vmatpush.bf16.msra.mxu1 %v9013_v14  ;;  %v9244_v14 = vld [vmem:[%s11078_s29 + $0x1250] sm:$0xf]  ;;  %v9437_v5 = vor.u32 %v10661_v34, %v9436_v22 }
 0x15e   : > { %5609 = vmatpush.bf16.msra.mxu2 %v9077_v61  ;;  %13482 = vst [vmem:[#allocation27_spill] sm:$0xff] %v12041_v25  ;;  %v10613_v61 = vld [vmem:[%s11078_s29 + $0x1254] sm:$0xf0]  ;;  %v9292_v22 = vld [vmem:[%s11078_s29 + $0x12b0] sm:$0xf] }
 0x15f   : > { %5623 = vmatpush.bf16.msra.mxu3 %v9141_v24  ;;  %5582 = vmatmul.bf16.vlgmr.msra.gmra.mxu0 %v12026_v3  ;;  %v9372_v24 = vld [vmem:[%s11078_s29 + $0x1350] sm:$0xf]  ;;  %v9245_v37 = vor.u32 %v10613_v61, %v9244_v14  ;;  %v9237_v61 = vor.u32 %v10611_v63, %v9236_v57 }
 0x160   : > { %5630 = vmatpush.bf16.msrb.mxu0 %v9261_v21  ;;  %v10645_v21 = vld [vmem:[%s11078_s29 + $0x1354] sm:$0xf0]  ;;  %5596 = vmatmul.bf16.vlgmr.msra.gmra.mxu1 %v12035_v33  ;;  %v9356_v33 = vld [vmem:[%s11078_s29 + $0x1330] sm:$0xf] }
 0x161   : > { %5644 = vmatpush.bf16.msrb.mxu1 %v9325_v53  ;;  %5610 = vmatmul.bf16.vlgmr.msra.gmra.mxu2 %v12033_v7  ;;  %v9309_v53 = vor.u32 %v10629_v16, %v9308_v18  ;;  %v5373_v18 = vpop.f32.mrf.mxu1  ;;  %v9365_v16 = vor.u32 %v10643_v27, %v9364_v48  ;;  %v9420_v57 = vld [vmem:[%s11078_s29 + $0x13b0] sm:$0xf]  ;;  %v9284_v48 = vld [vmem:[%s11078_s29 + $0x12a0] sm:$0xf]  ;;  %v10681_v7 = vld [vmem:[%s11078_s29 + $0x1474] sm:$0xf0] }
 0x162   : > { %5658 = vmatpush.bf16.msrb.mxu2 %v9389_v62  ;;  %5624 = vmatmul.bf16.vlgmr.msra.gmra.mxu3 %v12041_v25  ;;  %v9373_v62 = vor.u32 %v10645_v21, %v9372_v24  ;;  %v9228_v24 = vld [vmem:[%s11078_s29 + $0x1230] sm:$0xf]  ;;  %v10609_v21 = vld [vmem:[%s11078_s29 + $0x1234] sm:$0xf0] }
 0x163   : > { %5672 = vmatpush.bf16.msrb.mxu3 %v9453_v50  ;;  %v12058_v50 = vpop.f32.mrf.mxu2  ;;  %v10625_v25 = vld [vmem:[%s11078_s29 + $0x12b4] sm:$0xf0]  ;;  %v9644_v3 = vld [vmem:[%s11078_s29 + $0x1570] sm:$0xf] }
 0x164   : > { %5631 = vmatpush.bf16.msrb.mxu0 %v9253_v29  ;;  %v5359_v29 = vpop.f32.mrf.mxu0  ;;  %v9293_v63 = vor.u32 %v10625_v25, %v9292_v22  ;;  %v10655_v25 = vld [vmem:[%s11078_s29 + $0x13a4] sm:$0xf0] }
 0x165   : > { %5645 = vmatpush.bf16.msrb.mxu1 %v9317_v9  ;;  %v9428_v9 = vld [vmem:[%s11078_s29 + $0x13c0] sm:$0xf]  ;;  %v5360_v14 = vadd.f32 %v5359_v29, %v11974_v8  ;;  %v10641_v8 = vld [vmem:[%s11078_s29 + $0x1334] sm:$0xf0] }
 0x166   : > { %5659 = vmatpush.bf16.msrb.mxu2 %v9381_v11  ;;  %v10659_v11 = vld [vmem:[%s11078_s29 + $0x13c4] sm:$0xf0] }
 0x167   : > { %5673 = vmatpush.bf16.msrb.mxu3 %v9445_v15  ;;  %v9301_v15 = vor.u32 %v10627_v6, %v9300_v2  ;;  %v9429_v34 = vor.u32 %v10659_v11, %v9428_v9  ;;  %v9357_v2 = vor.u32 %v10641_v8, %v9356_v33  ;;  %v10607_v6 = vld [vmem:[%s11078_s29 + $0x1224] sm:$0xf0]  ;;  %v9348_v11 = vld [vmem:[%s11078_s29 + $0x1320] sm:$0xf]  ;;  %v10621_v8 = vld [vmem:[%s11078_s29 + $0x1294] sm:$0xf0] }
 0x168   : > { %5632 = vmatpush.bf16.msrb.mxu0 %v9245_v37  ;;  %v5374_v37 = vadd.f32 %v5373_v18, %v5360_v14  ;;  %v10623_v9 = vld [vmem:[%s11078_s29 + $0x12a4] sm:$0xf0]  ;;  %v5401_v18 = vpop.f32.mrf.mxu3 }
 0x169   : > { %5646 = vmatpush.bf16.msrb.mxu1 %v9309_v53  ;;  %v10657_v53 = vld [vmem:[%s11078_s29 + $0x13b4] sm:$0xf0]  ;;  %v10639_v14 = vld [vmem:[%s11078_s29 + $0x1324] sm:$0xf0] }
 0x16a   : > { %5660 = vmatpush.bf16.msrb.mxu2 %v9373_v62  ;;  %v9229_v62 = vor.u32 %v10609_v21, %v9228_v24  ;;  %v9421_v27 = vor.u32 %v10657_v53, %v9420_v57  ;;  %v9285_v21 = vor.u32 %v10623_v9, %v9284_v48  ;;  %v9349_v22 = vor.u32 %v10639_v14, %v9348_v11  ;;  %v9340_v53 = vld [vmem:[%s11078_s29 + $0x1310] sm:$0xf]  ;;  %v10619_v9 = vld [vmem:[%s11078_s29 + $0x1284] sm:$0xf0] }
 0x16b   : > { %5674 = vmatpush.bf16.msrb.mxu3 %v9437_v5  ;;  %v9220_v5 = vld [vmem:[%s11078_s29 + $0x1220] sm:$0xf]  ;;  %v5387_v29 = vpop.f32.mrf.mxu2  ;;  %v10635_v11 = vld [vmem:[%s11078_s29 + $0x1304] sm:$0xf0] }
 0x16c   : > { %5633 = vmatpush.bf16.msrb.mxu0 %v9237_v61  ;;  %v5388_v61 = vadd.f32 %v5387_v29, %v5374_v37  ;;  %v9221_v33 = vor.u32 %v10607_v6, %v9220_v5  ;;  %v9276_v37 = vld [vmem:[%s11078_s29 + $0x1290] sm:$0xf]  ;;  %v10603_v6 = vld [vmem:[%s11078_s29 + $0x1204] sm:$0xf0]  ;;  %v9268_v29 = vld [vmem:[%s11078_s29 + $0x1280] sm:$0xf] }
 0x16d   : > { %5647 = vmatpush.bf16.msrb.mxu1 %v9301_v15  ;;  %v9412_v15 = vld [vmem:[%s11078_s29 + $0x13a0] sm:$0xf]  ;;  %v9404_v5 = vld [vmem:[%s11078_s29 + $0x1390] sm:$0xf]  ;;  %v9277_v14 = vor.u32 %v10621_v8, %v9276_v37  ;;  %v9269_v37 = vor.u32 %v10619_v9, %v9268_v29  ;;  %v9645_v9 = vor.u32 %v10713_v19, %v9644_v3  ;;  %v10727_v3 = vld [vmem:[%s11078_s29 + $0x15e4] sm:$0xf0] }
 0x16e   : > { %5661 = vmatpush.bf16.msrb.mxu2 %v9365_v16  ;;  %v9212_v16 = vld [vmem:[%s11078_s29 + $0x1210] sm:$0xf]  ;;  %v12085_v24 = vadd.f32 %v5401_v18, %v5388_v61  ;;  %v9413_v57 = vor.u32 %v10655_v25, %v9412_v15  ;;  %v9396_v18 = vld [vmem:[%s11078_s29 + $0x1380] sm:$0xf]  ;;  %v10651_v15 = vld [vmem:[%s11078_s29 + $0x1384] sm:$0xf0] }
 0x16f   : > { %5675 = vmatpush.bf16.msrb.mxu3 %v9429_v34  ;;  %v10605_v34 = vld [vmem:[%s11078_s29 + $0x1214] sm:$0xf0]  ;;  %v9516_v25 = vld [vmem:[%s11078_s29 + $0x1470] sm:$0xf]  ;;  %v9700_v19 = vld [vmem:[%s11078_s29 + $0x15e0] sm:$0xf] }
 0x170   : > { %5634 = vmatpush.bf16.msrb.mxu0 %v9229_v62  ;;  %v10637_v62 = vld [vmem:[%s11078_s29 + $0x1314] sm:$0xf0]  ;;  %v9213_v48 = vor.u32 %v10605_v34, %v9212_v16  ;;  %v9580_v16 = vld [vmem:[%s11078_s29 + $0x14f0] sm:$0xf] }
 0x171   : > { %5648 = vmatpush.bf16.msrb.mxu1 %v9293_v63  ;;  %v10653_v63 = vld [vmem:[%s11078_s29 + $0x1394] sm:$0xf0]  ;;  %v9341_v61 = vor.u32 %v10637_v62, %v9340_v53  ;;  %v9996_v62 = vld [vmem:[%s13427_s0 + $0x94] sm:$0xf] }
 0x172   : > { %5662 = vmatpush.bf16.msrb.mxu2 %v9357_v2  ;;  %v9204_v2 = vld [vmem:[%s11078_s29 + $0x1200] sm:$0xf]  ;;  %v10697_v34 = vld [vmem:[%s11078_s29 + $0x14f4] sm:$0xf0] }
 0x173   : > { %5676 = vmatpush.bf16.msrb.mxu3 %v9421_v27  ;;  %v9332_v27 = vld [vmem:[%s11078_s29 + $0x1300] sm:$0xf]  ;;  %v9205_v56 = vor.u32 %v10603_v6, %v9204_v2  ;;  %v10021_v53 = vld [vmem:[%s13427_s0 + $0x154] sm:$0x30]  ;;  %v6854_v2 = vld [vmem:[%s13427_s0 + $0x150] sm:$0x30]  ;;  %v9581_v29 = vor.u32 %v10697_v34, %v9580_v16 }
 0x174   : > { %5635 = vmatpush.bf16.msrb.mxu0 %v9221_v33  ;;  %v9405_v33 = vor.u32 %v10653_v63, %v9404_v5  ;;  %v9333_v8 = vor.u32 %v10635_v11, %v9332_v27  ;;  %v9397_v5 = vor.u32 %v10651_v15, %v9396_v18  ;;  %v9517_v63 = vor.u32 %v10681_v7, %v9516_v25  ;;  %v9997_v6 = vld [vmem:[%s13427_s0 + $0x9c] sm:$0xf]  ;;  %v9508_v27 = vld [vmem:[%s11078_s29 + $0x1460] sm:$0xf]  ;;  %v10679_v11 = vld [vmem:[%s11078_s29 + $0x1464] sm:$0xf0] }
 0x175   : > { %5649 = vmatpush.bf16.msrb.mxu1 %v9285_v21  ;;  %v6852_v21 = vld [vmem:[%s13427_s0 + $0x90] sm:$0xf]  ;;  %v9709_v7 = vor.u32 %v10729_v55, %v9708_v60  ;;  %v10695_v18 = vld [vmem:[%s11078_s29 + $0x14e4] sm:$0xf0]  ;;  %v9636_v15 = vld [vmem:[%s11078_s29 + $0x1560] sm:$0xf]  ;;  %v12144_v16 = vor.u32 %v9996_v62, %v6854_v2 }
 0x176   : > { %5663 = vmatpush.bf16.msrb.mxu2 %v9349_v22  ;;  %v10020_v22 = vld [vmem:[%s13427_s0 + $0x14c] sm:$0x30]  ;;  %v10711_v25 = vld [vmem:[%s11078_s29 + $0x1564] sm:$0xf0]  ;;  %v10709_v62 = vld [vmem:[%s11078_s29 + $0x1554] sm:$0xf0] }
 0x177   : > { %5677 = vmatpush.bf16.msrb.mxu3 %v9413_v57  ;;  %v6860_v57 = vld [vmem:[%s13427_s0 + $0x98] sm:$0xf]  ;;  %13485 = vst [vmem:[#allocation30_spill] sm:$0xff] %v12144_v16  ;;  %v9637_v34 = vor.u32 %v10711_v25, %v9636_v15  ;;  %v9684_v15 = vld [vmem:[%s11078_s29 + $0x15c0] sm:$0xf] }
 0x178   : > { %5636 = vmatpush.bf16.msrb.mxu0 %v9213_v48  ;;  %v6862_v48 = vld [vmem:[%s13427_s0 + $0x158] sm:$0x30]  ;;  %v10723_v25 = vld [vmem:[%s11078_s29 + $0x15c4] sm:$0xf0] }
 0x179   : > { %5650 = vmatpush.bf16.msrb.mxu1 %v9277_v14  ;;  %v9572_v14 = vld [vmem:[%s11078_s29 + $0x14e0] sm:$0xf]  ;;  %v12148_v55 = vor.u32 %v9997_v6, %v6862_v48 }
 0x17a   : > { %5664 = vmatpush.bf16.msrb.mxu2 %v9341_v61  ;;  %v12137_v61 = vor.u32 %v10020_v22, %v6852_v21  ;;  %v9573_v60 = vor.u32 %v10695_v18, %v9572_v14  ;;  %v9500_v21 = vld [vmem:[%s11078_s29 + $0x1450] sm:$0xf]  ;;  %v10677_v22 = vld [vmem:[%s11078_s29 + $0x1454] sm:$0xf0]  ;;  %v10691_v14 = vld [vmem:[%s11078_s29 + $0x14c4] sm:$0xf0] }
 0x17b   : > { %5678 = vmatpush.bf16.msrb.mxu3 %v9405_v33  ;;  %v12142_v33 = vor.u32 %v10021_v53, %v6860_v57  ;;  %13486 = vst [vmem:[#allocation31_spill] sm:$0xff] %v12148_v55  ;;  %v10693_v57 = vld [vmem:[%s11078_s29 + $0x14d4] sm:$0xf0]  ;;  %v9628_v53 = vld [vmem:[%s11078_s29 + $0x1550] sm:$0xf]  ;;  %v9501_v2 = vor.u32 %v10677_v22, %v9500_v21  ;;  %v9685_v22 = vor.u32 %v10723_v25, %v9684_v15 }
 0x17c   : > { %5637 = vmatpush.bf16.msrb.mxu0 %v9205_v56  ;;  %13483 = vst [vmem:[#allocation28_spill] sm:$0xff] %v12137_v61  ;;  %v9509_v56 = vor.u32 %v10679_v11, %v9508_v27  ;;  %v9629_v48 = vor.u32 %v10709_v62, %v9628_v53  ;;  %v9556_v27 = vld [vmem:[%s11078_s29 + $0x14c0] sm:$0xf]  ;;  %v10707_v18 = vld [vmem:[%s11078_s29 + $0x1544] sm:$0xf0] }
 0x17d   : > { %5651 = vmatpush.bf16.msrb.mxu1 %v9269_v37  ;;  %13484 = vst [vmem:[#allocation29_spill] sm:$0xff] %v12142_v33  ;;  %v9564_v37 = vld [vmem:[%s11078_s29 + $0x14d0] sm:$0xf]  ;;  %v10721_v62 = vld [vmem:[%s11078_s29 + $0x15b4] sm:$0xf0] }
 0x17e   : > { %5665 = vmatpush.bf16.msrb.mxu2 %v9333_v8  ;;  %v9701_v8 = vor.u32 %v10727_v3, %v9700_v19  ;;  %v9565_v6 = vor.u32 %v10693_v57, %v9564_v37  ;;  %v9557_v3 = vor.u32 %v10691_v14, %v9556_v27  ;;  %v9548_v21 = vld [vmem:[%s11078_s29 + $0x14b0] sm:$0xf]  ;;  %v10689_v37 = vld [vmem:[%s11078_s29 + $0x14b4] sm:$0xf0]  ;;  %v10687_v27 = vld [vmem:[%s11078_s29 + $0x14a4] sm:$0xf0] }
 0x17f   : > { %5679 = vmatpush.bf16.msrb.mxu3 %v9397_v5  ;;  %5638 = vmatmul.bf16.vlgmr.msrb.gmra.mxu0 %v12137_v61  ;;  %v9692_v5 = vld [vmem:[%s11078_s29 + $0x15d0] sm:$0xf]  ;;  %v10705_v57 = vld [vmem:[%s11078_s29 + $0x1534] sm:$0xf0]  ;;  %v10703_v14 = vld [vmem:[%s11078_s29 + $0x1524] sm:$0xf0] }
 0x180   : > { %5686 = vmatpush.bf16.msra.mxu0 %v9517_v63  ;;  %5652 = vmatmul.bf16.vlgmr.msrb.gmra.mxu1 %v12144_v16  ;;  %v10725_v63 = vld [vmem:[%s11078_s29 + $0x15d4] sm:$0xf0]  ;;  %v9676_v53 = vld [vmem:[%s11078_s29 + $0x15b0] sm:$0xf] }
 0x181   : > { %5700 = vmatpush.bf16.msra.mxu1 %v9581_v29  ;;  %5666 = vmatmul.bf16.vlgmr.msrb.gmra.mxu2 %v12142_v33  ;;  %v9492_v29 = vld [vmem:[%s11078_s29 + $0x1440] sm:$0xf]  ;;  %v9693_v11 = vor.u32 %v10725_v63, %v9692_v5  ;;  %v9549_v63 = vor.u32 %v10689_v37, %v9548_v21  ;;  %v9468_v25 = vld [vmem:[%s11078_s29 + $0x1410] sm:$0xf]  ;;  %v10701_v37 = vld [vmem:[%s11078_s29 + $0x1514] sm:$0xf0] }
 0x182   : > { %5714 = vmatpush.bf16.msra.mxu2 %v9645_v9  ;;  %5680 = vmatmul.bf16.vlgmr.msrb.gmra.mxu3 %v12148_v55  ;;  %v10675_v9 = vld [vmem:[%s11078_s29 + $0x1444] sm:$0xf0]  ;;  %v10777_v55 = vld [vmem:[%s11078_s29 + $0x1774] sm:$0xf0]  ;;  %v9964_v16 = vld [vmem:[%s11078_s29 + $0x17f0] sm:$0xf] }
 0x183   : > { %5728 = vmatpush.bf16.msra.mxu3 %v9709_v7  ;;  %v9620_v7 = vld [vmem:[%s11078_s29 + $0x1540] sm:$0xf]  ;;  %v9493_v19 = vor.u32 %v10675_v9, %v9492_v29  ;;  %v9677_v9 = vor.u32 %v10721_v62, %v9676_v53  ;;  %v10667_v62 = vld [vmem:[%s11078_s29 + $0x1404] sm:$0xf0]  ;;  %v10793_v61 = vld [vmem:[%s11078_s29 + $0x17f4] sm:$0xf0] }
 0x184   : > { %5687 = vmatpush.bf16.msra.mxu0 %v9509_v56  ;;  %v9621_v56 = vor.u32 %v10707_v18, %v9620_v7  ;;  %v9540_v29 = vld [vmem:[%s11078_s29 + $0x14a0] sm:$0xf]  ;;  %v10719_v18 = vld [vmem:[%s11078_s29 + $0x15a4] sm:$0xf0] }
 0x185   : > { %5701 = vmatpush.bf16.msra.mxu1 %v9573_v60  ;;  %v9484_v60 = vld [vmem:[%s11078_s29 + $0x1430] sm:$0xf]  ;;  %v9668_v7 = vld [vmem:[%s11078_s29 + $0x15a0] sm:$0xf] }
 0x186   : > { %5715 = vmatpush.bf16.msra.mxu2 %v9637_v34  ;;  %v10673_v34 = vld [vmem:[%s11078_s29 + $0x1434] sm:$0xf0]  ;;  %v9669_v21 = vor.u32 %v10719_v18, %v9668_v7  ;;  %v9460_v53 = vld [vmem:[%s11078_s29 + $0x1400] sm:$0xf] }
 0x187   : > { %5729 = vmatpush.bf16.msra.mxu3 %v9701_v8  ;;  %v9612_v8 = vld [vmem:[%s11078_s29 + $0x1530] sm:$0xf]  ;;  %v9485_v5 = vor.u32 %v10673_v34, %v9484_v60  ;;  %v10685_v34 = vld [vmem:[%s11078_s29 + $0x1494] sm:$0xf0]  ;;  %v9461_v33 = vor.u32 %v10667_v62, %v9460_v53  ;;  %v6870_v53 = vld [vmem:[%s13427_s0 + $0x160] sm:$0x30] }
 0x188   : > { %5688 = vmatpush.bf16.msra.mxu0 %v9501_v2  ;;  %v9613_v2 = vor.u32 %v10705_v57, %v9612_v8  ;;  %v9532_v60 = vld [vmem:[%s11078_s29 + $0x1490] sm:$0xf]  ;;  %v10717_v57 = vld [vmem:[%s11078_s29 + $0x1594] sm:$0xf0]  ;;  %v9999_v62 = vld [vmem:[%s13427_s0 + $0xac] sm:$0xf] }
 0x189   : > { %5702 = vmatpush.bf16.msra.mxu1 %v9565_v6  ;;  %v9476_v6 = vld [vmem:[%s11078_s29 + $0x1420] sm:$0xf]  ;;  %v9660_v8 = vld [vmem:[%s11078_s29 + $0x1590] sm:$0xf]  ;;  %v10745_v18 = vld [vmem:[%s11078_s29 + $0x1674] sm:$0xf0] }
 0x18a   : > { %5716 = vmatpush.bf16.msra.mxu2 %v9629_v48  ;;  %v10671_v48 = vld [vmem:[%s11078_s29 + $0x1424] sm:$0xf0]  ;;  %v9661_v7 = vor.u32 %v10717_v57, %v9660_v8 }
 0x18b   : > { %5730 = vmatpush.bf16.msra.mxu3 %v9693_v11  ;;  %v9604_v11 = vld [vmem:[%s11078_s29 + $0x1520] sm:$0xf]  ;;  %v9477_v15 = vor.u32 %v10671_v48, %v9476_v6  ;;  %v10699_v48 = vld [vmem:[%s11078_s29 + $0x1504] sm:$0xf0] }
 0x18c   : > { %5689 = vmatpush.bf16.msra.mxu0 %v9493_v19  ;;  %v9541_v19 = vor.u32 %v10687_v27, %v9540_v29  ;;  %v9588_v6 = vld [vmem:[%s11078_s29 + $0x1500] sm:$0xf]  ;;  %v9533_v29 = vor.u32 %v10685_v34, %v9532_v60 }
 0x18d   : > { %5703 = vmatpush.bf16.msra.mxu1 %v9557_v3  ;;  %v9605_v3 = vor.u32 %v10703_v14, %v9604_v11  ;;  %v9652_v27 = vld [vmem:[%s11078_s29 + $0x1580] sm:$0xf]  ;;  %v10715_v11 = vld [vmem:[%s11078_s29 + $0x1584] sm:$0xf0]  ;;  %v9772_v14 = vld [vmem:[%s11078_s29 + $0x1670] sm:$0xf]  ;;  %v9589_v34 = vor.u32 %v10699_v48, %v9588_v6 }
 0x18e   : > { %5717 = vmatpush.bf16.msra.mxu2 %v9621_v56  ;;  %v10669_v56 = vld [vmem:[%s11078_s29 + $0x1414] sm:$0xf0]  ;;  %v9653_v8 = vor.u32 %v10715_v11, %v9652_v27  ;;  %v9773_v57 = vor.u32 %v10745_v18, %v9772_v14  ;;  %v9764_v6 = vld [vmem:[%s11078_s29 + $0x1660] sm:$0xf]  ;;  %v10743_v48 = vld [vmem:[%s11078_s29 + $0x1664] sm:$0xf0] }
 0x18f   : > { %5731 = vmatpush.bf16.msra.mxu3 %v9685_v22  ;;  %v9596_v22 = vld [vmem:[%s11078_s29 + $0x1510] sm:$0xf]  ;;  %v10759_v11 = vld [vmem:[%s11078_s29 + $0x16e4] sm:$0xf0]  ;;  %v9892_v14 = vld [vmem:[%s11078_s29 + $0x1760] sm:$0xf] }
 0x190   : > { %5690 = vmatpush.bf16.msra.mxu0 %v9485_v5  ;;  %v9469_v5 = vor.u32 %v10669_v56, %v9468_v25  ;;  %v10761_v25 = vld [vmem:[%s11078_s29 + $0x16f4] sm:$0xf0]  ;;  %v9900_v56 = vld [vmem:[%s11078_s29 + $0x1770] sm:$0xf] }
 0x191   : > { %5704 = vmatpush.bf16.msra.mxu1 %v9549_v63  ;;  %v9524_v63 = vld [vmem:[%s11078_s29 + $0x1480] sm:$0xf] }
 0x192   : > { %5718 = vmatpush.bf16.msra.mxu2 %v9613_v2  ;;  %v10683_v2 = vld [vmem:[%s11078_s29 + $0x1484] sm:$0xf0] }
 0x193   : > { %5732 = vmatpush.bf16.msra.mxu3 %v9677_v9  ;;  %v9597_v9 = vor.u32 %v10701_v37, %v9596_v22  ;;  %v9525_v60 = vor.u32 %v10683_v2, %v9524_v63  ;;  %v10023_v22 = vld [vmem:[%s13427_s0 + $0x164] sm:$0x30]  ;;  %v9998_v37 = vld [vmem:[%s13427_s0 + $0xa4] sm:$0xf]  ;;  %v9901_v2 = vor.u32 %v10777_v55, %v9900_v56  ;;  %v9956_v55 = vld [vmem:[%s11078_s29 + $0x17e0] sm:$0xf] }
 0x194   : > { %5691 = vmatpush.bf16.msra.mxu0 %v9477_v15  ;;  %v9836_v15 = vld [vmem:[%s11078_s29 + $0x16f0] sm:$0xf] }
 0x195   : > { %5705 = vmatpush.bf16.msra.mxu1 %v9541_v19  ;;  %v6868_v19 = vld [vmem:[%s13427_s0 + $0xa0] sm:$0xf]  ;;  %v9837_v63 = vor.u32 %v10761_v25, %v9836_v15  ;;  %v12244_v15 = vor.u32 %v9998_v37, %v6870_v53  ;;  %v10791_v25 = vld [vmem:[%s11078_s29 + $0x17e4] sm:$0xf0]  ;;  %v10773_v37 = vld [vmem:[%s11078_s29 + $0x1754] sm:$0xf0] }
 0x196   : > { %5719 = vmatpush.bf16.msra.mxu2 %v9605_v3  ;;  %v10022_v3 = vld [vmem:[%s13427_s0 + $0x15c] sm:$0x30] }
 0x197   : > { %5733 = vmatpush.bf16.msra.mxu3 %v9669_v21  ;;  %v6876_v21 = vld [vmem:[%s13427_s0 + $0xa8] sm:$0xf]  ;;  %v12237_v27 = vor.u32 %v10022_v3, %v6868_v19  ;;  %13489 = vst [vmem:[#allocation34_spill] sm:$0xff] %v12244_v15  ;;  %v9756_v19 = vld [vmem:[%s11078_s29 + $0x1650] sm:$0xf] }
 0x198   : > { %5692 = vmatpush.bf16.msra.mxu0 %v9469_v5  ;;  %v6878_v5 = vld [vmem:[%s13427_s0 + $0x168] sm:$0x30]  ;;  %v12242_v18 = vor.u32 %v10023_v22, %v6876_v21  ;;  %v10741_v3 = vld [vmem:[%s11078_s29 + $0x1654] sm:$0xf0]  ;;  %v9884_v22 = vld [vmem:[%s11078_s29 + $0x1750] sm:$0xf] }
 0x199   : > { %5706 = vmatpush.bf16.msra.mxu1 %v9533_v29  ;;  %v9828_v29 = vld [vmem:[%s11078_s29 + $0x16e0] sm:$0xf]  ;;  %13487 = vst [vmem:[#allocation32_spill] sm:$0xff] %v12237_v27  ;;  %v10757_v21 = vld [vmem:[%s11078_s29 + $0x16d4] sm:$0xf0]  ;;  %v9757_v53 = vor.u32 %v10741_v3, %v9756_v19 }
 0x19a   : > { %5720 = vmatpush.bf16.msra.mxu2 %v9597_v9  ;;  %v9965_v9 = vor.u32 %v10793_v61, %v9964_v16  ;;  %13488 = vst [vmem:[#allocation33_spill] sm:$0xff] %v12242_v18  ;;  %v12248_v61 = vor.u32 %v9999_v62, %v6878_v5  ;;  %v9829_v16 = vor.u32 %v10759_v11, %v9828_v29  ;;  %v10755_v29 = vld [vmem:[%s11078_s29 + $0x16c4] sm:$0xf0]  ;;  %v9804_v19 = vld [vmem:[%s11078_s29 + $0x16b0] sm:$0xf] }
 0x19b   : > { %5734 = vmatpush.bf16.msra.mxu3 %v9661_v7  ;;  %v10775_v7 = vld [vmem:[%s11078_s29 + $0x1764] sm:$0xf0]  ;;  %v9885_v5 = vor.u32 %v10773_v37, %v9884_v22  ;;  %v9932_v22 = vld [vmem:[%s11078_s29 + $0x17b0] sm:$0xf]  ;;  %v10785_v37 = vld [vmem:[%s11078_s29 + $0x17b4] sm:$0xf0] }
 0x19c   : > { %5693 = vmatpush.bf16.msra.mxu0 %v9461_v33  ;;  %13490 = vst [vmem:[#allocation35_spill] sm:$0xff] %v12248_v61  ;;  %v9765_v33 = vor.u32 %v10743_v48, %v9764_v6  ;;  %v9893_v56 = vor.u32 %v10775_v7, %v9892_v14  ;;  %v9812_v6 = vld [vmem:[%s11078_s29 + $0x16c0] sm:$0xf]  ;;  %v10771_v11 = vld [vmem:[%s11078_s29 + $0x1744] sm:$0xf0] }
 0x19d   : > { %5707 = vmatpush.bf16.msra.mxu1 %v9525_v60  ;;  %v9820_v60 = vld [vmem:[%s11078_s29 + $0x16d0] sm:$0xf]  ;;  %v9940_v14 = vld [vmem:[%s11078_s29 + $0x17c0] sm:$0xf]  ;;  %v10787_v7 = vld [vmem:[%s11078_s29 + $0x17c4] sm:$0xf0] }
 0x19e   : > { %5721 = vmatpush.bf16.msra.mxu2 %v9589_v34  ;;  %v9957_v34 = vor.u32 %v10791_v25, %v9956_v55  ;;  %v9821_v62 = vor.u32 %v10757_v21, %v9820_v60  ;;  %v9813_v25 = vor.u32 %v10755_v29, %v9812_v6  ;;  %v9941_v3 = vor.u32 %v10787_v7, %v9940_v14  ;;  %v10753_v60 = vld [vmem:[%s11078_s29 + $0x16b4] sm:$0xf0]  ;;  %v10751_v6 = vld [vmem:[%s11078_s29 + $0x16a4] sm:$0xf0]  ;;  %v9724_v7 = vld [vmem:[%s11078_s29 + $0x1610] sm:$0xf] }
 0x19f   : > { %5735 = vmatpush.bf16.msra.mxu3 %v9653_v8  ;;  %5694 = vmatmul.bf16.vlgmr.msra.gmra.mxu0 %v12237_v27  ;;  %v9948_v8 = vld [vmem:[%s11078_s29 + $0x17d0] sm:$0xf]  ;;  %v10769_v21 = vld [vmem:[%s11078_s29 + $0x1734] sm:$0xf0]  ;;  %v10767_v29 = vld [vmem:[%s11078_s29 + $0x1724] sm:$0xf0] }
 0x1a0   : > { %5742 = vmatpush.bf16.msrb.mxu0 %v9773_v57  ;;  %5708 = vmatmul.bf16.vlgmr.msra.gmra.mxu1 %v12244_v15  ;;  %v10789_v57 = vld [vmem:[%s11078_s29 + $0x17d4] sm:$0xf0]  ;;  %v10088_v15 = vld [vmem:[%s11078_s29 + $0x1f4] sm:$0xf]  ;;  %v7150_v27 = vld [vmem:[%s11078_s29 + $0x1f8] sm:$0xf0] }
 0x1a1   : > { %5756 = vmatpush.bf16.msrb.mxu1 %v9837_v63  ;;  %5722 = vmatmul.bf16.vlgmr.msra.gmra.mxu2 %v12242_v18  ;;  %v9748_v63 = vld [vmem:[%s11078_s29 + $0x1640] sm:$0xf]  ;;  %v9949_v48 = vor.u32 %v10789_v57, %v9948_v8  ;;  %v9805_v57 = vor.u32 %v10753_v60, %v9804_v19  ;;  %v10765_v60 = vld [vmem:[%s11078_s29 + $0x1714] sm:$0xf0] }
 0x1a2   : > { %5770 = vmatpush.bf16.msrb.mxu2 %v9901_v2  ;;  %5736 = vmatmul.bf16.vlgmr.msra.gmra.mxu3 %v12248_v61  ;;  %v10739_v2 = vld [vmem:[%s11078_s29 + $0x1644] sm:$0xf0]  ;;  %v7086_v61 = vld [vmem:[%s11078_s29 + $0x178] sm:$0xf0] }
 0x1a3   : > { %5784 = vmatpush.bf16.msrb.mxu3 %v9965_v9  ;;  %v9876_v9 = vld [vmem:[%s11078_s29 + $0x1740] sm:$0xf]  ;;  %v9749_v55 = vor.u32 %v10739_v2, %v9748_v63  ;;  %v9933_v2 = vor.u32 %v10785_v37, %v9932_v22  ;;  %v10731_v37 = vld [vmem:[%s11078_s29 + $0x1604] sm:$0xf0] }
 0x1a4   : > { %5743 = vmatpush.bf16.msrb.mxu0 %v9765_v33  ;;  %v9877_v33 = vor.u32 %v10771_v11, %v9876_v9  ;;  %v9796_v63 = vld [vmem:[%s11078_s29 + $0x16a0] sm:$0xf]  ;;  %v10783_v11 = vld [vmem:[%s11078_s29 + $0x17a4] sm:$0xf0] }
 0x1a5   : > { %5757 = vmatpush.bf16.msrb.mxu1 %v9829_v16  ;;  %v9740_v16 = vld [vmem:[%s11078_s29 + $0x1630] sm:$0xf]  ;;  %v9924_v9 = vld [vmem:[%s11078_s29 + $0x17a0] sm:$0xf] }
 0x1a6   : > { %5771 = vmatpush.bf16.msrb.mxu2 %v9893_v56  ;;  %v10737_v56 = vld [vmem:[%s11078_s29 + $0x1634] sm:$0xf0]  ;;  %v9925_v19 = vor.u32 %v10783_v11, %v9924_v9  ;;  %v9716_v22 = vld [vmem:[%s11078_s29 + $0x1600] sm:$0xf]  ;;  %v6958_v11 = vld [vmem:[%s11078_s29 + $0x78] sm:$0xf0] }
 0x1a7   : > { %5785 = vmatpush.bf16.msrb.mxu3 %v9957_v34  ;;  %v9868_v34 = vld [vmem:[%s11078_s29 + $0x1730] sm:$0xf]  ;;  %v9741_v8 = vor.u32 %v10737_v56, %v9740_v16  ;;  %v10749_v56 = vld [vmem:[%s11078_s29 + $0x1694] sm:$0xf0]  ;;  %v9717_v18 = vor.u32 %v10731_v37, %v9716_v22  ;;  %v6886_v22 = vld [vmem:[%s13427_s0 + $0x170] sm:$0x30] }
 0x1a8   : > { %5744 = vmatpush.bf16.msrb.mxu0 %v9757_v53  ;;  %v9869_v53 = vor.u32 %v10769_v21, %v9868_v34  ;;  %v9788_v16 = vld [vmem:[%s11078_s29 + $0x1690] sm:$0xf]  ;;  %v10781_v21 = vld [vmem:[%s11078_s29 + $0x1794] sm:$0xf0]  ;;  %v10001_v37 = vld [vmem:[%s13427_s0 + $0xbc] sm:$0xf] }
 0x1a9   : > { %5758 = vmatpush.bf16.msrb.mxu1 %v9821_v62  ;;  %v9732_v62 = vld [vmem:[%s11078_s29 + $0x1620] sm:$0xf]  ;;  %v9916_v34 = vld [vmem:[%s11078_s29 + $0x1790] sm:$0xf] }
 0x1aa   : > { %5772 = vmatpush.bf16.msrb.mxu2 %v9885_v5  ;;  %v10735_v5 = vld [vmem:[%s11078_s29 + $0x1624] sm:$0xf0]  ;;  %v9917_v9 = vor.u32 %v10781_v21, %v9916_v34 }
 0x1ab   : > { %5786 = vmatpush.bf16.msrb.mxu3 %v9949_v48  ;;  %v9860_v48 = vld [vmem:[%s11078_s29 + $0x1720] sm:$0xf]  ;;  %v9733_v14 = vor.u32 %v10735_v5, %v9732_v62  ;;  %v10763_v5 = vld [vmem:[%s11078_s29 + $0x1704] sm:$0xf0] }
 0x1ac   : > { %5745 = vmatpush.bf16.msrb.mxu0 %v9749_v55  ;;  %v9797_v55 = vor.u32 %v10751_v6, %v9796_v63  ;;  %v9844_v62 = vld [vmem:[%s11078_s29 + $0x1700] sm:$0xf]  ;;  %v9789_v63 = vor.u32 %v10749_v56, %v9788_v16 }
 0x1ad   : > { %5759 = vmatpush.bf16.msrb.mxu1 %v9813_v25  ;;  %v9861_v25 = vor.u32 %v10767_v29, %v9860_v48  ;;  %v9908_v6 = vld [vmem:[%s11078_s29 + $0x1780] sm:$0xf]  ;;  %v10779_v48 = vld [vmem:[%s11078_s29 + $0x1784] sm:$0xf0]  ;;  %v10040_v29 = vld [vmem:[%s11078_s29 + $0x74] sm:$0xf]  ;;  %v9845_v56 = vor.u32 %v10763_v5, %v9844_v62 }
 0x1ae   : > { %5773 = vmatpush.bf16.msrb.mxu2 %v9877_v33  ;;  %v10733_v33 = vld [vmem:[%s11078_s29 + $0x1614] sm:$0xf0]  ;;  %v9909_v34 = vor.u32 %v10779_v48, %v9908_v6  ;;  %v6961_v21 = vor.u32 %v10040_v29, %v6958_v11  ;;  %v10038_v62 = vld [vmem:[%s11078_s29 + $0x64] sm:$0xf]  ;;  %v6950_v5 = vld [vmem:[%s11078_s29 + $0x68] sm:$0xf0] }
 0x1af   : > { %5787 = vmatpush.bf16.msrb.mxu3 %v9941_v3  ;;  %v9852_v3 = vld [vmem:[%s11078_s29 + $0x1710] sm:$0xf]  ;;  %v7014_v48 = vld [vmem:[%s11078_s29 + $0xe8] sm:$0xf0]  ;;  %v10070_v29 = vld [vmem:[%s11078_s29 + $0x164] sm:$0xf] }
 0x1b0   : > { %5746 = vmatpush.bf16.msrb.mxu0 %v9741_v8  ;;  %v9725_v8 = vor.u32 %v10733_v33, %v9724_v7  ;;  %v7022_v7 = vld [vmem:[%s11078_s29 + $0xf8] sm:$0xf0]  ;;  %v10072_v33 = vld [vmem:[%s11078_s29 + $0x174] sm:$0xf] }
 0x1b1   : > { %5760 = vmatpush.bf16.msrb.mxu1 %v9805_v57  ;;  %v9780_v57 = vld [vmem:[%s11078_s29 + $0x1680] sm:$0xf] }
 0x1b2   : > { %5774 = vmatpush.bf16.msrb.mxu2 %v9869_v53  ;;  %v10747_v53 = vld [vmem:[%s11078_s29 + $0x1684] sm:$0xf0] }
 0x1b3   : > { %5788 = vmatpush.bf16.msrb.mxu3 %v9933_v2  ;;  %v9853_v2 = vor.u32 %v10765_v60, %v9852_v3  ;;  %v9781_v16 = vor.u32 %v10747_v53, %v9780_v57  ;;  %v10025_v3 = vld [vmem:[%s13427_s0 + $0x174] sm:$0x30]  ;;  %v10000_v60 = vld [vmem:[%s13427_s0 + $0xb4] sm:$0xf]  ;;  %v7089_v53 = vor.u32 %v10072_v33, %v7086_v61  ;;  %v10086_v61 = vld [vmem:[%s11078_s29 + $0x1e4] sm:$0xf] }
 0x1b4   : > { %5747 = vmatpush.bf16.msrb.mxu0 %v9733_v14  ;;  %v10056_v14 = vld [vmem:[%s11078_s29 + $0xf4] sm:$0xf] }
 0x1b5   : > { %5761 = vmatpush.bf16.msrb.mxu1 %v9797_v55  ;;  %v6884_v55 = vld [vmem:[%s13427_s0 + $0xb0] sm:$0xf]  ;;  %v7025_v57 = vor.u32 %v10056_v14, %v7022_v7  ;;  %v12344_v14 = vor.u32 %v10000_v60, %v6886_v22  ;;  %v7142_v7 = vld [vmem:[%s11078_s29 + $0x1e8] sm:$0xf0]  ;;  %v7070_v60 = vld [vmem:[%s11078_s29 + $0x158] sm:$0xf0] }
 0x1b6   : > { %5775 = vmatpush.bf16.msrb.mxu2 %v9861_v25  ;;  %v10024_v25 = vld [vmem:[%s13427_s0 + $0x16c] sm:$0x30] }
 0x1b7   : > { %5789 = vmatpush.bf16.msrb.mxu3 %v9925_v19  ;;  %v6892_v19 = vld [vmem:[%s13427_s0 + $0xb8] sm:$0xf]  ;;  %v12337_v6 = vor.u32 %v10024_v25, %v6884_v55  ;;  %v10036_v55 = vld [vmem:[%s11078_s29 + $0x54] sm:$0xf]  ;;  %v6942_v25 = vld [vmem:[%s11078_s29 + $0x58] sm:$0xf0] }
 0x1b8   : > { %5748 = vmatpush.bf16.msrb.mxu0 %v9725_v8  ;;  %v6894_v8 = vld [vmem:[%s13427_s0 + $0x178] sm:$0x30]  ;;  %v12342_v11 = vor.u32 %v10025_v3, %v6892_v19  ;;  %v10068_v3 = vld [vmem:[%s11078_s29 + $0x154] sm:$0xf]  ;;  %v6945_v22 = vor.u32 %v10036_v55, %v6942_v25 }
 0x1b9   : > { %5762 = vmatpush.bf16.msrb.mxu1 %v9789_v63  ;;  %v10054_v63 = vld [vmem:[%s11078_s29 + $0xe4] sm:$0xf]  ;;  %v7006_v19 = vld [vmem:[%s11078_s29 + $0xd8] sm:$0xf0]  ;;  %v10048_v25 = vld [vmem:[%s11078_s29 + $0xb4] sm:$0xf] }
 0x1ba   : > { %5776 = vmatpush.bf16.msrb.mxu2 %v9853_v2  ;;  %v7153_v2 = vor.u32 %v10088_v15, %v7150_v27  ;;  %13491 = vst [vmem:[#allocation36_spill] sm:$0xff] %v12342_v11  ;;  %v12348_v27 = vor.u32 %v10001_v37, %v6894_v8  ;;  %v7017_v15 = vor.u32 %v10054_v63, %v7014_v48  ;;  %v6998_v63 = vld [vmem:[%s11078_s29 + $0xc8] sm:$0xf0]  ;;  %v6926_v55 = vld [vmem:[%s11078_s29 + $0x38] sm:$0xf0] }
 0x1bb   : > { %5790 = vmatpush.bf16.msrb.mxu3 %v9917_v9  ;;  %v7078_v9 = vld [vmem:[%s11078_s29 + $0x168] sm:$0xf0]  ;;  %v7073_v8 = vor.u32 %v10068_v3, %v7070_v60  ;;  %v12379_v3 = vpop.f32.mrf.mxu0  ;;  %v10080_v60 = vld [vmem:[%s11078_s29 + $0x1b4] sm:$0xf] }
 0x1bc   : > { %5749 = vmatpush.bf16.msrb.mxu0 %v9717_v18  ;;  %13492 = vst [vmem:[#allocation37_spill] sm:$0xff] %v12348_v27  ;;  %v6953_v18 = vor.u32 %v10038_v62, %v6950_v5  ;;  %v7081_v33 = vor.u32 %v10070_v29, %v7078_v9  ;;  %v10050_v62 = vld [vmem:[%s11078_s29 + $0xc4] sm:$0xf]  ;;  %v7062_v48 = vld [vmem:[%s11078_s29 + $0x148] sm:$0xf0]  ;;  %v5152_v29 = vadd.f32 %v11706_v28, %v11690_v13 }
 0x1bd   : > { %5763 = vmatpush.bf16.msrb.mxu1 %v9781_v16  ;;  %v10052_v16 = vld [vmem:[%s11078_s29 + $0xd4] sm:$0xf]  ;;  %v10082_v9 = vld [vmem:[%s11078_s29 + $0x1c4] sm:$0xf]  ;;  %v7054_v28 = vld [vmem:[%s11078_s29 + $0x138] sm:$0xf0] }
 0x1be   : > { %5777 = vmatpush.bf16.msrb.mxu2 %v9845_v56  ;;  %v7145_v56 = vor.u32 %v10086_v61, %v7142_v7  ;;  %v7009_v37 = vor.u32 %v10052_v16, %v7006_v19  ;;  %v7126_v61 = vld [vmem:[%s11078_s29 + $0x1c8] sm:$0xf0]  ;;  %v10064_v13 = vld [vmem:[%s11078_s29 + $0x134] sm:$0xf]  ;;  %v5166_v19 = vadd.f32 %v11722_v59, %v5152_v29  ;;  %v10046_v59 = vld [vmem:[%s11078_s29 + $0xa4] sm:$0xf] }
 0x1bf   : > { %5791 = vmatpush.bf16.msrb.mxu3 %v9909_v34  ;;  %5750 = vmatmul.bf16.vlgmr.msrb.gmra.mxu0 %v12337_v6  ;;  %v10084_v34 = vld [vmem:[%s11078_s29 + $0x1d4] sm:$0xf]  ;;  %v7129_v16 = vor.u32 %v10082_v9, %v7126_v61  ;;  %v10078_v29 = vld [vmem:[%s11078_s29 + $0x1a4] sm:$0xf]  ;;  %v7110_v9 = vld [vmem:[%s11078_s29 + $0x1a8] sm:$0xf0] }
 0x1c0   : > { %5798 = vmatpush.bf16.msra.mxu0 %v6961_v21  ;;  %5764 = vmatmul.bf16.vlgmr.msrb.gmra.mxu1 %v12344_v14  ;;  %v7134_v21 = vld [vmem:[%s11078_s29 + $0x1d8] sm:$0xf0] }
 0x1c1   : > { %5812 = vmatpush.bf16.msra.mxu1 %v7025_v57  ;;  %5778 = vmatmul.bf16.vlgmr.msrb.gmra.mxu2 %v12342_v11  ;;  %v10034_v57 = vld [vmem:[%s11078_s29 + $0x44] sm:$0xf]  ;;  %v7137_v5 = vor.u32 %v10084_v34, %v7134_v21  ;;  %v7118_v34 = vld [vmem:[%s11078_s29 + $0x1b8] sm:$0xf0]  ;;  %v12383_v21 = vpop.f32.mrf.mxu1  ;;  %v7334_v11 = vld [vmem:[%s11078_s29 + $0x368] sm:$0xf0] }
 0x1c2   : > { %5826 = vmatpush.bf16.msra.mxu2 %v7089_v53  ;;  %5792 = vmatmul.bf16.vlgmr.msrb.gmra.mxu3 %v12348_v27  ;;  %v6934_v53 = vld [vmem:[%s11078_s29 + $0x48] sm:$0xf0]  ;;  %v10134_v27 = vld [vmem:[%s11078_s29 + $0x364] sm:$0xf] }
 0x1c3   : > { %5840 = vmatpush.bf16.msra.mxu3 %v7153_v2  ;;  %v10066_v2 = vld [vmem:[%s11078_s29 + $0x144] sm:$0xf]  ;;  %v6937_v7 = vor.u32 %v10034_v57, %v6934_v53  ;;  %v6918_v53 = vld [vmem:[%s11078_s29 + $0x28] sm:$0xf0] }
 0x1c4   : > { %5799 = vmatpush.bf16.msra.mxu0 %v6953_v18  ;;  %v7001_v18 = vor.u32 %v10050_v62, %v6998_v63  ;;  %v10030_v57 = vld [vmem:[%s11078_s29 + $0x24] sm:$0xf]  ;;  %v7121_v62 = vor.u32 %v10080_v60, %v7118_v34  ;;  %v10076_v60 = vld [vmem:[%s11078_s29 + $0x194] sm:$0xf]  ;;  %v7102_v34 = vld [vmem:[%s11078_s29 + $0x198] sm:$0xf0] }
 0x1c5   : > { %5813 = vmatpush.bf16.msra.mxu1 %v7017_v15  ;;  %v7065_v15 = vor.u32 %v10066_v2, %v7062_v48  ;;  %v10062_v63 = vld [vmem:[%s11078_s29 + $0x124] sm:$0xf]  ;;  %v7046_v2 = vld [vmem:[%s11078_s29 + $0x128] sm:$0xf0]  ;;  %v5180_v48 = vadd.f32 %v11727_v4, %v5166_v19  ;;  %v6921_v61 = vor.u32 %v10030_v57, %v6918_v53  ;;  %v10044_v4 = vld [vmem:[%s11078_s29 + $0x94] sm:$0xf]  ;;  %v12405_v19 = vpop.f32.mrf.mxu0 }
 0x1c6   : > { %5827 = vmatpush.bf16.msra.mxu2 %v7081_v33  ;;  %v10032_v33 = vld [vmem:[%s11078_s29 + $0x34] sm:$0xf]  ;;  %v6902_v57 = vld [vmem:[%s11078_s29 + $0x8] sm:$0xf0] }
 0x1c7   : > { %5841 = vmatpush.bf16.msra.mxu3 %v7145_v56  ;;  %v6990_v56 = vld [vmem:[%s11078_s29 + $0xb8] sm:$0xf0] }
 0x1c8   : > { %5800 = vmatpush.bf16.msra.mxu0 %v6945_v22  ;;  %v6929_v22 = vor.u32 %v10032_v33, %v6926_v55  ;;  %v10028_v33 = vld [vmem:[%s11078_s29 + $0x14] sm:$0xf]  ;;  %v6910_v55 = vld [vmem:[%s11078_s29 + $0x18] sm:$0xf0] }
 0x1c9   : > { %5814 = vmatpush.bf16.msra.mxu1 %v7009_v37  ;;  %v6993_v37 = vor.u32 %v10048_v25, %v6990_v56  ;;  %v12398_v25 = vpop.f32.mrf.mxu2  ;;  %v6974_v56 = vld [vmem:[%s11078_s29 + $0x98] sm:$0xf0] }
 0x1ca   : > { %5828 = vmatpush.bf16.msra.mxu2 %v7073_v8  ;;  %v7057_v8 = vor.u32 %v10064_v13, %v7054_v28  ;;  %v10060_v13 = vld [vmem:[%s11078_s29 + $0x114] sm:$0xf]  ;;  %v7038_v28 = vld [vmem:[%s11078_s29 + $0x118] sm:$0xf0] }
 0x1cb   : > { %5842 = vmatpush.bf16.msra.mxu3 %v7137_v5  ;;  %v6982_v5 = vld [vmem:[%s11078_s29 + $0xa8] sm:$0xf0] }
 0x1cc   : > { %5801 = vmatpush.bf16.msra.mxu0 %v6937_v7  ;;  %v5194_v7 = vadd.f32 %v11809_v42, %v5180_v48  ;;  %v12403_v42 = vpop.f32.mrf.mxu3  ;;  %v7105_v48 = vor.u32 %v10076_v60, %v7102_v34  ;;  %v7406_v60 = vld [vmem:[%s11078_s29 + $0x3f8] sm:$0xf0] }
 0x1cd   : > { %5815 = vmatpush.bf16.msra.mxu1 %v7001_v18  ;;  %v6985_v18 = vor.u32 %v10046_v59, %v6982_v5  ;;  %v6977_v59 = vor.u32 %v10044_v4, %v6974_v56  ;;  %v10042_v5 = vld [vmem:[%s11078_s29 + $0x84] sm:$0xf]  ;;  %v10136_v4 = vld [vmem:[%s11078_s29 + $0x374] sm:$0xf]  ;;  %v7342_v56 = vld [vmem:[%s11078_s29 + $0x378] sm:$0xf0] }
 0x1ce   : > { %5829 = vmatpush.bf16.msra.mxu2 %v7065_v15  ;;  %v7049_v15 = vor.u32 %v10062_v63, %v7046_v2  ;;  %v5208_v53 = vadd.f32 %v11817_v52, %v5194_v7  ;;  %v6966_v63 = vld [vmem:[%s11078_s29 + $0x88] sm:$0xf0]  ;;  %v10058_v2 = vld [vmem:[%s11078_s29 + $0x104] sm:$0xf]  ;;  %v10104_v7 = vld [vmem:[%s11078_s29 + $0x274] sm:$0xf] }
 0x1cf   : > { %5843 = vmatpush.bf16.msra.mxu3 %v7129_v16  ;;  %v7113_v16 = vor.u32 %v10078_v29, %v7110_v9  ;;  %v7030_v29 = vld [vmem:[%s11078_s29 + $0x108] sm:$0xf0]  ;;  %v10074_v9 = vld [vmem:[%s11078_s29 + $0x184] sm:$0xf] }
 0x1d0   : > { %5802 = vmatpush.bf16.msra.mxu0 %v6929_v22  ;;  %v12409_v22 = vpop.f32.mrf.mxu1  ;;  %v5222_v52 = vadd.f32 %v11836_v20, %v5208_v53 }
 0x1d1   : > { %5816 = vmatpush.bf16.msra.mxu1 %v6993_v37  ;;  %v6913_v37 = vor.u32 %v10028_v33, %v6910_v55  ;;  %v7278_v55 = vld [vmem:[%s11078_s29 + $0x2f8] sm:$0xf0]  ;;  %v12429_v20 = vpop.f32.mrf.mxu2 }
 0x1d2   : > { %5830 = vmatpush.bf16.msra.mxu2 %v7057_v8  ;;  %v10026_v8 = vld [vmem:[%s11078_s29 + $0x4] sm:$0xf] }
 0x1d3   : > { %5844 = vmatpush.bf16.msra.mxu3 %v7121_v62  ;;  %v7041_v62 = vor.u32 %v10060_v13, %v7038_v28  ;;  %v6905_v33 = vor.u32 %v10026_v8, %v6902_v57  ;;  %v7033_v13 = vor.u32 %v10058_v2, %v7030_v29  ;;  %v10152_v28 = vld [vmem:[%s11078_s29 + $0x3f4] sm:$0xf]  ;;  %v5236_v8 = vadd.f32 %v11841_v30, %v5222_v52  ;;  %v7270_v29 = vld [vmem:[%s11078_s29 + $0x2e8] sm:$0xf0]  ;;  %v12441_v30 = vpop.f32.mrf.mxu0 }
 0x1d4   : > { %5803 = vmatpush.bf16.msra.mxu0 %v6921_v61  ;;  %v7094_v61 = vld [vmem:[%s11078_s29 + $0x188] sm:$0xf0]  ;;  %v12432_v57 = vpop.f32.mrf.mxu3  ;;  %v7409_v2 = vor.u32 %v10152_v28, %v7406_v60  ;;  %v10148_v60 = vld [vmem:[%s11078_s29 + $0x3d4] sm:$0xf] }
 0x1d5   : > { %5817 = vmatpush.bf16.msra.mxu1 %v6985_v18  ;;  %v7214_v18 = vld [vmem:[%s11078_s29 + $0x278] sm:$0xf0]  ;;  %v7097_v34 = vor.u32 %v10074_v9, %v7094_v61  ;;  %v10150_v9 = vld [vmem:[%s11078_s29 + $0x3e4] sm:$0xf]  ;;  %v7398_v61 = vld [vmem:[%s11078_s29 + $0x3e8] sm:$0xf0] }
 0x1d6   : > { %5831 = vmatpush.bf16.msra.mxu2 %v7049_v15  ;;  %v10120_v15 = vld [vmem:[%s11078_s29 + $0x2f4] sm:$0xf] }
 0x1d7   : > { %5845 = vmatpush.bf16.msra.mxu3 %v7113_v16  ;;  %v6969_v16 = vor.u32 %v10042_v5, %v6966_v63  ;;  %v7281_v53 = vor.u32 %v10120_v15, %v7278_v55  ;;  %v7206_v5 = vld [vmem:[%s11078_s29 + $0x268] sm:$0xf0]  ;;  %v10118_v63 = vld [vmem:[%s11078_s29 + $0x2e4] sm:$0xf]  ;;  %v10100_v15 = vld [vmem:[%s11078_s29 + $0x254] sm:$0xf] }
 0x1d8   : > { %5804 = vmatpush.bf16.msra.mxu0 %v6913_v37  ;;  %v7217_v37 = vor.u32 %v10104_v7, %v7214_v18  ;;  %v12445_v52 = vpop.f32.mrf.mxu1  ;;  %v7337_v18 = vor.u32 %v10134_v27, %v7334_v11  ;;  %v10116_v55 = vld [vmem:[%s11078_s29 + $0x2d4] sm:$0xf] }
 0x1d9   : > { %5818 = vmatpush.bf16.msra.mxu1 %v6977_v59  ;;  %v7345_v59 = vor.u32 %v10136_v4, %v7342_v56  ;;  %v7401_v4 = vor.u32 %v10150_v9, %v7398_v61  ;;  %v7262_v56 = vld [vmem:[%s11078_s29 + $0x2d8] sm:$0xf0] }
 0x1da   : > { %5832 = vmatpush.bf16.msra.mxu2 %v7041_v62  ;;  %v10102_v62 = vld [vmem:[%s11078_s29 + $0x264] sm:$0xf] }
 0x1db   : > { %5846 = vmatpush.bf16.msra.mxu3 %v7105_v48  ;;  %v5250_v48 = vadd.f32 %v11920_v49, %v5236_v8  ;;  %v7209_v7 = vor.u32 %v10102_v62, %v7206_v5  ;;  %v7273_v49 = vor.u32 %v10118_v63, %v7270_v29  ;;  %v7190_v8 = vld [vmem:[%s11078_s29 + $0x248] sm:$0xf0]  ;;  %v10130_v62 = vld [vmem:[%s11078_s29 + $0x344] sm:$0xf]  ;;  %v12471_v5 = vpop.f32.mrf.mxu0 }
 0x1dc   : > { %5805 = vmatpush.bf16.msra.mxu0 %v6905_v33  ;;  %v7198_v33 = vld [vmem:[%s11078_s29 + $0x258] sm:$0xf0]  ;;  %v10146_v63 = vld [vmem:[%s11078_s29 + $0x3c4] sm:$0xf] }
 0x1dd   : > { %5819 = vmatpush.bf16.msra.mxu1 %v6969_v16  ;;  %v10132_v16 = vld [vmem:[%s11078_s29 + $0x354] sm:$0xf]  ;;  %v5264_v28 = vadd.f32 %v11928_v45, %v5250_v48  ;;  %v7201_v11 = vor.u32 %v10100_v15, %v7198_v33 }
 0x1de   : > { %5833 = vmatpush.bf16.msra.mxu2 %v7033_v13  ;;  %v7326_v13 = vld [vmem:[%s11078_s29 + $0x358] sm:$0xf0]  ;;  %v10112_v15 = vld [vmem:[%s11078_s29 + $0x2b4] sm:$0xf] }
 0x1df   : > { %5847 = vmatpush.bf16.msra.mxu3 %v7097_v34  ;;  %5806 = vmatmul.bf16.vlgmr.msra.gmra.mxu0 %v11183_v58  ;;  %v7390_v34 = vld [vmem:[%s11078_s29 + $0x3d8] sm:$0xf0]  ;;  %v5278_v27 = vadd.f32 %v11947_v26, %v5264_v28  ;;  %v7265_v58 = vor.u32 %v10116_v55, %v7262_v56  ;;  %v7329_v45 = vor.u32 %v10132_v16, %v7326_v13  ;;  %v12469_v26 = vpop.f32.mrf.mxu3 }
 0x1e0   : > { %5854 = vmatpush.bf16.msrb.mxu0 %v7217_v37  ;;  %5820 = vmatmul.bf16.vlgmr.msra.gmra.mxu1 %v11207_v10  ;;  %v10098_v37 = vld [vmem:[%s11078_s29 + $0x244] sm:$0xf]  ;;  %v7393_v10 = vor.u32 %v10148_v60, %v7390_v34  ;;  %v12475_v29 = vpop.f32.mrf.mxu1  ;;  %v7246_v55 = vld [vmem:[%s11078_s29 + $0x2b8] sm:$0xf0] }
 0x1e1   : > { %5868 = vmatpush.bf16.msrb.mxu1 %v7281_v53  ;;  %5834 = vmatmul.bf16.vlgmr.msra.gmra.mxu2 %v11191_v1  ;;  %v10114_v1 = vld [vmem:[%s11078_s29 + $0x2c4] sm:$0xf]  ;;  %v12464_v53 = vpop.f32.mrf.mxu2  ;;  %v7193_v48 = vor.u32 %v10098_v37, %v7190_v8  ;;  %v5292_v9 = vadd.f32 %v11952_v0, %v5278_v27  ;;  %v7310_v56 = vld [vmem:[%s11078_s29 + $0x338] sm:$0xf0]  ;;  %v10144_v0 = vld [vmem:[%s11078_s29 + $0x3b4] sm:$0xf]  ;;  %v7249_v60 = vor.u32 %v10112_v15, %v7246_v55 }
 0x1e2   : > { %5882 = vmatpush.bf16.msrb.mxu2 %v7345_v59  ;;  %5848 = vmatmul.bf16.vlgmr.msra.gmra.mxu3 %v11215_v17  ;;  %v7254_v59 = vld [vmem:[%s11078_s29 + $0x2c8] sm:$0xf0]  ;;  %v7374_v13 = vld [vmem:[%s11078_s29 + $0x3b8] sm:$0xf0]  ;;  %v10126_v8 = vld [vmem:[%s11078_s29 + $0x324] sm:$0xf] }
 0x1e3   : > { %5896 = vmatpush.bf16.msrb.mxu3 %v7409_v2  ;;  %v7318_v17 = vld [vmem:[%s11078_s29 + $0x348] sm:$0xf0]  ;;  %v7257_v61 = vor.u32 %v10114_v1, %v7254_v59  ;;  %v5306_v16 = vadd.f32 %v12031_v54, %v5292_v9  ;;  %v7377_v37 = vor.u32 %v10144_v0, %v7374_v13  ;;  %v7294_v55 = vld [vmem:[%s11078_s29 + $0x318] sm:$0xf0]  ;;  %v10090_v0 = vld [vmem:[%s11078_s29 + $0x204] sm:$0xf] }
 0x1e4   : > { %5855 = vmatpush.bf16.msrb.mxu0 %v7209_v7  ;;  %v7382_v2 = vld [vmem:[%s11078_s29 + $0x3c8] sm:$0xf0]  ;;  %v7321_v7 = vor.u32 %v10130_v62, %v7318_v17  ;;  %v10142_v62 = vld [vmem:[%s11078_s29 + $0x3a4] sm:$0xf] }
 0x1e5   : > { %5869 = vmatpush.bf16.msrb.mxu1 %v7273_v49  ;;  %v10096_v49 = vld [vmem:[%s11078_s29 + $0x234] sm:$0xf]  ;;  %v7385_v33 = vor.u32 %v10146_v63, %v7382_v2  ;;  %v7174_v27 = vld [vmem:[%s11078_s29 + $0x228] sm:$0xf0] }
 0x1e6   : > { %5883 = vmatpush.bf16.msrb.mxu2 %v7337_v18  ;;  %v7182_v18 = vld [vmem:[%s11078_s29 + $0x238] sm:$0xf0]  ;;  %v7238_v54 = vld [vmem:[%s11078_s29 + $0x2a8] sm:$0xf0] }
 0x1e7   : > { %5897 = vmatpush.bf16.msrb.mxu3 %v7401_v4  ;;  %v10128_v4 = vld [vmem:[%s11078_s29 + $0x334] sm:$0xf]  ;;  %v7185_v28 = vor.u32 %v10096_v49, %v7182_v18  ;;  %v7302_v1 = vld [vmem:[%s11078_s29 + $0x328] sm:$0xf0]  ;;  %v12496_v59 = vpop.f32.mrf.mxu3 }
 0x1e8   : > { %5856 = vmatpush.bf16.msrb.mxu0 %v7201_v11  ;;  %v7313_v34 = vor.u32 %v10128_v4, %v7310_v56  ;;  %v10094_v11 = vld [vmem:[%s11078_s29 + $0x224] sm:$0xf]  ;;  %v7366_v17 = vld [vmem:[%s11078_s29 + $0x3a8] sm:$0xf0]  ;;  %v10108_v49 = vld [vmem:[%s11078_s29 + $0x294] sm:$0xf]  ;;  %v12506_v18 = vpop.f32.mrf.mxu1 }
 0x1e9   : > { %5870 = vmatpush.bf16.msrb.mxu1 %v7265_v58  ;;  %v10110_v58 = vld [vmem:[%s11078_s29 + $0x2a4] sm:$0xf]  ;;  %v7177_v63 = vor.u32 %v10094_v11, %v7174_v27  ;;  %v7369_v15 = vor.u32 %v10142_v62, %v7366_v17  ;;  %v10140_v4 = vld [vmem:[%s11078_s29 + $0x394] sm:$0xf]  ;;  %v7358_v56 = vld [vmem:[%s11078_s29 + $0x398] sm:$0xf0] }
 0x1ea   : > { %5884 = vmatpush.bf16.msrb.mxu2 %v7329_v45  ;;  %v12490_v45 = vpop.f32.mrf.mxu2  ;;  %v7241_v9 = vor.u32 %v10110_v58, %v7238_v54  ;;  %v7158_v13 = vld [vmem:[%s11078_s29 + $0x208] sm:$0xf0]  ;;  %v10106_v11 = vld [vmem:[%s11078_s29 + $0x284] sm:$0xf]  ;;  %v7470_v62 = vld [vmem:[%s11078_s29 + $0x478] sm:$0xf0] }
 0x1eb   : > { %5898 = vmatpush.bf16.msrb.mxu3 %v7393_v10  ;;  %v5320_v10 = vadd.f32 %v12039_v23, %v5306_v16  ;;  %v7305_v23 = vor.u32 %v10126_v8, %v7302_v1  ;;  %v7222_v27 = vld [vmem:[%s11078_s29 + $0x288] sm:$0xf0]  ;;  %v10122_v58 = vld [vmem:[%s11078_s29 + $0x304] sm:$0xf]  ;;  %v10184_v17 = vld [vmem:[%s11078_s29 + $0x4f4] sm:$0xf] }
 0x1ec   : > { %5857 = vmatpush.bf16.msrb.mxu0 %v7193_v48  ;;  %v12501_v48 = vpop.f32.mrf.mxu0  ;;  %v7286_v54 = vld [vmem:[%s11078_s29 + $0x308] sm:$0xf0]  ;;  %v10138_v8 = vld [vmem:[%s11078_s29 + $0x384] sm:$0xf] }
 0x1ed   : > { %5871 = vmatpush.bf16.msrb.mxu1 %v7257_v61  ;;  %v5334_v2 = vadd.f32 %v12058_v50, %v5320_v10  ;;  %v10092_v61 = vld [vmem:[%s11078_s29 + $0x214] sm:$0xf]  ;;  %v7350_v1 = vld [vmem:[%s11078_s29 + $0x388] sm:$0xf0] }
 0x1ee   : > { %5885 = vmatpush.bf16.msrb.mxu2 %v7321_v7  ;;  %v7166_v7 = vld [vmem:[%s11078_s29 + $0x218] sm:$0xf0]  ;;  %v10124_v50 = vld [vmem:[%s11078_s29 + $0x314] sm:$0xf] }
 0x1ef   : > { %5899 = vmatpush.bf16.msrb.mxu3 %v7385_v33  ;;  %v7230_v33 = vld [vmem:[%s11078_s29 + $0x298] sm:$0xf0]  ;;  %v7169_v16 = vor.u32 %v10092_v61, %v7166_v7  ;;  %v12531_v7 = vpop.f32.mrf.mxu3 }
 0x1f0   : > { %5858 = vmatpush.bf16.msrb.mxu0 %v7185_v28  ;;  %v5348_v28 = vadd.f32 %v12063_v12, %v5334_v2  ;;  %v10168_v12 = vld [vmem:[%s11078_s29 + $0x474] sm:$0xf]  ;;  %v7161_v2 = vor.u32 %v10090_v0, %v7158_v13  ;;  %v7598_v61 = vld [vmem:[%s11078_s29 + $0x578] sm:$0xf0] }
 0x1f1   : > { %5872 = vmatpush.bf16.msrb.mxu1 %v7249_v60  ;;  %v7233_v60 = vor.u32 %v10108_v49, %v7230_v33  ;;  %v10216_v33 = vld [vmem:[%s11078_s29 + $0x5f4] sm:$0xf] }
 0x1f2   : > { %5886 = vmatpush.bf16.msrb.mxu2 %v7313_v34  ;;  %v7297_v34 = vor.u32 %v10124_v50, %v7294_v55  ;;  %v5362_v10 = vadd.f32 %v12379_v3, %v5348_v28  ;;  %v7225_v3 = vor.u32 %v10106_v11, %v7222_v27  ;;  %v7662_v50 = vld [vmem:[%s11078_s29 + $0x5f8] sm:$0xf0]  ;;  %v12537_v55 = vpop.f32.mrf.mxu1  ;;  %v10166_v28 = vld [vmem:[%s11078_s29 + $0x464] sm:$0xf]  ;;  %v7526_v27 = vld [vmem:[%s11078_s29 + $0x4e8] sm:$0xf0] }
 0x1f3   : > { %5900 = vmatpush.bf16.msrb.mxu3 %v7377_v37  ;;  %v7361_v37 = vor.u32 %v10140_v4, %v7358_v56  ;;  %v7353_v4 = vor.u32 %v10138_v8, %v7350_v1  ;;  %v7473_v56 = vor.u32 %v10168_v12, %v7470_v62  ;;  %v7665_v11 = vor.u32 %v10216_v33, %v7662_v50  ;;  %v10214_v8 = vld [vmem:[%s11078_s29 + $0x5e4] sm:$0xf]  ;;  %v10164_v62 = vld [vmem:[%s11078_s29 + $0x454] sm:$0xf] }
 0x1f4   : > { %5859 = vmatpush.bf16.msrb.mxu0 %v7177_v63  ;;  %v12526_v63 = vpop.f32.mrf.mxu2  ;;  %v12533_v49 = vpop.f32.mrf.mxu0  ;;  %v10212_v50 = vld [vmem:[%s11078_s29 + $0x5d4] sm:$0xf] }
 0x1f5   : > { %5873 = vmatpush.bf16.msrb.mxu1 %v7241_v9  ;;  %v7534_v9 = vld [vmem:[%s11078_s29 + $0x4f8] sm:$0xf0] }
 0x1f6   : > { %5887 = vmatpush.bf16.msrb.mxu2 %v7305_v23  ;;  %v10200_v23 = vld [vmem:[%s11078_s29 + $0x574] sm:$0xf]  ;;  %v7537_v0 = vor.u32 %v10184_v17, %v7534_v9  ;;  %v7454_v17 = vld [vmem:[%s11078_s29 + $0x458] sm:$0xf0] }
 0x1f7   : > { %5901 = vmatpush.bf16.msrb.mxu3 %v7369_v15  ;;  %v7289_v15 = vor.u32 %v10122_v58, %v7286_v54  ;;  %v7601_v13 = vor.u32 %v10200_v23, %v7598_v61  ;;  %v10198_v58 = vld [vmem:[%s11078_s29 + $0x564] sm:$0xf]  ;;  %v7590_v54 = vld [vmem:[%s11078_s29 + $0x568] sm:$0xf0]  ;;  %v7518_v23 = vld [vmem:[%s11078_s29 + $0x4d8] sm:$0xf0]  ;;  %v12559_v33 = vpop.f32.mrf.mxu3 }
 0x1f8   : > { %5860 = vmatpush.bf16.msrb.mxu0 %v7169_v16  ;;  %v5376_v16 = vadd.f32 %v12383_v21, %v5362_v10  ;;  %v7654_v21 = vld [vmem:[%s11078_s29 + $0x5e8] sm:$0xf0]  ;;  %v7593_v12 = vor.u32 %v10198_v58, %v7590_v54  ;;  %v10196_v61 = vld [vmem:[%s11078_s29 + $0x554] sm:$0xf] }
 0x1f9   : > { %5874 = vmatpush.bf16.msrb.mxu1 %v7233_v60  ;;  %v7462_v60 = vld [vmem:[%s11078_s29 + $0x468] sm:$0xf0]  ;;  %v7657_v9 = vor.u32 %v10214_v8, %v7654_v21  ;;  %v10160_v21 = vld [vmem:[%s11078_s29 + $0x434] sm:$0xf] }
 0x1fa   : > { %5888 = vmatpush.bf16.msrb.mxu2 %v7297_v34  ;;  %v10182_v34 = vld [vmem:[%s11078_s29 + $0x4e4] sm:$0xf]  ;;  %v7465_v1 = vor.u32 %v10166_v28, %v7462_v60  ;;  %v7510_v28 = vld [vmem:[%s11078_s29 + $0x4c8] sm:$0xf0] }
 0x1fb   : > { %5902 = vmatpush.bf16.msrb.mxu3 %v7361_v37  ;;  %v5390_v37 = vadd.f32 %v12398_v25, %v5376_v16  ;;  %v7529_v10 = vor.u32 %v10182_v34, %v7526_v27  ;;  %v10194_v60 = vld [vmem:[%s11078_s29 + $0x544] sm:$0xf] }
 0x1fc   : > { %5861 = vmatpush.bf16.msrb.mxu0 %v7161_v2  ;;  %v10180_v2 = vld [vmem:[%s11078_s29 + $0x4d4] sm:$0xf]  ;;  %v12552_v25 = vpop.f32.mrf.mxu2  ;;  %v10210_v34 = vld [vmem:[%s11078_s29 + $0x5c4] sm:$0xf] }
 0x1fd   : > { %5875 = vmatpush.bf16.msrb.mxu1 %v7225_v3  ;;  %v7582_v3 = vld [vmem:[%s11078_s29 + $0x558] sm:$0xf0] }
 0x1fe   : > { %5889 = vmatpush.bf16.msrb.mxu2 %v7289_v15  ;;  %v5404_v15 = vadd.f32 %v12403_v42, %v5390_v37  ;;  %v7457_v42 = vor.u32 %v10164_v62, %v7454_v17  ;;  %v7585_v16 = vor.u32 %v10196_v61, %v7582_v3  ;;  %v10192_v17 = vld [vmem:[%s11078_s29 + $0x534] sm:$0xf] }
 0x1ff   : > { %5903 = vmatpush.bf16.msrb.mxu3 %v7353_v4  ;;  %5862 = vmatmul.bf16.vlgmr.msrb.gmra.mxu0 %v11291_v39  ;;  %v7646_v4 = vld [vmem:[%s11078_s29 + $0x5d8] sm:$0xf0]  ;;  %v5416_v39 = vadd.f32 %v12405_v19, %v12085_v24  ;;  %v10178_v24 = vld [vmem:[%s11078_s29 + $0x4c4] sm:$0xf]  ;;  %v12574_v19 = vpop.f32.mrf.mxu1 }
 0x200   : > { %5910 = vmatpush.bf16.msra.mxu0 %v7473_v56  ;;  %5876 = vmatmul.bf16.vlgmr.msrb.gmra.mxu1 %v11298_v44  ;;  %v5418_v56 = vadd.f32 %v12441_v30, %v5404_v15  ;;  %v7521_v44 = vor.u32 %v10180_v2, %v7518_v23  ;;  %v7574_v30 = vld [vmem:[%s11078_s29 + $0x548] sm:$0xf0]  ;;  %v7513_v37 = vor.u32 %v10178_v24, %v7510_v28  ;;  %v7566_v2 = vld [vmem:[%s11078_s29 + $0x538] sm:$0xf0]  ;;  %v10206_v28 = vld [vmem:[%s11078_s29 + $0x5a4] sm:$0xf] }
 0x201   : > { %5924 = vmatpush.bf16.msra.mxu1 %v7537_v0  ;;  %5890 = vmatmul.bf16.vlgmr.msrb.gmra.mxu2 %v11296_v43  ;;  %v12569_v43 = vpop.f32.mrf.mxu0  ;;  %v10162_v0 = vld [vmem:[%s11078_s29 + $0x444] sm:$0xf]  ;;  %v5430_v27 = vadd.f32 %v12409_v22, %v5416_v39  ;;  %v7577_v8 = vor.u32 %v10194_v60, %v7574_v30  ;;  %v7502_v22 = vld [vmem:[%s11078_s29 + $0x4b8] sm:$0xf0]  ;;  %v7430_v39 = vld [vmem:[%s11078_s29 + $0x428] sm:$0xf0] }
 0x202   : > { %5938 = vmatpush.bf16.msra.mxu2 %v7601_v13  ;;  %5904 = vmatmul.bf16.vlgmr.msrb.gmra.mxu3 %v11302_v47  ;;  %v7446_v13 = vld [vmem:[%s11078_s29 + $0x448] sm:$0xf0]  ;;  %v7649_v47 = vor.u32 %v10212_v50, %v7646_v4  ;;  %v5432_v54 = vadd.f32 %v12445_v52, %v5418_v56  ;;  %v7630_v23 = vld [vmem:[%s11078_s29 + $0x5b8] sm:$0xf0]  ;;  %v7569_v4 = vor.u32 %v10192_v17, %v7566_v2 }
 0x203   : > { %5952 = vmatpush.bf16.msra.mxu3 %v7665_v11  ;;  %v7638_v11 = vld [vmem:[%s11078_s29 + $0x5c8] sm:$0xf0]  ;;  %v7449_v58 = vor.u32 %v10162_v0, %v7446_v13  ;;  %v10190_v13 = vld [vmem:[%s11078_s29 + $0x524] sm:$0xf] }
 0x204   : > { %5911 = vmatpush.bf16.msra.mxu0 %v7465_v1  ;;  %v7438_v1 = vld [vmem:[%s11078_s29 + $0x438] sm:$0xf0]  ;;  %v7641_v62 = vor.u32 %v10210_v34, %v7638_v11  ;;  %v5446_v52 = vadd.f32 %v12464_v53, %v5432_v54  ;;  %v12593_v61 = vpop.f32.mrf.mxu2  ;;  %v10158_v53 = vld [vmem:[%s11078_s29 + $0x424] sm:$0xf]  ;;  %v7494_v0 = vld [vmem:[%s11078_s29 + $0x4a8] sm:$0xf0] }
 0x205   : > { %5925 = vmatpush.bf16.msra.mxu1 %v7529_v10  ;;  %v10176_v10 = vld [vmem:[%s11078_s29 + $0x4b4] sm:$0xf]  ;;  %v7441_v3 = vor.u32 %v10160_v21, %v7438_v1  ;;  %v7558_v24 = vld [vmem:[%s11078_s29 + $0x528] sm:$0xf0] }
 0x206   : > { %5939 = vmatpush.bf16.msra.mxu2 %v7593_v12  ;;  %v5444_v12 = vadd.f32 %v12429_v20, %v5430_v27  ;;  %v12595_v20 = vpop.f32.mrf.mxu3  ;;  %v7505_v50 = vor.u32 %v10176_v10, %v7502_v22  ;;  %v7622_v60 = vld [vmem:[%s11078_s29 + $0x5a8] sm:$0xf0]  ;;  %v7561_v27 = vor.u32 %v10190_v13, %v7558_v24  ;;  %v10172_v54 = vld [vmem:[%s11078_s29 + $0x494] sm:$0xf]  ;;  %v7614_v10 = vld [vmem:[%s11078_s29 + $0x598] sm:$0xf0] }
 0x207   : > { %5953 = vmatpush.bf16.msra.mxu3 %v7657_v9  ;;  %v10208_v9 = vld [vmem:[%s11078_s29 + $0x5b4] sm:$0xf]  ;;  %v10154_v22 = vld [vmem:[%s11078_s29 + $0x404] sm:$0xf]  ;;  %v7414_v17 = vld [vmem:[%s11078_s29 + $0x408] sm:$0xf0] }
 0x208   : > { %5912 = vmatpush.bf16.msra.mxu0 %v7457_v42  ;;  %v10174_v42 = vld [vmem:[%s11078_s29 + $0x4a4] sm:$0xf]  ;;  %v5458_v56 = vadd.f32 %v12432_v57, %v5444_v12  ;;  %v7433_v57 = vor.u32 %v10158_v53, %v7430_v39  ;;  %v10188_v21 = vld [vmem:[%s11078_s29 + $0x514] sm:$0xf]  ;;  %v7726_v13 = vld [vmem:[%s11078_s29 + $0x678] sm:$0xf0] }
 0x209   : > { %5926 = vmatpush.bf16.msra.mxu1 %v7521_v44  ;;  %v12597_v15 = vpop.f32.mrf.mxu0  ;;  %v12603_v44 = vpop.f32.mrf.mxu1  ;;  %v7497_v11 = vor.u32 %v10174_v42, %v7494_v0  ;;  %v10204_v1 = vld [vmem:[%s11078_s29 + $0x594] sm:$0xf]  ;;  %v10202_v39 = vld [vmem:[%s11078_s29 + $0x584] sm:$0xf]  ;;  %v7606_v42 = vld [vmem:[%s11078_s29 + $0x588] sm:$0xf0] }
 0x20a   : > { %5940 = vmatpush.bf16.msra.mxu2 %v7585_v16  ;;  %v7633_v16 = vor.u32 %v10208_v9, %v7630_v23  ;;  %v5472_v30 = vadd.f32 %v12471_v5, %v5458_v56  ;;  %v7550_v5 = vld [vmem:[%s11078_s29 + $0x518] sm:$0xf0]  ;;  %v10170_v23 = vld [vmem:[%s11078_s29 + $0x484] sm:$0xf]  ;;  %v7617_v53 = vor.u32 %v10204_v1, %v7614_v10  ;;  %v10232_v0 = vld [vmem:[%s11078_s29 + $0x674] sm:$0xf] }
 0x20b   : > { %5954 = vmatpush.bf16.msra.mxu3 %v7649_v47  ;;  %v5460_v47 = vadd.f32 %v12469_v26, %v5446_v52  ;;  %v10156_v26 = vld [vmem:[%s11078_s29 + $0x414] sm:$0xf]  ;;  %v10246_v1 = vld [vmem:[%s11078_s29 + $0x6e4] sm:$0xf] }
 0x20c   : > { %5913 = vmatpush.bf16.msra.mxu0 %v7449_v58  ;;  %v7422_v58 = vld [vmem:[%s11078_s29 + $0x418] sm:$0xf0]  ;;  %v12622_v12 = vpop.f32.mrf.mxu2  ;;  %v10248_v24 = vld [vmem:[%s11078_s29 + $0x6f4] sm:$0xf] }
 0x20d   : > { %5927 = vmatpush.bf16.msra.mxu1 %v7513_v37  ;;  %v5474_v34 = vadd.f32 %v12501_v48, %v5460_v47  ;;  %v7625_v37 = vor.u32 %v10206_v28, %v7622_v60  ;;  %v5486_v48 = vadd.f32 %v12475_v29, %v5472_v30  ;;  %v7553_v29 = vor.u32 %v10188_v21, %v7550_v5  ;;  %v10264_v60 = vld [vmem:[%s11078_s29 + $0x774] sm:$0xf]  ;;  %v7854_v30 = vld [vmem:[%s11078_s29 + $0x778] sm:$0xf0]  ;;  %v10230_v21 = vld [vmem:[%s11078_s29 + $0x664] sm:$0xf] }
 0x20e   : > { %5941 = vmatpush.bf16.msra.mxu2 %v7577_v8  ;;  %v7486_v8 = vld [vmem:[%s11078_s29 + $0x498] sm:$0xf0]  ;;  %v12627_v52 = vpop.f32.mrf.mxu3  ;;  %v7417_v28 = vor.u32 %v10154_v22, %v7414_v17  ;;  %v7718_v5 = vld [vmem:[%s11078_s29 + $0x668] sm:$0xf0]  ;;  %v10262_v22 = vld [vmem:[%s11078_s29 + $0x764] sm:$0xf] }
 0x20f   : > { %5955 = vmatpush.bf16.msra.mxu3 %v7641_v62  ;;  %v7425_v62 = vor.u32 %v10156_v26, %v7422_v58  ;;  %v5488_v2 = vadd.f32 %v12506_v18, %v5474_v34  ;;  %v7489_v9 = vor.u32 %v10172_v54, %v7486_v8  ;;  %v7542_v18 = vld [vmem:[%s11078_s29 + $0x508] sm:$0xf0]  ;;  %v10280_v34 = vld [vmem:[%s11078_s29 + $0x7f4] sm:$0xf]  ;;  %v7609_v26 = vor.u32 %v10202_v39, %v7606_v42 }
 0x210   : > { %5914 = vmatpush.bf16.msra.mxu0 %v7441_v3  ;;  %v7478_v3 = vld [vmem:[%s11078_s29 + $0x488] sm:$0xf0]  ;;  %v7729_v58 = vor.u32 %v10232_v0, %v7726_v13  ;;  %v7857_v8 = vor.u32 %v10264_v60, %v7854_v30  ;;  %v10260_v0 = vld [vmem:[%s11078_s29 + $0x754] sm:$0xf]  ;;  %v7838_v13 = vld [vmem:[%s11078_s29 + $0x758] sm:$0xf0] }
 0x211   : > { %5928 = vmatpush.bf16.msra.mxu1 %v7505_v50  ;;  %v10186_v50 = vld [vmem:[%s11078_s29 + $0x504] sm:$0xf]  ;;  %v5502_v56 = vadd.f32 %v12526_v63, %v5488_v2  ;;  %v12642_v47 = vpop.f32.mrf.mxu1  ;;  %v7846_v17 = vld [vmem:[%s11078_s29 + $0x768] sm:$0xf0]  ;;  %v7841_v60 = vor.u32 %v10260_v0, %v7838_v13 }
 0x212   : > { %5942 = vmatpush.bf16.msra.mxu2 %v7569_v4  ;;  %v5500_v4 = vadd.f32 %v12490_v45, %v5486_v48  ;;  %v7790_v45 = vld [vmem:[%s11078_s29 + $0x6f8] sm:$0xf0]  ;;  %v7545_v63 = vor.u32 %v10186_v50, %v7542_v18  ;;  %v7910_v2 = vld [vmem:[%s11078_s29 + $0x7e8] sm:$0xf0]  ;;  %v10228_v50 = vld [vmem:[%s11078_s29 + $0x654] sm:$0xf] }
 0x213   : > { %5956 = vmatpush.bf16.msra.mxu3 %v7633_v16  ;;  %v12637_v16 = vpop.f32.mrf.mxu0  ;;  %v5516_v54 = vadd.f32 %v12531_v7, %v5502_v56  ;;  %v10278_v7 = vld [vmem:[%s11078_s29 + $0x7e4] sm:$0xf]  ;;  %v7774_v56 = vld [vmem:[%s11078_s29 + $0x6d8] sm:$0xf0]  ;;  %v7702_v30 = vld [vmem:[%s11078_s29 + $0x648] sm:$0xf0] }
 0x214   : > { %5915 = vmatpush.bf16.msra.mxu0 %v7433_v57  ;;  %v7481_v57 = vor.u32 %v10170_v23, %v7478_v3  ;;  %v7849_v3 = vor.u32 %v10262_v22, %v7846_v17  ;;  %v7913_v42 = vor.u32 %v10278_v7, %v7910_v2  ;;  %v7822_v22 = vld [vmem:[%s11078_s29 + $0x738] sm:$0xf0]  ;;  %v10272_v7 = vld [vmem:[%s11078_s29 + $0x7b4] sm:$0xf]  ;;  %v7814_v0 = vld [vmem:[%s11078_s29 + $0x728] sm:$0xf0] }
 0x215   : > { %5929 = vmatpush.bf16.msra.mxu1 %v7497_v11  ;;  %v7918_v11 = vld [vmem:[%s11078_s29 + $0x7f8] sm:$0xf0] }
 0x216   : > { %5943 = vmatpush.bf16.msra.mxu2 %v7561_v27  ;;  %v5514_v27 = vadd.f32 %v12496_v59, %v5500_v4  ;;  %v7921_v48 = vor.u32 %v10280_v34, %v7918_v11  ;;  %v5530_v59 = vadd.f32 %v12569_v43, %v5516_v54  ;;  %v7710_v4 = vld [vmem:[%s11078_s29 + $0x658] sm:$0xf0]  ;;  %v10258_v34 = vld [vmem:[%s11078_s29 + $0x744] sm:$0xf] }
 0x217   : > { %5957 = vmatpush.bf16.msra.mxu3 %v7625_v37  ;;  %v7793_v37 = vor.u32 %v10248_v24, %v7790_v45  ;;  %v10274_v11 = vld [vmem:[%s11078_s29 + $0x7c4] sm:$0xf]  ;;  %v7886_v2 = vld [vmem:[%s11078_s29 + $0x7b8] sm:$0xf0] }
 0x218   : > { %5916 = vmatpush.bf16.msra.mxu0 %v7425_v62  ;;  %v5528_v10 = vadd.f32 %v12533_v49, %v5514_v27  ;;  %v7782_v62 = vld [vmem:[%s11078_s29 + $0x6e8] sm:$0xf0]  ;;  %v7721_v49 = vor.u32 %v10230_v21, %v7718_v5  ;;  %v5544_v24 = vadd.f32 %v12574_v19, %v5530_v59  ;;  %v10224_v5 = vld [vmem:[%s11078_s29 + $0x634] sm:$0xf] }
 0x219   : > { %5930 = vmatpush.bf16.msra.mxu1 %v7489_v9  ;;  %v12661_v9 = vpop.f32.mrf.mxu2  ;;  %v7785_v43 = vor.u32 %v10246_v1, %v7782_v62  ;;  %v12671_v39 = vpop.f32.mrf.mxu1  ;;  %v7894_v27 = vld [vmem:[%s11078_s29 + $0x7c8] sm:$0xf0]  ;;  %v7694_v1 = vld [vmem:[%s11078_s29 + $0x638] sm:$0xf0] }
 0x21a   : > { %5944 = vmatpush.bf16.msra.mxu2 %v7553_v29  ;;  %v12663_v29 = vpop.f32.mrf.mxu3  ;;  %v5542_v18 = vadd.f32 %v12537_v55, %v5528_v10  ;;  %v7902_v55 = vld [vmem:[%s11078_s29 + $0x7d8] sm:$0xf0]  ;;  %v5558_v19 = vadd.f32 %v12593_v61, %v5544_v24  ;;  %v10270_v24 = vld [vmem:[%s11078_s29 + $0x7a4] sm:$0xf] }
 0x21b   : > { %5958 = vmatpush.bf16.msra.mxu3 %v7617_v53  ;;  %v12665_v23 = vpop.f32.mrf.mxu0  ;;  %v10244_v53 = vld [vmem:[%s11078_s29 + $0x6d4] sm:$0xf]  ;;  %v7758_v62 = vld [vmem:[%s11078_s29 + $0x6b8] sm:$0xf0] }
 0x21c   : > { %5917 = vmatpush.bf16.msra.mxu0 %v7417_v28  ;;  %v10276_v28 = vld [vmem:[%s11078_s29 + $0x7d4] sm:$0xf]  ;;  %v5556_v45 = vadd.f32 %v12552_v25, %v5542_v18  ;;  %v7766_v25 = vld [vmem:[%s11078_s29 + $0x6c8] sm:$0xf0]  ;;  %v5572_v54 = vadd.f32 %v12595_v20, %v5558_v19  ;;  %v7889_v18 = vor.u32 %v10272_v7, %v7886_v2  ;;  %v7982_v7 = vld [vmem:[%s11078_s29 + $0x878] sm:$0xf0] }
 0x21d   : > { %5931 = vmatpush.bf16.msra.mxu1 %v7481_v57  ;;  %v10242_v57 = vld [vmem:[%s11078_s29 + $0x6c4] sm:$0xf]  ;;  %v10256_v20 = vld [vmem:[%s11078_s29 + $0x734] sm:$0xf] }
 0x21e   : > { %5945 = vmatpush.bf16.msra.mxu2 %v7545_v63  ;;  %v7905_v63 = vor.u32 %v10276_v28, %v7902_v55  ;;  %v5586_v17 = vadd.f32 %v12637_v16, %v5572_v54  ;;  %v10238_v16 = vld [vmem:[%s11078_s29 + $0x6a4] sm:$0xf]  ;;  %v7878_v28 = vld [vmem:[%s11078_s29 + $0x7a8] sm:$0xf0]  ;;  %v10312_v2 = vld [vmem:[%s11078_s29 + $0x8f4] sm:$0xf] }
 0x21f   : > { %5959 = vmatpush.bf16.msra.mxu3 %v7609_v26  ;;  %5918 = vmatmul.bf16.vlgmr.msra.gmra.mxu0 %v11391_v31  ;;  %v7713_v31 = vor.u32 %v10228_v50, %v7710_v4  ;;  %v5570_v26 = vadd.f32 %v12559_v33, %v5556_v45  ;;  %v10240_v33 = vld [vmem:[%s11078_s29 + $0x6b4] sm:$0xf]  ;;  %v10222_v50 = vld [vmem:[%s11078_s29 + $0x624] sm:$0xf]  ;;  %v7686_v4 = vld [vmem:[%s11078_s29 + $0x628] sm:$0xf0] }
 0x220   : > { %5966 = vmatpush.bf16.msrb.mxu0 %v7729_v58  ;;  %5932 = vmatmul.bf16.vlgmr.msra.gmra.mxu1 %v11398_v36  ;;  %v10226_v36 = vld [vmem:[%s11078_s29 + $0x644] sm:$0xf]  ;;  %v5600_v13 = vadd.f32 %v12642_v47, %v5586_v17  ;;  %v7689_v45 = vor.u32 %v10222_v50, %v7686_v4  ;;  %v10236_v47 = vld [vmem:[%s11078_s29 + $0x694] sm:$0xf]  ;;  %v7670_v54 = vld [vmem:[%s11078_s29 + $0x608] sm:$0xf0] }
 0x221   : > { %5980 = vmatpush.bf16.msrb.mxu1 %v7793_v37  ;;  %5946 = vmatmul.bf16.vlgmr.msra.gmra.mxu2 %v11396_v35  ;;  %v7777_v35 = vor.u32 %v10244_v53, %v7774_v56  ;;  %v12694_v61 = vpop.f32.mrf.mxu2  ;;  %v7705_v58 = vor.u32 %v10226_v36, %v7702_v30  ;;  %v5584_v10 = vadd.f32 %v12597_v15, %v5570_v26  ;;  %v10254_v56 = vld [vmem:[%s11078_s29 + $0x724] sm:$0xf]  ;;  %v7742_v30 = vld [vmem:[%s11078_s29 + $0x698] sm:$0xf0]  ;;  %v10296_v17 = vld [vmem:[%s11078_s29 + $0x874] sm:$0xf] }
 0x222   : > { %5994 = vmatpush.bf16.msrb.mxu2 %v7857_v8  ;;  %5960 = vmatmul.bf16.vlgmr.msra.gmra.mxu3 %v11402_v40  ;;  %v7830_v40 = vld [vmem:[%s11078_s29 + $0x748] sm:$0xf0]  ;;  %v12697_v37 = vpop.f32.mrf.mxu3  ;;  %v7769_v8 = vor.u32 %v10242_v57, %v7766_v25  ;;  %v7697_v15 = vor.u32 %v10224_v5, %v7694_v1  ;;  %v7817_v19 = vor.u32 %v10254_v56, %v7814_v0  ;;  %v10252_v57 = vld [vmem:[%s11078_s29 + $0x714] sm:$0xf]  ;;  %v8110_v50 = vld [vmem:[%s11078_s29 + $0x978] sm:$0xf0] }
 0x223   : > { %6008 = vmatpush.bf16.msrb.mxu3 %v7921_v48  ;;  %v7833_v21 = vor.u32 %v10258_v34, %v7830_v40  ;;  %v7897_v48 = vor.u32 %v10274_v11, %v7894_v27  ;;  %v12707_v59 = vpop.f32.mrf.mxu0  ;;  %v5598_v53 = vadd.f32 %v12603_v44, %v5584_v10  ;;  %v5614_v44 = vadd.f32 %v12661_v9, %v5600_v13  ;;  %v10268_v34 = vld [vmem:[%s11078_s29 + $0x794] sm:$0xf]  ;;  %v7870_v40 = vld [vmem:[%s11078_s29 + $0x798] sm:$0xf0]  ;;  %v7734_v1 = vld [vmem:[%s11078_s29 + $0x688] sm:$0xf0] }
 0x224   : > { %5967 = vmatpush.bf16.msrb.mxu0 %v7721_v49  ;;  %v12711_v49 = vpop.f32.mrf.mxu1  ;;  %v7985_v56 = vor.u32 %v10296_v17, %v7982_v7  ;;  %v10338_v7 = vld [vmem:[%s11078_s29 + $0x9c4] sm:$0xf] }
 0x225   : > { %5981 = vmatpush.bf16.msrb.mxu1 %v7785_v43  ;;  %v7761_v43 = vor.u32 %v10240_v33, %v7758_v62  ;;  %v5612_v55 = vadd.f32 %v12622_v12, %v5598_v53  ;;  %v7881_v12 = vor.u32 %v10270_v24, %v7878_v28  ;;  %v10250_v33 = vld [vmem:[%s11078_s29 + $0x704] sm:$0xf]  ;;  %v7798_v62 = vld [vmem:[%s11078_s29 + $0x708] sm:$0xf0]  ;;  %v8174_v53 = vld [vmem:[%s11078_s29 + $0x9f8] sm:$0xf0] }
 0x226   : > { %5995 = vmatpush.bf16.msrb.mxu2 %v7849_v3  ;;  %v7825_v3 = vor.u32 %v10256_v20, %v7822_v22  ;;  %v10266_v20 = vld [vmem:[%s11078_s29 + $0x784] sm:$0xf]  ;;  %v7801_v4 = vor.u32 %v10250_v33, %v7798_v62 }
 0x227   : > { %6009 = vmatpush.bf16.msrb.mxu3 %v7913_v42  ;;  %v7750_v42 = vld [vmem:[%s11078_s29 + $0x6a8] sm:$0xf0]  ;;  %v5626_v11 = vadd.f32 %v12627_v52, %v5612_v55  ;;  %v10234_v52 = vld [vmem:[%s11078_s29 + $0x684] sm:$0xf] }
 0x228   : > { %5968 = vmatpush.bf16.msrb.mxu0 %v7713_v31  ;;  %v7753_v31 = vor.u32 %v10238_v16, %v7750_v42  ;;  %v10344_v16 = vld [vmem:[%s11078_s29 + $0x9f4] sm:$0xf]  ;;  %v10294_v55 = vld [vmem:[%s11078_s29 + $0x864] sm:$0xf] }
 0x229   : > { %5982 = vmatpush.bf16.msrb.mxu1 %v7777_v35  ;;  %v10220_v35 = vld [vmem:[%s11078_s29 + $0x614] sm:$0xf]  ;;  %v12728_v36 = vpop.f32.mrf.mxu2  ;;  %v5640_v10 = vadd.f32 %v12665_v23, %v5626_v11  ;;  %v7737_v23 = vor.u32 %v10234_v52, %v7734_v1  ;;  %v8158_v1 = vld [vmem:[%s11078_s29 + $0x9d8] sm:$0xf0] }
 0x22a   : > { %5996 = vmatpush.bf16.msrb.mxu2 %v7841_v60  ;;  %v7678_v60 = vld [vmem:[%s11078_s29 + $0x618] sm:$0xf0]  ;;  %v12733_v9 = vpop.f32.mrf.mxu3  ;;  %v10308_v11 = vld [vmem:[%s11078_s29 + $0x8d4] sm:$0xf] }
 0x22b   : > { %6010 = vmatpush.bf16.msrb.mxu3 %v7905_v63  ;;  %v7806_v63 = vld [vmem:[%s11078_s29 + $0x718] sm:$0xf0]  ;;  %v12735_v25 = vpop.f32.mrf.mxu0  ;;  %v7681_v26 = vor.u32 %v10220_v35, %v7678_v60  ;;  %v10326_v35 = vld [vmem:[%s11078_s29 + $0x964] sm:$0xf]  ;;  %v8102_v60 = vld [vmem:[%s11078_s29 + $0x968] sm:$0xf0] }
 0x22c   : > { %5969 = vmatpush.bf16.msrb.mxu0 %v7705_v58  ;;  %v12740_v27 = vpop.f32.mrf.mxu1  ;;  %v10218_v58 = vld [vmem:[%s11078_s29 + $0x604] sm:$0xf]  ;;  %v7809_v5 = vor.u32 %v10252_v57, %v7806_v63  ;;  %v10340_v52 = vld [vmem:[%s11078_s29 + $0x9d4] sm:$0xf] }
 0x22d   : > { %5983 = vmatpush.bf16.msrb.mxu1 %v7769_v8  ;;  %v5628_v8 = vadd.f32 %v12663_v29, %v5614_v44  ;;  %v7862_v29 = vld [vmem:[%s11078_s29 + $0x788] sm:$0xf0]  ;;  %v10310_v44 = vld [vmem:[%s11078_s29 + $0x8e4] sm:$0xf] }
 0x22e   : > { %5997 = vmatpush.bf16.msrb.mxu2 %v7833_v21  ;;  %v7745_v21 = vor.u32 %v10236_v47, %v7742_v30  ;;  %v7865_v42 = vor.u32 %v10266_v20, %v7862_v29  ;;  %v8166_v30 = vld [vmem:[%s11078_s29 + $0x9e8] sm:$0xf0]  ;;  %v8161_v20 = vor.u32 %v10340_v52, %v8158_v1  ;;  %v10322_v29 = vld [vmem:[%s11078_s29 + $0x944] sm:$0xf]  ;;  %v10300_v52 = vld [vmem:[%s11078_s29 + $0x894] sm:$0xf] }
 0x22f   : > { %6011 = vmatpush.bf16.msrb.mxu3 %v7897_v48  ;;  %v7873_v48 = vor.u32 %v10268_v34, %v7870_v40  ;;  %v5642_v22 = vadd.f32 %v12707_v59, %v5628_v8  ;;  %v5654_v59 = vadd.f32 %v12671_v39, %v5640_v10  ;;  %v8105_v34 = vor.u32 %v10326_v35, %v8102_v60  ;;  %v7966_v40 = vld [vmem:[%s11078_s29 + $0x858] sm:$0xf0]  ;;  %v10324_v8 = vld [vmem:[%s11078_s29 + $0x954] sm:$0xf]  ;;  %v10290_v10 = vld [vmem:[%s11078_s29 + $0x844] sm:$0xf] }
 0x230   : > { %5970 = vmatpush.bf16.msrb.mxu0 %v7697_v15  ;;  %v7673_v15 = vor.u32 %v10218_v58, %v7670_v54  ;;  %v8030_v54 = vld [vmem:[%s11078_s29 + $0x8d8] sm:$0xf0]  ;;  %v10302_v35 = vld [vmem:[%s11078_s29 + $0x8a4] sm:$0xf] }
 0x231   : > { %5984 = vmatpush.bf16.msrb.mxu1 %v7761_v43  ;;  %v8046_v43 = vld [vmem:[%s11078_s29 + $0x8f8] sm:$0xf0]  ;;  %v5656_v0 = vadd.f32 %v12711_v49, %v5642_v22  ;;  %v5668_v39 = vadd.f32 %v12694_v61, %v5654_v59  ;;  %v10304_v59 = vld [vmem:[%s11078_s29 + $0x8b4] sm:$0xf] }
 0x232   : > { %5998 = vmatpush.bf16.msrb.mxu2 %v7825_v3  ;;  %v10328_v3 = vld [vmem:[%s11078_s29 + $0x974] sm:$0xf]  ;;  %v12765_v13 = vpop.f32.mrf.mxu3  ;;  %v8049_v24 = vor.u32 %v10312_v2, %v8046_v43  ;;  %v8150_v2 = vld [vmem:[%s11078_s29 + $0x9c8] sm:$0xf0] }
 0x233   : > { %6012 = vmatpush.bf16.msrb.mxu3 %v7889_v18  ;;  %v12762_v18 = vpop.f32.mrf.mxu2  ;;  %v8113_v28 = vor.u32 %v10328_v3, %v8110_v50  ;;  %v5670_v49 = vadd.f32 %v12728_v36, %v5656_v0  ;;  %v5697_v47 = vpop.f32.mrf.mxu0  ;;  %v10292_v36 = vld [vmem:[%s11078_s29 + $0x854] sm:$0xf] }
 0x234   : > { %5971 = vmatpush.bf16.msrb.mxu0 %v7689_v45  ;;  %v7974_v45 = vld [vmem:[%s11078_s29 + $0x868] sm:$0xf0]  ;;  %v5711_v57 = vpop.f32.mrf.mxu1  ;;  %v10320_v0 = vld [vmem:[%s11078_s29 + $0x934] sm:$0xf] }
 0x235   : > { %5985 = vmatpush.bf16.msrb.mxu1 %v7753_v31  ;;  %v8177_v31 = vor.u32 %v10344_v16, %v8174_v53  ;;  %v7977_v61 = vor.u32 %v10294_v55, %v7974_v45  ;;  %v10288_v16 = vld [vmem:[%s11078_s29 + $0x834] sm:$0xf]  ;;  %v7950_v53 = vld [vmem:[%s11078_s29 + $0x838] sm:$0xf0] }
 0x236   : > { %5999 = vmatpush.bf16.msrb.mxu2 %v7817_v19  ;;  %v8038_v19 = vld [vmem:[%s11078_s29 + $0x8e8] sm:$0xf0]  ;;  %v10336_v55 = vld [vmem:[%s11078_s29 + $0x9b4] sm:$0xf]  ;;  %v8142_v45 = vld [vmem:[%s11078_s29 + $0x9b8] sm:$0xf0] }
 0x237   : > { %6013 = vmatpush.bf16.msrb.mxu3 %v7881_v12  ;;  %v10342_v12 = vld [vmem:[%s11078_s29 + $0x9e4] sm:$0xf]  ;;  %v8041_v63 = vor.u32 %v10310_v44, %v8038_v19  ;;  %v7953_v44 = vor.u32 %v10288_v16, %v7950_v53  ;;  %v7942_v19 = vld [vmem:[%s11078_s29 + $0x828] sm:$0xf0]  ;;  %v10360_v16 = vld [vmem:[%s11078_s29 + $0xa74] sm:$0xf] }
 0x238   : > { %5972 = vmatpush.bf16.msrb.mxu0 %v7681_v26  ;;  %v5682_v26 = vadd.f32 %v12697_v37, %v5668_v39  ;;  %v8169_v58 = vor.u32 %v10342_v12, %v8166_v30  ;;  %v8006_v12 = vld [vmem:[%s11078_s29 + $0x8a8] sm:$0xf0]  ;;  %v10318_v30 = vld [vmem:[%s11078_s29 + $0x924] sm:$0xf] }
 0x239   : > { %5986 = vmatpush.bf16.msrb.mxu1 %v7745_v21  ;;  %v8094_v21 = vld [vmem:[%s11078_s29 + $0x958] sm:$0xf0] }
 0x23a   : > { %6000 = vmatpush.bf16.msrb.mxu2 %v7809_v5  ;;  %v5684_v5 = vadd.f32 %v12733_v9, %v5670_v49  ;;  %v5696_v37 = vadd.f32 %v12735_v25, %v5682_v26  ;;  %v8033_v9 = vor.u32 %v10308_v11, %v8030_v54  ;;  %v8022_v25 = vld [vmem:[%s11078_s29 + $0x8c8] sm:$0xf0]  ;;  %v5739_v22 = vpop.f32.mrf.mxu3  ;;  %v8145_v49 = vor.u32 %v10336_v55, %v8142_v45  ;;  %v8366_v55 = vld [vmem:[%s11078_s29 + $0xb78] sm:$0xf0] }
 0x23b   : > { %6014 = vmatpush.bf16.msrb.mxu3 %v7873_v48  ;;  %v10306_v48 = vld [vmem:[%s11078_s29 + $0x8c4] sm:$0xf]  ;;  %v5725_v62 = vpop.f32.mrf.mxu2  ;;  %v8134_v11 = vld [vmem:[%s11078_s29 + $0x9a8] sm:$0xf0]  ;;  %v8009_v54 = vor.u32 %v10302_v35, %v8006_v12 }
 0x23c   : > { %5973 = vmatpush.bf16.msrb.mxu0 %v7673_v15  ;;  %v5698_v33 = vadd.f32 %v5697_v47, %v5684_v5  ;;  %v5751_v17 = vpop.f32.mrf.mxu0  ;;  %v5710_v15 = vadd.f32 %v12740_v27, %v5696_v37  ;;  %v8153_v27 = vor.u32 %v10338_v7, %v8150_v2  ;;  %v7934_v5 = vld [vmem:[%s11078_s29 + $0x818] sm:$0xf0]  ;;  %v7990_v7 = vld [vmem:[%s11078_s29 + $0x888] sm:$0xf0]  ;;  %v10314_v2 = vld [vmem:[%s11078_s29 + $0x904] sm:$0xf] }
 0x23d   : > { %5987 = vmatpush.bf16.msrb.mxu1 %v7737_v23  ;;  %v5765_v3 = vpop.f32.mrf.mxu1  ;;  %v8025_v23 = vor.u32 %v10306_v48, %v8022_v25  ;;  %v7926_v25 = vld [vmem:[%s11078_s29 + $0x808] sm:$0xf0] }
 0x23e   : > { %6001 = vmatpush.bf16.msrb.mxu2 %v7801_v4  ;;  %v5712_v50 = vadd.f32 %v5711_v57, %v5698_v33  ;;  %v8070_v57 = vld [vmem:[%s11078_s29 + $0x928] sm:$0xf0]  ;;  %v10316_v33 = vld [vmem:[%s11078_s29 + $0x914] sm:$0xf] }
 0x23f   : > { %6015 = vmatpush.bf16.msrb.mxu3 %v7865_v42  ;;  %5974 = vmatmul.bf16.vlgmr.msrb.gmra.mxu0 %v11491_v32  ;;  %v7969_v32 = vor.u32 %v10292_v36, %v7966_v40  ;;  %v5724_v42 = vadd.f32 %v12762_v18, %v5710_v15  ;;  %v10286_v18 = vld [vmem:[%s11078_s29 + $0x824] sm:$0xf]  ;;  %v8054_v15 = vld [vmem:[%s11078_s29 + $0x908] sm:$0xf0] }
 0x240   : > { %6022 = vmatpush.bf16.msra.mxu0 %v7985_v56  ;;  %5988 = vmatmul.bf16.vlgmr.msrb.gmra.mxu1 %v11498_v41  ;;  %v7958_v41 = vld [vmem:[%s11078_s29 + $0x848] sm:$0xf0]  ;;  %v8014_v56 = vld [vmem:[%s11078_s29 + $0x8b8] sm:$0xf0]  ;;  %v10334_v40 = vld [vmem:[%s11078_s29 + $0x9a4] sm:$0xf] }
 0x241   : > { %6036 = vmatpush.bf16.msra.mxu1 %v8049_v24  ;;  %6002 = vmatmul.bf16.vlgmr.msrb.gmra.mxu2 %v11496_v38  ;;  %v8097_v38 = vor.u32 %v10324_v8, %v8094_v21  ;;  %v7961_v43 = vor.u32 %v10290_v10, %v7958_v41  ;;  %v8078_v24 = vld [vmem:[%s11078_s29 + $0x938] sm:$0xf0]  ;;  %v8017_v39 = vor.u32 %v10304_v59, %v8014_v56  ;;  %v10284_v21 = vld [vmem:[%s11078_s29 + $0x814] sm:$0xf] }
 0x242   : > { %6050 = vmatpush.bf16.msra.mxu2 %v8113_v28  ;;  %6016 = vmatmul.bf16.vlgmr.msrb.gmra.mxu3 %v11502_v46  ;;  %v8086_v46 = vld [vmem:[%s11078_s29 + $0x948] sm:$0xf0]  ;;  %v5726_v28 = vadd.f32 %v5725_v62, %v5712_v50  ;;  %v5738_v60 = vadd.f32 %v12765_v13, %v5724_v42  ;;  %v7945_v13 = vor.u32 %v10286_v18, %v7942_v19  ;;  %v8126_v10 = vld [vmem:[%s11078_s29 + $0x998] sm:$0xf0]  ;;  %v10376_v56 = vld [vmem:[%s11078_s29 + $0xaf4] sm:$0xf] }
 0x243   : > { %6064 = vmatpush.bf16.msra.mxu3 %v8177_v31  ;;  %v8089_v4 = vor.u32 %v10322_v29, %v8086_v46  ;;  %v8081_v31 = vor.u32 %v10320_v0, %v8078_v24  ;;  %v8073_v8 = vor.u32 %v10318_v30, %v8070_v57  ;;  %v8137_v1 = vor.u32 %v10334_v40, %v8134_v11  ;;  %v10298_v29 = vld [vmem:[%s11078_s29 + $0x884] sm:$0xf]  ;;  %v8302_v24 = vld [vmem:[%s11078_s29 + $0xaf8] sm:$0xf0]  ;;  %v8294_v40 = vld [vmem:[%s11078_s29 + $0xae8] sm:$0xf0] }
 0x244   : > { %6023 = vmatpush.bf16.msra.mxu0 %v7977_v61  ;;  %v5779_v47 = vpop.f32.mrf.mxu2  ;;  %v10956_v61 = vmov 12.0   ;;  %v5752_v26 = vadd.f32 %v5751_v17, %v5738_v60  ;;  %v7937_v62 = vor.u32 %v10284_v21, %v7934_v5  ;;  %v8430_v18 = vld [vmem:[%s11078_s29 + $0xbf8] sm:$0xf0]  ;;  %v8305_v30 = vor.u32 %v10376_v56, %v8302_v24  ;;  %v10390_v11 = vld [vmem:[%s11078_s29 + $0xb64] sm:$0xf] }
 0x245   : > { %6037 = vmatpush.bf16.msra.mxu1 %v8041_v63  ;;  %10845 = vrcp.f32 %v10956_v61  ;;  %v5740_v63 = vadd.f32 %v5739_v22, %v5726_v28  ;;  %v5793_v36 = vpop.f32.mrf.mxu3  ;;  %v5767_v37 = vpop.f32.mrf.mxu1  ;;  %v10392_v28 = vld [vmem:[%s11078_s29 + $0xb74] sm:$0xf]  ;;  %v8230_v61 = vld [vmem:[%s11078_s29 + $0xa68] sm:$0xf0] }
 0x246   : > { %6051 = vmatpush.bf16.msra.mxu2 %v8105_v34  ;;  %v5753_v34 = vpop.f32.mrf.mxu0  ;;  %v5766_v48 = vadd.f32 %v5765_v3, %v5752_v26  ;;  %v8369_v57 = vor.u32 %v10392_v28, %v8366_v55  ;;  %v8358_v26 = vld [vmem:[%s11078_s29 + $0xb68] sm:$0xf0] }
 0x247   : > { %6065 = vmatpush.bf16.msra.mxu3 %v8169_v58  ;;  %v5754_v58 = vadd.f32 %v5753_v34, %v5740_v63  ;;  %v10374_v63 = vld [vmem:[%s11078_s29 + $0xae4] sm:$0xf] }
 0x248   : > { %6024 = vmatpush.bf16.msra.mxu0 %v7969_v32  ;;  %v7998_v32 = vld [vmem:[%s11078_s29 + $0x898] sm:$0xf0]  ;;  %v8297_v5 = vor.u32 %v10374_v63, %v8294_v40 }
 0x249   : > { %6038 = vmatpush.bf16.msra.mxu1 %v8033_v9  ;;  %v8062_v9 = vld [vmem:[%s11078_s29 + $0x918] sm:$0xf0]  ;;  %v5768_v46 = vadd.f32 %v5767_v37, %v5754_v58  ;;  %v8001_v22 = vor.u32 %v10300_v52, %v7998_v32  ;;  %v8422_v58 = vld [vmem:[%s11078_s29 + $0xbe8] sm:$0xf0]  ;;  %v8361_v52 = vor.u32 %v10390_v11, %v8358_v26  ;;  %v10372_v32 = vld [vmem:[%s11078_s29 + $0xad4] sm:$0xf] }
 0x24a   : > { %6052 = vmatpush.bf16.msra.mxu2 %v8097_v38  ;;  %v10332_v38 = vld [vmem:[%s11078_s29 + $0x994] sm:$0xf]  ;;  %v8065_v17 = vor.u32 %v10316_v33, %v8062_v9  ;;  %v8222_v37 = vld [vmem:[%s11078_s29 + $0xa58] sm:$0xf0]  ;;  %v8198_v11 = vld [vmem:[%s11078_s29 + $0xa28] sm:$0xf0] }
 0x24b   : > { %6066 = vmatpush.bf16.msra.mxu3 %v8161_v20  ;;  %v12827_v41 = vpop.eup %10845  ;;  %v10282_v20 = vld [vmem:[%s11078_s29 + $0x804] sm:$0xf]  ;;  %v8129_v3 = vor.u32 %v10332_v38, %v8126_v10  ;;  %v8286_v38 = vld [vmem:[%s11078_s29 + $0xad8] sm:$0xf0]  ;;  %v10388_v10 = vld [vmem:[%s11078_s29 + $0xb54] sm:$0xf] }
 0x24c   : > { %6025 = vmatpush.bf16.msra.mxu0 %v7961_v43  ;;  %v5780_v43 = vadd.f32 %v5779_v47, %v5766_v48  ;;  %v5781_v50 = vpop.f32.mrf.mxu2  ;;  %v6488_v42 = vmul.f32 12.0, %v12827_v41  ;;  %v7929_v0 = vor.u32 %v10282_v20, %v7926_v25  ;;  %v8350_v48 = vld [vmem:[%s11078_s29 + $0xb58] sm:$0xf0]  ;;  %v13494_v20 = vld [vmem:[#allocation10_spill] sm:$0xff]  ;;  %vm6492_vm1 = vweird.f32 %v12827_v41  ;;  %v10366_v26 = vld [vmem:[%s11078_s29 + $0xaa4] sm:$0xf] }
 0x24d   : > { %6039 = vmatpush.bf16.msra.mxu1 %v8025_v23  ;;  %v10330_v23 = vld [vmem:[%s11078_s29 + $0x984] sm:$0xf]  ;;  %v5782_v53 = vadd.f32 %v5781_v50, %v5768_v46  ;;  %v5795_v59 = vpop.f32.mrf.mxu3  ;;  %v10404_v25 = vld [vmem:[%s11078_s29 + $0xbd4] sm:$0xf] }
 0x24e   : > { %6053 = vmatpush.bf16.msra.mxu2 %v8089_v4  ;;  %v8118_v4 = vld [vmem:[%s11078_s29 + $0x988] sm:$0xf0]  ;;  %v12848_v19 = vadd.f32 %v5793_v36, %v5780_v43  ;;  %v6489_v12 = vsub.f32 1.0, %v6488_v42 }
 0x24f   : > { %6067 = vmatpush.bf16.msra.mxu3 %v8153_v27  ;;  %v8238_v27 = vld [vmem:[%s11078_s29 + $0xa78] sm:$0xf0]  ;;  %v12844_v45 = vadd.f32 %v5795_v59, %v5782_v53  ;;  %v8121_v35 = vor.u32 %v10330_v23, %v8118_v4  ;;  %v8214_v43 = vld [vmem:[%s11078_s29 + $0xa48] sm:$0xf0]  ;;  %v10402_v59 = vld [vmem:[%s11078_s29 + $0xbc4] sm:$0xf] }
 0x250   : > { %6026 = vmatpush.bf16.msra.mxu0 %v7953_v44  ;;  %v7993_v44 = vor.u32 %v10298_v29, %v7990_v7  ;;  %v8241_v60 = vor.u32 %v10360_v16, %v8238_v27  ;;  %v6490_v21 = vmul.f32 %v12827_v41, %v6489_v12  ;;  %v8414_v29 = vld [vmem:[%s11078_s29 + $0xbd8] sm:$0xf0]  ;;  %v8289_v7 = vor.u32 %v10372_v32, %v8286_v38  ;;  %v8278_v4 = vld [vmem:[%s11078_s29 + $0xac8] sm:$0xf0]  ;;  %v10386_v16 = vld [vmem:[%s11078_s29 + $0xb44] sm:$0xf] }
 0x251   : > { %6040 = vmatpush.bf16.msra.mxu1 %v8017_v39  ;;  %v8057_v39 = vor.u32 %v10314_v2, %v8054_v15  ;;  %v6471_v47 = vsel %vm6470_vm0, %v12844_v45, 0.0  ;;  %v8353_v2 = vor.u32 %v10388_v10, %v8350_v48  ;;  %v10354_v15 = vld [vmem:[%s11078_s29 + $0xa44] sm:$0xf]  ;;  %v8417_v23 = vor.u32 %v10404_v25, %v8414_v29  ;;  %v8342_v53 = vld [vmem:[%s11078_s29 + $0xb48] sm:$0xf0] }
 0x252   : > { %6054 = vmatpush.bf16.msra.mxu2 %v8081_v31  ;;  %v10408_v31 = vld [vmem:[%s11078_s29 + $0xbf4] sm:$0xf]  ;;  %v6472_v34 = vadd.f32 %v6471_v47, %v12848_v19  ;;  %v8406_v42 = vld [vmem:[%s11078_s29 + $0xbc8] sm:$0xf0]  ;;  %v8334_v12 = vld [vmem:[%s11078_s29 + $0xb38] sm:$0xf0] }
 0x253   : > { %6068 = vmatpush.bf16.msra.mxu3 %v8145_v49  ;;  %v10358_v49 = vld [vmem:[%s11078_s29 + $0xa64] sm:$0xf]  ;;  %v8433_v36 = vor.u32 %v10408_v31, %v8430_v18  ;;  %v8206_v31 = vld [vmem:[%s11078_s29 + $0xa38] sm:$0xf0]  ;;  %v10368_v18 = vld [vmem:[%s11078_s29 + $0xab4] sm:$0xf] }
 0x254   : > { %6027 = vmatpush.bf16.msra.mxu0 %v7945_v13  ;;  %v10406_v13 = vld [vmem:[%s11078_s29 + $0xbe4] sm:$0xf]  ;;  %v10384_v47 = vld [vmem:[%s11078_s29 + $0xb34] sm:$0xf]  ;;  %v8190_v25 = vld [vmem:[%s11078_s29 + $0xa18] sm:$0xf0] }
 0x255   : > { %6041 = vmatpush.bf16.msra.mxu1 %v8009_v54  ;;  %v6473_v54 = vrot.slane %v6472_v34, 4  ;;  %v8425_v9 = vor.u32 %v10406_v13, %v8422_v58  ;;  %v8337_v40 = vor.u32 %v10384_v47, %v8334_v12  ;;  %v8262_v13 = vld [vmem:[%s11078_s29 + $0xaa8] sm:$0xf0]  ;;  %v10348_v10 = vld [vmem:[%s11078_s29 + $0xa14] sm:$0xf] }
 0x256   : > { %6055 = vmatpush.bf16.msra.mxu2 %v8073_v8  ;;  %v8233_v8 = vor.u32 %v10358_v49, %v8230_v61  ;;  %v8270_v49 = vld [vmem:[%s11078_s29 + $0xab8] sm:$0xf0]  ;;  %v8265_v38 = vor.u32 %v10366_v26, %v8262_v13  ;;  %v10364_v29 = vld [vmem:[%s11078_s29 + $0xa94] sm:$0xf] }
 0x257   : > { %6069 = vmatpush.bf16.msra.mxu3 %v8137_v1  ;;  %v10356_v1 = vld [vmem:[%s11078_s29 + $0xa54] sm:$0xf]  ;;  %v6474_v33 = vadd.f32 %v6473_v54, %v6472_v34  ;;  %v10350_v34 = vld [vmem:[%s11078_s29 + $0xa24] sm:$0xf] }
 0x258   : > { %6028 = vmatpush.bf16.msra.mxu0 %v7937_v62  ;;  %v13493_v62 = vld [vmem:[#allocation9_spill] sm:$0xff] }
 0x259   : > { %6042 = vmatpush.bf16.msra.mxu1 %v8001_v22  ;;  %v6475_v46 = vrot.slane %v6474_v33, 2  ;;  %v13495_v22 = vld [vmem:[#allocation11_spill] sm:$0xff] }
 0x25a   : > { %6056 = vmatpush.bf16.msra.mxu2 %v8065_v17  ;;  %v6491_v17 = vadd.f32 %v12827_v41, %v6490_v21  ;;  %v10382_v21 = vld [vmem:[%s11078_s29 + $0xb24] sm:$0xf] }
 0x25b   : > { %6070 = vmatpush.bf16.msra.mxu3 %v8129_v3  ;;  %v10370_v3 = vld [vmem:[%s11078_s29 + $0xac4] sm:$0xf]  ;;  %v6476_v50 = vadd.f32 %v6475_v46, %v6474_v33  ;;  %v8254_v46 = vld [vmem:[%s11078_s29 + $0xa98] sm:$0xf0] }
 0x25c   : > { %6029 = vmatpush.bf16.msra.mxu0 %v7929_v0  ;;  %v5807_v27 = vpop.f32.mrf.mxu0  ;;  %v8217_v0 = vor.u32 %v10354_v15, %v8214_v43  ;;  %v12885_v28 = vsel %vm6492_vm1, %v12827_v41, %v6491_v17  ;;  %v8281_v55 = vor.u32 %v10370_v3, %v8278_v4  ;;  %v8398_v41 = vld [vmem:[%s11078_s29 + $0xbb8] sm:$0xf0]  ;;  %v10396_v3 = vld [vmem:[%s11078_s29 + $0xb94] sm:$0xf]  ;;  %v10346_v4 = vld [vmem:[%s11078_s29 + $0xa04] sm:$0xf] }
 0x25d   : > { %6043 = vmatpush.bf16.msra.mxu1 %v7993_v44  ;;  %v6477_v56 = vrot.slane %v6476_v50, 1  ;;  %v5821_v24 = vpop.f32.mrf.mxu1  ;;  %v8345_v44 = vor.u32 %v10386_v16, %v8342_v53  ;;  %v8318_v15 = vld [vmem:[%s11078_s29 + $0xb18] sm:$0xf0]  ;;  %v8182_v16 = vld [vmem:[%s11078_s29 + $0xa08] sm:$0xf0] }
 0x25e   : > { %6057 = vmatpush.bf16.msra.mxu2 %v8057_v39  ;;  %v10352_v39 = vld [vmem:[%s11078_s29 + $0xa34] sm:$0xf]  ;;  %v10362_v53 = vld [vmem:[%s11078_s29 + $0xa84] sm:$0xf]  ;;  %v8185_v12 = vor.u32 %v10346_v4, %v8182_v16 }
 0x25f   : > { %6071 = vmatpush.bf16.msra.mxu3 %v8121_v35  ;;  %6030 = vmatmul.bf16.vlgmr.msra.gmra.mxu0 %v11591_v51  ;;  %v8225_v51 = vor.u32 %v10356_v1, %v8222_v37  ;;  %v6478_v35 = vadd.f32 %v6477_v56, %v6476_v50  ;;  %v8209_v63 = vor.u32 %v10352_v39, %v8206_v31  ;;  %v10398_v1 = vld [vmem:[%s11078_s29 + $0xba4] sm:$0xf]  ;;  %v8390_v37 = vld [vmem:[%s11078_s29 + $0xba8] sm:$0xf0]  ;;  %v8382_v50 = vld [vmem:[%s11078_s29 + $0xb98] sm:$0xf0] }
 0x260   : > { %6078 = vmatpush.bf16.msrb.mxu0 %v8241_v60  ;;  %6044 = vmatmul.bf16.vlgmr.msra.gmra.mxu1 %v13494_v20  ;;  %v8409_v60 = vor.u32 %v10402_v59, %v8406_v42  ;;  %v8257_v42 = vor.u32 %v10364_v29, %v8254_v46  ;;  %v8246_v56 = vld [vmem:[%s11078_s29 + $0xa88] sm:$0xf0]  ;;  %v10420_v46 = vld [vmem:[%s11078_s29 + $0xc54] sm:$0xf] }
 0x261   : > { %6092 = vmatpush.bf16.msrb.mxu1 %v8305_v30  ;;  %6058 = vmatmul.bf16.vlgmr.msra.gmra.mxu2 %v13493_v62  ;;  %v10400_v30 = vld [vmem:[%s11078_s29 + $0xbb4] sm:$0xf]  ;;  %v6494_v61 = vmul.f32 %v12885_v28, %v6478_v35  ;;  %v8374_v39 = vld [vmem:[%s11078_s29 + $0xb88] sm:$0xf0] }
 0x262   : > { %6106 = vmatpush.bf16.msrb.mxu2 %v8369_v57  ;;  %6072 = vmatmul.bf16.vlgmr.msra.gmra.mxu3 %v13495_v22  ;;  %v5822_v57 = vadd.f32 %v5821_v24, %v5807_v27  ;;  %v8385_v24 = vor.u32 %v10396_v3, %v8382_v50  ;;  %v10424_v35 = vld [vmem:[%s11078_s29 + $0xc74] sm:$0xf]  ;;  %v8606_v3 = vld [vmem:[%s11078_s29 + $0xd58] sm:$0xf0] }
 0x263   : > { %6120 = vmatpush.bf16.msrb.mxu3 %v8433_v36  ;;  %v8273_v36 = vor.u32 %v10368_v18, %v8270_v49  ;;  %v12901_v58 = vsub.f32 %v12848_v19, %v6494_v61  ;;  %v12904_v54 = vsub.f32 %v12844_v45, %v6494_v61  ;;  %v8201_v45 = vor.u32 %v10350_v34, %v8198_v11  ;;  %v10440_v49 = vld [vmem:[%s11078_s29 + $0xcf4] sm:$0xf]  ;;  %v8686_v11 = vld [vmem:[%s11078_s29 + $0xdf8] sm:$0xf0] }
 0x264   : > { %6079 = vmatpush.bf16.msrb.mxu0 %v8233_v8  ;;  %v8401_v8 = vor.u32 %v10400_v30, %v8398_v41  ;;  %v5809_v48 = vpop.f32.mrf.mxu0  ;;  %v8558_v30 = vld [vmem:[%s11078_s29 + $0xcf8] sm:$0xf0]  ;;  %v10456_v41 = vld [vmem:[%s11078_s29 + $0xd74] sm:$0xf]  ;;  %v8249_v34 = vor.u32 %v10362_v53, %v8246_v56 }
 0x265   : > { %6093 = vmatpush.bf16.msrb.mxu1 %v8297_v5  ;;  %v8326_v5 = vld [vmem:[%s11078_s29 + $0xb28] sm:$0xf0]  ;;  %v5849_v33 = vpop.f32.mrf.mxu3  ;;  %v6500_v19 = vmul.f32 %v12901_v58, %v12901_v58  ;;  %v5823_v62 = vpop.f32.mrf.mxu1  ;;  %v13498_v4 = vld [vmem:[#allocation14_spill] sm:$0xff]  ;;  %v8670_v53 = vld [vmem:[%s11078_s29 + $0xdd8] sm:$0xf0] }
 0x266   : > { %6107 = vmatpush.bf16.msrb.mxu2 %v8361_v52  ;;  %v5835_v52 = vpop.f32.mrf.mxu2  ;;  %v8329_v20 = vor.u32 %v10382_v21, %v8326_v5  ;;  %v8561_v5 = vor.u32 %v10440_v49, %v8558_v30  ;;  %v10468_v16 = vld [vmem:[%s11078_s29 + $0xdd4] sm:$0xf]  ;;  %v10466_v49 = vld [vmem:[%s11078_s29 + $0xdc4] sm:$0xf] }
 0x267   : > { %6121 = vmatpush.bf16.msrb.mxu3 %v8425_v9  ;;  %v5836_v32 = vadd.f32 %v5835_v52, %v5822_v57  ;;  %v6502_v9 = vmul.f32 %v12904_v54, %v12904_v54  ;;  %v8622_v57 = vld [vmem:[%s11078_s29 + $0xd78] sm:$0xf0] }
 0x268   : > { %6080 = vmatpush.bf16.msrb.mxu0 %v8225_v51  ;;  %v5824_v51 = vadd.f32 %v5823_v62, %v5809_v48  ;;  %v8625_v52 = vor.u32 %v10456_v41, %v8622_v57  ;;  %v8678_v48 = vld [vmem:[%s11078_s29 + $0xde8] sm:$0xf0] }
 0x269   : > { %6094 = vmatpush.bf16.msrb.mxu1 %v8289_v7  ;;  %v12918_v22 = vadd.f32 %v5849_v33, %v5836_v32  ;;  %v6504_v17 = vsel %vm6470_vm0, %v6502_v9, 0.0  ;;  %v8393_v7 = vor.u32 %v10398_v1, %v8390_v37  ;;  %v10422_v1 = vld [vmem:[%s11078_s29 + $0xc64] sm:$0xf]  ;;  %v8486_v37 = vld [vmem:[%s11078_s29 + $0xc68] sm:$0xf0] }
 0x26a   : > { %6108 = vmatpush.bf16.msrb.mxu2 %v8353_v2  ;;  %v10380_v2 = vld [vmem:[%s11078_s29 + $0xb14] sm:$0xf]  ;;  %v6505_v43 = vadd.f32 %v6504_v17, %v6500_v19  ;;  %v10438_v32 = vld [vmem:[%s11078_s29 + $0xce4] sm:$0xf]  ;;  %v8550_v19 = vld [vmem:[%s11078_s29 + $0xce8] sm:$0xf0]  ;;  %v8489_v62 = vor.u32 %v10422_v1, %v8486_v37 }
 0x26b   : > { %6122 = vmatpush.bf16.msrb.mxu3 %v8417_v23  ;;  %v8193_v23 = vor.u32 %v10348_v10, %v8190_v25  ;;  %v8321_v27 = vor.u32 %v10380_v2, %v8318_v15  ;;  %v10454_v9 = vld [vmem:[%s11078_s29 + $0xd64] sm:$0xf]  ;;  %v8553_v25 = vor.u32 %v10438_v32, %v8550_v19  ;;  %v10436_v17 = vld [vmem:[%s11078_s29 + $0xcd4] sm:$0xf]  ;;  %v8542_v15 = vld [vmem:[%s11078_s29 + $0xcd8] sm:$0xf0] }
 0x26c   : > { %6081 = vmatpush.bf16.msrb.mxu0 %v8217_v0  ;;  %v6506_v59 = vrot.slane %v6505_v43, 4  ;;  %v10378_v0 = vld [vmem:[%s11078_s29 + $0xb04] sm:$0xf]  ;;  %v8454_v19 = vld [vmem:[%s11078_s29 + $0xc28] sm:$0xf0] }
 0x26d   : > { %6095 = vmatpush.bf16.msrb.mxu1 %v8281_v55  ;;  %v8310_v55 = vld [vmem:[%s11078_s29 + $0xb08] sm:$0xf0]  ;;  %v5851_v61 = vpop.f32.mrf.mxu3  ;;  %v10470_v10 = vld [vmem:[%s11078_s29 + $0xde4] sm:$0xf] }
 0x26e   : > { %6109 = vmatpush.bf16.msrb.mxu2 %v8345_v44  ;;  %v10394_v44 = vld [vmem:[%s11078_s29 + $0xb84] sm:$0xf]  ;;  %v5837_v31 = vpop.f32.mrf.mxu2  ;;  %v6507_v18 = vadd.f32 %v6506_v59, %v6505_v43  ;;  %v8681_v2 = vor.u32 %v10470_v10, %v8678_v48  ;;  %v10452_v43 = vld [vmem:[%s11078_s29 + $0xd54] sm:$0xf]  ;;  %v13499_v59 = vld [vmem:[#allocation15_spill] sm:$0xff] }
 0x26f   : > { %6123 = vmatpush.bf16.msrb.mxu3 %v8409_v60  ;;  %v8494_v60 = vld [vmem:[%s11078_s29 + $0xc78] sm:$0xf0]  ;;  %v5838_v47 = vadd.f32 %v5837_v31, %v5824_v51  ;;  %v8377_v13 = vor.u32 %v10394_v44, %v8374_v39  ;;  %v10434_v44 = vld [vmem:[%s11078_s29 + $0xcc4] sm:$0xf]  ;;  %v8673_v39 = vor.u32 %v10468_v16, %v8670_v53  ;;  %v8534_v31 = vld [vmem:[%s11078_s29 + $0xcc8] sm:$0xf0] }
 0x270   : > { %6082 = vmatpush.bf16.msrb.mxu0 %v8209_v63  ;;  %v6508_v63 = vrot.slane %v6507_v18, 2  ;;  %v8478_v51 = vld [vmem:[%s11078_s29 + $0xc58] sm:$0xf0]  ;;  %v8537_v57 = vor.u32 %v10434_v44, %v8534_v31  ;;  %v8518_v48 = vld [vmem:[%s11078_s29 + $0xca8] sm:$0xf0] }
 0x271   : > { %6096 = vmatpush.bf16.msrb.mxu1 %v8273_v36  ;;  %v8313_v36 = vor.u32 %v10378_v0, %v8310_v55  ;;  %v12941_v26 = vadd.f32 %v5851_v61, %v5838_v47  ;;  %v8545_v0 = vor.u32 %v10436_v17, %v8542_v15  ;;  %v8470_v55 = vld [vmem:[%s11078_s29 + $0xc48] sm:$0xf0]  ;;  %v8446_v16 = vld [vmem:[%s11078_s29 + $0xc18] sm:$0xf0]  ;;  %v10428_v53 = vld [vmem:[%s11078_s29 + $0xc94] sm:$0xf] }
 0x272   : > { %6110 = vmatpush.bf16.msrb.mxu2 %v8337_v40  ;;  %v10472_v40 = vld [vmem:[%s11078_s29 + $0xdf4] sm:$0xf]  ;;  %v6509_v21 = vadd.f32 %v6508_v63, %v6507_v18  ;;  %v10450_v18 = vld [vmem:[%s11078_s29 + $0xd44] sm:$0xf]  ;;  %v8662_v47 = vld [vmem:[%s11078_s29 + $0xdc8] sm:$0xf0] }
 0x273   : > { %6124 = vmatpush.bf16.msrb.mxu3 %v8401_v8  ;;  %v8497_v8 = vor.u32 %v10424_v35, %v8494_v60  ;;  %v8689_v33 = vor.u32 %v10472_v40, %v8686_v11  ;;  %v8598_v35 = vld [vmem:[%s11078_s29 + $0xd48] sm:$0xf0]  ;;  %v10416_v63 = vld [vmem:[%s11078_s29 + $0xc34] sm:$0xf]  ;;  %v8665_v40 = vor.u32 %v10466_v49, %v8662_v47  ;;  %v10410_v31 = vld [vmem:[%s11078_s29 + $0xc04] sm:$0xf] }
 0x274   : > { %6083 = vmatpush.bf16.msrb.mxu0 %v8201_v45  ;;  %v8614_v45 = vld [vmem:[%s11078_s29 + $0xd68] sm:$0xf0]  ;;  %v8601_v61 = vor.u32 %v10450_v18, %v8598_v35  ;;  %v10460_v44 = vld [vmem:[%s11078_s29 + $0xd94] sm:$0xf]  ;;  %v10426_v47 = vld [vmem:[%s11078_s29 + $0xc84] sm:$0xf] }
 0x275   : > { %6097 = vmatpush.bf16.msrb.mxu1 %v8265_v38  ;;  %v6510_v38 = vrot.slane %v6509_v21, 1  ;;  %v8617_v29 = vor.u32 %v10454_v9, %v8614_v45  ;;  %v10430_v9 = vld [vmem:[%s11078_s29 + $0xca4] sm:$0xf]  ;;  %v8646_v17 = vld [vmem:[%s11078_s29 + $0xda8] sm:$0xf0] }
 0x276   : > { %6111 = vmatpush.bf16.msrb.mxu2 %v8329_v20  ;;  %v9970_v35 = vld [vmem:[%s11086_s4 + $0x1] ss:$2 sm:$0x3]  ;;  %v8438_v49 = vld [vmem:[%s11078_s29 + $0xc08] sm:$0xf0] }
 0x277   : > { %6125 = vmatpush.bf16.msrb.mxu3 %v8393_v7  ;;  %v6511_v20 = vadd.f32 %v6510_v38, %v6509_v21  ;;  %v13496_v7 = vld [vmem:[#allocation12_spill] sm:$0xff]  ;;  %v10464_v21 = vld [vmem:[%s11078_s29 + $0xdb4] sm:$0xf] }
 0x278   : > { %6084 = vmatpush.bf16.msrb.mxu0 %v8193_v23  ;;  %v13497_v23 = vld [vmem:[#allocation13_spill] sm:$0xff] }
 0x279   : > { %6098 = vmatpush.bf16.msrb.mxu1 %v8257_v42  ;;  %v6520_v50 = vmul.f32 %v6511_v20, %v12885_v28  ;;  %v8481_v42 = vor.u32 %v10420_v46, %v8478_v51  ;;  %v8582_v20 = vld [vmem:[%s11078_s29 + $0xd28] sm:$0xf0]  ;;  %v10462_v51 = vld [vmem:[%s11078_s29 + $0xda4] sm:$0xf] }
 0x27a   : > { %6112 = vmatpush.bf16.msrb.mxu2 %v8321_v27  ;;  %v10418_v27 = vld [vmem:[%s11078_s29 + $0xc44] sm:$0xf] }
 0x27b   : > { %6126 = vmatpush.bf16.msrb.mxu3 %v8385_v24  ;;  %v12965_v56 = vadd.f32 1e-05, %v6520_v50  ;;  %v8609_v24 = vor.u32 %v10452_v43, %v8606_v3  ;;  %v8473_v30 = vor.u32 %v10418_v27, %v8470_v55  ;;  %v10412_v3 = vld [vmem:[%s11078_s29 + $0xc14] sm:$0xf]  ;;  %v8649_v27 = vor.u32 %v10462_v51, %v8646_v17  ;;  %v8574_v55 = vld [vmem:[%s11078_s29 + $0xd18] sm:$0xf0] }
 0x27c   : > { %6085 = vmatpush.bf16.msrb.mxu0 %v8185_v12  ;;  %v5863_v60 = vpop.f32.mrf.mxu0  ;;  %v10486_v17 = vld [vmem:[%s11078_s29 + $0xe64] sm:$0xf] }
 0x27d   : > { %6099 = vmatpush.bf16.msrb.mxu1 %v8249_v34  ;;  %10847 = vrsqrt.f32 %v12965_v56  ;;  %v5864_v12 = vadd.f32 %v5863_v60, %v12918_v22  ;;  %v5877_v41 = vpop.f32.mrf.mxu1  ;;  %v8462_v34 = vld [vmem:[%s11078_s29 + $0xc38] sm:$0xf0]  ;;  %v8449_v60 = vor.u32 %v10412_v3, %v8446_v16  ;;  %vm6530_vm3 = vweird.f32 %v12965_v56  ;;  %v10518_v3 = vld [vmem:[%s11078_s29 + $0xf64] sm:$0xf] }
 0x27e   : > { %6113 = vmatpush.bf16.msrb.mxu2 %v8313_v36  ;;  %v10432_v36 = vld [vmem:[%s11078_s29 + $0xcb4] sm:$0xf]  ;;  %v8590_v22 = vld [vmem:[%s11078_s29 + $0xd38] sm:$0xf0] }
 0x27f   : > { %6127 = vmatpush.bf16.msrb.mxu3 %v8377_v13  ;;  %6086 = vmatmul.bf16.vlgmr.msrb.gmra.mxu0 %v13496_v7  ;;  %v5878_v11 = vadd.f32 %v5877_v41, %v5864_v12  ;;  %v8526_v13 = vld [vmem:[%s11078_s29 + $0xcb8] sm:$0xf0]  ;;  %v8502_v41 = vld [vmem:[%s11078_s29 + $0xc88] sm:$0xf0] }
 0x280   : > { %6134 = vmatpush.bf16.msra.mxu0 %v8497_v8  ;;  %6100 = vmatmul.bf16.vlgmr.msrb.gmra.mxu1 %v13498_v4  ;;  %v10448_v8 = vld [vmem:[%s11078_s29 + $0xd34] sm:$0xf]  ;;  %v8529_v37 = vor.u32 %v10432_v36, %v8526_v13 }
 0x281   : > { %6148 = vmatpush.bf16.msra.mxu1 %v8561_v5  ;;  %6114 = vmatmul.bf16.vlgmr.msrb.gmra.mxu2 %v13497_v23  ;;  %v8654_v5 = vld [vmem:[%s11078_s29 + $0xdb8] sm:$0xf0]  ;;  %v8593_v32 = vor.u32 %v10448_v8, %v8590_v22  ;;  %v8521_v23 = vor.u32 %v10430_v9, %v8518_v48  ;;  %v10488_v13 = vld [vmem:[%s11078_s29 + $0xe74] sm:$0xf]  ;;  %v6561_v48 = vperm.slane %v9970_v35, 0 }
 0x282   : > { %6162 = vmatpush.bf16.msra.mxu2 %v8625_v52  ;;  %6128 = vmatmul.bf16.vlgmr.msrb.gmra.mxu3 %v13499_v59  ;;  %v8465_v52 = vor.u32 %v10416_v63, %v8462_v34  ;;  %v8657_v38 = vor.u32 %v10464_v21, %v8654_v5  ;;  %v8510_v59 = vld [vmem:[%s11078_s29 + $0xc98] sm:$0xf0]  ;;  %v10520_v9 = vld [vmem:[%s11078_s29 + $0xf74] sm:$0xf] }
 0x283   : > { %6176 = vmatpush.bf16.msra.mxu3 %v8689_v33  ;;  %v12984_v1 = vpop.eup %10847  ;;  %v10414_v33 = vld [vmem:[%s11078_s29 + $0xc24] sm:$0xf]  ;;  %v8513_v12 = vor.u32 %v10428_v53, %v8510_v59  ;;  %v8750_v5 = vld [vmem:[%s11078_s29 + $0xe78] sm:$0xf0]  ;;  %v8934_v59 = vld [vmem:[%s11078_s29 + $0xfe8] sm:$0xf0] }
 0x284   : > { %6135 = vmatpush.bf16.msra.mxu0 %v8489_v62  ;;  %v6525_v45 = vmul.f32 %v12984_v1, %v12965_v56  ;;  %v5891_v10 = vpop.f32.mrf.mxu2  ;;  %v10446_v62 = vld [vmem:[%s11078_s29 + $0xd24] sm:$0xf]  ;;  %v8457_v15 = vor.u32 %v10414_v33, %v8454_v19  ;;  %vm6531_vm2 = vweird.f32 %v12984_v1  ;;  %v8814_v19 = vld [vmem:[%s11078_s29 + $0xef8] sm:$0xf0] }
 0x285   : > { %6149 = vmatpush.bf16.msra.mxu1 %v8553_v25  ;;  %v5892_v25 = vadd.f32 %v5891_v10, %v5878_v11  ;;  %v5905_v46 = vpop.f32.mrf.mxu3  ;;  %v5879_v43 = vpop.f32.mrf.mxu1  ;;  %v8585_v4 = vor.u32 %v10446_v62, %v8582_v20  ;;  %v8630_v11 = vld [vmem:[%s11078_s29 + $0xd88] sm:$0xf0]  ;;  %vm6532_vm4 = vmor %vm6530_vm3, %vm6531_vm2  ;;  %v8942_v20 = vld [vmem:[%s11078_s29 + $0xff8] sm:$0xf0] }
 0x286   : > { %6163 = vmatpush.bf16.msra.mxu2 %v8617_v29  ;;  %v5865_v29 = vpop.f32.mrf.mxu0  ;;  %v6526_v7 = vmul.f32 %v12984_v1, %v6525_v45  ;;  %v8878_v45 = vld [vmem:[%s11078_s29 + $0xf78] sm:$0xf0]  ;;  %v10534_v53 = vld [vmem:[%s11078_s29 + $0xfe4] sm:$0xf] }
 0x287   : > { %6177 = vmatpush.bf16.msra.mxu3 %v8681_v2  ;;  %v5866_v2 = vadd.f32 %v5865_v29, %v12941_v26  ;;  %v12999_v50 = vadd.f32 %v5905_v46, %v5892_v25  ;;  %v8753_v29 = vor.u32 %v10488_v13, %v8750_v5  ;;  %v8881_v51 = vor.u32 %v10520_v9, %v8878_v45  ;;  %v8798_v35 = vld [vmem:[%s11078_s29 + $0xed8] sm:$0xf0]  ;;  %v10480_v45 = vld [vmem:[%s11078_s29 + $0xe34] sm:$0xf] }
 0x288   : > { %6136 = vmatpush.bf16.msra.mxu0 %v8481_v42  ;;  %v6527_v26 = vmul.f32 0.5, %v6526_v7  ;;  %v6544_v42 = vld [vmem:[%s11086_s4] ss:$2 sm:$0x3]  ;;  %v8742_v7 = vld [vmem:[%s11078_s29 + $0xe68] sm:$0xf0] }
 0x289   : > { %6150 = vmatpush.bf16.msra.mxu1 %v8545_v0  ;;  %v5880_v0 = vadd.f32 %v5879_v43, %v5866_v2  ;;  %v6552_v8 = vperm.slane %v6544_v42, 0  ;;  %v10502_v2 = vld [vmem:[%s11078_s29 + $0xee4] sm:$0xf]  ;;  %v8806_v43 = vld [vmem:[%s11078_s29 + $0xee8] sm:$0xf0] }
 0x28a   : > { %6164 = vmatpush.bf16.msra.mxu2 %v8609_v24  ;;  %v10444_v24 = vld [vmem:[%s11078_s29 + $0xd14] sm:$0xf]  ;;  %v6528_v18 = vsub.f32 1.5, %v6527_v26  ;;  %v8745_v26 = vor.u32 %v10486_v17, %v8742_v7  ;;  %v10478_v17 = vld [vmem:[%s11078_s29 + $0xe24] sm:$0xf] }
 0x28b   : > { %6178 = vmatpush.bf16.msra.mxu3 %v8673_v39  ;;  %v8638_v39 = vld [vmem:[%s11078_s29 + $0xd98] sm:$0xf0]  ;;  %v10484_v42 = vld [vmem:[%s11078_s29 + $0xe54] sm:$0xf]  ;;  %v8710_v7 = vld [vmem:[%s11078_s29 + $0xe28] sm:$0xf0] }
 0x28c   : > { %6137 = vmatpush.bf16.msra.mxu0 %v8473_v30  ;;  %v8577_v30 = vor.u32 %v10444_v24, %v8574_v55  ;;  %v6529_v63 = vmul.f32 %v12984_v1, %v6528_v18  ;;  %v8641_v34 = vor.u32 %v10460_v44, %v8638_v39  ;;  %v5893_v36 = vpop.f32.mrf.mxu2  ;;  %v8809_v24 = vor.u32 %v10502_v2, %v8806_v43  ;;  %v8734_v44 = vld [vmem:[%s11078_s29 + $0xe58] sm:$0xf0]  ;;  %v10500_v39 = vld [vmem:[%s11078_s29 + $0xed4] sm:$0xf]  ;;  %v10494_v2 = vld [vmem:[%s11078_s29 + $0xea4] sm:$0xf] }
 0x28d   : > { %6151 = vmatpush.bf16.msra.mxu1 %v8537_v57  ;;  %v10442_v57 = vld [vmem:[%s11078_s29 + $0xd04] sm:$0xf]  ;;  %v5894_v22 = vadd.f32 %v5893_v36, %v5880_v0  ;;  %v5907_v21 = vpop.f32.mrf.mxu3  ;;  %v8937_v18 = vor.u32 %v10534_v53, %v8934_v59 }
 0x28e   : > { %6165 = vmatpush.bf16.msra.mxu2 %v8601_v61  ;;  %v8566_v61 = vld [vmem:[%s11078_s29 + $0xd08] sm:$0xf0]  ;;  %v6533_v56 = vsel %vm6532_vm4, %v12984_v1, %v6529_v63  ;;  %v10536_v1 = vld [vmem:[%s11078_s29 + $0xff4] sm:$0xf]  ;;  %v8801_v63 = vor.u32 %v10500_v39, %v8798_v35  ;;  %v10482_v36 = vld [vmem:[%s11078_s29 + $0xe44] sm:$0xf] }
 0x28f   : > { %6179 = vmatpush.bf16.msra.mxu3 %v8665_v40  ;;  %v10458_v40 = vld [vmem:[%s11078_s29 + $0xd84] sm:$0xf]  ;;  %v8569_v33 = vor.u32 %v10442_v57, %v8566_v61  ;;  %v6549_v10 = vmul.f32 %v6533_v56, %v12904_v54  ;;  %v13032_v62 = vadd.f32 %v5907_v21, %v5894_v22  ;;  %v13503_v57 = vld [vmem:[#allocation19_spill] sm:$0xff]  ;;  %v8737_v61 = vor.u32 %v10484_v42, %v8734_v44  ;;  %v8854_v21 = vld [vmem:[%s11078_s29 + $0xf48] sm:$0xf0] }
 0x290   : > { %6138 = vmatpush.bf16.msra.mxu0 %v8465_v52  ;;  %v10504_v52 = vld [vmem:[%s11078_s29 + $0xef4] sm:$0xf]  ;;  %v8633_v25 = vor.u32 %v10458_v40, %v8630_v11  ;;  %v8726_v40 = vld [vmem:[%s11078_s29 + $0xe48] sm:$0xf0]  ;;  %v10498_v11 = vld [vmem:[%s11078_s29 + $0xec4] sm:$0xf] }
 0x291   : > { %6152 = vmatpush.bf16.msra.mxu1 %v8529_v37  ;;  %v8441_v37 = vor.u32 %v10410_v31, %v8438_v49  ;;  %v6558_v46 = vmul.f32 %v6552_v8, %v6549_v10  ;;  %v8817_v54 = vor.u32 %v10504_v52, %v8814_v19  ;;  %v13500_v31 = vld [vmem:[#allocation16_spill] sm:$0xff]  ;;  %v8862_v49 = vld [vmem:[%s11078_s29 + $0xf58] sm:$0xf0]  ;;  %v10496_v10 = vld [vmem:[%s11078_s29 + $0xeb4] sm:$0xf] }
 0x292   : > { %6166 = vmatpush.bf16.msra.mxu2 %v8593_v32  ;;  %v8505_v32 = vor.u32 %v10426_v47, %v8502_v41  ;;  %v13501_v47 = vld [vmem:[#allocation17_spill] sm:$0xff]  ;;  %v8926_v41 = vld [vmem:[%s11078_s29 + $0xfd8] sm:$0xf0]  ;;  %v10514_v22 = vld [vmem:[%s11078_s29 + $0xf44] sm:$0xf] }
 0x293   : > { %6180 = vmatpush.bf16.msra.mxu3 %v8657_v38  ;;  %v6547_v38 = vmul.f32 %v6533_v56, %v12901_v58  ;;  %v6567_v16 = vadd.f32 %v6561_v48, %v6558_v46  ;;  %v10530_v52 = vld [vmem:[%s11078_s29 + $0xfc4] sm:$0xf]  ;;  %v8918_v56 = vld [vmem:[%s11078_s29 + $0xfc8] sm:$0xf0]  ;;  %v8857_v9 = vor.u32 %v10514_v22, %v8854_v21  ;;  %v10492_v35 = vld [vmem:[%s11078_s29 + $0xe94] sm:$0xf] }
 0x294   : > { %6139 = vmatpush.bf16.msra.mxu0 %v8457_v15  ;;  %v8945_v15 = vor.u32 %v10536_v1, %v8942_v20  ;;  %v8782_v20 = vld [vmem:[%s11078_s29 + $0xeb8] sm:$0xf0]  ;;  %v8902_v42 = vld [vmem:[%s11078_s29 + $0xfa8] sm:$0xf0] }
 0x295   : > { %6153 = vmatpush.bf16.msra.mxu1 %v8521_v23  ;;  %v6556_v58 = vmul.f32 %v6552_v8, %v6547_v38  ;;  %v8870_v23 = vld [vmem:[%s11078_s29 + $0xf68] sm:$0xf0]  ;;  %v6571_v0 = vmax.f32 %v6567_v16, 0.0  ;;  %v8718_v38 = vld [vmem:[%s11078_s29 + $0xe38] sm:$0xf0] }
 0x296   : > { %6167 = vmatpush.bf16.msra.mxu2 %v8585_v4  ;;  %v8873_v55 = vor.u32 %v10518_v3, %v8870_v23  ;;  %v8790_v8 = vld [vmem:[%s11078_s29 + $0xec8] sm:$0xf0]  ;;  %v8721_v46 = vor.u32 %v10480_v45, %v8718_v38  ;;  %v10510_v23 = vld [vmem:[%s11078_s29 + $0xf24] sm:$0xf]  ;;  %v9070_v45 = vld [vmem:[%s11078_s29 + $0x10f8] sm:$0xf0] }
 0x297   : > { %6181 = vmatpush.bf16.msra.mxu3 %v8649_v27  ;;  %v6565_v4 = vadd.f32 %v6561_v48, %v6556_v58  ;;  %6575 = vst [vmem:[%s13054_s24 + $0x10] sm:$0xf] %v6571_v0  ;;  %v8793_v19 = vor.u32 %v10498_v11, %v8790_v8  ;;  %v8921_v48 = vor.u32 %v10530_v52, %v8918_v56  ;;  %v8910_v58 = vld [vmem:[%s11078_s29 + $0xfb8] sm:$0xf0]  ;;  %v8774_v3 = vld [vmem:[%s11078_s29 + $0xea8] sm:$0xf0] }
 0x298   : > { %6140 = vmatpush.bf16.msra.mxu0 %v8449_v60  ;;  %v10516_v60 = vld [vmem:[%s11078_s29 + $0xf54] sm:$0xf]  ;;  %v8713_v0 = vor.u32 %v10478_v17, %v8710_v7  ;;  %v8777_v44 = vor.u32 %v10494_v2, %v8774_v3  ;;  %v8758_v11 = vld [vmem:[%s11078_s29 + $0xe88] sm:$0xf0]  ;;  %v10566_v7 = vld [vmem:[%s11078_s29 + $0x10e4] sm:$0xf] }
 0x299   : > { %6154 = vmatpush.bf16.msra.mxu1 %v8513_v12  ;;  %v6569_v27 = vmax.f32 %v6565_v4, 0.0  ;;  %v13502_v12 = vld [vmem:[#allocation18_spill] sm:$0xff]  ;;  %v8838_v4 = vld [vmem:[%s11078_s29 + $0xf28] sm:$0xf0] }
 0x29a   : > { %6168 = vmatpush.bf16.msra.mxu2 %v8577_v30  ;;  %v10532_v30 = vld [vmem:[%s11078_s29 + $0xfd4] sm:$0xf]  ;;  %v8841_v39 = vor.u32 %v10510_v23, %v8838_v4  ;;  %v8822_v21 = vld [vmem:[%s11078_s29 + $0xf08] sm:$0xf0]  ;;  %v10598_v23 = vld [vmem:[%s11078_s29 + $0x11e4] sm:$0xf] }
 0x29b   : > { %6182 = vmatpush.bf16.msra.mxu3 %v8641_v34  ;;  %6573 = vst [vmem:[%s13054_s24] sm:$0xff] %v6569_v27  ;;  %v8865_v34 = vor.u32 %v10516_v60, %v8862_v49  ;;  %v8929_v13 = vor.u32 %v10532_v30, %v8926_v41  ;;  %v8766_v49 = vld [vmem:[%s11078_s29 + $0xe98] sm:$0xf0]  ;;  %v10524_v30 = vld [vmem:[%s11078_s29 + $0xf94] sm:$0xf]  ;;  %v8886_v52 = vld [vmem:[%s11078_s29 + $0xf88] sm:$0xf0] }
 0x29c   : > { %6141 = vmatpush.bf16.msra.mxu0 %v8441_v37  ;;  %v5919_v5 = vpop.f32.mrf.mxu0  ;;  %v8894_v41 = vld [vmem:[%s11078_s29 + $0xf98] sm:$0xf0]  ;;  %v10584_v38 = vld [vmem:[%s11078_s29 + $0x1174] sm:$0xf]  ;;  %v8998_v17 = vld [vmem:[%s11078_s29 + $0x1068] sm:$0xf0] }
 0x29d   : > { %6155 = vmatpush.bf16.msra.mxu1 %v8505_v32  ;;  %v5920_v37 = vadd.f32 %v5919_v5, %v12999_v50  ;;  %v8729_v32 = vor.u32 %v10482_v36, %v8726_v40  ;;  %v8846_v50 = vld [vmem:[%s11078_s29 + $0xf38] sm:$0xf0]  ;;  %v10490_v40 = vld [vmem:[%s11078_s29 + $0xe84] sm:$0xf]  ;;  %v8897_v8 = vor.u32 %v10524_v30, %v8894_v41  ;;  %v9126_v3 = vld [vmem:[%s11078_s29 + $0x1168] sm:$0xf0] }
 0x29e   : > { %6169 = vmatpush.bf16.msra.mxu2 %v8569_v33  ;;  %v5933_v33 = vpop.f32.mrf.mxu1  ;;  %v10522_v5 = vld [vmem:[%s11078_s29 + $0xf84] sm:$0xf]  ;;  %v9190_v4 = vld [vmem:[%s11078_s29 + $0x11e8] sm:$0xf0] }
 0x29f   : > { %6183 = vmatpush.bf16.msra.mxu3 %v8633_v25  ;;  %6142 = vmatmul.bf16.vlgmr.msra.gmra.mxu0 %v13500_v31  ;;  %v5934_v1 = vadd.f32 %v5933_v33, %v5920_v37  ;;  %v10512_v25 = vld [vmem:[%s11078_s29 + $0xf34] sm:$0xf]  ;;  %v9006_v33 = vld [vmem:[%s11078_s29 + $0x1078] sm:$0xf0]  ;;  %v10546_v41 = vld [vmem:[%s11078_s29 + $0x1044] sm:$0xf] }
 0x2a0   : > { %6190 = vmatpush.bf16.msrb.mxu0 %v8753_v29  ;;  %6156 = vmatmul.bf16.vlgmr.msra.gmra.mxu1 %v13502_v12  ;;  %v10528_v29 = vld [vmem:[%s11078_s29 + $0xfb4] sm:$0xf]  ;;  %v8830_v12 = vld [vmem:[%s11078_s29 + $0xf18] sm:$0xf0] }
 0x2a1   : > { %6204 = vmatpush.bf16.msrb.mxu1 %v8817_v54  ;;  %6170 = vmatmul.bf16.vlgmr.msra.gmra.mxu2 %v13501_v47  ;;  %v8785_v54 = vor.u32 %v10496_v10, %v8782_v20  ;;  %v10476_v31 = vld [vmem:[%s11078_s29 + $0xe14] sm:$0xf]  ;;  %v9134_v10 = vld [vmem:[%s11078_s29 + $0x1178] sm:$0xf0] }
 0x2a2   : > { %6218 = vmatpush.bf16.msrb.mxu2 %v8881_v51  ;;  %6184 = vmatmul.bf16.vlgmr.msra.gmra.mxu3 %v13503_v57  ;;  %v8849_v51 = vor.u32 %v10512_v25, %v8846_v50  ;;  %v10508_v47 = vld [vmem:[%s11078_s29 + $0xf14] sm:$0xf]  ;;  %v9198_v50 = vld [vmem:[%s11078_s29 + $0x11f8] sm:$0xf0] }
 0x2a3   : > { %6232 = vmatpush.bf16.msrb.mxu3 %v8945_v15  ;;  %v8913_v15 = vor.u32 %v10528_v29, %v8910_v58  ;;  %v8833_v36 = vor.u32 %v10508_v47, %v8830_v12  ;;  %v10600_v25 = vld [vmem:[%s11078_s29 + $0x11f4] sm:$0xf]  ;;  %v8889_v29 = vor.u32 %v10522_v5, %v8886_v52 }
 0x2a4   : > { %6191 = vmatpush.bf16.msrb.mxu0 %v8745_v26  ;;  %v5947_v43 = vpop.f32.mrf.mxu2  ;;  %v5921_v53 = vpop.f32.mrf.mxu0  ;;  %v10526_v26 = vld [vmem:[%s11078_s29 + $0xfa4] sm:$0xf]  ;;  %v9201_v2 = vor.u32 %v10600_v25, %v9198_v50 }
 0x2a5   : > { %6205 = vmatpush.bf16.msrb.mxu1 %v8809_v24  ;;  %v5948_v16 = vadd.f32 %v5947_v43, %v5934_v1  ;;  %v5961_v59 = vpop.f32.mrf.mxu3  ;;  %v5922_v27 = vadd.f32 %v5921_v53, %v13032_v62  ;;  %v8905_v60 = vor.u32 %v10526_v26, %v8902_v42  ;;  %v8761_v1 = vor.u32 %v10490_v40, %v8758_v11  ;;  %v10582_v43 = vld [vmem:[%s11078_s29 + $0x1164] sm:$0xf]  ;;  %v10548_v26 = vld [vmem:[%s11078_s29 + $0x1054] sm:$0xf]  ;;  %v8990_v42 = vld [vmem:[%s11078_s29 + $0x1058] sm:$0xf0] }
 0x2a6   : > { %6219 = vmatpush.bf16.msrb.mxu2 %v8873_v55  ;;  %v5935_v24 = vpop.f32.mrf.mxu1  ;;  %v8993_v47 = vor.u32 %v10548_v26, %v8990_v42  ;;  %v9110_v40 = vld [vmem:[%s11078_s29 + $0x1148] sm:$0xf0] }
 0x2a7   : > { %6233 = vmatpush.bf16.msrb.mxu3 %v8937_v18  ;;  %v13089_v55 = vadd.f32 %v5961_v59, %v5948_v16  ;;  %v8702_v18 = vld [vmem:[%s11078_s29 + $0xe18] sm:$0xf0]  ;;  %v5936_v62 = vadd.f32 %v5935_v24, %v5922_v27  ;;  %v9129_v59 = vor.u32 %v10582_v43, %v9126_v3  ;;  %v10564_v27 = vld [vmem:[%s11078_s29 + $0x10d4] sm:$0xf]  ;;  %v9193_v24 = vor.u32 %v10598_v23, %v9190_v4  ;;  %v10590_v23 = vld [vmem:[%s11078_s29 + $0x11a4] sm:$0xf] }
 0x2a8   : > { %6192 = vmatpush.bf16.msrb.mxu0 %v8737_v61  ;;  %v8705_v57 = vor.u32 %v10476_v31, %v8702_v18  ;;  %v10474_v61 = vld [vmem:[%s11078_s29 + $0xe04] sm:$0xf]  ;;  %v9118_v31 = vld [vmem:[%s11078_s29 + $0x1158] sm:$0xf0]  ;;  %v13505_v18 = vld [vmem:[#allocation21_spill] sm:$0xff] }
 0x2a9   : > { %6206 = vmatpush.bf16.msrb.mxu1 %v8801_v63  ;;  %v8694_v63 = vld [vmem:[%s11078_s29 + $0xe08] sm:$0xf0] }
 0x2aa   : > { %6220 = vmatpush.bf16.msrb.mxu2 %v8865_v34  ;;  %v8769_v34 = vor.u32 %v10492_v35, %v8766_v49  ;;  %v13506_v35 = vld [vmem:[#allocation22_spill] sm:$0xff]  ;;  %v13507_v49 = vld [vmem:[#allocation23_spill] sm:$0xff]  ;;  %v9158_v4 = vld [vmem:[%s11078_s29 + $0x11a8] sm:$0xf0] }
 0x2ab   : > { %6234 = vmatpush.bf16.msrb.mxu3 %v8929_v13  ;;  %v10506_v13 = vld [vmem:[%s11078_s29 + $0xf04] sm:$0xf] }
 0x2ac   : > { %6193 = vmatpush.bf16.msrb.mxu0 %v8729_v32  ;;  %v5949_v22 = vpop.f32.mrf.mxu2  ;;  %v10552_v32 = vld [vmem:[%s11078_s29 + $0x1074] sm:$0xf]  ;;  %v8825_v20 = vor.u32 %v10506_v13, %v8822_v21  ;;  %v10594_v13 = vld [vmem:[%s11078_s29 + $0x11c4] sm:$0xf] }
 0x2ad   : > { %6207 = vmatpush.bf16.msrb.mxu1 %v8793_v19  ;;  %v5950_v56 = vadd.f32 %v5949_v22, %v5936_v62  ;;  %v5963_v37 = vpop.f32.mrf.mxu3  ;;  %v10568_v19 = vld [vmem:[%s11078_s29 + $0x10f4] sm:$0xf]  ;;  %v9009_v58 = vor.u32 %v10552_v32, %v9006_v33  ;;  %v9182_v62 = vld [vmem:[%s11078_s29 + $0x11d8] sm:$0xf0] }
 0x2ae   : > { %6221 = vmatpush.bf16.msrb.mxu2 %v8857_v9  ;;  %v8697_v9 = vor.u32 %v10474_v61, %v8694_v63  ;;  %v10562_v61 = vld [vmem:[%s11078_s29 + $0x10c4] sm:$0xf]  ;;  %v8974_v32 = vld [vmem:[%s11078_s29 + $0x1038] sm:$0xf0]  ;;  %v10560_v33 = vld [vmem:[%s11078_s29 + $0x10b4] sm:$0xf] }
 0x2af   : > { %6235 = vmatpush.bf16.msrb.mxu3 %v8921_v48  ;;  %v13113_v48 = vadd.f32 %v5963_v37, %v5950_v56  ;;  %v10544_v37 = vld [vmem:[%s11078_s29 + $0x1034] sm:$0xf] }
 0x2b0   : > { %6194 = vmatpush.bf16.msrb.mxu0 %v8721_v46  ;;  %v9073_v46 = vor.u32 %v10568_v19, %v9070_v45  ;;  %v9038_v45 = vld [vmem:[%s11078_s29 + $0x10b8] sm:$0xf0] }
 0x2b1   : > { %6208 = vmatpush.bf16.msrb.mxu1 %v8785_v54  ;;  %v9137_v54 = vor.u32 %v10584_v38, %v9134_v10  ;;  %v10576_v38 = vld [vmem:[%s11078_s29 + $0x1134] sm:$0xf]  ;;  %v9041_v25 = vor.u32 %v10560_v33, %v9038_v45  ;;  %v9390_v33 = vld [vmem:[%s11078_s29 + $0x1378] sm:$0xf0] }
 0x2b2   : > { %6222 = vmatpush.bf16.msrb.mxu2 %v8849_v51  ;;  %v10550_v51 = vld [vmem:[%s11078_s29 + $0x1064] sm:$0xf]  ;;  %v10592_v10 = vld [vmem:[%s11078_s29 + $0x11b4] sm:$0xf] }
 0x2b3   : > { %6236 = vmatpush.bf16.msrb.mxu3 %v8913_v15  ;;  %v9062_v15 = vld [vmem:[%s11078_s29 + $0x10e8] sm:$0xf0]  ;;  %v9001_v16 = vor.u32 %v10550_v51, %v8998_v17 }
 0x2b4   : > { %6195 = vmatpush.bf16.msrb.mxu0 %v8713_v0  ;;  %v9065_v53 = vor.u32 %v10566_v7, %v9062_v15  ;;  %v13504_v0 = vld [vmem:[#allocation20_spill] sm:$0xff]  ;;  %v9030_v17 = vld [vmem:[%s11078_s29 + $0x10a8] sm:$0xf0] }
 0x2b5   : > { %6209 = vmatpush.bf16.msrb.mxu1 %v8777_v44  ;;  %v9054_v44 = vld [vmem:[%s11078_s29 + $0x10d8] sm:$0xf0]  ;;  %v10574_v7 = vld [vmem:[%s11078_s29 + $0x1124] sm:$0xf] }
 0x2b6   : > { %6223 = vmatpush.bf16.msrb.mxu2 %v8841_v39  ;;  %v10580_v39 = vld [vmem:[%s11078_s29 + $0x1154] sm:$0xf]  ;;  %v9057_v12 = vor.u32 %v10564_v27, %v9054_v44 }
 0x2b7   : > { %6237 = vmatpush.bf16.msrb.mxu3 %v8905_v60  ;;  %v10596_v60 = vld [vmem:[%s11078_s29 + $0x11d4] sm:$0xf]  ;;  %v9121_v30 = vor.u32 %v10580_v39, %v9118_v31  ;;  %v9161_v39 = vor.u32 %v10590_v23, %v9158_v4  ;;  %v9022_v31 = vld [vmem:[%s11078_s29 + $0x1098] sm:$0xf0] }
 0x2b8   : > { %6196 = vmatpush.bf16.msrb.mxu0 %v8705_v57  ;;  %v8982_v57 = vld [vmem:[%s11078_s29 + $0x1048] sm:$0xf0]  ;;  %v9185_v63 = vor.u32 %v10596_v60, %v9182_v62  ;;  %v10556_v44 = vld [vmem:[%s11078_s29 + $0x1094] sm:$0xf]  ;;  %v9150_v62 = vld [vmem:[%s11078_s29 + $0x1198] sm:$0xf0] }
 0x2b9   : > { %6210 = vmatpush.bf16.msrb.mxu1 %v8769_v34  ;;  %v9046_v34 = vld [vmem:[%s11078_s29 + $0x10c8] sm:$0xf0]  ;;  %v8985_v21 = vor.u32 %v10546_v41, %v8982_v57  ;;  %v10588_v60 = vld [vmem:[%s11078_s29 + $0x1194] sm:$0xf]  ;;  %v10554_v57 = vld [vmem:[%s11078_s29 + $0x1084] sm:$0xf] }
 0x2ba   : > { %6224 = vmatpush.bf16.msrb.mxu2 %v8833_v36  ;;  %v10578_v36 = vld [vmem:[%s11078_s29 + $0x1144] sm:$0xf]  ;;  %v9049_v52 = vor.u32 %v10562_v61, %v9046_v34  ;;  %v9014_v61 = vld [vmem:[%s11078_s29 + $0x1088] sm:$0xf0]  ;;  %v9153_v34 = vor.u32 %v10588_v60, %v9150_v62  ;;  %v10612_v23 = vld [vmem:[%s11078_s29 + $0x1254] sm:$0xf] }
 0x2bb   : > { %6238 = vmatpush.bf16.msrb.mxu3 %v8897_v8  ;;  %v9174_v8 = vld [vmem:[%s11078_s29 + $0x11c8] sm:$0xf0]  ;;  %v9113_v56 = vor.u32 %v10578_v36, %v9110_v40  ;;  %v9246_v4 = vld [vmem:[%s11078_s29 + $0x1258] sm:$0xf0]  ;;  %v10610_v62 = vld [vmem:[%s11078_s29 + $0x1244] sm:$0xf] }
 0x2bc   : > { %6197 = vmatpush.bf16.msrb.mxu0 %v8697_v9  ;;  %v5975_v11 = vpop.f32.mrf.mxu0  ;;  %v9177_v19 = vor.u32 %v10594_v13, %v9174_v8  ;;  %v9078_v40 = vld [vmem:[%s11078_s29 + $0x1108] sm:$0xf0] }
 0x2bd   : > { %6211 = vmatpush.bf16.msrb.mxu1 %v8761_v1  ;;  %v5976_v22 = vadd.f32 %v5975_v11, %v13089_v55  ;;  %v5989_v5 = vpop.f32.mrf.mxu1  ;;  %v9102_v55 = vld [vmem:[%s11078_s29 + $0x1138] sm:$0xf0]  ;;  %v10586_v11 = vld [vmem:[%s11078_s29 + $0x1184] sm:$0xf]  ;;  %v9142_v13 = vld [vmem:[%s11078_s29 + $0x1188] sm:$0xf0] }
 0x2be   : > { %6225 = vmatpush.bf16.msrb.mxu2 %v8825_v20  ;;  %v9166_v1 = vld [vmem:[%s11078_s29 + $0x11b8] sm:$0xf0]  ;;  %v8977_v20 = vor.u32 %v10544_v37, %v8974_v32  ;;  %v9105_v50 = vor.u32 %v10576_v38, %v9102_v55  ;;  %v10648_v32 = vld [vmem:[%s11078_s29 + $0x1374] sm:$0xf] }
 0x2bf   : > { %6239 = vmatpush.bf16.msrb.mxu3 %v8889_v29  ;;  %6198 = vmatmul.bf16.vlgmr.msrb.gmra.mxu0 %v13504_v0  ;;  %v5990_v9 = vadd.f32 %v5989_v5, %v5976_v22  ;;  %v10542_v29 = vld [vmem:[%s11078_s29 + $0x1024] sm:$0xf]  ;;  %v10540_v0 = vld [vmem:[%s11078_s29 + $0x1014] sm:$0xf]  ;;  %v9262_v5 = vld [vmem:[%s11078_s29 + $0x1278] sm:$0xf0] }
 0x2c0   : > { %6246 = vmatpush.bf16.msra.mxu0 %v9009_v58  ;;  %6212 = vmatmul.bf16.vlgmr.msrb.gmra.mxu1 %v13506_v35  ;;  %v8966_v58 = vld [vmem:[%s11078_s29 + $0x1028] sm:$0xf0]  ;;  %v9086_v35 = vld [vmem:[%s11078_s29 + $0x1118] sm:$0xf0]  ;;  %v10664_v38 = vld [vmem:[%s11078_s29 + $0x13f4] sm:$0xf] }
 0x2c1   : > { %6260 = vmatpush.bf16.msra.mxu1 %v9073_v46  ;;  %6226 = vmatmul.bf16.vlgmr.msrb.gmra.mxu2 %v13505_v18  ;;  %v10558_v46 = vld [vmem:[%s11078_s29 + $0x10a4] sm:$0xf]  ;;  %v10572_v18 = vld [vmem:[%s11078_s29 + $0x1114] sm:$0xf]  ;;  %v9326_v37 = vld [vmem:[%s11078_s29 + $0x12f8] sm:$0xf0] }
 0x2c2   : > { %6274 = vmatpush.bf16.msra.mxu2 %v9137_v54  ;;  %6240 = vmatmul.bf16.vlgmr.msrb.gmra.mxu3 %v13507_v49  ;;  %v9169_v54 = vor.u32 %v10592_v10, %v9166_v1  ;;  %v9033_v42 = vor.u32 %v10558_v46, %v9030_v17  ;;  %v9089_v41 = vor.u32 %v10572_v18, %v9086_v35  ;;  %v9454_v55 = vld [vmem:[%s11078_s29 + $0x13f8] sm:$0xf0]  ;;  %v9382_v17 = vld [vmem:[%s11078_s29 + $0x1368] sm:$0xf0] }
 0x2c3   : > { %6288 = vmatpush.bf16.msra.mxu3 %v9201_v2  ;;  %v9094_v2 = vld [vmem:[%s11078_s29 + $0x1128] sm:$0xf0]  ;;  %v9145_v10 = vor.u32 %v10586_v11, %v9142_v13  ;;  %v9457_v46 = vor.u32 %v10664_v38, %v9454_v55  ;;  %v9249_v18 = vor.u32 %v10612_v23, %v9246_v4  ;;  %v10604_v23 = vld [vmem:[%s11078_s29 + $0x1214] sm:$0xf]  ;;  %v9214_v4 = vld [vmem:[%s11078_s29 + $0x1218] sm:$0xf0] }
 0x2c4   : > { %6247 = vmatpush.bf16.msra.mxu0 %v9001_v16  ;;  %v6003_v51 = vpop.f32.mrf.mxu2  ;;  %v5977_v43 = vpop.f32.mrf.mxu0  ;;  %v9097_v27 = vor.u32 %v10574_v7, %v9094_v2  ;;  %v10662_v7 = vld [vmem:[%s11078_s29 + $0x13e4] sm:$0xf]  ;;  %v9446_v2 = vld [vmem:[%s11078_s29 + $0x13e8] sm:$0xf0] }
 0x2c5   : > { %6261 = vmatpush.bf16.msra.mxu1 %v9065_v53  ;;  %v6004_v15 = vadd.f32 %v6003_v51, %v5990_v9  ;;  %v6017_v3 = vpop.f32.mrf.mxu3  ;;  %v5978_v16 = vadd.f32 %v5977_v43, %v13113_v48  ;;  %v8969_v53 = vor.u32 %v10542_v29, %v8966_v58  ;;  %v9017_v9 = vor.u32 %v10554_v57, %v9014_v61  ;;  %v9254_v29 = vld [vmem:[%s11078_s29 + $0x1268] sm:$0xf0]  ;;  %v10630_v58 = vld [vmem:[%s11078_s29 + $0x12e4] sm:$0xf] }
 0x2c6   : > { %6275 = vmatpush.bf16.msra.mxu2 %v9129_v59  ;;  %v5991_v59 = vpop.f32.mrf.mxu1  ;;  %v10646_v51 = vld [vmem:[%s11078_s29 + $0x1364] sm:$0xf]  ;;  %v9366_v57 = vld [vmem:[%s11078_s29 + $0x1348] sm:$0xf0] }
 0x2c7   : > { %6289 = vmatpush.bf16.msra.mxu3 %v9193_v24  ;;  %v13163_v26 = vadd.f32 %v6017_v3, %v6004_v15  ;;  %v8958_v24 = vld [vmem:[%s11078_s29 + $0x1018] sm:$0xf0]  ;;  %v5992_v48 = vadd.f32 %v5991_v59, %v5978_v16  ;;  %v9385_v3 = vor.u32 %v10646_v51, %v9382_v17  ;;  %v10628_v16 = vld [vmem:[%s11078_s29 + $0x12d4] sm:$0xf]  ;;  %v9449_v59 = vor.u32 %v10662_v7, %v9446_v2  ;;  %v10654_v17 = vld [vmem:[%s11078_s29 + $0x13a4] sm:$0xf] }
 0x2c8   : > { %6248 = vmatpush.bf16.msra.mxu0 %v8993_v47  ;;  %v8961_v49 = vor.u32 %v10540_v0, %v8958_v24  ;;  %v10538_v47 = vld [vmem:[%s11078_s29 + $0x1004] sm:$0xf]  ;;  %v9374_v0 = vld [vmem:[%s11078_s29 + $0x1358] sm:$0xf0]  ;;  %v13509_v24 = vld [vmem:[#allocation25_spill] sm:$0xff] }
 0x2c9   : > { %6262 = vmatpush.bf16.msra.mxu1 %v9057_v12  ;;  %v8950_v12 = vld [vmem:[%s11078_s29 + $0x1008] sm:$0xf0] }
 0x2ca   : > { %6276 = vmatpush.bf16.msra.mxu2 %v9121_v30  ;;  %v9025_v30 = vor.u32 %v10556_v44, %v9022_v31  ;;  %v13510_v44 = vld [vmem:[#allocation26_spill] sm:$0xff]  ;;  %v13511_v31 = vld [vmem:[#allocation27_spill] sm:$0xff]  ;;  %v9414_v7 = vld [vmem:[%s11078_s29 + $0x13a8] sm:$0xf0] }
 0x2cb   : > { %6290 = vmatpush.bf16.msra.mxu3 %v9185_v63  ;;  %v10570_v63 = vld [vmem:[%s11078_s29 + $0x1104] sm:$0xf] }
 0x2cc   : > { %6249 = vmatpush.bf16.msra.mxu0 %v8985_v21  ;;  %v6005_v36 = vpop.f32.mrf.mxu2  ;;  %v10616_v21 = vld [vmem:[%s11078_s29 + $0x1274] sm:$0xf]  ;;  %v9081_v45 = vor.u32 %v10570_v63, %v9078_v40  ;;  %v10658_v63 = vld [vmem:[%s11078_s29 + $0x13c4] sm:$0xf] }
 0x2cd   : > { %6263 = vmatpush.bf16.msra.mxu1 %v9049_v52  ;;  %v6006_v8 = vadd.f32 %v6005_v36, %v5992_v48  ;;  %v6019_v22 = vpop.f32.mrf.mxu3  ;;  %v10632_v52 = vld [vmem:[%s11078_s29 + $0x12f4] sm:$0xf]  ;;  %v9265_v1 = vor.u32 %v10616_v21, %v9262_v5  ;;  %v9438_v48 = vld [vmem:[%s11078_s29 + $0x13d8] sm:$0xf0] }
 0x2ce   : > { %6277 = vmatpush.bf16.msra.mxu2 %v9113_v56  ;;  %v8953_v56 = vor.u32 %v10538_v47, %v8950_v12  ;;  %v10626_v47 = vld [vmem:[%s11078_s29 + $0x12c4] sm:$0xf]  ;;  %v9230_v21 = vld [vmem:[%s11078_s29 + $0x1238] sm:$0xf0]  ;;  %v10624_v5 = vld [vmem:[%s11078_s29 + $0x12b4] sm:$0xf] }
 0x2cf   : > { %6291 = vmatpush.bf16.msra.mxu3 %v9177_v19  ;;  %v13187_v19 = vadd.f32 %v6019_v22, %v6006_v8  ;;  %v10608_v22 = vld [vmem:[%s11078_s29 + $0x1234] sm:$0xf] }
 0x2d0   : > { %6250 = vmatpush.bf16.msra.mxu0 %v8977_v20  ;;  %v9329_v20 = vor.u32 %v10632_v52, %v9326_v37  ;;  %v9294_v37 = vld [vmem:[%s11078_s29 + $0x12b8] sm:$0xf0] }
 0x2d1   : > { %6264 = vmatpush.bf16.msra.mxu1 %v9041_v25  ;;  %v9393_v25 = vor.u32 %v10648_v32, %v9390_v33  ;;  %v10640_v32 = vld [vmem:[%s11078_s29 + $0x1334] sm:$0xf]  ;;  %v9297_v38 = vor.u32 %v10624_v5, %v9294_v37  ;;  %v10678_v37 = vld [vmem:[%s11078_s29 + $0x1464] sm:$0xf] }
 0x2d2   : > { %6278 = vmatpush.bf16.msra.mxu2 %v9105_v50  ;;  %v10614_v50 = vld [vmem:[%s11078_s29 + $0x1264] sm:$0xf]  ;;  %v10656_v33 = vld [vmem:[%s11078_s29 + $0x13b4] sm:$0xf] }
 0x2d3   : > { %6292 = vmatpush.bf16.msra.mxu3 %v9169_v54  ;;  %v9318_v54 = vld [vmem:[%s11078_s29 + $0x12e8] sm:$0xf0]  ;;  %v9257_v15 = vor.u32 %v10614_v50, %v9254_v29 }
 0x2d4   : > { %6251 = vmatpush.bf16.msra.mxu0 %v8969_v53  ;;  %v9321_v43 = vor.u32 %v10630_v58, %v9318_v54  ;;  %v13508_v53 = vld [vmem:[#allocation24_spill] sm:$0xff]  ;;  %v9286_v29 = vld [vmem:[%s11078_s29 + $0x12a8] sm:$0xf0] }
 0x2d5   : > { %6265 = vmatpush.bf16.msra.mxu1 %v9033_v42  ;;  %v9310_v42 = vld [vmem:[%s11078_s29 + $0x12d8] sm:$0xf0]  ;;  %v10638_v58 = vld [vmem:[%s11078_s29 + $0x1324] sm:$0xf] }
 0x2d6   : > { %6279 = vmatpush.bf16.msra.mxu2 %v9097_v27  ;;  %v10644_v27 = vld [vmem:[%s11078_s29 + $0x1354] sm:$0xf]  ;;  %v9313_v35 = vor.u32 %v10628_v16, %v9310_v42 }
 0x2d7   : > { %6293 = vmatpush.bf16.msra.mxu3 %v9161_v39  ;;  %v10660_v39 = vld [vmem:[%s11078_s29 + $0x13d4] sm:$0xf]  ;;  %v9377_v60 = vor.u32 %v10644_v27, %v9374_v0  ;;  %v9342_v27 = vld [vmem:[%s11078_s29 + $0x1318] sm:$0xf0] }
 0x2d8   : > { %6252 = vmatpush.bf16.msra.mxu0 %v8961_v49  ;;  %v9238_v49 = vld [vmem:[%s11078_s29 + $0x1248] sm:$0xf0]  ;;  %v9441_v12 = vor.u32 %v10660_v39, %v9438_v48  ;;  %v10620_v16 = vld [vmem:[%s11078_s29 + $0x1294] sm:$0xf]  ;;  %v10602_v39 = vld [vmem:[%s11078_s29 + $0x1204] sm:$0xf] }
 0x2d9   : > { %6266 = vmatpush.bf16.msra.mxu1 %v9025_v30  ;;  %v9302_v30 = vld [vmem:[%s11078_s29 + $0x12c8] sm:$0xf0]  ;;  %v9241_v40 = vor.u32 %v10610_v62, %v9238_v49  ;;  %v10636_v42 = vld [vmem:[%s11078_s29 + $0x1314] sm:$0xf]  ;;  %v10634_v62 = vld [vmem:[%s11078_s29 + $0x1304] sm:$0xf] }
 0x2da   : > { %6280 = vmatpush.bf16.msra.mxu2 %v9089_v41  ;;  %v10642_v41 = vld [vmem:[%s11078_s29 + $0x1344] sm:$0xf]  ;;  %v9305_v13 = vor.u32 %v10626_v47, %v9302_v30  ;;  %v10652_v0 = vld [vmem:[%s11078_s29 + $0x1394] sm:$0xf]  ;;  %v9206_v48 = vld [vmem:[%s11078_s29 + $0x1208] sm:$0xf0] }
 0x2db   : > { %6294 = vmatpush.bf16.msra.mxu3 %v9153_v34  ;;  %v9430_v34 = vld [vmem:[%s11078_s29 + $0x13c8] sm:$0xf0]  ;;  %v9369_v8 = vor.u32 %v10642_v41, %v9366_v57  ;;  %v10680_v41 = vld [vmem:[%s11078_s29 + $0x1474] sm:$0xf]  ;;  %v9518_v57 = vld [vmem:[%s11078_s29 + $0x1478] sm:$0xf0] }
 0x2dc   : > { %6253 = vmatpush.bf16.msra.mxu0 %v8953_v56  ;;  %v6031_v61 = vpop.f32.mrf.mxu0  ;;  %v9433_v52 = vor.u32 %v10658_v63, %v9430_v34  ;;  %v9334_v47 = vld [vmem:[%s11078_s29 + $0x1308] sm:$0xf0]  ;;  %v9209_v63 = vor.u32 %v10602_v39, %v9206_v48  ;;  %v9582_v34 = vld [vmem:[%s11078_s29 + $0x14f8] sm:$0xf0]  ;;  %v9521_v5 = vor.u32 %v10680_v41, %v9518_v57  ;;  %v10706_v39 = vld [vmem:[%s11078_s29 + $0x1544] sm:$0xf] }
 0x2dd   : > { %6267 = vmatpush.bf16.msra.mxu1 %v9017_v9  ;;  %v6032_v36 = vadd.f32 %v6031_v61, %v13163_v26  ;;  %v6045_v11 = vpop.f32.mrf.mxu1  ;;  %v9358_v26 = vld [vmem:[%s11078_s29 + $0x1338] sm:$0xf0]  ;;  %v9398_v30 = vld [vmem:[%s11078_s29 + $0x1388] sm:$0xf0]  ;;  %v10696_v61 = vld [vmem:[%s11078_s29 + $0x14f4] sm:$0xf] }
 0x2de   : > { %6281 = vmatpush.bf16.msra.mxu2 %v9081_v45  ;;  %v9422_v9 = vld [vmem:[%s11078_s29 + $0x13b8] sm:$0xf0]  ;;  %v9233_v45 = vor.u32 %v10608_v22, %v9230_v21  ;;  %v9361_v55 = vor.u32 %v10640_v32, %v9358_v26  ;;  %v9510_v32 = vld [vmem:[%s11078_s29 + $0x1468] sm:$0xf0]  ;;  %v10694_v26 = vld [vmem:[%s11078_s29 + $0x14e4] sm:$0xf] }
 0x2df   : > { %6295 = vmatpush.bf16.msra.mxu3 %v9145_v10  ;;  %6254 = vmatmul.bf16.vlgmr.msra.gmra.mxu0 %v13508_v53  ;;  %v6046_v56 = vadd.f32 %v6045_v11, %v6032_v36  ;;  %v10606_v10 = vld [vmem:[%s11078_s29 + $0x1224] sm:$0xf]  ;;  %v9417_v53 = vor.u32 %v10654_v17, %v9414_v7  ;;  %v10712_v36 = vld [vmem:[%s11078_s29 + $0x1574] sm:$0xf]  ;;  %v9710_v22 = vld [vmem:[%s11078_s29 + $0x15f8] sm:$0xf0] }
 0x2e0   : > { %6302 = vmatpush.bf16.msrb.mxu0 %v9265_v1  ;;  %6268 = vmatmul.bf16.vlgmr.msra.gmra.mxu1 %v13510_v44  ;;  %v9222_v1 = vld [vmem:[%s11078_s29 + $0x1228] sm:$0xf0]  ;;  %v9217_v44 = vor.u32 %v10604_v23, %v9214_v4  ;;  %v10708_v17 = vld [vmem:[%s11078_s29 + $0x1554] sm:$0xf]  ;;  %v9630_v7 = vld [vmem:[%s11078_s29 + $0x1558] sm:$0xf0] }
 0x2e1   : > { %6316 = vmatpush.bf16.msrb.mxu1 %v9329_v20  ;;  %6282 = vmatmul.bf16.vlgmr.msra.gmra.mxu2 %v13509_v24  ;;  %v10622_v20 = vld [vmem:[%s11078_s29 + $0x12a4] sm:$0xf]  ;;  %v9225_v2 = vor.u32 %v10606_v10, %v9222_v1  ;;  %v9406_v24 = vld [vmem:[%s11078_s29 + $0x1398] sm:$0xf0]  ;;  %v9702_v10 = vld [vmem:[%s11078_s29 + $0x15e8] sm:$0xf0]  ;;  %v9513_v1 = vor.u32 %v10678_v37, %v9510_v32 }
 0x2e2   : > { %6330 = vmatpush.bf16.msrb.mxu2 %v9393_v25  ;;  %6296 = vmatmul.bf16.vlgmr.msra.gmra.mxu3 %v13511_v31  ;;  %v9425_v25 = vor.u32 %v10656_v33, %v9422_v9  ;;  %v9409_v49 = vor.u32 %v10652_v0, %v9406_v24  ;;  %v9574_v9 = vld [vmem:[%s11078_s29 + $0x14e8] sm:$0xf0]  ;;  %v9694_v23 = vld [vmem:[%s11078_s29 + $0x15d8] sm:$0xf0]  ;;  %v10690_v0 = vld [vmem:[%s11078_s29 + $0x14c4] sm:$0xf] }
 0x2e3   : > { %6344 = vmatpush.bf16.msrb.mxu3 %v9457_v46  ;;  %v9350_v46 = vld [vmem:[%s11078_s29 + $0x1328] sm:$0xf0]  ;;  %v13515_v4 = vld [vmem:[#allocation31_spill] sm:$0xff]  ;;  %v10704_v57 = vld [vmem:[%s11078_s29 + $0x1534] sm:$0xf] }
 0x2e4   : > { %6303 = vmatpush.bf16.msrb.mxu0 %v9257_v15  ;;  %v6059_v50 = vpop.f32.mrf.mxu2  ;;  %v9622_v48 = vld [vmem:[%s11078_s29 + $0x1548] sm:$0xf0]  ;;  %v9550_v41 = vld [vmem:[%s11078_s29 + $0x14b8] sm:$0xf0]  ;;  %v10718_v37 = vld [vmem:[%s11078_s29 + $0x15a4] sm:$0xf] }
 0x2e5   : > { %6317 = vmatpush.bf16.msrb.mxu1 %v9321_v43  ;;  %v6060_v54 = vadd.f32 %v6059_v50, %v6046_v56  ;;  %v6073_v51 = vpop.f32.mrf.mxu3  ;;  %v9289_v43 = vor.u32 %v10622_v20, %v9286_v29  ;;  %v9577_v20 = vor.u32 %v10694_v26, %v9574_v9  ;;  %v10676_v50 = vld [vmem:[%s11078_s29 + $0x1454] sm:$0xf]  ;;  %v9502_v29 = vld [vmem:[%s11078_s29 + $0x1458] sm:$0xf0]  ;;  %v9670_v32 = vld [vmem:[%s11078_s29 + $0x15a8] sm:$0xf0] }
 0x2e6   : > { %6331 = vmatpush.bf16.msrb.mxu2 %v9385_v3  ;;  %v9353_v3 = vor.u32 %v10638_v58, %v9350_v46  ;;  %v10692_v58 = vld [vmem:[%s11078_s29 + $0x14d4] sm:$0xf]  ;;  %v13512_v46 = vld [vmem:[#allocation28_spill] sm:$0xff] }
 0x2e7   : > { %6345 = vmatpush.bf16.msrb.mxu3 %v9449_v59  ;;  %v13236_v15 = vadd.f32 %v6073_v51, %v6060_v54  ;;  %v9278_v59 = vld [vmem:[%s11078_s29 + $0x1298] sm:$0xf0] }
 0x2e8   : > { %6304 = vmatpush.bf16.msrb.mxu0 %v9249_v18  ;;  %v9281_v31 = vor.u32 %v10620_v16, %v9278_v59  ;;  %v9345_v18 = vor.u32 %v10636_v42, %v9342_v27  ;;  %v9566_v51 = vld [vmem:[%s11078_s29 + $0x14d8] sm:$0xf0]  ;;  %v9505_v16 = vor.u32 %v10676_v50, %v9502_v29  ;;  %v9633_v59 = vor.u32 %v10708_v17, %v9630_v7  ;;  %v10674_v42 = vld [vmem:[%s11078_s29 + $0x1444] sm:$0xf]  ;;  %v9494_v27 = vld [vmem:[%s11078_s29 + $0x1448] sm:$0xf0] }
 0x2e9   : > { %6318 = vmatpush.bf16.msrb.mxu1 %v9313_v35  ;;  %v10618_v35 = vld [vmem:[%s11078_s29 + $0x1284] sm:$0xf]  ;;  %v10716_v50 = vld [vmem:[%s11078_s29 + $0x1594] sm:$0xf]  ;;  %v9662_v29 = vld [vmem:[%s11078_s29 + $0x1598] sm:$0xf0] }
 0x2ea   : > { %6332 = vmatpush.bf16.msrb.mxu2 %v9377_v60  ;;  %v9270_v60 = vld [vmem:[%s11078_s29 + $0x1288] sm:$0xf0]  ;;  %v10682_v7 = vld [vmem:[%s11078_s29 + $0x1484] sm:$0xf] }
 0x2eb   : > { %6346 = vmatpush.bf16.msrb.mxu3 %v9441_v12  ;;  %v10650_v12 = vld [vmem:[%s11078_s29 + $0x1384] sm:$0xf]  ;;  %v9273_v11 = vor.u32 %v10618_v35, %v9270_v60  ;;  %v9497_v35 = vor.u32 %v10674_v42, %v9494_v27  ;;  %v10760_v42 = vld [vmem:[%s11078_s29 + $0x16f4] sm:$0xf] }
 0x2ec   : > { %6305 = vmatpush.bf16.msrb.mxu0 %v9241_v40  ;;  %v9646_v40 = vld [vmem:[%s11078_s29 + $0x1578] sm:$0xf0]  ;;  %v9401_v21 = vor.u32 %v10650_v12, %v9398_v30  ;;  %v10688_v12 = vld [vmem:[%s11078_s29 + $0x14b4] sm:$0xf] }
 0x2ed   : > { %6319 = vmatpush.bf16.msrb.mxu1 %v9305_v13  ;;  %v9337_v13 = vor.u32 %v10634_v62, %v9334_v47  ;;  %v9649_v56 = vor.u32 %v10712_v36, %v9646_v40  ;;  %v9625_v62 = vor.u32 %v10706_v39, %v9622_v48  ;;  %v9486_v47 = vld [vmem:[%s11078_s29 + $0x1438] sm:$0xf0]  ;;  %v9553_v40 = vor.u32 %v10688_v12, %v9550_v41  ;;  %v9766_v12 = vld [vmem:[%s11078_s29 + $0x1668] sm:$0xf0] }
 0x2ee   : > { %6333 = vmatpush.bf16.msrb.mxu2 %v9369_v8  ;;  %v10728_v8 = vld [vmem:[%s11078_s29 + $0x15f4] sm:$0xf] }
 0x2ef   : > { %6347 = vmatpush.bf16.msrb.mxu3 %v9433_v52  ;;  %v9585_v52 = vor.u32 %v10696_v61, %v9582_v34  ;;  %v9713_v33 = vor.u32 %v10728_v8, %v9710_v22  ;;  %v9614_v61 = vld [vmem:[%s11078_s29 + $0x1538] sm:$0xf0]  ;;  %v9478_v8 = vld [vmem:[%s11078_s29 + $0x1428] sm:$0xf0]  ;;  %v10686_v22 = vld [vmem:[%s11078_s29 + $0x14a4] sm:$0xf] }
 0x2f0   : > { %6306 = vmatpush.bf16.msrb.mxu0 %v9233_v45  ;;  %v10710_v45 = vld [vmem:[%s11078_s29 + $0x1564] sm:$0xf]  ;;  %v9678_v34 = vld [vmem:[%s11078_s29 + $0x15b8] sm:$0xf0] }
 0x2f1   : > { %6320 = vmatpush.bf16.msrb.mxu1 %v9297_v38  ;;  %v9638_v38 = vld [vmem:[%s11078_s29 + $0x1568] sm:$0xf0] }
 0x2f2   : > { %6334 = vmatpush.bf16.msrb.mxu2 %v9361_v55  ;;  %v10726_v55 = vld [vmem:[%s11078_s29 + $0x15e4] sm:$0xf] }
 0x2f3   : > { %6348 = vmatpush.bf16.msrb.mxu3 %v9425_v25  ;;  %v9641_v25 = vor.u32 %v10710_v45, %v9638_v38  ;;  %v9705_v54 = vor.u32 %v10726_v55, %v9702_v10  ;;  %v10668_v45 = vld [vmem:[%s11078_s29 + $0x1414] sm:$0xf]  ;;  %v9470_v38 = vld [vmem:[%s11078_s29 + $0x1418] sm:$0xf0]  ;;  %v9673_v10 = vor.u32 %v10718_v37, %v9670_v32 }
 0x2f4   : > { %6307 = vmatpush.bf16.msrb.mxu0 %v9225_v2  ;;  %v13513_v2 = vld [vmem:[#allocation29_spill] sm:$0xff]  ;;  %v10684_v55 = vld [vmem:[%s11078_s29 + $0x1494] sm:$0xf]  ;;  %v9886_v32 = vld [vmem:[%s11078_s29 + $0x1758] sm:$0xf0] }
 0x2f5   : > { %6321 = vmatpush.bf16.msrb.mxu1 %v9289_v43  ;;  %v13514_v43 = vld [vmem:[#allocation30_spill] sm:$0xff] }
 0x2f6   : > { %6335 = vmatpush.bf16.msrb.mxu2 %v9353_v3  ;;  %v10724_v3 = vld [vmem:[%s11078_s29 + $0x15d4] sm:$0xf] }
 0x2f7   : > { %6349 = vmatpush.bf16.msrb.mxu3 %v9417_v53  ;;  %v9569_v53 = vor.u32 %v10692_v58, %v9566_v51  ;;  %v9697_v24 = vor.u32 %v10724_v3, %v9694_v23  ;;  %v9473_v58 = vor.u32 %v10668_v45, %v9470_v38  ;;  %v9665_v3 = vor.u32 %v10716_v50, %v9662_v29  ;;  %v9590_v23 = vld [vmem:[%s11078_s29 + $0x1508] sm:$0xf0]  ;;  %v10772_v37 = vld [vmem:[%s11078_s29 + $0x1754] sm:$0xf]  ;;  %v9950_v45 = vld [vmem:[%s11078_s29 + $0x17d8] sm:$0xf0] }
 0x2f8   : > { %6308 = vmatpush.bf16.msrb.mxu0 %v9217_v44  ;;  %v9558_v44 = vld [vmem:[%s11078_s29 + $0x14c8] sm:$0xf0]  ;;  %v13519_v38 = vld [vmem:[#allocation35_spill] sm:$0xff]  ;;  %v10754_v50 = vld [vmem:[%s11078_s29 + $0x16c4] sm:$0xf] }
 0x2f9   : > { %6322 = vmatpush.bf16.msrb.mxu1 %v9281_v31  ;;  %v10722_v31 = vld [vmem:[%s11078_s29 + $0x15c4] sm:$0xf]  ;;  %v9561_v60 = vor.u32 %v10690_v0, %v9558_v44  ;;  %v9838_v0 = vld [vmem:[%s11078_s29 + $0x16f8] sm:$0xf0] }
 0x2fa   : > { %6336 = vmatpush.bf16.msrb.mxu2 %v9345_v18  ;;  %v9686_v18 = vld [vmem:[%s11078_s29 + $0x15c8] sm:$0xf0]  ;;  %v9902_v44 = vld [vmem:[%s11078_s29 + $0x1778] sm:$0xf0] }
 0x2fb   : > { %6350 = vmatpush.bf16.msrb.mxu3 %v9409_v49  ;;  %v10672_v49 = vld [vmem:[%s11078_s29 + $0x1434] sm:$0xf]  ;;  %v9689_v30 = vor.u32 %v10722_v31, %v9686_v18  ;;  %v9966_v18 = vld [vmem:[%s11078_s29 + $0x17f8] sm:$0xf0] }
 0x2fc   : > { %6309 = vmatpush.bf16.msrb.mxu0 %v9209_v63  ;;  %v10720_v63 = vld [vmem:[%s11078_s29 + $0x15b4] sm:$0xf]  ;;  %v9489_v36 = vor.u32 %v10672_v49, %v9486_v47  ;;  %v10742_v47 = vld [vmem:[%s11078_s29 + $0x1664] sm:$0xf] }
 0x2fd   : > { %6323 = vmatpush.bf16.msrb.mxu1 %v9273_v11  ;;  %v9617_v11 = vor.u32 %v10704_v57, %v9614_v61  ;;  %v10792_v31 = vld [vmem:[%s11078_s29 + $0x17f4] sm:$0xf]  ;;  %v9830_v57 = vld [vmem:[%s11078_s29 + $0x16e8] sm:$0xf0]  ;;  %v10774_v61 = vld [vmem:[%s11078_s29 + $0x1764] sm:$0xf] }
 0x2fe   : > { %6337 = vmatpush.bf16.msrb.mxu2 %v9337_v13  ;;  %v10670_v13 = vld [vmem:[%s11078_s29 + $0x1424] sm:$0xf]  ;;  %v9969_v41 = vor.u32 %v10792_v31, %v9966_v18  ;;  %v9734_v31 = vld [vmem:[%s11078_s29 + $0x1628] sm:$0xf0] }
 0x2ff   : > { %6351 = vmatpush.bf16.msrb.mxu3 %v9401_v21  ;;  %6310 = vmatmul.bf16.vlgmr.msrb.gmra.mxu0 %v13512_v46  ;;  %v9681_v21 = vor.u32 %v10720_v63, %v9678_v34  ;;  %v9481_v26 = vor.u32 %v10670_v13, %v9478_v8  ;;  %v10666_v46 = vld [vmem:[%s11078_s29 + $0x1404] sm:$0xf]  ;;  %v9894_v63 = vld [vmem:[%s11078_s29 + $0x1768] sm:$0xf0]  ;;  %v10740_v8 = vld [vmem:[%s11078_s29 + $0x1654] sm:$0xf] }
 0x300   : > { %6358 = vmatpush.bf16.msra.mxu0 %v9521_v5  ;;  %6324 = vmatmul.bf16.vlgmr.msrb.gmra.mxu1 %v13514_v43  ;;  %v9542_v5 = vld [vmem:[%s11078_s29 + $0x14a8] sm:$0xf0]  ;;  %v10698_v43 = vld [vmem:[%s11078_s29 + $0x1504] sm:$0xf]  ;;  %v9897_v13 = vor.u32 %v10774_v61, %v9894_v63  ;;  %v10732_v61 = vld [vmem:[%s11078_s29 + $0x1614] sm:$0xf] }
 0x301   : > { %6372 = vmatpush.bf16.msra.mxu1 %v9585_v52  ;;  %6338 = vmatmul.bf16.vlgmr.msrb.gmra.mxu2 %v13513_v2  ;;  %v10702_v52 = vld [vmem:[%s11078_s29 + $0x1524] sm:$0xf]  ;;  %v9526_v2 = vld [vmem:[%s11078_s29 + $0x1488] sm:$0xf0]  ;;  %v9593_v48 = vor.u32 %v10698_v43, %v9590_v23  ;;  %v9742_v23 = vld [vmem:[%s11078_s29 + $0x1638] sm:$0xf0] }
 0x302   : > { %6386 = vmatpush.bf16.msra.mxu2 %v9649_v56  ;;  %6352 = vmatmul.bf16.vlgmr.msrb.gmra.mxu3 %v13515_v4  ;;  %v9606_v56 = vld [vmem:[%s11078_s29 + $0x1528] sm:$0xf0]  ;;  %v10714_v4 = vld [vmem:[%s11078_s29 + $0x1584] sm:$0xf]  ;;  %v9529_v39 = vor.u32 %v10682_v7, %v9526_v2  ;;  %v9726_v63 = vld [vmem:[%s11078_s29 + $0x1618] sm:$0xf0] }
 0x303   : > { %6400 = vmatpush.bf16.msra.mxu3 %v9713_v33  ;;  %v9545_v33 = vor.u32 %v10686_v22, %v9542_v5  ;;  %v9609_v9 = vor.u32 %v10702_v52, %v9606_v56  ;;  %v10790_v34 = vld [vmem:[%s11078_s29 + $0x17e4] sm:$0xf]  ;;  %v9758_v22 = vld [vmem:[%s11078_s29 + $0x1658] sm:$0xf0] }
 0x304   : > { %6359 = vmatpush.bf16.msra.mxu0 %v9513_v1  ;;  %v9534_v1 = vld [vmem:[%s11078_s29 + $0x1498] sm:$0xf0]  ;;  %v13516_v5 = vld [vmem:[#allocation32_spill] sm:$0xff] }
 0x305   : > { %6373 = vmatpush.bf16.msra.mxu1 %v9577_v20  ;;  %v10700_v20 = vld [vmem:[%s11078_s29 + $0x1514] sm:$0xf]  ;;  %v9537_v51 = vor.u32 %v10684_v55, %v9534_v1  ;;  %v9822_v56 = vld [vmem:[%s11078_s29 + $0x16d8] sm:$0xf0]  ;;  %v9761_v55 = vor.u32 %v10740_v8, %v9758_v22  ;;  %v9889_v1 = vor.u32 %v10772_v37, %v9886_v32  ;;  %v10750_v18 = vld [vmem:[%s11078_s29 + $0x16a4] sm:$0xf] }
 0x306   : > { %6387 = vmatpush.bf16.msra.mxu2 %v9641_v25  ;;  %v9598_v25 = vld [vmem:[%s11078_s29 + $0x1518] sm:$0xf0]  ;;  %v10780_v8 = vld [vmem:[%s11078_s29 + $0x1794] sm:$0xf]  ;;  %v9718_v37 = vld [vmem:[%s11078_s29 + $0x1608] sm:$0xf0] }
 0x307   : > { %6401 = vmatpush.bf16.msra.mxu3 %v9705_v54  ;;  %v9462_v54 = vld [vmem:[%s11078_s29 + $0x1408] sm:$0xf0]  ;;  %v9601_v17 = vor.u32 %v10700_v20, %v9598_v25  ;;  %v10738_v20 = vld [vmem:[%s11078_s29 + $0x1644] sm:$0xf]  ;;  %v9918_v22 = vld [vmem:[%s11078_s29 + $0x1798] sm:$0xf0] }
 0x308   : > { %6360 = vmatpush.bf16.msra.mxu0 %v9505_v16  ;;  %v9654_v16 = vld [vmem:[%s11078_s29 + $0x1588] sm:$0xf0]  ;;  %v9465_v27 = vor.u32 %v10666_v46, %v9462_v54  ;;  %v10770_v46 = vld [vmem:[%s11078_s29 + $0x1744] sm:$0xf] }
 0x309   : > { %6374 = vmatpush.bf16.msra.mxu1 %v9569_v53  ;;  %v10744_v53 = vld [vmem:[%s11078_s29 + $0x1674] sm:$0xf]  ;;  %v9750_v25 = vld [vmem:[%s11078_s29 + $0x1648] sm:$0xf0]  ;;  %v10746_v32 = vld [vmem:[%s11078_s29 + $0x1684] sm:$0xf] }
 0x30a   : > { %6388 = vmatpush.bf16.msra.mxu2 %v9633_v59  ;;  %v9774_v59 = vld [vmem:[%s11078_s29 + $0x1678] sm:$0xf0]  ;;  %v9878_v54 = vld [vmem:[%s11078_s29 + $0x1748] sm:$0xf0]  ;;  %v9753_v7 = vor.u32 %v10738_v20, %v9750_v25 }
 0x30b   : > { %6402 = vmatpush.bf16.msra.mxu3 %v9697_v24  ;;  %v10776_v24 = vld [vmem:[%s11078_s29 + $0x1774] sm:$0xf]  ;;  %v9881_v43 = vor.u32 %v10770_v46, %v9878_v54  ;;  %v6047_v46 = vpop.f32.mrf.mxu1  ;;  %v6061_v54 = vpop.f32.mrf.mxu2 }
 0x30c   : > { %6361 = vmatpush.bf16.msra.mxu0 %v9497_v35  ;;  %v9657_v35 = vor.u32 %v10714_v4, %v9654_v16  ;;  %v9905_v49 = vor.u32 %v10776_v24, %v9902_v44  ;;  %v10752_v4 = vld [vmem:[%s11078_s29 + $0x16b4] sm:$0xf] }
 0x30d   : > { %6375 = vmatpush.bf16.msra.mxu1 %v9561_v60  ;;  %v9777_v60 = vor.u32 %v10744_v53, %v9774_v59  ;;  %v9806_v53 = vld [vmem:[%s11078_s29 + $0x16b8] sm:$0xf0]  ;;  %v10768_v59 = vld [vmem:[%s11078_s29 + $0x1734] sm:$0xf] }
 0x30e   : > { %6389 = vmatpush.bf16.msra.mxu2 %v9625_v62  ;;  %v9841_v62 = vor.u32 %v10760_v42, %v9838_v0  ;;  %v9870_v42 = vld [vmem:[%s11078_s29 + $0x1738] sm:$0xf0]  ;;  %v9809_v44 = vor.u32 %v10752_v4, %v9806_v53 }
 0x30f   : > { %6403 = vmatpush.bf16.msra.mxu3 %v9689_v30  ;;  %v10758_v30 = vld [vmem:[%s11078_s29 + $0x16e4] sm:$0xf]  ;;  %v9934_v0 = vld [vmem:[%s11078_s29 + $0x17b8] sm:$0xf0] }
 0x310   : > { %6362 = vmatpush.bf16.msra.mxu0 %v9489_v36  ;;  %v9958_v36 = vld [vmem:[%s11078_s29 + $0x17e8] sm:$0xf0] }
 0x311   : > { %6376 = vmatpush.bf16.msra.mxu1 %v9553_v40  ;;  %v9769_v40 = vor.u32 %v10742_v47, %v9766_v12  ;;  %v9961_v52 = vor.u32 %v10790_v34, %v9958_v36  ;;  %v10782_v47 = vld [vmem:[%s11078_s29 + $0x17a4] sm:$0xf]  ;;  %v9926_v12 = vld [vmem:[%s11078_s29 + $0x17a8] sm:$0xf0]  ;;  %v10748_v34 = vld [vmem:[%s11078_s29 + $0x1694] sm:$0xf] }
 0x312   : > { %6390 = vmatpush.bf16.msra.mxu2 %v9617_v11  ;;  %v9833_v11 = vor.u32 %v10758_v30, %v9830_v57  ;;  %v9929_v36 = vor.u32 %v10782_v47, %v9926_v12 }
 0x313   : > { %6404 = vmatpush.bf16.msra.mxu3 %v9681_v21  ;;  %v10756_v21 = vld [vmem:[%s11078_s29 + $0x16d4] sm:$0xf] }
 0x314   : > { %6363 = vmatpush.bf16.msra.mxu0 %v9481_v26  ;;  %v13517_v26 = vld [vmem:[#allocation33_spill] sm:$0xff] }
 0x315   : > { %6377 = vmatpush.bf16.msra.mxu1 %v9545_v33  ;;  %v13518_v33 = vld [vmem:[#allocation34_spill] sm:$0xff] }
 0x316   : > { %6391 = vmatpush.bf16.msra.mxu2 %v9609_v9  ;;  %v10788_v9 = vld [vmem:[%s11078_s29 + $0x17d4] sm:$0xf] }
 0x317   : > { %6405 = vmatpush.bf16.msra.mxu3 %v9673_v10  ;;  %v9825_v10 = vor.u32 %v10756_v21, %v9822_v56  ;;  %v9953_v29 = vor.u32 %v10788_v9, %v9950_v45  ;;  %v9729_v21 = vor.u32 %v10732_v61, %v9726_v63  ;;  %v10730_v56 = vld [vmem:[%s11078_s29 + $0x1604] sm:$0xf]  ;;  %v9846_v45 = vld [vmem:[%s11078_s29 + $0x1708] sm:$0xf0] }
 0x318   : > { %6364 = vmatpush.bf16.msra.mxu0 %v9473_v58  ;;  %v9814_v58 = vld [vmem:[%s11078_s29 + $0x16c8] sm:$0xf0]  ;;  %v10762_v9 = vld [vmem:[%s11078_s29 + $0x1704] sm:$0xf] }
 0x319   : > { %6378 = vmatpush.bf16.msra.mxu1 %v9537_v51  ;;  %v10786_v51 = vld [vmem:[%s11078_s29 + $0x17c4] sm:$0xf]  ;;  %v9817_v2 = vor.u32 %v10754_v50, %v9814_v58  ;;  %v9849_v20 = vor.u32 %v10762_v9, %v9846_v45  ;;  %v6033_v58 = vpop.f32.mrf.mxu0 }
 0x31a   : > { %6392 = vmatpush.bf16.msra.mxu2 %v9601_v17  ;;  %v9942_v17 = vld [vmem:[%s11078_s29 + $0x17c8] sm:$0xf0]  ;;  %v13520_v50 = vld [vmem:[#allocation36_spill] sm:$0xff] }
 0x31b   : > { %6406 = vmatpush.bf16.msra.mxu3 %v9665_v3  ;;  %v10736_v3 = vld [vmem:[%s11078_s29 + $0x1634] sm:$0xf]  ;;  %v9945_v16 = vor.u32 %v10786_v51, %v9942_v17  ;;  %v6075_v51 = vpop.f32.mrf.mxu3 }
 0x31c   : > { %6365 = vmatpush.bf16.msra.mxu0 %v9465_v27  ;;  %v10784_v27 = vld [vmem:[%s11078_s29 + $0x17b4] sm:$0xf]  ;;  %v9745_v24 = vor.u32 %v10736_v3, %v9742_v23 }
 0x31d   : > { %6379 = vmatpush.bf16.msra.mxu1 %v9529_v39  ;;  %v9873_v39 = vor.u32 %v10768_v59, %v9870_v42 }
 0x31e   : > { %6393 = vmatpush.bf16.msra.mxu2 %v9593_v48  ;;  %v10734_v48 = vld [vmem:[%s11078_s29 + $0x1624] sm:$0xf] }
 0x31f   : > { %6407 = vmatpush.bf16.msra.mxu3 %v9657_v35  ;;  %6366 = vmatmul.bf16.vlgmr.msra.gmra.mxu0 %v13516_v5  ;;  %v9937_v35 = vor.u32 %v10784_v27, %v9934_v0  ;;  %v9737_v30 = vor.u32 %v10734_v48, %v9734_v31  ;;  %v6034_v0 = vadd.f32 %v6033_v58, %v13187_v19 }
 0x320   : > { %6414 = vmatpush.bf16.msrb.mxu0 %v9777_v60  ;;  %6380 = vmatmul.bf16.vlgmr.msra.gmra.mxu1 %v13518_v33  ;;  %v9798_v60 = vld [vmem:[%s11078_s29 + $0x16a8] sm:$0xf0] }
 0x321   : > { %6428 = vmatpush.bf16.msrb.mxu1 %v9841_v62  ;;  %6394 = vmatmul.bf16.vlgmr.msra.gmra.mxu2 %v13517_v26  ;;  %v10766_v62 = vld [vmem:[%s11078_s29 + $0x1724] sm:$0xf]  ;;  %v9921_v26 = vor.u32 %v10780_v8, %v9918_v22  ;;  %v9782_v33 = vld [vmem:[%s11078_s29 + $0x1688] sm:$0xf0]  ;;  %v6087_v17 = vpop.f32.mrf.mxu0  ;;  %v6048_v48 = vadd.f32 %v6047_v46, %v6034_v0 }
 0x322   : > { %6442 = vmatpush.bf16.msrb.mxu2 %v9905_v49  ;;  %6408 = vmatmul.bf16.vlgmr.msra.gmra.mxu3 %v13519_v38  ;;  %v9862_v49 = vld [vmem:[%s11078_s29 + $0x1728] sm:$0xf0]  ;;  %v10778_v38 = vld [vmem:[%s11078_s29 + $0x1784] sm:$0xf] }
 0x323   : > { %6456 = vmatpush.bf16.msrb.mxu3 %v9969_v41  ;;  %v9801_v41 = vor.u32 %v10750_v18, %v9798_v60  ;;  %v9865_v57 = vor.u32 %v10766_v62, %v9862_v49  ;;  %v6062_v18 = vadd.f32 %v6061_v54, %v6048_v48  ;;  %v6088_v49 = vadd.f32 %v6087_v17, %v13236_v15 }
 0x324   : > { %6415 = vmatpush.bf16.msrb.mxu0 %v9769_v40  ;;  %v9790_v40 = vld [vmem:[%s11078_s29 + $0x1698] sm:$0xf0] }
 0x325   : > { %6429 = vmatpush.bf16.msrb.mxu1 %v9833_v11  ;;  %v10764_v11 = vld [vmem:[%s11078_s29 + $0x1714] sm:$0xf]  ;;  %v9793_v5 = vor.u32 %v10748_v34, %v9790_v40  ;;  %v6076_v60 = vadd.f32 %v6075_v51, %v6062_v18 }
 0x326   : > { %6443 = vmatpush.bf16.msrb.mxu2 %v9897_v13  ;;  %v9854_v13 = vld [vmem:[%s11078_s29 + $0x1718] sm:$0xf0] }
 0x327   : > { %6457 = vmatpush.bf16.msrb.mxu3 %v9961_v52  ;;  %v9857_v52 = vor.u32 %v10764_v11, %v9854_v13 }
 0x328   : > { %6416 = vmatpush.bf16.msrb.mxu0 %v9761_v55  ;;  %v9910_v55 = vld [vmem:[%s11078_s29 + $0x1788] sm:$0xf0] }
 0x329   : > { %6430 = vmatpush.bf16.msrb.mxu1 %v9825_v10  ;;  %v9721_v10 = vor.u32 %v10730_v56, %v9718_v37  ;;  %v9913_v25 = vor.u32 %v10778_v38, %v9910_v55  ;;  %v6089_v3 = vpop.f32.mrf.mxu0 }
 0x32a   : > { %6444 = vmatpush.bf16.msrb.mxu2 %v9889_v1  ;;  %v9785_v1 = vor.u32 %v10746_v32, %v9782_v33  ;;  %v6090_v47 = vadd.f32 %v6089_v3, %v6076_v60 }
 0x32b   : > { %6458 = vmatpush.bf16.msrb.mxu3 %v9953_v29  ;;  %v13521_v29 = vld [vmem:[#allocation37_spill] sm:$0xff] }
 0x32c   : > { %6417 = vmatpush.bf16.msrb.mxu0 %v9753_v7  ;;  %v6101_v7 = vpop.f32.mrf.mxu1 }
 0x32d   : > { %6431 = vmatpush.bf16.msrb.mxu1 %v9817_v2  ;;  %v6115_v2 = vpop.f32.mrf.mxu2 }
 0x32e   : > { %6445 = vmatpush.bf16.msrb.mxu2 %v9881_v43  ;;  %v6129_v43 = vpop.f32.mrf.mxu3 }
 0x32f   : > { %6459 = vmatpush.bf16.msrb.mxu3 %v9945_v16 }
 0x330   : > { %6418 = vmatpush.bf16.msrb.mxu0 %v9745_v24 }
 0x331   : > { %6432 = vmatpush.bf16.msrb.mxu1 %v9809_v44  ;;  %v6143_v53 = vpop.f32.mrf.mxu0 }
 0x332   : > { %6446 = vmatpush.bf16.msrb.mxu2 %v9873_v39 }
 0x333   : > { %6460 = vmatpush.bf16.msrb.mxu3 %v9937_v35 }
 0x334   : > { %6419 = vmatpush.bf16.msrb.mxu0 %v9737_v30  ;;  %v6103_v23 = vpop.f32.mrf.mxu1  ;;  %v6102_v30 = vadd.f32 %v6101_v7, %v6088_v49 }
 0x335   : > { %6433 = vmatpush.bf16.msrb.mxu1 %v9801_v41  ;;  %v6117_v4 = vpop.f32.mrf.mxu2 }
 0x336   : > { %6447 = vmatpush.bf16.msrb.mxu2 %v9865_v57  ;;  %v6131_v16 = vpop.f32.mrf.mxu3  ;;  %v6104_v57 = vadd.f32 %v6103_v23, %v6090_v47  ;;  %v6116_v61 = vadd.f32 %v6115_v2, %v6102_v30 }
 0x337   : > { %6461 = vmatpush.bf16.msrb.mxu3 %v9929_v36 }
 0x338   : > { %6420 = vmatpush.bf16.msrb.mxu0 %v9729_v21  ;;  %v6118_v63 = vadd.f32 %v6117_v4, %v6104_v57  ;;  %v6130_v40 = vadd.f32 %v6129_v43, %v6116_v61 }
 0x339   : > { %6434 = vmatpush.bf16.msrb.mxu1 %v9793_v5  ;;  %v6145_v42 = vpop.f32.mrf.mxu0 }
 0x33a   : > { %6448 = vmatpush.bf16.msrb.mxu2 %v9857_v52  ;;  %v6132_v11 = vadd.f32 %v6131_v16, %v6118_v63  ;;  %v6144_v13 = vadd.f32 %v6143_v53, %v6130_v40 }
 0x33b   : > { %6462 = vmatpush.bf16.msrb.mxu3 %v9921_v26 }
 0x33c   : > { %6421 = vmatpush.bf16.msrb.mxu0 %v9721_v10  ;;  %v6146_v22 = vadd.f32 %v6145_v42, %v6132_v11 }
 0x33d   : > { %6435 = vmatpush.bf16.msrb.mxu1 %v9785_v1  ;;  %v6171_v59 = vpop.f32.mrf.mxu2 }
 0x33e   : > { %6449 = vmatpush.bf16.msrb.mxu2 %v9849_v20 }
 0x33f   : > { %6463 = vmatpush.bf16.msrb.mxu3 %v9913_v25  ;;  %6422 = vmatmul.bf16.vlgmr.msrb.gmra.mxu0 %v12337_v6  ;;  %v6157_v6 = vpop.f32.mrf.mxu1 }
 0x340   : > { %6436 = vmatmul.bf16.vlgmr.msrb.gmra.mxu1 %v12344_v14  ;;  %v6185_v14 = vpop.f32.mrf.mxu3  ;;  %v6158_v21 = vadd.f32 %v6157_v6, %v6144_v13 }
 0x341   : > { %6450 = vmatmul.bf16.vlgmr.msrb.gmra.mxu2 %v13520_v50  ;;  %v6199_v39 = vpop.f32.mrf.mxu0 }
 0x342   : > { %6464 = vmatmul.bf16.vlgmr.msrb.gmra.mxu3 %v13521_v29  ;;  %v6172_v15 = vadd.f32 %v6171_v59, %v6158_v21 }
 0x344   : > { %v6186_v26 = vadd.f32 %v6185_v14, %v6172_v15 }
 0x345   : > { %v6173_v24 = vpop.f32.mrf.mxu2 }
 0x346   : > { %v6200_v45 = vadd.f32 %v6199_v39, %v6186_v26 }
 0x347   : > { %v6159_v27 = vpop.f32.mrf.mxu1 }
 0x348   : > { %v6187_v44 = vpop.f32.mrf.mxu3  ;;  %v6160_v52 = vadd.f32 %v6159_v27, %v6146_v22 }
 0x349   : > { %v6201_v12 = vpop.f32.mrf.mxu0 }
 0x34a   : > { %v6174_v37 = vadd.f32 %v6173_v24, %v6160_v52 }
 0x34c   : > { %v6188_v9 = vadd.f32 %v6187_v44, %v6174_v37 }
 0x34d   : > { %v6227_v35 = vpop.f32.mrf.mxu2 }
 0x34e   : > { %v6202_v38 = vadd.f32 %v6201_v12, %v6188_v9 }
 0x34f   : > { %v6213_v31 = vpop.f32.mrf.mxu1 }
 0x350   : > { %v6241_v62 = vpop.f32.mrf.mxu3  ;;  %v6214_v20 = vadd.f32 %v6213_v31, %v6200_v45 }
 0x352   : > { %v6228_v50 = vadd.f32 %v6227_v35, %v6214_v20 }
 0x354   : > { %v6242_v46 = vadd.f32 %v6241_v62, %v6228_v50 }
 0x355   : > { %v6229_v34 = vpop.f32.mrf.mxu2 }
 0x357   : > { %v6215_v41 = vpop.f32.mrf.mxu1 }
 0x358   : > { %v6243_v19 = vpop.f32.mrf.mxu3  ;;  %v6216_v25 = vadd.f32 %v6215_v41, %v6202_v38 }
 0x35a   : > { %v6230_v58 = vadd.f32 %v6229_v34, %v6216_v25 }
 0x35c   : > { %v6255_v36 = vpop.f32.mrf.mxu0  ;;  %v6244_v51 = vadd.f32 %v6243_v19, %v6230_v58 }
 0x35d   : > { %v6256_v7 = vadd.f32 %v6255_v36, %v6242_v46 }
 0x35f   : > { %v6269_v8 = vpop.f32.mrf.mxu1 }
 0x360   : > { %v6270_v3 = vadd.f32 %v6269_v8, %v6256_v7 }
 0x364   : > { %v6283_v5 = vpop.f32.mrf.mxu2  ;;  %v6257_v32 = vpop.f32.mrf.mxu0 }
 0x365   : > { %v6297_v56 = vpop.f32.mrf.mxu3  ;;  %v6258_v2 = vadd.f32 %v6257_v32, %v6244_v51  ;;  %v6284_v16 = vadd.f32 %v6283_v5, %v6270_v3 }
 0x367   : > { %v6271_v33 = vpop.f32.mrf.mxu1  ;;  %v6298_v42 = vadd.f32 %v6297_v56, %v6284_v16 }
 0x368   : > { %v6272_v4 = vadd.f32 %v6271_v33, %v6258_v2 }
 0x36c   : > { %v6285_v55 = vpop.f32.mrf.mxu2 }
 0x36d   : > { %v6299_v10 = vpop.f32.mrf.mxu3  ;;  %v6286_v53 = vadd.f32 %v6285_v55, %v6272_v4 }
 0x36f   : > { %v6300_v27 = vadd.f32 %v6299_v10, %v6286_v53 }
 0x37c   : > { %v6311_v1 = vpop.f32.mrf.mxu0 }
 0x37d   : > { %v6325_v29 = vpop.f32.mrf.mxu1  ;;  %v6312_v0 = vadd.f32 %v6311_v1, %v6298_v42 }
 0x37f   : > { %v6326_v39 = vadd.f32 %v6325_v29, %v6312_v0 }
 0x384   : > { %v6339_v54 = vpop.f32.mrf.mxu2  ;;  %v6313_v43 = vpop.f32.mrf.mxu0 }
 0x385   : > { %v6353_v17 = vpop.f32.mrf.mxu3  ;;  %v6327_v23 = vpop.f32.mrf.mxu1  ;;  %v6314_v44 = vadd.f32 %v6313_v43, %v6300_v27  ;;  %v6340_v35 = vadd.f32 %v6339_v54, %v6326_v39 }
 0x387   : > { %v6328_v31 = vadd.f32 %v6327_v23, %v6314_v44  ;;  %v6354_v49 = vadd.f32 %v6353_v17, %v6340_v35 }
 0x38c   : > { %v6341_v6 = vpop.f32.mrf.mxu2 }
 0x38d   : > { %v6355_v59 = vpop.f32.mrf.mxu3  ;;  %v6342_v60 = vadd.f32 %v6341_v6, %v6328_v31  ;;  %v10851_v31 = vld [vmem:[%s11086_s4] ss:$2 sm:$0x3] }
 0x38f   : > { %v6356_v12 = vadd.f32 %v6355_v59, %v6342_v60 }
 0x39c   : > { %v6367_v14 = vpop.f32.mrf.mxu0 }
 0x39d   : > { %v6381_v24 = vpop.f32.mrf.mxu1  ;;  %v6368_v30 = vadd.f32 %v6367_v14, %v6354_v49 }
 0x39f   : > { %v6382_v34 = vadd.f32 %v6381_v24, %v6368_v30 }
 0x3a4   : > { %v6395_v48 = vpop.f32.mrf.mxu2  ;;  %v6369_v62 = vpop.f32.mrf.mxu0 }
 0x3a5   : > { %v6409_v18 = vpop.f32.mrf.mxu3  ;;  %v6383_v47 = vpop.f32.mrf.mxu1  ;;  %v6370_v41 = vadd.f32 %v6369_v62, %v6356_v12  ;;  %v6396_v36 = vadd.f32 %v6395_v48, %v6382_v34 }
 0x3a7   : > { %v6384_v19 = vadd.f32 %v6383_v47, %v6370_v41  ;;  %v6410_v13 = vadd.f32 %v6409_v18, %v6396_v36  ;;  %v6553_v18 = vperm.slane %v10851_v31, 1 }
 0x3ac   : > { %v6397_v57 = vpop.f32.mrf.mxu2 }
 0x3ad   : > { %v6411_v61 = vpop.f32.mrf.mxu3  ;;  %v6398_v11 = vadd.f32 %v6397_v57, %v6384_v19  ;;  %v6603_v19 = vld [vmem:[%s13054_s24 + $0x10] sm:$0xff] (%p11018_p9) }
 0x3ae   : > { %6604 = vst [vmem:[%s6586_s25 + $0x20] sm:$0xff] (%p11018_p9), %v6603_v19 }
 0x3af   : > { %v6412_v22 = vadd.f32 %v6411_v61, %v6398_v11 }
 0x3bc   : > { %v6423_v63 = vpop.f32.mrf.mxu0 }
 0x3bd   : > { %v6437_v40 = vpop.f32.mrf.mxu1  ;;  %v6424_v52 = vadd.f32 %v6423_v63, %v6410_v13  ;;  %v6599_v63 = vld [vmem:[%s13054_s24] sm:$0xff] (%p11018_p9) }
 0x3be   : > { %6600 = vst [vmem:[%s6586_s25] sm:$0xff] (%p11018_p9), %v6599_v63 }
 0x3bf   : > { %v6438_v15 = vadd.f32 %v6437_v40, %v6424_v52 }
 0x3c4   : > { %v6451_v8 = vpop.f32.mrf.mxu2  ;;  %v6425_v5 = vpop.f32.mrf.mxu0 }
 0x3c5   : > { %v6465_v21 = vpop.f32.mrf.mxu3  ;;  %v6426_v56 = vadd.f32 %v6425_v5, %v6412_v22  ;;  %v6439_v37 = vpop.f32.mrf.mxu1  ;;  %v6452_v26 = vadd.f32 %v6451_v8, %v6438_v15 }
 0x3c7   : > { %v6440_v32 = vadd.f32 %v6439_v37, %v6426_v56  ;;  %v6466_v55 = vadd.f32 %v6465_v21, %v6452_v26 }
 0x3cc   : > { %v6453_v33 = vpop.f32.mrf.mxu2 }
 0x3cd   : > { %v6454_v9 = vadd.f32 %v6453_v33, %v6440_v32  ;;  %v6467_v45 = vpop.f32.mrf.mxu3 }
 0x3cf   : > { %v6468_v38 = vadd.f32 %v6467_v45, %v6454_v9 }
 0x3d1   : > { %v6479_v10 = vsel %vm6470_vm0, %v6468_v38, 0.0 }
 0x3d2   : > { %v6480_v1 = vadd.f32 %v6479_v10, %v6466_v55 }
 0x3d4   : > { %v6481_v20 = vrot.slane %v6480_v1, 4 }
 0x3d6   : > { %v6482_v25 = vadd.f32 %v6481_v20, %v6480_v1 }
 0x3d8   : > { %v6483_v50 = vrot.slane %v6482_v25, 2 }
 0x3da   : > { %v6484_v29 = vadd.f32 %v6483_v50, %v6482_v25 }
 0x3dc   : > { %v6485_v58 = vrot.slane %v6484_v29, 1 }
 0x3de   : > { %v6486_v46 = vadd.f32 %v6485_v58, %v6484_v29 }
 0x3e0   : > { %v6495_v54 = vmul.f32 %v12885_v28, %v6486_v46 }
 0x3e2   : > { %v6497_v51 = vsub.f32 %v6466_v55, %v6495_v54  ;;  %v6499_v17 = vsub.f32 %v6468_v38, %v6495_v54 }
 0x3e4   : > { %v6501_v7 = vmul.f32 %v6497_v51, %v6497_v51  ;;  %v6503_v2 = vmul.f32 %v6499_v17, %v6499_v17 }
 0x3e6   : > { %v6512_v43 = vsel %vm6470_vm0, %v6503_v2, 0.0 }
 0x3e7   : > { %v6513_v3 = vadd.f32 %v6512_v43, %v6501_v7 }
 0x3e9   : > { %v6514_v23 = vrot.slane %v6513_v3, 4 }
 0x3eb   : > { %v6515_v4 = vadd.f32 %v6514_v23, %v6513_v3 }
 0x3ed   : > { %v6516_v16 = vrot.slane %v6515_v4, 2 }
 0x3ef   : > { %v6517_v53 = vadd.f32 %v6516_v16, %v6515_v4 }
 0x3f1   : > { %v6518_v6 = vrot.slane %v6517_v53, 1 }
 0x3f3   : > { %v6519_v59 = vadd.f32 %v6518_v6, %v6517_v53 }
 0x3f5   : > { %v6521_v14 = vmul.f32 %v6519_v59, %v12885_v28  ;;  %v10852_v28 = vld [vmem:[%s11086_s4 + $0x1] ss:$2 sm:$0x3] }
 0x3f6   : > { %v6562_v49 = vperm.slane %v10852_v28, 1 }
 0x3f7   : > { %v6523_v42 = vadd.f32 1e-05, %v6521_v14 }
 0x3f9   : > { %10849 = vrsqrt.f32 %v6523_v42  ;;  %vm6540_vm6 = vweird.f32 %v6523_v42 }
 0x3ff   : > { %v10850_v27 = vpop.eup %10849 }
 0x400   : > { %v6535_v0 = vmul.f32 %v10850_v27, %v6523_v42  ;;  %vm6541_vm5 = vweird.f32 %v10850_v27 }
 0x401   : > { %vm6542_vm7 = vmor %vm6540_vm6, %vm6541_vm5 }
 0x402   : > { %v6536_v24 = vmul.f32 %v10850_v27, %v6535_v0 }
 0x404   : > { %v6537_v44 = vmul.f32 0.5, %v6536_v24 }
 0x406   : > { %v6538_v39 = vsub.f32 1.5, %v6537_v44 }
 0x408   : > { %v6539_v48 = vmul.f32 %v10850_v27, %v6538_v39 }
 0x40a   : > { %v6543_v35 = vsel %vm6542_vm7, %v10850_v27, %v6539_v48 }
 0x40b   : > { %v6548_v60 = vmul.f32 %v6543_v35, %v6497_v51  ;;  %v6550_v62 = vmul.f32 %v6543_v35, %v6499_v17 }
 0x40d   : > { %v6557_v47 = vmul.f32 %v6553_v18, %v6548_v60  ;;  %v6559_v12 = vmul.f32 %v6553_v18, %v6550_v62 }
 0x40f   : > { %v6566_v30 = vadd.f32 %v6562_v49, %v6557_v47  ;;  %v6568_v41 = vadd.f32 %v6562_v49, %v6559_v12 }
 0x410   : > { %6583 = sbr.rel (!%p11018_p9) target bundleno = 1053 (0x41d), region = 44 }
 0x411   : > { %v6570_v57 = vmax.f32 %v6566_v30, 0.0  ;;  %v6572_v61 = vmax.f32 %v6568_v41, 0.0 }
 0x413   : > { %6574 = vst [vmem:[%s13054_s24 + $0x8] sm:$0xff] %v6570_v57 }
 0x414   : > { %6576 = vst [vmem:[%s13054_s24 + $0x18] sm:$0xf] %v6572_v61 }
 0x41a   : > { %v6601_v34 = vld [vmem:[%s13054_s24 + $0x8] sm:$0xff] }
 0x41b   : > { %v6605_v36 = vld [vmem:[%s13054_s24 + $0x18] sm:$0xff]  ;;  %6602 = vst [vmem:[%s6586_s25 + $0x8] sm:$0xff] %v6601_v34 }
 0x41c   : > { %6606 = vst [vmem:[%s6586_s25 + $0x28] sm:$0xff] %v6605_v36 }
 0x41d PF: > { %p16_p7 = scmp.ge.s32.totalorder %s10999_s17, 4   ;;  %s13522_s12 = smov %s10943_s13 }
 0x41e   : > { %s13523_s13 = smov %s10947_s14  ;;  %s13524_s14 = smov %s11009_s20 }
 0x41f   : > { %s13525_s15 = smov %s10999_s17  ;;  %18 = sbr.rel (!%p16_p7) target bundleno = 5 (0x5), region = 109 }
 0x424   :  { %6622 = vsyncpa [#allocation3], 1 }
 0x425   :  { %6624 = vsyncpa [#allocation3 + $0x1], 1 }
 0x426   :  { %6625 = vsyncpa [#allocation5], 1 }
 0x427   :  { %6627 = vsyncpa [#allocation5 + $0x1], 1 }

</bundles_post_ra>
